<compile_context>
chip_gen: v7x
topology: tpu7x:2x2x1
jax: 0.10.0
libtpu: 0.0.40
codegen_flags: <defaults>
</compile_context>

<pallas_src>
import numpy as np
import jax
import jax.numpy as jnp
from jax.experimental import pallas as pl
from jax.experimental.pallas import tpu as pltpu

# --- module hyper-parameters (match PyTorch defaults) ---
D = 8            # number of hidden linears
W = 256          # hidden width
INPUT_CH = 3
INPUT_PAD = 8    # coordinates padded 3 -> 8 lanes (zero cols / zero weight rows)
OUTPUT_CH = 8
MULTIRES = 10
EMB_DIM = INPUT_CH * (1 + 2 * MULTIRES)   # 63
FREQ_DIM = INPUT_CH * MULTIRES            # 30 sin (and 30 cos) columns
FREQ_PAD = 32                             # 30 padded to 32 lanes (zero columns)
SKIP = D // 2                             # concat of embedding after layer 4
TN_DEFAULT = 2048                         # rows per kernel tile


# ----------------------------- Pallas kernel -----------------------------
def _codefield_kernel(x_ref, mf_ref,
                      w0i, w0s, w0c, b0,
                      w1, b1, w2, b2, w3, b3, w4, b4,
                      w5i, w5s, w5c, w5h, b5,
                      w6, b6, w7, b7,
                      wo, bo,
                      out_ref):
    x = x_ref[...]                                    # (tn, 8) f32, cols 3..7 = 0
    mf = mf_ref[...]                                  # (3, 32) f32 frequency table

    # Phases for the 30 frequency-scaled embedding columns (+2 zero pad lanes).
    # Exact f32 on the VPU: sin/cos of arguments up to 512*x are very sensitive
    # to argument rounding, so no bf16 here.
    zf = (x[:, 0:1] * mf[0:1, :]
          + x[:, 1:2] * mf[1:2, :]
          + x[:, 2:3] * mf[2:3, :])                   # (tn, 32) f32

    # sin/cos expand into VPU range-reduction + polynomial, so only evaluate
    # the 30 needed columns (vs 64 each in the masked variant).
    s = jnp.sin(zf).astype(jnp.bfloat16)              # (tn, 32)
    c = jnp.cos(zf).astype(jnp.bfloat16)              # (tn, 32); pad cols hit zero W rows
    xb = x.astype(jnp.bfloat16)                       # (tn, 8)

    def mm(a, w_ref):
        # bf16 operands on the MXU, f32 accumulation.
        return jnp.dot(a, w_ref[...], preferred_element_type=jnp.float32)

    def epi(y, b_ref):
        # bf16 bias + ReLU epilogue (2x-packed on v6e/v7x VALU; harmless on v5e).
        return jnp.maximum(y.astype(jnp.bfloat16) + b_ref[...], 0.0)

    # layer 0: embedding [id | sin | cos] -> 256, split into three small matmuls
    h = epi(mm(xb, w0i) + mm(s, w0s) + mm(c, w0c), b0)
    h = epi(mm(h, w1), b1)                             # layer 1
    h = epi(mm(h, w2), b2)                             # layer 2
    h = epi(mm(h, w3), b3)                             # layer 3
    h = epi(mm(h, w4), b4)                             # layer 4 (skip concat follows)
    # skip: cat([x_emb, h], -1) @ W5 == x_emb @ W5[:63] + h @ W5[63:]
    h = epi(mm(xb, w5i) + mm(s, w5s) + mm(c, w5c) + mm(h, w5h), b5)
    h = epi(mm(h, w6), b6)                             # layer 6
    h = epi(mm(h, w7), b7)                             # layer 7
    out = mm(h, wo) + bo[...]                          # final epilogue stays f32
    out_ref[...] = out.astype(out_ref.dtype)           # (tn, 8)


# ----------------------------- glue / setup ------------------------------
def _freq_table():
    """(3, 32) f32: column 3*k + c holds 2^k for channel c (2 zero pad cols)."""
    mf = np.zeros((INPUT_CH, FREQ_PAD), np.float32)
    for k in range(MULTIRES):
        for ch in range(INPUT_CH):
            mf[ch, INPUT_CH * k + ch] = float(2.0 ** k)
    return jnp.asarray(mf)


def _split_embed_weight(w_emb):
    """Split a (63, out) weight block whose rows follow the PyTorch Embedder
    column order [x, sin(1x), cos(1x), sin(2x), cos(2x), ...] into the
    reordered / zero-padded (id(8), sin(32), cos(32)) row blocks matching the
    kernel's [x | sin | cos] phase layout."""
    out = w_emb.shape[1]
    w_id = jnp.zeros((INPUT_PAD, out), w_emb.dtype).at[:INPUT_CH].set(
        w_emb[:INPUT_CH])
    sin_rows, cos_rows = [], []
    for k in range(MULTIRES):
        base = INPUT_CH + 2 * INPUT_CH * k
        sin_rows.append(w_emb[base:base + INPUT_CH])
        cos_rows.append(w_emb[base + INPUT_CH:base + 2 * INPUT_CH])
    pad = ((0, FREQ_PAD - FREQ_DIM), (0, 0))
    w_sin = jnp.pad(jnp.concatenate(sin_rows, axis=0), pad)
    w_cos = jnp.pad(jnp.concatenate(cos_rows, axis=0), pad)
    return w_id, w_sin, w_cos


def embed(x):
    """NeRF positional embedding (reference path): [x, sin(2^k x), cos(2^k x)]."""
    freqs = 2.0 ** jnp.linspace(0.0, MULTIRES - 1, MULTIRES)
    parts = [x]
    for k in range(MULTIRES):
        parts.append(jnp.sin(x * freqs[k]))
        parts.append(jnp.cos(x * freqs[k]))
    return jnp.concatenate(parts, axis=-1)


def init_params(key):
    """Deterministic synthetic init, PyTorch-Linear-style uniform(-1/sqrt(fan_in))."""
    def linear(k, fan_in, fan_out):
        kw, kb = jax.random.split(k)
        bound = fan_in ** -0.5
        w = jax.random.uniform(kw, (fan_in, fan_out), jnp.float32, -bound, bound)
        b = jax.random.uniform(kb, (1, fan_out), jnp.float32, -bound, bound)
        return w, b

    keys = jax.random.split(key, D + 1)
    in_dims = [EMB_DIM] + [W] * (D - 1)
    in_dims[SKIP + 1] = W + EMB_DIM          # wide layer after the skip concat
    ws, bs = [], []
    for li in range(D):
        w, b = linear(keys[li], in_dims[li], W)
        ws.append(w)
        bs.append(b)
    wo, bo = linear(keys[D], W, OUTPUT_CH)
    return ws, bs, wo, bo


def code_field_forward(x, params, tn=TN_DEFAULT):
    ws, bs, wo, bo = params
    lead = x.shape[:-1]
    xf = x.reshape(-1, INPUT_CH).astype(jnp.float32)
    n = xf.shape[0]
    # Keep the grid at >= 2 steps when possible (so ("parallel",) actually
    # shards across v7x's two TensorCores) without over-padding tiny inputs.
    if n < 2 * tn:
        tn = max(128, 128 * pl.cdiv(pl.cdiv(n, 2), 128))
    n_pad = pl.cdiv(n, tn) * tn
    xpad = jnp.pad(xf, ((0, n_pad - n), (0, INPUT_PAD - INPUT_CH)))

    mf = _freq_table()

    def bf(a):
        return a.astype(jnp.bfloat16)

    w0i, w0s, w0c = _split_embed_weight(ws[0])
    w5 = ws[SKIP + 1]                                         # (319, 256)
    w5i, w5s, w5c = _split_embed_weight(w5[:EMB_DIM])
    w5h = w5[EMB_DIM:]                                        # (256, 256)

    # Weights + hidden biases in bf16 (MXU operands / bf16 epilogues); the
    # final bias stays f32 (f32 output epilogue).
    const_args = [
        mf,
        bf(w0i), bf(w0s), bf(w0c), bf(bs[0]),
        bf(ws[1]), bf(bs[1]), bf(ws[2]), bf(bs[2]),
        bf(ws[3]), bf(bs[3]), bf(ws[4]), bf(bs[4]),
        bf(w5i), bf(w5s), bf(w5c), bf(w5h), bf(bs[SKIP + 1]),
        bf(ws[6]), bf(bs[6]), bf(ws[7]), bf(bs[7]),
        bf(wo), bo,
    ]

    def full_spec(a):
        return pl.BlockSpec(a.shape, lambda i: (0, 0))

    in_specs = ([pl.BlockSpec((tn, INPUT_PAD), lambda i: (i, 0))]
                + [full_spec(a) for a in const_args])

    k_emb = INPUT_PAD + 2 * FREQ_PAD                          # 72 effective K
    flops_per_row = 2 * (k_emb * W + 4 * W * W + (k_emb + W) * W
                         + 2 * W * W + W * OUTPUT_CH)
    bytes_accessed = (xpad.size * 4 + n_pad * OUTPUT_CH * 4
                      + sum(int(a.size) * a.dtype.itemsize for a in const_args))
    cost = pl.CostEstimate(flops=int(flops_per_row * n_pad),
                           transcendentals=int(2 * FREQ_PAD * n_pad),
                           bytes_accessed=int(bytes_accessed))

    out = pl.pallas_call(
        _codefield_kernel,
        out_shape=jax.ShapeDtypeStruct((n_pad, OUTPUT_CH), jnp.float32),
        grid=(n_pad // tn,),
        in_specs=in_specs,
        out_specs=pl.BlockSpec((tn, OUTPUT_CH), lambda i: (i, 0)),
        compiler_params=pltpu.CompilerParams(
            dimension_semantics=("parallel",),
            vmem_limit_bytes=32 * 1024 * 1024),
        cost_estimate=cost,
    )(xpad, *const_args)
    return out[:n].reshape(lead + (OUTPUT_CH,))


def code_field_ref(x, params):
    """Pure-JAX f32 reference mirroring the PyTorch forward exactly."""
    ws, bs, wo, bo = params
    xf = x.reshape(-1, INPUT_CH).astype(jnp.float32)
    xe = embed(xf)
    h = xe
    for i in range(D):
        h = jnp.maximum(
            jnp.dot(h, ws[i], precision=jax.lax.Precision.HIGHEST) + bs[i], 0.0)
        if i == SKIP:
            h = jnp.concatenate([xe, h], axis=-1)
    out = jnp.dot(h, wo, precision=jax.lax.Precision.HIGHEST) + bo
    return out.reshape(x.shape[:-1] + (OUTPUT_CH,))


if __name__ == "__main__":
    key = jax.random.PRNGKey(0)
    kp, kx = jax.random.split(key)
    params = init_params(kp)

    # small example input: batch=2, 100 points each, 3 coords
    # (exercises row padding and a >= 2-step grid)
    x = jax.random.uniform(kx, (2, 100, 3), jnp.float32, -1.0, 1.0)

    y = code_field_forward(x, params)
    y = jax.block_until_ready(y)
    assert y.shape == (2, 100, OUTPUT_CH) and y.dtype == jnp.float32

    y_ref = code_field_ref(x, params)
    max_err = float(jnp.max(jnp.abs(y - y_ref)))
    # tolerance sized for bf16 matmul operands + bf16 hidden-layer epilogues
    # with f32 MXU accumulation
    assert max_err < 2e-2, f"mismatch vs f32 reference: {max_err}"

    print("KERNEL_OK")
</pallas_src>

<mosaic_0001>
module attributes {stable_mosaic.version = 11 : i64} {
  func.func @_codefield_kernel(%arg0: i32, %arg1: memref<128x8xf32, #tpu.memory_space<vmem>>, %arg2: memref<3x32xf32, #tpu.memory_space<vmem>>, %arg3: memref<8x256xbf16, #tpu.memory_space<vmem>>, %arg4: memref<32x256xbf16, #tpu.memory_space<vmem>>, %arg5: memref<32x256xbf16, #tpu.memory_space<vmem>>, %arg6: memref<1x256xbf16, #tpu.memory_space<vmem>>, %arg7: memref<256x256xbf16, #tpu.memory_space<vmem>>, %arg8: memref<1x256xbf16, #tpu.memory_space<vmem>>, %arg9: memref<256x256xbf16, #tpu.memory_space<vmem>>, %arg10: memref<1x256xbf16, #tpu.memory_space<vmem>>, %arg11: memref<256x256xbf16, #tpu.memory_space<vmem>>, %arg12: memref<1x256xbf16, #tpu.memory_space<vmem>>, %arg13: memref<256x256xbf16, #tpu.memory_space<vmem>>, %arg14: memref<1x256xbf16, #tpu.memory_space<vmem>>, %arg15: memref<8x256xbf16, #tpu.memory_space<vmem>>, %arg16: memref<32x256xbf16, #tpu.memory_space<vmem>>, %arg17: memref<32x256xbf16, #tpu.memory_space<vmem>>, %arg18: memref<256x256xbf16, #tpu.memory_space<vmem>>, %arg19: memref<1x256xbf16, #tpu.memory_space<vmem>>, %arg20: memref<256x256xbf16, #tpu.memory_space<vmem>>, %arg21: memref<1x256xbf16, #tpu.memory_space<vmem>>, %arg22: memref<256x256xbf16, #tpu.memory_space<vmem>>, %arg23: memref<1x256xbf16, #tpu.memory_space<vmem>>, %arg24: memref<256x8xbf16, #tpu.memory_space<vmem>>, %arg25: memref<1x8xf32, #tpu.memory_space<vmem>>, %arg26: memref<128x8xf32, #tpu.memory_space<vmem>>) attributes {dimension_semantics = [#tpu.dimension_semantics<parallel>], iteration_bounds = array<i64: 2>, scalar_prefetch = 0 : i64, scratch_operands = 0 : i64, tpu.core_type = #tpu.core_type<tc>, window_params = [{transform_indices = @transform_0, window_bounds = array<i64: 128, 8>}, {pipeline_mode = #tpu.pipeline_mode<synchronous>, transform_indices = @transform_1, window_bounds = array<i64: 3, 32>}, {pipeline_mode = #tpu.pipeline_mode<synchronous>, transform_indices = @transform_2, window_bounds = array<i64: 8, 256>}, {pipeline_mode = #tpu.pipeline_mode<synchronous>, transform_indices = @transform_3, window_bounds = array<i64: 32, 256>}, {pipeline_mode = #tpu.pipeline_mode<synchronous>, transform_indices = @transform_4, window_bounds = array<i64: 32, 256>}, {pipeline_mode = #tpu.pipeline_mode<synchronous>, transform_indices = @transform_5, window_bounds = array<i64: 1, 256>}, {pipeline_mode = #tpu.pipeline_mode<synchronous>, transform_indices = @transform_6, window_bounds = array<i64: 256, 256>}, {pipeline_mode = #tpu.pipeline_mode<synchronous>, transform_indices = @transform_7, window_bounds = array<i64: 1, 256>}, {pipeline_mode = #tpu.pipeline_mode<synchronous>, transform_indices = @transform_8, window_bounds = array<i64: 256, 256>}, {pipeline_mode = #tpu.pipeline_mode<synchronous>, transform_indices = @transform_9, window_bounds = array<i64: 1, 256>}, {pipeline_mode = #tpu.pipeline_mode<synchronous>, transform_indices = @transform_10, window_bounds = array<i64: 256, 256>}, {pipeline_mode = #tpu.pipeline_mode<synchronous>, transform_indices = @transform_11, window_bounds = array<i64: 1, 256>}, {pipeline_mode = #tpu.pipeline_mode<synchronous>, transform_indices = @transform_12, window_bounds = array<i64: 256, 256>}, {pipeline_mode = #tpu.pipeline_mode<synchronous>, transform_indices = @transform_13, window_bounds = array<i64: 1, 256>}, {pipeline_mode = #tpu.pipeline_mode<synchronous>, transform_indices = @transform_14, window_bounds = array<i64: 8, 256>}, {pipeline_mode = #tpu.pipeline_mode<synchronous>, transform_indices = @transform_15, window_bounds = array<i64: 32, 256>}, {pipeline_mode = #tpu.pipeline_mode<synchronous>, transform_indices = @transform_16, window_bounds = array<i64: 32, 256>}, {pipeline_mode = #tpu.pipeline_mode<synchronous>, transform_indices = @transform_17, window_bounds = array<i64: 256, 256>}, {pipeline_mode = #tpu.pipeline_mode<synchronous>, transform_indices = @transform_18, window_bounds = array<i64: 1, 256>}, {pipeline_mode = #tpu.pipeline_mode<synchronous>, transform_indices = @transform_19, window_bounds = array<i64: 256, 256>}, {pipeline_mode = #tpu.pipeline_mode<synchronous>, transform_indices = @transform_20, window_bounds = array<i64: 1, 256>}, {pipeline_mode = #tpu.pipeline_mode<synchronous>, transform_indices = @transform_21, window_bounds = array<i64: 256, 256>}, {pipeline_mode = #tpu.pipeline_mode<synchronous>, transform_indices = @transform_22, window_bounds = array<i64: 1, 256>}, {pipeline_mode = #tpu.pipeline_mode<synchronous>, transform_indices = @transform_23, window_bounds = array<i64: 256, 8>}, {pipeline_mode = #tpu.pipeline_mode<synchronous>, transform_indices = @transform_24, window_bounds = array<i64: 1, 8>}, {transform_indices = @transform_25, window_bounds = array<i64: 128, 8>}]} {
    %c0 = arith.constant 0 : index
    %c0_0 = arith.constant 0 : index
    %0 = vector.load %arg1[%c0, %c0_0] : memref<128x8xf32, #tpu.memory_space<vmem>>, vector<128x8xf32>
    %c0_1 = arith.constant 0 : index
    %c0_2 = arith.constant 0 : index
    %1 = vector.load %arg2[%c0_1, %c0_2] : memref<3x32xf32, #tpu.memory_space<vmem>>, vector<3x32xf32>
    %2 = vector.extract_strided_slice %0 {offsets = [0, 0], sizes = [128, 1], strides = [1, 1]} : vector<128x8xf32> to vector<128x1xf32>
    %3 = vector.extract_strided_slice %1 {offsets = [0, 0], sizes = [1, 32], strides = [1, 1]} : vector<3x32xf32> to vector<1x32xf32>
    %4 = vector.broadcast %2 : vector<128x1xf32> to vector<128x32xf32>
    %5 = vector.broadcast %3 : vector<1x32xf32> to vector<128x32xf32>
    %6 = arith.mulf %4, %5 : vector<128x32xf32>
    %7 = vector.extract_strided_slice %0 {offsets = [0, 1], sizes = [128, 1], strides = [1, 1]} : vector<128x8xf32> to vector<128x1xf32>
    %8 = vector.extract_strided_slice %1 {offsets = [1, 0], sizes = [1, 32], strides = [1, 1]} : vector<3x32xf32> to vector<1x32xf32>
    %9 = vector.broadcast %7 : vector<128x1xf32> to vector<128x32xf32>
    %10 = vector.broadcast %8 : vector<1x32xf32> to vector<128x32xf32>
    %11 = arith.mulf %9, %10 : vector<128x32xf32>
    %12 = arith.addf %6, %11 : vector<128x32xf32>
    %13 = vector.extract_strided_slice %0 {offsets = [0, 2], sizes = [128, 1], strides = [1, 1]} : vector<128x8xf32> to vector<128x1xf32>
    %14 = vector.extract_strided_slice %1 {offsets = [2, 0], sizes = [1, 32], strides = [1, 1]} : vector<3x32xf32> to vector<1x32xf32>
    %15 = vector.broadcast %13 : vector<128x1xf32> to vector<128x32xf32>
    %16 = vector.broadcast %14 : vector<1x32xf32> to vector<128x32xf32>
    %17 = arith.mulf %15, %16 : vector<128x32xf32>
    %18 = arith.addf %12, %17 : vector<128x32xf32>
    %19 = math.sin %18 : vector<128x32xf32>
    %20 = arith.truncf %19 : vector<128x32xf32> to vector<128x32xbf16>
    %21 = math.cos %18 : vector<128x32xf32>
    %22 = arith.truncf %21 : vector<128x32xf32> to vector<128x32xbf16>
    %23 = arith.truncf %0 : vector<128x8xf32> to vector<128x8xbf16>
    %c0_3 = arith.constant 0 : index
    %c0_4 = arith.constant 0 : index
    %24 = vector.load %arg3[%c0_3, %c0_4] : memref<8x256xbf16, #tpu.memory_space<vmem>>, vector<8x256xbf16>
    %cst = arith.constant dense<0.000000e+00> : vector<128x256xf32>
    %25 = tpu.matmul %23, %24, %cst {dimension_numbers = #tpu.dot_dimension_numbers<[1], [0], [0], [1], [0, 0, 1, 1], [], []>} : vector<128x8xbf16>, vector<8x256xbf16>, vector<128x256xf32> -> vector<128x256xf32>
    %c0_5 = arith.constant 0 : index
    %c0_6 = arith.constant 0 : index
    %26 = vector.load %arg4[%c0_5, %c0_6] : memref<32x256xbf16, #tpu.memory_space<vmem>>, vector<32x256xbf16>
    %cst_7 = arith.constant dense<0.000000e+00> : vector<128x256xf32>
    %27 = tpu.matmul %20, %26, %cst_7 {dimension_numbers = #tpu.dot_dimension_numbers<[1], [0], [0], [1], [0, 0, 1, 1], [], []>} : vector<128x32xbf16>, vector<32x256xbf16>, vector<128x256xf32> -> vector<128x256xf32>
    %28 = arith.addf %25, %27 : vector<128x256xf32>
    %c0_8 = arith.constant 0 : index
    %c0_9 = arith.constant 0 : index
    %29 = vector.load %arg5[%c0_8, %c0_9] : memref<32x256xbf16, #tpu.memory_space<vmem>>, vector<32x256xbf16>
    %cst_10 = arith.constant dense<0.000000e+00> : vector<128x256xf32>
    %30 = tpu.matmul %22, %29, %cst_10 {dimension_numbers = #tpu.dot_dimension_numbers<[1], [0], [0], [1], [0, 0, 1, 1], [], []>} : vector<128x32xbf16>, vector<32x256xbf16>, vector<128x256xf32> -> vector<128x256xf32>
    %31 = arith.addf %28, %30 : vector<128x256xf32>
    %32 = arith.truncf %31 : vector<128x256xf32> to vector<128x256xbf16>
    %c0_11 = arith.constant 0 : index
    %c0_12 = arith.constant 0 : index
    %33 = vector.load %arg6[%c0_11, %c0_12] : memref<1x256xbf16, #tpu.memory_space<vmem>>, vector<1x256xbf16>
    %34 = vector.broadcast %33 : vector<1x256xbf16> to vector<128x256xbf16>
    %35 = arith.addf %32, %34 : vector<128x256xbf16>
    %cst_13 = arith.constant 0.000000e+00 : bf16
    %36 = vector.broadcast %cst_13 : bf16 to vector<128x256xbf16>
    %37 = arith.maximumf %35, %36 : vector<128x256xbf16>
    %c0_14 = arith.constant 0 : index
    %c0_15 = arith.constant 0 : index
    %38 = vector.load %arg7[%c0_14, %c0_15] : memref<256x256xbf16, #tpu.memory_space<vmem>>, vector<256x256xbf16>
    %cst_16 = arith.constant dense<0.000000e+00> : vector<128x256xf32>
    %39 = tpu.matmul %37, %38, %cst_16 {dimension_numbers = #tpu.dot_dimension_numbers<[1], [0], [0], [1], [0, 0, 1, 1], [], []>} : vector<128x256xbf16>, vector<256x256xbf16>, vector<128x256xf32> -> vector<128x256xf32>
    %40 = arith.truncf %39 : vector<128x256xf32> to vector<128x256xbf16>
    %c0_17 = arith.constant 0 : index
    %c0_18 = arith.constant 0 : index
    %41 = vector.load %arg8[%c0_17, %c0_18] : memref<1x256xbf16, #tpu.memory_space<vmem>>, vector<1x256xbf16>
    %42 = vector.broadcast %41 : vector<1x256xbf16> to vector<128x256xbf16>
    %43 = arith.addf %40, %42 : vector<128x256xbf16>
    %cst_19 = arith.constant 0.000000e+00 : bf16
    %44 = vector.broadcast %cst_19 : bf16 to vector<128x256xbf16>
    %45 = arith.maximumf %43, %44 : vector<128x256xbf16>
    %c0_20 = arith.constant 0 : index
    %c0_21 = arith.constant 0 : index
    %46 = vector.load %arg9[%c0_20, %c0_21] : memref<256x256xbf16, #tpu.memory_space<vmem>>, vector<256x256xbf16>
    %cst_22 = arith.constant dense<0.000000e+00> : vector<128x256xf32>
    %47 = tpu.matmul %45, %46, %cst_22 {dimension_numbers = #tpu.dot_dimension_numbers<[1], [0], [0], [1], [0, 0, 1, 1], [], []>} : vector<128x256xbf16>, vector<256x256xbf16>, vector<128x256xf32> -> vector<128x256xf32>
    %48 = arith.truncf %47 : vector<128x256xf32> to vector<128x256xbf16>
    %c0_23 = arith.constant 0 : index
    %c0_24 = arith.constant 0 : index
    %49 = vector.load %arg10[%c0_23, %c0_24] : memref<1x256xbf16, #tpu.memory_space<vmem>>, vector<1x256xbf16>
    %50 = vector.broadcast %49 : vector<1x256xbf16> to vector<128x256xbf16>
    %51 = arith.addf %48, %50 : vector<128x256xbf16>
    %cst_25 = arith.constant 0.000000e+00 : bf16
    %52 = vector.broadcast %cst_25 : bf16 to vector<128x256xbf16>
    %53 = arith.maximumf %51, %52 : vector<128x256xbf16>
    %c0_26 = arith.constant 0 : index
    %c0_27 = arith.constant 0 : index
    %54 = vector.load %arg11[%c0_26, %c0_27] : memref<256x256xbf16, #tpu.memory_space<vmem>>, vector<256x256xbf16>
    %cst_28 = arith.constant dense<0.000000e+00> : vector<128x256xf32>
    %55 = tpu.matmul %53, %54, %cst_28 {dimension_numbers = #tpu.dot_dimension_numbers<[1], [0], [0], [1], [0, 0, 1, 1], [], []>} : vector<128x256xbf16>, vector<256x256xbf16>, vector<128x256xf32> -> vector<128x256xf32>
    %56 = arith.truncf %55 : vector<128x256xf32> to vector<128x256xbf16>
    %c0_29 = arith.constant 0 : index
    %c0_30 = arith.constant 0 : index
    %57 = vector.load %arg12[%c0_29, %c0_30] : memref<1x256xbf16, #tpu.memory_space<vmem>>, vector<1x256xbf16>
    %58 = vector.broadcast %57 : vector<1x256xbf16> to vector<128x256xbf16>
    %59 = arith.addf %56, %58 : vector<128x256xbf16>
    %cst_31 = arith.constant 0.000000e+00 : bf16
    %60 = vector.broadcast %cst_31 : bf16 to vector<128x256xbf16>
    %61 = arith.maximumf %59, %60 : vector<128x256xbf16>
    %c0_32 = arith.constant 0 : index
    %c0_33 = arith.constant 0 : index
    %62 = vector.load %arg13[%c0_32, %c0_33] : memref<256x256xbf16, #tpu.memory_space<vmem>>, vector<256x256xbf16>
    %cst_34 = arith.constant dense<0.000000e+00> : vector<128x256xf32>
    %63 = tpu.matmul %61, %62, %cst_34 {dimension_numbers = #tpu.dot_dimension_numbers<[1], [0], [0], [1], [0, 0, 1, 1], [], []>} : vector<128x256xbf16>, vector<256x256xbf16>, vector<128x256xf32> -> vector<128x256xf32>
    %64 = arith.truncf %63 : vector<128x256xf32> to vector<128x256xbf16>
    %c0_35 = arith.constant 0 : index
    %c0_36 = arith.constant 0 : index
    %65 = vector.load %arg14[%c0_35, %c0_36] : memref<1x256xbf16, #tpu.memory_space<vmem>>, vector<1x256xbf16>
    %66 = vector.broadcast %65 : vector<1x256xbf16> to vector<128x256xbf16>
    %67 = arith.addf %64, %66 : vector<128x256xbf16>
    %cst_37 = arith.constant 0.000000e+00 : bf16
    %68 = vector.broadcast %cst_37 : bf16 to vector<128x256xbf16>
    %69 = arith.maximumf %67, %68 : vector<128x256xbf16>
    %c0_38 = arith.constant 0 : index
    %c0_39 = arith.constant 0 : index
    %70 = vector.load %arg15[%c0_38, %c0_39] : memref<8x256xbf16, #tpu.memory_space<vmem>>, vector<8x256xbf16>
    %cst_40 = arith.constant dense<0.000000e+00> : vector<128x256xf32>
    %71 = tpu.matmul %23, %70, %cst_40 {dimension_numbers = #tpu.dot_dimension_numbers<[1], [0], [0], [1], [0, 0, 1, 1], [], []>} : vector<128x8xbf16>, vector<8x256xbf16>, vector<128x256xf32> -> vector<128x256xf32>
    %c0_41 = arith.constant 0 : index
    %c0_42 = arith.constant 0 : index
    %72 = vector.load %arg16[%c0_41, %c0_42] : memref<32x256xbf16, #tpu.memory_space<vmem>>, vector<32x256xbf16>
    %cst_43 = arith.constant dense<0.000000e+00> : vector<128x256xf32>
    %73 = tpu.matmul %20, %72, %cst_43 {dimension_numbers = #tpu.dot_dimension_numbers<[1], [0], [0], [1], [0, 0, 1, 1], [], []>} : vector<128x32xbf16>, vector<32x256xbf16>, vector<128x256xf32> -> vector<128x256xf32>
    %74 = arith.addf %71, %73 : vector<128x256xf32>
    %c0_44 = arith.constant 0 : index
    %c0_45 = arith.constant 0 : index
    %75 = vector.load %arg17[%c0_44, %c0_45] : memref<32x256xbf16, #tpu.memory_space<vmem>>, vector<32x256xbf16>
    %cst_46 = arith.constant dense<0.000000e+00> : vector<128x256xf32>
    %76 = tpu.matmul %22, %75, %cst_46 {dimension_numbers = #tpu.dot_dimension_numbers<[1], [0], [0], [1], [0, 0, 1, 1], [], []>} : vector<128x32xbf16>, vector<32x256xbf16>, vector<128x256xf32> -> vector<128x256xf32>
    %77 = arith.addf %74, %76 : vector<128x256xf32>
    %c0_47 = arith.constant 0 : index
    %c0_48 = arith.constant 0 : index
    %78 = vector.load %arg18[%c0_47, %c0_48] : memref<256x256xbf16, #tpu.memory_space<vmem>>, vector<256x256xbf16>
    %cst_49 = arith.constant dense<0.000000e+00> : vector<128x256xf32>
    %79 = tpu.matmul %69, %78, %cst_49 {dimension_numbers = #tpu.dot_dimension_numbers<[1], [0], [0], [1], [0, 0, 1, 1], [], []>} : vector<128x256xbf16>, vector<256x256xbf16>, vector<128x256xf32> -> vector<128x256xf32>
    %80 = arith.addf %77, %79 : vector<128x256xf32>
    %81 = arith.truncf %80 : vector<128x256xf32> to vector<128x256xbf16>
    %c0_50 = arith.constant 0 : index
    %c0_51 = arith.constant 0 : index
    %82 = vector.load %arg19[%c0_50, %c0_51] : memref<1x256xbf16, #tpu.memory_space<vmem>>, vector<1x256xbf16>
    %83 = vector.broadcast %82 : vector<1x256xbf16> to vector<128x256xbf16>
    %84 = arith.addf %81, %83 : vector<128x256xbf16>
    %cst_52 = arith.constant 0.000000e+00 : bf16
    %85 = vector.broadcast %cst_52 : bf16 to vector<128x256xbf16>
    %86 = arith.maximumf %84, %85 : vector<128x256xbf16>
    %c0_53 = arith.constant 0 : index
    %c0_54 = arith.constant 0 : index
    %87 = vector.load %arg20[%c0_53, %c0_54] : memref<256x256xbf16, #tpu.memory_space<vmem>>, vector<256x256xbf16>
    %cst_55 = arith.constant dense<0.000000e+00> : vector<128x256xf32>
    %88 = tpu.matmul %86, %87, %cst_55 {dimension_numbers = #tpu.dot_dimension_numbers<[1], [0], [0], [1], [0, 0, 1, 1], [], []>} : vector<128x256xbf16>, vector<256x256xbf16>, vector<128x256xf32> -> vector<128x256xf32>
    %89 = arith.truncf %88 : vector<128x256xf32> to vector<128x256xbf16>
    %c0_56 = arith.constant 0 : index
    %c0_57 = arith.constant 0 : index
    %90 = vector.load %arg21[%c0_56, %c0_57] : memref<1x256xbf16, #tpu.memory_space<vmem>>, vector<1x256xbf16>
    %91 = vector.broadcast %90 : vector<1x256xbf16> to vector<128x256xbf16>
    %92 = arith.addf %89, %91 : vector<128x256xbf16>
    %cst_58 = arith.constant 0.000000e+00 : bf16
    %93 = vector.broadcast %cst_58 : bf16 to vector<128x256xbf16>
    %94 = arith.maximumf %92, %93 : vector<128x256xbf16>
    %c0_59 = arith.constant 0 : index
    %c0_60 = arith.constant 0 : index
    %95 = vector.load %arg22[%c0_59, %c0_60] : memref<256x256xbf16, #tpu.memory_space<vmem>>, vector<256x256xbf16>
    %cst_61 = arith.constant dense<0.000000e+00> : vector<128x256xf32>
    %96 = tpu.matmul %94, %95, %cst_61 {dimension_numbers = #tpu.dot_dimension_numbers<[1], [0], [0], [1], [0, 0, 1, 1], [], []>} : vector<128x256xbf16>, vector<256x256xbf16>, vector<128x256xf32> -> vector<128x256xf32>
    %97 = arith.truncf %96 : vector<128x256xf32> to vector<128x256xbf16>
    %c0_62 = arith.constant 0 : index
    %c0_63 = arith.constant 0 : index
    %98 = vector.load %arg23[%c0_62, %c0_63] : memref<1x256xbf16, #tpu.memory_space<vmem>>, vector<1x256xbf16>
    %99 = vector.broadcast %98 : vector<1x256xbf16> to vector<128x256xbf16>
    %100 = arith.addf %97, %99 : vector<128x256xbf16>
    %cst_64 = arith.constant 0.000000e+00 : bf16
    %101 = vector.broadcast %cst_64 : bf16 to vector<128x256xbf16>
    %102 = arith.maximumf %100, %101 : vector<128x256xbf16>
    %c0_65 = arith.constant 0 : index
    %c0_66 = arith.constant 0 : index
    %103 = vector.load %arg24[%c0_65, %c0_66] : memref<256x8xbf16, #tpu.memory_space<vmem>>, vector<256x8xbf16>
    %cst_67 = arith.constant dense<0.000000e+00> : vector<128x8xf32>
    %104 = tpu.matmul %102, %103, %cst_67 {dimension_numbers = #tpu.dot_dimension_numbers<[1], [0], [0], [1], [0, 0, 1, 1], [], []>} : vector<128x256xbf16>, vector<256x8xbf16>, vector<128x8xf32> -> vector<128x8xf32>
    %c0_68 = arith.constant 0 : index
    %c0_69 = arith.constant 0 : index
    %105 = vector.load %arg25[%c0_68, %c0_69] : memref<1x8xf32, #tpu.memory_space<vmem>>, vector<1x8xf32>
    %106 = vector.broadcast %105 : vector<1x8xf32> to vector<128x8xf32>
    %107 = arith.addf %104, %106 : vector<128x8xf32>
    %c0_70 = arith.constant 0 : index
    %c0_71 = arith.constant 0 : index
    %108 = vector.load %arg26[%c0_70, %c0_71] : memref<128x8xf32, #tpu.memory_space<vmem>>, vector<128x8xf32>
    tpu.vector_store %arg26[%c0_70, %c0_71], %107 {strides = array<i32>} : memref<128x8xf32, #tpu.memory_space<vmem>>, vector<128x8xf32>,
    return
  }
  func.func @transform_0(%arg0: i32) -> (i32, i32) {
    %c0_i32 = arith.constant 0 : i32
    %c0_i32_0 = arith.constant 0 : i32
    return %arg0, %c0_i32 : i32, i32
  }
  func.func @transform_1(%arg0: i32) -> (i32, i32) {
    %c0_i32 = arith.constant 0 : i32
    %c0_i32_0 = arith.constant 0 : i32
    %c0_i32_1 = arith.constant 0 : i32
    return %c0_i32, %c0_i32_0 : i32, i32
  }
  func.func @transform_2(%arg0: i32) -> (i32, i32) {
    %c0_i32 = arith.constant 0 : i32
    %c0_i32_0 = arith.constant 0 : i32
    %c0_i32_1 = arith.constant 0 : i32
    return %c0_i32, %c0_i32_0 : i32, i32
  }
  func.func @transform_3(%arg0: i32) -> (i32, i32) {
    %c0_i32 = arith.constant 0 : i32
    %c0_i32_0 = arith.constant 0 : i32
    %c0_i32_1 = arith.constant 0 : i32
    return %c0_i32, %c0_i32_0 : i32, i32
  }
  func.func @transform_4(%arg0: i32) -> (i32, i32) {
    %c0_i32 = arith.constant 0 : i32
    %c0_i32_0 = arith.constant 0 : i32
    %c0_i32_1 = arith.constant 0 : i32
    return %c0_i32, %c0_i32_0 : i32, i32
  }
  func.func @transform_5(%arg0: i32) -> (i32, i32) {
    %c0_i32 = arith.constant 0 : i32
    %c0_i32_0 = arith.constant 0 : i32
    %c0_i32_1 = arith.constant 0 : i32
    return %c0_i32, %c0_i32_0 : i32, i32
  }
  func.func @transform_6(%arg0: i32) -> (i32, i32) {
    %c0_i32 = arith.constant 0 : i32
    %c0_i32_0 = arith.constant 0 : i32
    %c0_i32_1 = arith.constant 0 : i32
    return %c0_i32, %c0_i32_0 : i32, i32
  }
  func.func @transform_7(%arg0: i32) -> (i32, i32) {
    %c0_i32 = arith.constant 0 : i32
    %c0_i32_0 = arith.constant 0 : i32
    %c0_i32_1 = arith.constant 0 : i32
    return %c0_i32, %c0_i32_0 : i32, i32
  }
  func.func @transform_8(%arg0: i32) -> (i32, i32) {
    %c0_i32 = arith.constant 0 : i32
    %c0_i32_0 = arith.constant 0 : i32
    %c0_i32_1 = arith.constant 0 : i32
    return %c0_i32, %c0_i32_0 : i32, i32
  }
  func.func @transform_9(%arg0: i32) -> (i32, i32) {
    %c0_i32 = arith.constant 0 : i32
    %c0_i32_0 = arith.constant 0 : i32
    %c0_i32_1 = arith.constant 0 : i32
    return %c0_i32, %c0_i32_0 : i32, i32
  }
  func.func @transform_10(%arg0: i32) -> (i32, i32) {
    %c0_i32 = arith.constant 0 : i32
    %c0_i32_0 = arith.constant 0 : i32
    %c0_i32_1 = arith.constant 0 : i32
    return %c0_i32, %c0_i32_0 : i32, i32
  }
  func.func @transform_11(%arg0: i32) -> (i32, i32) {
    %c0_i32 = arith.constant 0 : i32
    %c0_i32_0 = arith.constant 0 : i32
    %c0_i32_1 = arith.constant 0 : i32
    return %c0_i32, %c0_i32_0 : i32, i32
  }
  func.func @transform_12(%arg0: i32) -> (i32, i32) {
    %c0_i32 = arith.constant 0 : i32
    %c0_i32_0 = arith.constant 0 : i32
    %c0_i32_1 = arith.constant 0 : i32
    return %c0_i32, %c0_i32_0 : i32, i32
  }
  func.func @transform_13(%arg0: i32) -> (i32, i32) {
    %c0_i32 = arith.constant 0 : i32
    %c0_i32_0 = arith.constant 0 : i32
    %c0_i32_1 = arith.constant 0 : i32
    return %c0_i32, %c0_i32_0 : i32, i32
  }
  func.func @transform_14(%arg0: i32) -> (i32, i32) {
    %c0_i32 = arith.constant 0 : i32
    %c0_i32_0 = arith.constant 0 : i32
    %c0_i32_1 = arith.constant 0 : i32
    return %c0_i32, %c0_i32_0 : i32, i32
  }
  func.func @transform_15(%arg0: i32) -> (i32, i32) {
    %c0_i32 = arith.constant 0 : i32
    %c0_i32_0 = arith.constant 0 : i32
    %c0_i32_1 = arith.constant 0 : i32
    return %c0_i32, %c0_i32_0 : i32, i32
  }
  func.func @transform_16(%arg0: i32) -> (i32, i32) {
    %c0_i32 = arith.constant 0 : i32
    %c0_i32_0 = arith.constant 0 : i32
    %c0_i32_1 = arith.constant 0 : i32
    return %c0_i32, %c0_i32_0 : i32, i32
  }
  func.func @transform_17(%arg0: i32) -> (i32, i32) {
    %c0_i32 = arith.constant 0 : i32
    %c0_i32_0 = arith.constant 0 : i32
    %c0_i32_1 = arith.constant 0 : i32
    return %c0_i32, %c0_i32_0 : i32, i32
  }
  func.func @transform_18(%arg0: i32) -> (i32, i32) {
    %c0_i32 = arith.constant 0 : i32
    %c0_i32_0 = arith.constant 0 : i32
    %c0_i32_1 = arith.constant 0 : i32
    return %c0_i32, %c0_i32_0 : i32, i32
  }
  func.func @transform_19(%arg0: i32) -> (i32, i32) {
    %c0_i32 = arith.constant 0 : i32
    %c0_i32_0 = arith.constant 0 : i32
    %c0_i32_1 = arith.constant 0 : i32
    return %c0_i32, %c0_i32_0 : i32, i32
  }
  func.func @transform_20(%arg0: i32) -> (i32, i32) {
    %c0_i32 = arith.constant 0 : i32
    %c0_i32_0 = arith.constant 0 : i32
    %c0_i32_1 = arith.constant 0 : i32
    return %c0_i32, %c0_i32_0 : i32, i32
  }
  func.func @transform_21(%arg0: i32) -> (i32, i32) {
    %c0_i32 = arith.constant 0 : i32
    %c0_i32_0 = arith.constant 0 : i32
    %c0_i32_1 = arith.constant 0 : i32
    return %c0_i32, %c0_i32_0 : i32, i32
  }
  func.func @transform_22(%arg0: i32) -> (i32, i32) {
    %c0_i32 = arith.constant 0 : i32
    %c0_i32_0 = arith.constant 0 : i32
    %c0_i32_1 = arith.constant 0 : i32
    return %c0_i32, %c0_i32_0 : i32, i32
  }
  func.func @transform_23(%arg0: i32) -> (i32, i32) {
    %c0_i32 = arith.constant 0 : i32
    %c0_i32_0 = arith.constant 0 : i32
    %c0_i32_1 = arith.constant 0 : i32
    return %c0_i32, %c0_i32_0 : i32, i32
  }
  func.func @transform_24(%arg0: i32) -> (i32, i32) {
    %c0_i32 = arith.constant 0 : i32
    %c0_i32_0 = arith.constant 0 : i32
    %c0_i32_1 = arith.constant 0 : i32
    return %c0_i32, %c0_i32_0 : i32, i32
  }
  func.func @transform_25(%arg0: i32) -> (i32, i32) {
    %c0_i32 = arith.constant 0 : i32
    %c0_i32_0 = arith.constant 0 : i32
    return %arg0, %c0_i32 : i32, i32
  }
}

</mosaic_0001>

<bundles_post_ra>
// kernel: tpu_custom_call.1
= control target key start
LH: loop header
LB: loop body
LE: loop exit
PB: predicated region body
PF: predicated region fallthrough
CT: control target
= control target key end

     0   :  { %s13245_s0 = inlined_call_operand.vmem [shape: f32[256,8], index: 0, kind: input, shape index: {}]   ;;  %s13246_s1 = inlined_call_operand.vmem [shape: f32[3,32], index: 1, kind: input, shape index: {}]   ;;  %s13247_s2 = inlined_call_operand.vmem [shape: bf16[8,256], index: 2, kind: input, shape index: {}]   ;;  %s13248_s3 = inlined_call_operand.vmem [shape: bf16[32,256], index: 3, kind: input, shape index: {}]   ;;  %s13249_s4 = inlined_call_operand.vmem [shape: bf16[32,256], index: 4, kind: input, shape index: {}]   ;;  %s13250_s5 = inlined_call_operand.vmem [shape: bf16[1,256], index: 5, kind: input, shape index: {}]   ;;  %s13251_s6 = inlined_call_operand.vmem [shape: bf16[256,256], index: 6, kind: input, shape index: {}]   ;;  %s13252_s7 = inlined_call_operand.vmem [shape: bf16[1,256], index: 7, kind: input, shape index: {}]   ;;  %s13253_s8 = inlined_call_operand.hbm [shape: bf16[256,256], index: 8, kind: input, shape index: {}]   ;;  %s13254_s9 = inlined_call_operand.vmem [shape: bf16[1,256], index: 9, kind: input, shape index: {}]   ;;  %s13255_s10 = inlined_call_operand.hbm [shape: bf16[256,256], index: 10, kind: input, shape index: {}]   ;;  %s13256_s11 = inlined_call_operand.vmem [shape: bf16[1,256], index: 11, kind: input, shape index: {}]   ;;  %s13257_s12 = inlined_call_operand.hbm [shape: bf16[256,256], index: 12, kind: input, shape index: {}]   ;;  %s13258_s13 = inlined_call_operand.vmem [shape: bf16[1,256], index: 13, kind: input, shape index: {}]   ;;  %s13259_s14 = inlined_call_operand.vmem [shape: bf16[8,256], index: 14, kind: input, shape index: {}]   ;;  %s13260_s15 = inlined_call_operand.vmem [shape: bf16[32,256], index: 15, kind: input, shape index: {}]   ;;  %s13261_s16 = inlined_call_operand.vmem [shape: bf16[32,256], index: 16, kind: input, shape index: {}]   ;;  %s13262_s17 = inlined_call_operand.hbm [shape: bf16[256,256], index: 17, kind: input, shape index: {}]   ;;  %s13263_s18 = inlined_call_operand.vmem [shape: bf16[1,256], index: 18, kind: input, shape index: {}]   ;;  %s13264_s19 = inlined_call_operand.hbm [shape: bf16[256,256], index: 19, kind: input, shape index: {}]   ;;  %s13265_s20 = inlined_call_operand.vmem [shape: bf16[1,256], index: 20, kind: input, shape index: {}]   ;;  %s13266_s21 = inlined_call_operand.hbm [shape: bf16[256,256], index: 21, kind: input, shape index: {}]   ;;  %s13267_s22 = inlined_call_operand.vmem [shape: bf16[1,256], index: 22, kind: input, shape index: {}]   ;;  %s13268_s23 = inlined_call_operand.vmem [shape: bf16[256,8], index: 23, kind: input, shape index: {}]   ;;  %s13269_s24 = inlined_call_operand.vmem [shape: f32[1,8], index: 24, kind: input, shape index: {}]   ;;  %s13270_s25 = inlined_call_operand.vmem [shape: f32[256,8], index: 25, kind: output, shape index: {}]  }
   0x1   :  { %13401 = sst [smem:[#allocation50_spill]] %s13245_s0 }
   0x2   :  { %13402 = sst [smem:[#allocation51_spill]] %s13246_s1 }
   0x3   :  { %13403 = sst [smem:[#allocation52_spill]] %s13247_s2 }
   0x4   :  { %13404 = sst [smem:[#allocation53_spill]] %s13248_s3 }
   0x5   :  { %13405 = sst [smem:[#allocation54_spill]] %s13249_s4 }
   0x6   :  { %13406 = sst [smem:[#allocation55_spill]] %s13250_s5 }
   0x7   :  { %13407 = sst [smem:[#allocation56_spill]] %s13251_s6 }
   0x8   :  { %13408 = sst [smem:[#allocation57_spill]] %s13252_s7 }
   0x9   :  { %13409 = sst [smem:[#allocation58_spill]] %s13253_s8 }
   0xa   :  { %13410 = sst [smem:[#allocation59_spill]] %s13254_s9 }
   0xb   :  { %13411 = sst [smem:[#allocation60_spill]] %s13265_s20 }
   0xc   :  { %13412 = sst [smem:[#allocation61_spill]] %s13267_s22 }
   0xd   :  { %13413 = sst [smem:[#allocation62_spill]] %s13268_s23 }
   0xe   :  { %13414 = sst [smem:[#allocation63_spill]] %s13269_s24 }
   0xf   :  { %13415 = sst [smem:[#allocation64_spill]] %s13270_s25 }
  0x10   :  { %30 = vsyncpa [#allocation3], 0 }
  0x11   :  { %31 = vsyncpa [#allocation5], 0 }
  0x12   :  { %32 = vsyncpa [#allocation8], 0 }
  0x13   :  { %33 = vsyncpa [#allocation11], 0  ;;  %s10331_s29 = smov 0  }
  0x14 LB: > { %s13275_s2 = sadd.s32 4294967295, %s10181_s29   ;;  %p8668_p0 = scmp.ge.s32.totalorder %s10181_s29, 1  ;;  %s10181_s29 = sphi %s10331_s29, %s39_s29  }
  0x15   : > { %p600_p1 = scmp.lt.s32.totalorder %s10181_s29, 3  ;;  %p10341_p2 = scmp.eq.s32.totalorder %s13275_s2, 0 }
  0x16   : > { %s10183_s7 = smov [#allocation4]   ;;  %s10184_s26 = smov [#allocation7]  }
  0x17   : > { %s13416_s6 = scalar_select %p10341_p2, 1, 0 }
  0x18   : > { %p10345_p3 = pnand %p8668_p0, %p600_p1  ;;  %s649_s3 = sshll.u32 %s10183_s7, 4  ;;  %s10349_s3 = int_to_ptr.vmem [resolvable:$true] %s649_s3 }
  0x19   : > { %s690_s1 = sshll.u32 %s10184_s26, 4  ;;  %s10185_s27 = smov [#allocation2]   ;;  %s10353_s1 = int_to_ptr.vmem [resolvable:$true] %s690_s1 }
  0x1a   : > { %s13417_s30 = scalar_select %p10345_p3, 1, 0 }
  0x1b   : > { %p9448_p4 = pneg %p10345_p3  ;;  %s633_s4 = sshll.u32 %s10185_s27, 4  ;;  %s10361_s4 = int_to_ptr.vmem [resolvable:$true] %s633_s4 }
  0x1c   : > { %s10186_s28 = smov [#allocation6]   ;;  %s9991_s7 = scalar_lea.hbm %s13255_s10, 4096 }
  0x1d   : > { %p10357_p5 = pnand %p10341_p2, %p9448_p4  ;;  %s10363_s9 = sshll.u32 %s10186_s28, 4  ;;  %s666_s9 = int_to_ptr.vmem [resolvable:$true] %s10363_s9 }
  0x1e   : > { %p9992_p6 = scmp.ne.s32.totalorder %s13255_s10, %s9991_s7  ;;  %p9998_p10 = scmp.lt.u32.totalorder %s9991_s7, %s13255_s10 }
  0x1f   : > { %p10373_p7 = pneg %p10357_p5 }
  0x21   : > { %p9994_p8 = pnand %p10373_p7, %p9992_p6 }
  0x23   : > { %p9995_p9 = pneg %p9994_p8 }
  0x25   : > { %p10000_p11 = pnand %p9998_p10, %p9995_p9 }
  0x27   : > { %10003 = shalt.err (!%p10000_p11)
}
  0x28   : > { %s10004_s2 = scalar_lea.vmem %s10349_s3, 4096  ;;  %p10012_p1 = scmp.lt.s32.totalorder %s10349_s3, %s10349_s3 }
  0x29   : > { %p10005_p12 = scmp.ne.s32.totalorder %s10349_s3, %s10004_s2  ;;  %p10013_p4 = scmp.lt.s32.totalorder %s10004_s2, %s10004_s2 }
  0x2b   : > { %p10007_p13 = pnand %p10005_p12, %p10373_p7  ;;  %p10014_p6 = por %p10013_p4, %p10012_p1 }
  0x2d   : > { %p10008_p0 = pneg %p10007_p13 }
  0x2f   : > { %p10015_p8 = pnand %p10014_p6, %p10008_p0 }
  0x31   : > { %10018 = shalt.err (!%p10015_p8)
}
  0x32   : > { %s10187_s5 = smov 128   ;;  %s10188_s0 = smov 8  }
  0x33   : > { %9454 = dma.hbm_to_vmem [thread:$0]  (!%p10357_p5), %s13255_s10, 4096, %s10349_s3, [#allocation5], %s10187_s5, %s10187_s5, %s10188_s0  }
  0x34   : > { %s10019_s2 = scalar_lea.hbm %s13262_s17, 4096 }
  0x35   : > { %p10020_p9 = scmp.ne.s32.totalorder %s13262_s17, %s10019_s2  ;;  %p10026_p12 = scmp.lt.u32.totalorder %s10019_s2, %s13262_s17 }
  0x37   : > { %p10022_p10 = pnand %p10020_p9, %p10373_p7 }
  0x39   : > { %p10023_p11 = pneg %p10022_p10 }
  0x3b   : > { %p10028_p13 = pnand %p10026_p12, %p10023_p11 }
  0x3d   : > { %10031 = shalt.err (!%p10028_p13)
}
  0x3e   : > { %s10032_s3 = scalar_lea.vmem %s10353_s1, 4096  ;;  %p10040_p6 = scmp.lt.s32.totalorder %s10353_s1, %s10353_s1 }
  0x3f   : > { %p10033_p0 = scmp.ne.s32.totalorder %s10353_s1, %s10032_s3  ;;  %p10041_p8 = scmp.lt.s32.totalorder %s10032_s3, %s10032_s3 }
  0x41   : > { %p10035_p1 = pnand %p10033_p0, %p10373_p7  ;;  %p10042_p9 = por %p10041_p8, %p10040_p6 }
  0x43   : > { %p10036_p4 = pneg %p10035_p1 }
  0x45   : > { %p10043_p10 = pnand %p10042_p9, %p10036_p4 }
  0x47   : > { %10046 = shalt.err (!%p10043_p10)
}
  0x48   : > { %9460 = dma.hbm_to_vmem [thread:$0]  (!%p10357_p5), %s13262_s17, 4096, %s10353_s1, [#allocation8], %s10187_s5, %s10187_s5, %s10188_s0  }
  0x49   : > { %s13420_s7 = sld [smem:[#allocation58_spill]] }
  0x4f   : > { %s10047_s26 = scalar_lea.hbm %s13420_s7, 4096 }
  0x50   : > { %p10048_p11 = scmp.ne.s32.totalorder %s13420_s7, %s10047_s26  ;;  %p10054_p0 = scmp.lt.u32.totalorder %s10047_s26, %s13420_s7 }
  0x52   : > { %p10050_p12 = pnand %p10048_p11, %p10373_p7 }
  0x54   : > { %p10051_p13 = pneg %p10050_p12 }
  0x56   : > { %p10056_p1 = pnand %p10054_p0, %p10051_p13 }
  0x58   : > { %10059 = shalt.err (!%p10056_p1)
}
  0x59   : > { %s10060_s1 = scalar_lea.vmem %s10361_s4, 4096  ;;  %p10068_p9 = scmp.lt.s32.totalorder %s10361_s4, %s10361_s4 }
  0x5a   : > { %p10061_p4 = scmp.ne.s32.totalorder %s10361_s4, %s10060_s1  ;;  %p10069_p10 = scmp.lt.s32.totalorder %s10060_s1, %s10060_s1 }
  0x5c   : > { %p10063_p6 = pnand %p10061_p4, %p10373_p7  ;;  %p10070_p11 = por %p10069_p10, %p10068_p9 }
  0x5e   : > { %p10064_p8 = pneg %p10063_p6 }
  0x60   : > { %p10071_p12 = pnand %p10070_p11, %p10064_p8 }
  0x62   : > { %10074 = shalt.err (!%p10071_p12)
}
  0x63   : > { %9451 = dma.hbm_to_vmem [thread:$0]  (!%p10357_p5), %s13420_s7, 4096, %s10361_s4, [#allocation3], %s10187_s5, %s10187_s5, %s10188_s0  }
  0x64   : > { %s10075_s26 = scalar_lea.hbm %s13257_s12, 4096 }
  0x65   : > { %p10076_p13 = scmp.ne.s32.totalorder %s13257_s12, %s10075_s26  ;;  %p10082_p4 = scmp.lt.u32.totalorder %s10075_s26, %s13257_s12 }
  0x67   : > { %p10078_p0 = pnand %p10076_p13, %p10373_p7 }
  0x69   : > { %p10079_p1 = pneg %p10078_p0 }
  0x6b   : > { %p10084_p6 = pnand %p10082_p4, %p10079_p1 }
  0x6d   : > { %10087 = shalt.err (!%p10084_p6)
}
  0x6e   : > { %s10088_s1 = scalar_lea.vmem %s666_s9, 4096  ;;  %p10096_p11 = scmp.lt.s32.totalorder %s666_s9, %s666_s9 }
  0x6f   : > { %p10089_p8 = scmp.ne.s32.totalorder %s666_s9, %s10088_s1  ;;  %p10097_p12 = scmp.lt.s32.totalorder %s10088_s1, %s10088_s1 }
  0x71   : > { %p10091_p9 = pnand %p10089_p8, %p10373_p7  ;;  %p10098_p2 = por %p10097_p12, %p10096_p11 }
  0x73   : > { %p10092_p10 = pneg %p10091_p9 }
  0x75   : > { %p10099_p3 = pnand %p10098_p2, %p10092_p10 }
  0x77   : > { %10102 = shalt.err (!%p10099_p3)
}
  0x78   : > { %9457 = dma.hbm_to_vmem [thread:$0]  (!%p10357_p5), %s13257_s12, 4096, %s666_s9, [#allocation5], %s10187_s5, %s10187_s5, %s10188_s0  }
  0x79   : > { %s10189_s22 = smov [#allocation9]   ;;  %s10190_s24 = smov [#allocation10]  }
  0x7a   : > { %s706_s23 = sshll.u32 %s10189_s22, 4  ;;  %s722_s26 = sshll.u32 %s10190_s24, 4  ;;  %s707_s23 = int_to_ptr.vmem [resolvable:$true] %s706_s23  ;;  %s723_s26 = int_to_ptr.vmem [resolvable:$true] %s722_s26 }
  0x7b   : > { %s10103_s2 = scalar_lea.hbm %s13264_s19, 4096 }
  0x7c   : > { %p10104_p2 = scmp.ne.s32.totalorder %s13264_s19, %s10103_s2  ;;  %p10110_p0 = scmp.lt.u32.totalorder %s10103_s2, %s13264_s19 }
  0x7e   : > { %p10106_p3 = pnand %p10104_p2, %p10373_p7 }
  0x80   : > { %p10107_p13 = pneg %p10106_p3 }
  0x82   : > { %p10112_p1 = pnand %p10110_p0, %p10107_p13 }
  0x84   : > { %10115 = shalt.err (!%p10112_p1)
}
  0x85   : > { %s10116_s9 = scalar_lea.vmem %s707_s23, 4096  ;;  %p10124_p9 = scmp.lt.s32.totalorder %s707_s23, %s707_s23 }
  0x86   : > { %p10117_p4 = scmp.ne.s32.totalorder %s707_s23, %s10116_s9  ;;  %p10125_p10 = scmp.lt.s32.totalorder %s10116_s9, %s10116_s9 }
  0x88   : > { %p10119_p6 = pnand %p10117_p4, %p10373_p7  ;;  %p10126_p11 = por %p10125_p10, %p10124_p9 }
  0x8a   : > { %p10120_p8 = pneg %p10119_p6 }
  0x8c   : > { %p10127_p12 = pnand %p10126_p11, %p10120_p8 }
  0x8e   : > { %10130 = shalt.err (!%p10127_p12)
}
  0x8f   : > { %9463 = dma.hbm_to_vmem [thread:$0]  (!%p10357_p5), %s13264_s19, 4096, %s707_s23, [#allocation8], %s10187_s5, %s10187_s5, %s10188_s0  }
  0x90   : > { %s10131_s27 = scalar_lea.hbm %s13266_s21, 4096 }
  0x91   : > { %p10132_p2 = scmp.ne.s32.totalorder %s13266_s21, %s10131_s27  ;;  %p10138_p0 = scmp.lt.u32.totalorder %s10131_s27, %s13266_s21 }
  0x93   : > { %p10134_p3 = pnand %p10132_p2, %p10373_p7 }
  0x95   : > { %p10135_p13 = pneg %p10134_p3 }
  0x97   : > { %p10140_p1 = pnand %p10138_p0, %p10135_p13 }
  0x99   : > { %10143 = shalt.err (!%p10140_p1)
}
  0x9a   : > { %s10144_s4 = scalar_lea.vmem %s723_s26, 4096  ;;  %p10152_p9 = scmp.lt.s32.totalorder %s723_s26, %s723_s26 }
  0x9b   : > { %p10145_p4 = scmp.ne.s32.totalorder %s723_s26, %s10144_s4  ;;  %p10153_p10 = scmp.lt.s32.totalorder %s10144_s4, %s10144_s4 }
  0x9d   : > { %p10147_p6 = pnand %p10145_p4, %p10373_p7  ;;  %p10154_p11 = por %p10153_p10, %p10152_p9 }
  0x9f   : > { %p10148_p8 = pneg %p10147_p6 }
  0xa1   : > { %p10155_p12 = pnand %p10154_p11, %p10148_p8 }
  0xa3   : > { %10158 = shalt.err (!%p10155_p12)
}
  0xa4   : > { %9466 = dma.hbm_to_vmem [thread:$0]  (!%p10357_p5), %s13266_s21, 4096, %s723_s26, [#allocation11], %s10187_s5, %s10187_s5, %s10188_s0  }
  0xa5   : > { %p13421_p2 = scmp.ne.s32.totalorder %s13417_s30, 0 }
  0xa7   : > { %756 = sbr.rel (%p13421_p2) target bundleno = 2907 (0xb5b), region = 120 }
  0xae   : > { %p13422_p7 = scmp.ne.s32.totalorder %s13416_s6, 0 }
  0xb0   : > { %10164 = dma.done.wait (%p13422_p7), [#allocation3], 4096  }
  0xb1   : > { %10166 = vsyncadd (%p13422_p7), [#allocation3], 4294963200 }
  0xb2   : > { %10168 = dma.done.wait (%p13422_p7), [#allocation5], 8192  }
  0xb3   : > { %10170 = vsyncadd (%p13422_p7), [#allocation5], 4294959104 }
  0xb4   : > { %10172 = dma.done.wait (%p13422_p7), [#allocation8], 8192  }
  0xb5   : > { %10174 = vsyncadd (%p13422_p7), [#allocation8], 4294959104 }
  0xb6   : > { %10176 = dma.done.wait (%p13422_p7), [#allocation11], 4096  }
  0xb7   : > { %10178 = vsyncadd (%p13422_p7), [#allocation11], 4294963200  ;;  %s13423_s25 = sadd.s32 4294967295, %s10181_s29   ;;  %v10191_v0 = vmov 2   ;;  %v10192_v1 = vmov 1   ;;  %v13281_v2 = vmov 0   ;;  %v954_v20 = vlaneseq }
  0xb8   : > { %s8683_s30 = sshll.u32 %s13423_s25, 4  ;;  %9506 = vset.pattern.permute.xlu0 %v10191_v0  ;;  %9505 = vset.pattern.permute.xlu1 %v10192_v1  ;;  %s13424_s0 = sld [smem:[#allocation50_spill]] }
  0xb9   : > { %p845_p5 = scmp.lt.s32.totalorder %s8683_s30, 31  ;;  %4592 = vmatprep.mubr.bf16.mxu0 %v13281_v2  ;;  %v10588_v23 = vshrl.u32 %v954_v20, 7  ;;  %s13428_s22 = sld [smem:[#allocation51_spill]] }
  0xba   : > { %s13435_s28 = sld [smem:[#allocation53_spill]]  ;;  %s13567_s5 = sld [smem:[#allocation52_spill]] }
  0xbb   : > { %s13639_s30 = smov (!%p845_p5, %s8683_s30), 31  ;;  %13426 = vst [vmem:[#allocation17_spill] sm:$0xff] %v10588_v23  ;;  %v1040_v26 = vsub.s32 1, %v10588_v23  ;;  %v10593_v27 = vsub.s32 0, %v10588_v23  ;;  %v1140_v29 = vsub.s32 2, %v10588_v23  ;;  %s13573_s20 = sld [smem:[#allocation54_spill]] }
  0xbc   : > { %s8684_s8 = sshll.u32 %s13639_s30, 3  ;;  %v13452_v23 = vmov 1326507024   ;;  %s13580_s27 = sld [smem:[#allocation56_spill]] }
  0xbd   : > { %13427 = vst [vmem:[#allocation18_spill] sm:$0xff] %v10593_v27  ;;  %s13623_s23 = sld [smem:[#allocation55_spill]]  ;;  %s13626_s25 = sld [smem:[#allocation57_spill]] }
  0xbe   : > { %s10544_s26 = scalar_lea.vmem %s13424_s0, %s8684_s8  ;;  %s13635_s9 = sld [smem:[#allocation61_spill]] }
  0xbf   : > { %v857_v3 = vld [vmem:[%s10544_s26] sm:$0xff]  ;;  %v858_v4 = vld [vmem:[%s10544_s26 + $0x8] sm:$0xff]  ;;  %v859_v6 = vld [vmem:[%s10544_s26 + $0x10] sm:$0xff]  ;;  %s13636_s6 = sld [smem:[#allocation63_spill]] }
  0xc0   : > { %1075 = vperm.xlu0 %9506, %v857_v3   ;;  %975 = vperm.xlu1 %9505, %v857_v3   ;;  %v10548_v5 = vpack.c.bf16 %v858_v4, %v857_v3  ;;  %v861_v7 = vld [vmem:[%s10544_s26 + $0x20] sm:$0xff]  ;;  %v860_v8 = vld [vmem:[%s10544_s26 + $0x18] sm:$0xff]  ;;  %v862_v9 = vld [vmem:[%s10544_s26 + $0x28] sm:$0xff] }
  0xc1   : > { %v864_v10 = vld [vmem:[%s10544_s26 + $0x38] sm:$0xff]  ;;  %v866_v11 = vld [vmem:[%s10544_s26 + $0x48] sm:$0xff]  ;;  %v863_v13 = vld [vmem:[%s10544_s26 + $0x30] sm:$0xff] }
  0xc2   : > { %13425 = vst [vmem:[#allocation16_spill] sm:$0xff] %v10548_v5  ;;  %v868_v12 = vld [vmem:[%s10544_s26 + $0x58] sm:$0xff]  ;;  %v865_v14 = vld [vmem:[%s10544_s26 + $0x40] sm:$0xff]  ;;  %v867_v15 = vld [vmem:[%s10544_s26 + $0x50] sm:$0xff] }
  0xc3   : > { %v869_v16 = vld [vmem:[%s10544_s26 + $0x60] sm:$0xff]  ;;  %v870_v17 = vld [vmem:[%s10544_s26 + $0x68] sm:$0xff]  ;;  %v872_v18 = vld [vmem:[%s10544_s26 + $0x78] sm:$0xff] }
  0xc4   : > { %1083 = vperm.xlu0 %9506, %v859_v6   ;;  %979 = vperm.xlu1 %9505, %v858_v4   ;;  %v871_v19 = vld [vmem:[%s10544_s26 + $0x70] sm:$0xff]  ;;  %v873_v28 = vld [vmem:[%s13428_s22] sm:$0x7]  ;;  %s13627_s22 = sld [smem:[#allocation59_spill]] }
  0xc5   : > { %v10601_v32 = vrot.slane %v873_v28, %v1040_v26  ;;  %v10604_v33 = vrot.slane %v873_v28, %v10593_v27  ;;  %v10606_v34 = vrot.slane %v873_v28, %v1140_v29  ;;  %v13305_v28 = vmov 920167782  }
  0xc8   : > { %1091 = vperm.xlu0 %9506, %v861_v7   ;;  %9507 = vset.pattern.permute.xlu1 %v10191_v0 }
  0xc9   : > { %1079 = vperm.xlu1 %9507, %v858_v4  }
  0xcc   : > { %9513 = vset.pattern.permute.xlu0 %v13281_v2 }
  0xcd   : > { %876 = vperm.xlu0 %9513, %v857_v3   ;;  %9508 = vset.pattern.permute.xlu1 %v13281_v2 }
  0xce   : > { %886 = vperm.xlu1 %9508, %v859_v6  }
  0xd1   : > { %881 = vperm.xlu0 %9513, %v858_v4  }
  0xd2   : > { %9509 = vset.pattern.permute.xlu1 %v10192_v1 }
  0xd3   : > { %983 = vperm.xlu1 %9509, %v859_v6  }
  0xd5   : > { %891 = vperm.xlu0 %9513, %v860_v8  }
  0xd7   : > { %987 = vperm.xlu1 %9509, %v860_v8  }
  0xd9   : > { %901 = vperm.xlu0 %9513, %v862_v9  }
  0xdb   : > { %9510 = vset.pattern.permute.xlu1 %v10191_v0 }
  0xdc   : > { %1087 = vperm.xlu1 %9510, %v860_v8  }
  0xdd   : > { %911 = vperm.xlu0 %9513, %v864_v10  }
  0xe0   : > { %9511 = vset.pattern.permute.xlu1 %v13281_v2 }
  0xe1   : > { %896 = vperm.xlu1 %9511, %v861_v7   ;;  %921 = vperm.xlu0 %9513, %v866_v11  }
  0xe5   : > { %9512 = vset.pattern.permute.xlu1 %v10192_v1  ;;  %931 = vperm.xlu0 %9513, %v868_v12  }
  0xe6   : > { %991 = vperm.xlu1 %9512, %v861_v7  }
  0xe9   : > { %9522 = vset.pattern.permute.xlu0 %v10191_v0 }
  0xea   : > { %995 = vperm.xlu1 %9512, %v862_v9   ;;  %1099 = vperm.xlu0 %9522, %v863_v13  }
  0xee   : > { %9514 = vset.pattern.permute.xlu1 %v10191_v0  ;;  %1107 = vperm.xlu0 %9522, %v865_v14  }
  0xef   : > { %1095 = vperm.xlu1 %9514, %v862_v9  }
  0xf2   : > { %1115 = vperm.xlu0 %9522, %v867_v15  }
  0xf3   : > { %9515 = vset.pattern.permute.xlu1 %v13281_v2 }
  0xf4   : > { %906 = vperm.xlu1 %9515, %v863_v13  }
  0xf6   : > { %1123 = vperm.xlu0 %9522, %v869_v16  }
  0xf8   : > { %9516 = vset.pattern.permute.xlu1 %v10192_v1 }
  0xf9   : > { %999 = vperm.xlu1 %9516, %v863_v13  }
  0xfa   : > { %9527 = vset.pattern.permute.xlu0 %v13281_v2 }
  0xfb   : > { %941 = vperm.xlu0 %9527, %v870_v17  }
  0xfd   : > { %1003 = vperm.xlu1 %9516, %v864_v10  }
  0xff   : > { %951 = vperm.xlu0 %9527, %v872_v18  }
 0x101   : > { %9517 = vset.pattern.permute.xlu1 %v10191_v0 }
 0x102   : > { %1103 = vperm.xlu1 %9517, %v864_v10  }
 0x103   : > { %9531 = vset.pattern.permute.xlu0 %v10191_v0 }
 0x104   : > { %1131 = vperm.xlu0 %9531, %v871_v19  }
 0x106   : > { %9518 = vset.pattern.permute.xlu1 %v13281_v2 }
 0x107   : > { %916 = vperm.xlu1 %9518, %v865_v14  }
 0x10b   : > { %9519 = vset.pattern.permute.xlu1 %v10192_v1 }
 0x10c   : > { %1007 = vperm.xlu1 %9519, %v865_v14  }
 0x110   : > { %1011 = vperm.xlu1 %9519, %v866_v11  }
 0x114   : > { %9520 = vset.pattern.permute.xlu1 %v10191_v0 }
 0x115   : > { %1111 = vperm.xlu1 %9520, %v866_v11  }
 0x119   : > { %9521 = vset.pattern.permute.xlu1 %v13281_v2 }
 0x11a   : > { %926 = vperm.xlu1 %9521, %v867_v15  }
 0x11e   : > { %9523 = vset.pattern.permute.xlu1 %v10192_v1 }
 0x11f   : > { %1015 = vperm.xlu1 %9523, %v867_v15  }
 0x123   : > { %1019 = vperm.xlu1 %9523, %v868_v12  }
 0x127   : > { %9524 = vset.pattern.permute.xlu1 %v10191_v0 }
 0x128   : > { %1119 = vperm.xlu1 %9524, %v868_v12  }
 0x12c   : > { %9525 = vset.pattern.permute.xlu1 %v13281_v2 }
 0x12d   : > { %936 = vperm.xlu1 %9525, %v869_v16  }
 0x131   : > { %9526 = vset.pattern.permute.xlu1 %v10192_v1 }
 0x132   : > { %1023 = vperm.xlu1 %9526, %v869_v16  }
 0x136   : > { %1027 = vperm.xlu1 %9526, %v870_v17  }
 0x13a   : > { %9528 = vset.pattern.permute.xlu1 %v10191_v0 }
 0x13b   : > { %1127 = vperm.xlu1 %9528, %v870_v17   ;;  %v13292_v17 = vmov 683565275  }
 0x13f   : > { %9529 = vset.pattern.permute.xlu1 %v13281_v2  ;;  %v976_v21 = vpop.permute.xlu1 %975  ;;  %v1076_v22 = vpop.permute.xlu0 %1075 }
 0x140   : > { %946 = vperm.xlu1 %9529, %v871_v19   ;;  %v1042_v36 = vmul.f32 %v10601_v32, %v976_v21  ;;  %v1142_v37 = vmul.f32 %v10606_v34, %v1076_v22  ;;  %v13289_v22 = vmov 2131351028  }
 0x143   : > { %v980_v24 = vpop.permute.xlu1 %979  ;;  %v1084_v25 = vpop.permute.xlu0 %1083 }
 0x144   : > { %9530 = vset.pattern.permute.xlu1 %v10192_v1  ;;  %v1043_v42 = vmul.f32 %v10601_v32, %v980_v24  ;;  %v1144_v50 = vmul.f32 %v10606_v34, %v1084_v25  ;;  %v13300_v25 = vmov 2102212464  }
 0x145   : > { %1031 = vperm.xlu1 %9530, %v871_v19   ;;  %v13287_v19 = vmov 2475754826  }
 0x147   : > { %v10599_v30 = vpop.permute.xlu0 %1091 }
 0x148   : > { %v1080_v31 = vpop.permute.xlu1 %1079 }
 0x149   : > { %1035 = vperm.xlu1 %9530, %v872_v18   ;;  %v1143_v46 = vmul.f32 %v10606_v34, %v1080_v31 }
 0x14c   : > { %v877_v35 = vpop.permute.xlu0 %876 }
 0x14d   : > { %v958_v38 = vmul.f32 %v10604_v33, %v877_v35  ;;  %9532 = vset.pattern.permute.xlu1 %v10191_v0  ;;  %v887_v39 = vpop.permute.xlu1 %886 }
 0x14e   : > { %1135 = vperm.xlu1 %9532, %v872_v18   ;;  %v960_v51 = vmul.f32 %v10604_v33, %v887_v39  ;;  %v13294_v39 = vmov 1326507024  }
 0x14f   : > { %v1058_v40 = vadd.f32 %v1042_v36, %v958_v38 }
 0x150   : > { %v882_v41 = vpop.permute.xlu0 %881 }
 0x151   : > { %v10613_v43 = vadd.f32 %v1142_v37, %v1058_v40  ;;  %v959_v44 = vmul.f32 %v10604_v33, %v882_v41 }
 0x152   : > { %v984_v45 = vpop.permute.xlu1 %983 }
 0x153   : > { %v1174_v47 = vand.u32 2147483647, %v10613_v43  ;;  %v1177_v48 = vand.u32 2139095040, %v10613_v43  ;;  %v1059_v49 = vadd.f32 %v1043_v42, %v959_v44  ;;  %v1044_v52 = vmul.f32 %v10601_v32, %v984_v45 }
 0x154   : > { %v892_v3 = vpop.permute.xlu0 %891 }
 0x155   : > { %v1178_v53 = vshrl.u32 %v1177_v48, 23  ;;  %v10622_v54 = vadd.f32 %v1143_v46, %v1059_v49  ;;  %v1181_v55 = vand.u32 8388607, %v1174_v47  ;;  %v1060_v56 = vadd.f32 %v1044_v52, %v960_v51 }
 0x156   : > { %v988_v4 = vpop.permute.xlu1 %987  ;;  %v10634_v10 = vmul.f32 %v10604_v33, %v892_v3 }
 0x157   : > { %13429 = vst [vmem:[#allocation19_spill] sm:$0xff] %v10622_v54  ;;  %v8687_v57 = vadd.s32 4294967169, %v1178_v53  ;;  %v1278_v58 = vand.u32 2147483647, %v10622_v54  ;;  %v1281_v59 = vand.u32 2139095040, %v10622_v54  ;;  %v10628_v60 = vadd.f32 %v1144_v50, %v1060_v56 }
 0x158   : > { %v1182_v62 = vor.u32 8388608, %v1181_v55  ;;  %v10637_v11 = vmul.f32 %v10601_v32, %v988_v4 }
 0x159   : > { %13430 = vst [vmem:[#allocation20_spill] sm:$0xff] %v10628_v60  ;;  %v1184_v61 = vadd.s32 1, %v8687_v57  ;;  %v1282_v63 = vshrl.u32 %v1281_v59, 23  ;;  %v1285_v0 = vand.u32 8388607, %v1278_v58  ;;  %v1385_v1 = vand.u32 2139095040, %v10628_v60 }
 0x15a   : > { %v10639_v12 = vshll.u32 %v1182_v62, 8  ;;  %v13285_v14 = vand.u32 2147483647, %v10628_v60 }
 0x15b   : > { %vm1185_vm0 = vcmp.gt.s32.totalorder %v1184_v61, 0  ;;  %v8691_v7 = vadd.s32 4294967169, %v1282_v63  ;;  %v1286_v13 = vor.u32 8388608, %v1285_v0  ;;  %v1386_v15 = vshrl.u32 %v1385_v1, 23 }
 0x15c   : > { %v1186_v6 = vsel %vm1185_vm0, %v1184_v61, 0 }
 0x15d   : > { %v1187_v8 = vshrl.u32 %v1186_v6, 5  ;;  %v1188_v9 = vand.u32 31, %v1186_v6  ;;  %v1288_v21 = vadd.s32 1, %v8691_v7  ;;  %v10662_v3 = vshll.u32 %v1286_v13, 8 }
 0x15e   : > { %v8695_v4 = vadd.s32 4294967169, %v1386_v15 }
 0x15f   : > { %v1189_v16 = vsub.s32 32, %v1188_v9  ;;  %v1191_v18 = vshll.u32 %v13292_v17, %v1188_v9  ;;  %v1194_v20 = vshll.u32 %v13287_v19, %v1188_v9  ;;  %v1197_v24 = vshll.u32 %v13289_v22, %v1188_v9 }
 0x160   : > { %v1200_v26 = vshll.u32 %v13300_v25, %v1188_v9  ;;  %v1203_v29 = vshll.u32 %v13305_v28, %v1188_v9  ;;  %vm1206_vm1 = vcmp.lt.s32.totalorder %v1187_v8, 1  ;;  %vm1207_vm2 = vcmp.lt.s32.totalorder %v1187_v8, 2 }
 0x161   : > { %v1192_v31 = vshrl.u32 %v13287_v19, %v1189_v16  ;;  %v1195_v35 = vshrl.u32 %v13289_v22, %v1189_v16  ;;  %v1198_v36 = vshrl.u32 %v13300_v25, %v1189_v16  ;;  %v1190_v37 = vshrl.u32 %v13292_v17, %v1189_v16 }
 0x162   : > { %v1201_v38 = vshrl.u32 %v13305_v28, %v1189_v16  ;;  %v1204_v40 = vshrl.u32 %v13294_v39, %v1189_v16  ;;  %vm1208_vm3 = vcmp.lt.s32.totalorder %v1187_v8, 3  ;;  %vm1289_vm4 = vcmp.gt.s32.totalorder %v1288_v21, 0 }
 0x163   : > { %v1193_v41 = vor.u32 %v1192_v31, %v1191_v18  ;;  %v1196_v42 = vor.u32 %v1195_v35, %v1194_v20  ;;  %v1199_v44 = vor.u32 %v1198_v36, %v1197_v24  ;;  %vm1209_vm5 = vcmp.lt.s32.totalorder %v1187_v8, 4 }
 0x164   : > { %v1202_v45 = vor.u32 %v1201_v38, %v1200_v26  ;;  %v1205_v46 = vor.u32 %v1204_v40, %v1203_v29  ;;  %v1290_v48 = vsel %vm1289_vm4, %v1288_v21, 0 }
 0x165   : > { %v1210_v49 = vsel %vm1206_vm1, %v1190_v37, %v1193_v41  ;;  %v1211_v50 = vsel %vm1209_vm5, %v1199_v44, 2102212464  ;;  %v1214_v51 = vsel %vm1206_vm1, %v1193_v41, %v1196_v42  ;;  %v1218_v52 = vsel %vm1206_vm1, %v1196_v42, %v1199_v44 }
 0x166   : > { %v1212_v53 = vsel %vm1208_vm3, %v1196_v42, %v1211_v50  ;;  %v1215_v55 = vsel %vm1209_vm5, %v1202_v45, 920167782  ;;  %v1219_v56 = vsel %vm1209_vm5, %v1205_v46, 1326507024  ;;  %v1291_v57 = vshrl.u32 %v1290_v48, 5 }
 0x167   : > { %v1213_v59 = vsel %vm1207_vm2, %v1210_v49, %v1212_v53  ;;  %v1216_v61 = vsel %vm1208_vm3, %v1199_v44, %v1215_v55  ;;  %v1220_v62 = vsel %vm1208_vm3, %v1202_v45, %v1219_v56  ;;  %v1292_v63 = vand.u32 31, %v1290_v48 }
 0x168   : > { %v1217_v0 = vsel %vm1207_vm2, %v1214_v51, %v1216_v61  ;;  %v1221_v1 = vsel %vm1207_vm2, %v1218_v52, %v1220_v62  ;;  %v1229_v18 = vmul.u32 %v10639_v12, %v1213_v59  ;;  %vm1310_vm6 = vcmp.lt.s32.totalorder %v1291_v57, 1 }
 0x169   : > { %v10665_v6 = vmul.u32.u64.low %v10639_v12, %v1221_v1  ;;  %v10666_v7 = vmul.u32.u64.high %v10639_v12, %v1221_v1, %v10665_v6  ;;  %v10669_v9 = vmul.u32.u64.low %v10639_v12, %v1217_v0  ;;  %v10670_v16 = vmul.u32.u64.high %v10639_v12, %v1217_v0, %v10669_v9 }
 0x16a   : > { %v1293_v20 = vsub.s32 32, %v1292_v63  ;;  %v1295_v21 = vshll.u32 %v13292_v17, %v1292_v63  ;;  %v1298_v8 = vshll.u32 %v13287_v19, %v1292_v63  ;;  %v1301_v13 = vshll.u32 %v13289_v22, %v1292_v63 }
 0x16b   : > { %v1304_v15 = vshll.u32 %v13300_v25, %v1292_v63  ;;  %v1307_v24 = vshll.u32 %v13305_v28, %v1292_v63  ;;  %vm1311_vm7 = vcmp.lt.s32.totalorder %v1291_v57, 2  ;;  %vm1231_vm8 = vc.u32 %v10666_v7, %v10669_v9 }
 0x16c   : > { %v1296_v26 = vshrl.u32 %v13287_v19, %v1293_v20  ;;  %v1299_v29 = vshrl.u32 %v13289_v22, %v1293_v20  ;;  %v1302_v31 = vshrl.u32 %v13300_v25, %v1293_v20  ;;  %v1232_v12 = vadd.s32 1, %v10670_v16 }
 0x16d   : > { %v1294_v35 = vshrl.u32 %v13292_v17, %v1293_v20  ;;  %v1305_v36 = vshrl.u32 %v13305_v28, %v1293_v20  ;;  %v1308_v41 = vshrl.u32 %v13294_v39, %v1293_v20  ;;  %vm1313_vm9 = vcmp.lt.s32.totalorder %v1291_v57, 4 }
 0x16e   : > { %v1297_v37 = vor.u32 %v1296_v26, %v1295_v21  ;;  %v1300_v38 = vor.u32 %v1299_v29, %v1298_v8  ;;  %v1303_v40 = vor.u32 %v1302_v31, %v1301_v13  ;;  %v1233_v42 = vsel %vm1231_vm8, %v1232_v12, %v10670_v16 }
 0x16f   : > { %v1306_v44 = vor.u32 %v1305_v36, %v1304_v15  ;;  %v1392_v45 = vadd.s32 1, %v8695_v4  ;;  %v1234_v46 = vadd.s32 %v1233_v42, %v1229_v18  ;;  %v1309_v48 = vor.u32 %v1308_v41, %v1307_v24 }
 0x170   : > { %vm1312_vm10 = vcmp.lt.s32.totalorder %v1291_v57, 3  ;;  %v1315_v49 = vsel %vm1313_vm9, %v1303_v40, 2102212464  ;;  %v1314_v50 = vsel %vm1310_vm6, %v1294_v35, %v1297_v37  ;;  %v1318_v51 = vsel %vm1310_vm6, %v1297_v37, %v1300_v38  ;;  %v1088_v35 = vpop.permute.xlu1 %1087 }
 0x171   : > { %v1319_v52 = vsel %vm1313_vm9, %v1306_v44, 920167782  ;;  %v1322_v53 = vsel %vm1310_vm6, %v1300_v38, %v1303_v40  ;;  %v1235_v55 = vadd.s32 536870912, %v1234_v46  ;;  %v1316_v56 = vsel %vm1312_vm10, %v1300_v38, %v1315_v49 }
 0x172   : > { %v1320_v59 = vsel %vm1312_vm10, %v1303_v40, %v1319_v52  ;;  %v1323_v61 = vsel %vm1313_vm9, %v1309_v48, 1326507024  ;;  %v1389_v0 = vand.u32 8388607, %v13285_v14  ;;  %vm1393_vm11 = vcmp.gt.s32.totalorder %v1392_v45, 0 }
 0x173   : > { %v1321_v62 = vsel %vm1311_vm7, %v1318_v51, %v1320_v59  ;;  %v1324_v63 = vsel %vm1312_vm10, %v1306_v44, %v1323_v61  ;;  %v10695_v1 = vshrl.u32 %v1235_v55, 30  ;;  %v1317_v18 = vsel %vm1311_vm7, %v1314_v50, %v1316_v56 }
 0x174   : > { %v1325_v4 = vsel %vm1311_vm7, %v1322_v53, %v1324_v63  ;;  %v10699_v6 = vmul.u32.u64.low %v10662_v3, %v1321_v62  ;;  %v10700_v16 = vmul.u32.u64.high %v10662_v3, %v1321_v62, %v10699_v6  ;;  %v1394_v8 = vsel %vm1393_vm11, %v1392_v45, 0  ;;  %v897_v63 = vpop.permute.xlu1 %896 }
 0x175   : > { %v10705_v20 = vmul.u32.u64.low %v10662_v3, %v1325_v4  ;;  %v10706_v21 = vmul.u32.u64.high %v10662_v3, %v1325_v4, %v10705_v20  ;;  %v1237_v13 = vshll.u32 %v10695_v1, 30  ;;  %v1396_v15 = vand.u32 31, %v1394_v8 }
 0x176   : > { %v1390_v24 = vor.u32 8388608, %v1389_v0  ;;  %v1061_v26 = vadd.f32 %v10637_v11, %v10634_v10  ;;  %v1333_v31 = vmul.u32 %v10662_v3, %v1317_v18  ;;  %v1336_v12 = vadd.s32 1, %v10700_v16 }
 0x177   : > { %v10711_v29 = vsub.s32 %v1234_v46, %v1237_v13  ;;  %v1397_v57 = vsub.s32 32, %v1396_v15  ;;  %vm1335_vm12 = vc.u32 %v10706_v21, %v10699_v6  ;;  %v1395_v36 = vshrl.u32 %v1394_v8, 5 }
 0x178   : > { %v1399_v37 = vshll.u32 %v13292_v17, %v1396_v15  ;;  %v1402_v38 = vshll.u32 %v13287_v19, %v1396_v15  ;;  %v1337_v10 = vsel %vm1335_vm12, %v1336_v12, %v10700_v16  ;;  %v1405_v3 = vshll.u32 %v13289_v22, %v1396_v15 }
 0x179   : > { %v1240_v40 = vsub.s32 0, %v10711_v29  ;;  %v1400_v11 = vshrl.u32 %v13287_v19, %v1397_v57  ;;  %v1338_v41 = vadd.s32 %v1337_v10, %v1333_v31  ;;  %v1403_v42 = vshrl.u32 %v13289_v22, %v1397_v57 }
 0x17a   : > { %v1406_v44 = vshrl.u32 %v13300_v25, %v1397_v57  ;;  %v1408_v45 = vshll.u32 %v13300_v25, %v1396_v15  ;;  %v1409_v49 = vshrl.u32 %v13305_v28, %v1397_v57  ;;  %v1411_v50 = vshll.u32 %v13305_v28, %v1396_v15 }
 0x17b   : > { %v8688_v46 = vmin.u32 %v1240_v40, %v10711_v29  ;;  %v1401_v48 = vor.u32 %v1400_v11, %v1399_v37  ;;  %v1339_v51 = vadd.s32 536870912, %v1338_v41  ;;  %v1404_v52 = vor.u32 %v1403_v42, %v1402_v38 }
 0x17c   : > { %v1407_v53 = vor.u32 %v1406_v44, %v1405_v3  ;;  %v1412_v55 = vshrl.u32 %v13294_v39, %v1397_v57  ;;  %v1410_v59 = vor.u32 %v1409_v49, %v1408_v45  ;;  %v1430_v61 = vshll.u32 %v1390_v24, 8  ;;  %v992_v3 = vpop.permute.xlu1 %991 }
 0x17d   : > { %v1242_v56 = vclz %v8688_v46  ;;  %v1145_v62 = vmul.f32 %v10606_v34, %v1088_v35  ;;  %v10731_v0 = vshrl.u32 %v1339_v51, 30  ;;  %v1398_v4 = vshrl.u32 %v13292_v17, %v1397_v57 }
 0x17e   : > { %v1413_v16 = vor.u32 %v1412_v55, %v1411_v50  ;;  %vm1414_vm13 = vcmp.lt.s32.totalorder %v1395_v36, 1  ;;  %vm1416_vm14 = vcmp.lt.s32.totalorder %v1395_v36, 3  ;;  %vm1417_vm15 = vcmp.lt.s32.totalorder %v1395_v36, 4 }
 0x17f   : > { %v8689_v18 = vadd.s32 4294967294, %v1242_v56  ;;  %v1422_v20 = vsel %vm1414_vm13, %v1401_v48, %v1404_v52  ;;  %v1341_v8 = vshll.u32 %v10731_v0, 30  ;;  %v1419_v13 = vsel %vm1417_vm15, %v1407_v53, 2102212464 }
 0x180   : > { %v1423_v15 = vsel %vm1417_vm15, %v1410_v59, 920167782  ;;  %v1426_v24 = vsel %vm1414_vm13, %v1404_v52, %v1407_v53  ;;  %vm1415_vm1 = vcmp.lt.s32.totalorder %v1395_v36, 2  ;;  %v1427_v12 = vsel %vm1417_vm15, %v1413_v16, 1326507024  ;;  %v996_v56 = vpop.permute.xlu1 %995 }
 0x181   : > { %vm8690_vm0 = vcmp.lt.s32.totalorder %v8689_v18, 0  ;;  %v1424_v31 = vsel %vm1416_vm14, %v1407_v53, %v1423_v15  ;;  %v10738_v35 = vsub.s32 %v1338_v41, %v1341_v8  ;;  %v1428_v37 = vsel %vm1416_vm14, %v1410_v59, %v1427_v12 }
 0x182   : > { %v1425_v57 = vsel %vm1415_vm1, %v1422_v20, %v1424_v31  ;;  %v10742_v38 = vadd.f32 %v1145_v62, %v1061_v26  ;;  %v1418_v40 = vsel %vm1414_vm13, %v1398_v4, %v1401_v48  ;;  %v1420_v10 = vsel %vm1416_vm14, %v1404_v52, %v1419_v13 }
 0x183   : > { %v1429_v11 = vsel %vm1415_vm1, %v1426_v24, %v1428_v37  ;;  %v1245_v42 = vsel %vm8690_vm0, 0, %v8689_v18  ;;  %v1344_v44 = vsub.s32 0, %v10738_v35  ;;  %v1421_v51 = vsel %vm1415_vm1, %v1418_v40, %v1420_v10  ;;  %v902_v10 = vpop.permute.xlu0 %901 }
 0x184   : > { %13431 = vst [vmem:[#allocation21_spill] sm:$0xff] %v10742_v38  ;;  %v10748_v45 = vmul.u32.u64.low %v1430_v61, %v1429_v11  ;;  %v10749_v46 = vmul.u32.u64.high %v1430_v61, %v1429_v11, %v10748_v45  ;;  %v10751_v41 = vmul.u32.u64.low %v1430_v61, %v1425_v57  ;;  %v10752_v49 = vmul.u32.u64.high %v1430_v61, %v1425_v57, %v10751_v41  ;;  %v1096_v11 = vpop.permute.xlu1 %1095 }
 0x185   : > { %v8692_v26 = vmin.u32 %v1344_v44, %v10738_v35  ;;  %v1489_v50 = vand.u32 2139095040, %v10742_v38  ;;  %v1250_v48 = vsub.s32 4294967266, %v1245_v42  ;;  %v1437_v62 = vmul.u32 %v1430_v61, %v1421_v51 }
 0x186   : > { %vm1439_vm2 = vc.u32 %v10749_v46, %v10751_v41  ;;  %v1440_v53 = vadd.s32 1, %v10752_v49  ;;  %v1246_v4 = vsub.s32 32, %v1245_v42  ;;  %v1046_v36 = vmul.f32 %v10601_v32, %v992_v3 }
 0x187   : > { %v1346_v52 = vclz %v8692_v26  ;;  %v1490_v55 = vshrl.u32 %v1489_v50, 23  ;;  %v1251_v16 = vadd.s32 127, %v1250_v48  ;;  %v1230_v13 = vadd.s32 %v10669_v9, %v10666_v7 }
 0x188   : > { %v1441_v18 = vsel %vm1439_vm2, %v1440_v53, %v10752_v49  ;;  %v1146_v31 = vmul.f32 %v10606_v34, %v10599_v30  ;;  %v962_v61 = vmul.f32 %v10604_v33, %v897_v63  ;;  %v13284_v40 = vand.u32 2147483647, %v10742_v38 }
 0x189   : > { %v8693_v59 = vadd.s32 4294967294, %v1346_v52  ;;  %v8699_v20 = vadd.s32 4294967169, %v1490_v55  ;;  %v1442_v8 = vadd.s32 %v1441_v18, %v1437_v62  ;;  %v1248_v57 = vshrl.u32 %v1230_v13, %v1246_v4 }
 0x18a   : > { %v1252_v37 = vshll.u32 %v1251_v16, 23  ;;  %v1062_v9 = vadd.f32 %v1046_v36, %v962_v61  ;;  %v1247_v45 = vshll.u32 %v10711_v29, %v1245_v42  ;;  %v963_v63 = vmul.f32 %v10604_v33, %v902_v10 }
 0x18b   : > { %vm8694_vm3 = vcmp.lt.s32.totalorder %v8693_v59, 0  ;;  %v1496_v24 = vadd.s32 1, %v8699_v20  ;;  %v1443_v12 = vadd.s32 536870912, %v1442_v8  ;;  %v1047_v26 = vmul.f32 %v10601_v32, %v996_v56 }
 0x18c   : > { %v10765_v15 = vsel %vm8694_vm3, 0, %v8693_v59  ;;  %v10779_v50 = vmul.f32 %v10606_v34, %v1096_v11  ;;  %v10781_v48 = vor.u32 %v1248_v57, %v1247_v45  ;;  %v10783_v51 = vor.u32 4788187, %v1252_v37 }
 0x18d   : > { %vm1497_vm4 = vcmp.gt.s32.totalorder %v1496_v24, 0  ;;  %v1354_v3 = vsub.s32 4294967266, %v10765_v15  ;;  %v10772_v44 = vshrl.u32 %v1443_v12, 30  ;;  %v1334_v52 = vadd.s32 %v10699_v6, %v10706_v21 }
 0x18e   : > { %v1498_v7 = vsel %vm1497_vm4, %v1496_v24, 0  ;;  %v1493_v42 = vand.u32 8388607, %v13284_v40  ;;  %v10791_v59 = vadd.f32 %v1146_v31, %v1062_v9  ;;  %v1350_v37 = vsub.s32 32, %v10765_v15 }
 0x18f   : > { %13432 = vst [vmem:[#allocation22_spill] sm:$0xff] %v10772_v44  ;;  %v1500_v49 = vand.u32 31, %v1498_v7  ;;  %v1445_v30 = vshll.u32 %v10772_v44, 30  ;;  %v1355_v55 = vadd.s32 127, %v1354_v3  ;;  %v1499_v6 = vshrl.u32 %v1498_v7, 5 }
 0x190   : > { %13433 = vst [vmem:[#allocation23_spill] sm:$0xff] %v10791_v59  ;;  %v1494_v10 = vor.u32 8388608, %v1493_v42  ;;  %v1063_v3 = vadd.f32 %v1047_v26, %v963_v63  ;;  %v1351_v42 = vshll.u32 %v10738_v35, %v10765_v15  ;;  %vm1176_vm12 = vcmp.lt.s32.totalorder %v10613_v43, 0 }
 0x191   : > { %v1501_v53 = vsub.s32 32, %v1500_v49  ;;  %v10787_v29 = vsub.s32 %v1442_v8, %v1445_v30  ;;  %v1503_v56 = vshll.u32 %v13292_v17, %v1500_v49  ;;  %v1506_v4 = vshll.u32 %v13287_v19, %v1500_v49 }
 0x192   : > { %v1509_v21 = vshll.u32 %v13289_v22, %v1500_v49  ;;  %v1512_v13 = vshll.u32 %v13300_v25, %v1500_v49  ;;  %v1515_v61 = vshll.u32 %v13305_v28, %v1500_v49  ;;  %vm1518_vm5 = vcmp.lt.s32.totalorder %v1499_v6, 1 }
 0x193   : > { %v1504_v62 = vshrl.u32 %v13287_v19, %v1501_v53  ;;  %v1507_v16 = vshrl.u32 %v13289_v22, %v1501_v53  ;;  %v1448_v18 = vsub.s32 0, %v10787_v29  ;;  %v1510_v20 = vshrl.u32 %v13300_v25, %v1501_v53 }
 0x194   : > { %v1513_v24 = vshrl.u32 %v13305_v28, %v1501_v53  ;;  %v1516_v57 = vshrl.u32 %v13294_v39, %v1501_v53  ;;  %vm1521_vm6 = vcmp.lt.s32.totalorder %v1499_v6, 4  ;;  %vm1520_vm7 = vcmp.lt.s32.totalorder %v1499_v6, 3 }
 0x195   : > { %v1505_v8 = vor.u32 %v1504_v62, %v1503_v56  ;;  %v1508_v36 = vor.u32 %v1507_v16, %v1506_v4  ;;  %v8696_v31 = vmin.u32 %v1448_v18, %v10787_v29  ;;  %v1511_v12 = vor.u32 %v1510_v20, %v1509_v21 }
 0x196   : > { %v1514_v11 = vor.u32 %v1513_v24, %v1512_v13  ;;  %v1517_v9 = vor.u32 %v1516_v57, %v1515_v61  ;;  %v1593_v56 = vand.u32 2139095040, %v10791_v59  ;;  %v1254_v62 = vand.u32 2147483647, %v10783_v51 }
 0x197   : > { %v1450_v7 = vclz %v8696_v31  ;;  %v1526_v45 = vsel %vm1518_vm5, %v1505_v8, %v1508_v36  ;;  %v1356_v49 = vshll.u32 %v1355_v55, 23  ;;  %vm1519_vm8 = vcmp.lt.s32.totalorder %v1499_v6, 2 }
 0x198   : > { %v1527_v30 = vsel %vm1521_vm6, %v1514_v11, 920167782  ;;  %v1523_v63 = vsel %vm1521_vm6, %v1511_v12, 2102212464  ;;  %v1530_v26 = vsel %vm1518_vm5, %v1508_v36, %v1511_v12  ;;  %v1502_v18 = vshrl.u32 %v13292_v17, %v1501_v53 }
 0x199   : > { %v8697_v4 = vadd.s32 4294967294, %v1450_v7  ;;  %v1528_v16 = vsel %vm1520_vm7, %v1511_v12, %v1527_v30  ;;  %v1531_v20 = vsel %vm1521_vm6, %v1517_v9, 1326507024  ;;  %v1534_v13 = vshll.u32 %v1494_v10, 8 }
 0x19a   : > { %v1529_v21 = vsel %vm1519_vm8, %v1526_v45, %v1528_v16  ;;  %v1352_v24 = vshrl.u32 %v1334_v52, %v1350_v37  ;;  %v1532_v51 = vsel %vm1520_vm7, %v1514_v11, %v1531_v20  ;;  %v1594_v55 = vshrl.u32 %v1593_v56, 23  ;;  %v9533_v45 = vld [vmem:[%s13435_s28 + $0x4] ss:$8 sps:$4 sm:$0xff]  }
 0x19b   : > { %vm8698_vm9 = vcmp.lt.s32.totalorder %v8697_v4, 0  ;;  %v1357_v31 = vor.u32 4788187, %v1356_v49  ;;  %v1522_v61 = vsel %vm1518_vm5, %v1502_v18, %v1505_v8  ;;  %v1524_v35 = vsel %vm1520_vm7, %v1508_v36, %v1523_v63  ;;  %4560 = vmatprep.subr.bf16.mxu0 %v9533_v45 }
 0x19c   : > { %v1533_v15 = vsel %vm1519_vm8, %v1530_v26, %v1532_v51  ;;  %v10822_v53 = vmul.u32.u64.low %v1534_v13, %v1529_v21  ;;  %v10823_v7 = vmul.u32.u64.high %v1534_v13, %v1529_v21, %v10822_v53  ;;  %v1256_v52 = vcvt.s32.f32 %v10781_v48  ;;  %v9535_v48 = vld [vmem:[%s13435_s28] ss:$8 sps:$4 sm:$0xff]   ;;  %v9536_v26 = vld [vmem:[%s13435_s28 + $0x14] ss:$8 sps:$4 sm:$0xff]  }
 0x19d   : > { %v10819_v57 = vmul.u32.u64.low %v1534_v13, %v1533_v15  ;;  %v10820_v12 = vmul.u32.u64.high %v1534_v13, %v1533_v15, %v10819_v57  ;;  %v10827_v37 = vsel %vm8698_vm9, 0, %v8697_v4  ;;  %v13283_v10 = vand.u32 2147483647, %v10791_v59  ;;  %4561 = vmatpush1.bf16.msra.mxu0 %v9535_v48 }
 0x19e   : > { %v8703_v11 = vadd.s32 4294967169, %v1594_v55  ;;  %v1353_v9 = vor.u32 %v1352_v24, %v1351_v42  ;;  %v1525_v8 = vsel %vm1519_vm8, %v1522_v61, %v1524_v35  ;;  %v10832_v36 = vadd.f32 %v10779_v50, %v1063_v3  ;;  %4562 = vmatprep.subr.bf16.mxu0 %v9536_v26 }
 0x19f   : > { %v10837_v30 = vmul.f32 %v1256_v52, %v1254_v62  ;;  %v1358_v49 = vand.u32 2147483647, %v1357_v31  ;;  %v1458_v4 = vsub.s32 4294967266, %v10827_v37  ;;  %vm1543_vm10 = vc.u32 %v10820_v12, %v10822_v53 }
 0x1a0   : > { %13434 = vst [vmem:[#allocation24_spill] sm:$0xff] %v10832_v36  ;;  %v1600_v56 = vadd.s32 1, %v8703_v11  ;;  %v1544_v50 = vadd.s32 1, %v10823_v7  ;;  %v1541_v6 = vmul.u32 %v1534_v13, %v1525_v8  ;;  %v1597_v3 = vand.u32 8388607, %v13283_v10 }
 0x1a1   : > { %v1360_v62 = vcvt.s32.f32 %v1353_v9  ;;  %v1697_v63 = vand.u32 2139095040, %v10832_v36  ;;  %v1438_v18 = vadd.s32 %v10751_v41, %v10749_v46  ;;  %v9538_v13 = vld [vmem:[%s13435_s28 + $0x10] ss:$8 sps:$4 sm:$0xff]   ;;  %v1258_v24 = vxor.u32 2147483648, %v10837_v30 }
 0x1a2   : > { %vm1601_vm11 = vcmp.gt.s32.totalorder %v1600_v56, 0  ;;  %v1545_v16 = vsel %vm1543_vm10, %v1544_v50, %v10823_v7  ;;  %v1454_v55 = vsub.s32 32, %v10827_v37  ;;  %v1459_v31 = vadd.s32 127, %v1458_v4  ;;  %4563 = vmatpush1.bf16.msra.mxu0 %v9538_v13  ;;  %v912_v50 = vpop.permute.xlu0 %911 }
 0x1a3   : > { %v1602_v42 = vsel %vm1601_vm11, %v1600_v56, 0  ;;  %v1546_v21 = vadd.s32 %v1545_v16, %v1541_v6  ;;  %v10859_v51 = vmul.f32 %v1360_v62, %v1358_v49  ;;  %v1598_v35 = vor.u32 8388608, %v1597_v3 }
 0x1a4   : > { %v1604_v20 = vand.u32 31, %v1602_v42  ;;  %v13286_v57 = vand.u32 2147483647, %v10832_v36  ;;  %v10863_v46 = vshrl.u32 %v1602_v42, 5  ;;  %v1698_v52 = vshrl.u32 %v1697_v63, 23 }
 0x1a5   : > { %v1547_v61 = vadd.s32 536870912, %v1546_v21  ;;  %v1455_v6 = vshll.u32 %v10787_v29, %v10827_v37  ;;  %v1456_v42 = vshrl.u32 %v1438_v18, %v1454_v55  ;;  %v1638_v40 = vshll.u32 %v1598_v35, 8 }
 0x1a6   : > { %v1605_v15 = vsub.s32 32, %v1604_v20  ;;  %v1607_v41 = vshll.u32 %v13292_v17, %v1604_v20  ;;  %v1610_v7 = vshll.u32 %v13287_v19, %v1604_v20  ;;  %v1613_v8 = vshll.u32 %v13289_v22, %v1604_v20 }
 0x1a7   : > { %v10867_v11 = vshrl.u32 %v1547_v61, 30  ;;  %v1616_v45 = vshll.u32 %v13300_v25, %v1604_v20  ;;  %v1619_v16 = vshll.u32 %v13305_v28, %v1604_v20  ;;  %v1460_v61 = vshll.u32 %v1459_v31, 23 }
 0x1a8   : > { %v1608_v9 = vshrl.u32 %v13287_v19, %v1605_v15  ;;  %v1611_v56 = vshrl.u32 %v13289_v22, %v1605_v15  ;;  %v1614_v48 = vshrl.u32 %v13300_v25, %v1605_v15  ;;  %v1617_v49 = vshrl.u32 %v13305_v28, %v1605_v15 }
 0x1a9   : > { %v1620_v4 = vshrl.u32 %v13294_v39, %v1605_v15  ;;  %v1549_v3 = vshll.u32 %v10867_v11, 30  ;;  %v1606_v14 = vshrl.u32 %v13292_v17, %v1605_v15  ;;  %vm1622_vm13 = vcmp.lt.s32.totalorder %v10863_v46, 1  ;;  %v10894_v15 = vpop.permute.xlu0 %921 }
 0x1aa   : > { %v1609_v62 = vor.u32 %v1608_v9, %v1607_v41  ;;  %v1612_v63 = vor.u32 %v1611_v56, %v1610_v7  ;;  %v1615_v26 = vor.u32 %v1614_v48, %v1613_v8  ;;  %v1618_v13 = vor.u32 %v1617_v49, %v1616_v45  ;;  %v907_v9 = vpop.permute.xlu1 %906 }
 0x1ab   : > { %v10881_v2 = vsub.s32 %v1546_v21, %v1549_v3  ;;  %v1621_v10 = vor.u32 %v1620_v4, %v1619_v16  ;;  %v8707_v29 = vadd.s32 4294967169, %v1698_v52  ;;  %v1701_v37 = vand.u32 8388607, %v13286_v57 }
 0x1ac   : > { %vm1624_vm14 = vcmp.lt.s32.totalorder %v10863_v46, 3  ;;  %vm1625_vm15 = vcmp.lt.s32.totalorder %v10863_v46, 4  ;;  %v1630_v21 = vsel %vm1622_vm13, %v1609_v62, %v1612_v63  ;;  %v1634_v31 = vsel %vm1622_vm13, %v1612_v63, %v1615_v26 }
 0x1ad   : > { %v1552_v18 = vsub.s32 0, %v10881_v2  ;;  %v1627_v20 = vsel %vm1625_vm15, %v1615_v26, 2102212464  ;;  %v1631_v55 = vsel %vm1625_vm15, %v1618_v13, 920167782  ;;  %vm1623_vm0 = vcmp.lt.s32.totalorder %v10863_v46, 2 }
 0x1ae   : > { %v1635_v35 = vsel %vm1625_vm15, %v1621_v10, 1326507024  ;;  %v1632_v7 = vsel %vm1624_vm14, %v1615_v26, %v1631_v55  ;;  %v1626_v8 = vsel %vm1622_vm13, %v1606_v14, %v1609_v62  ;;  %v1704_v56 = vadd.s32 1, %v8707_v29  ;;  %v10934_v55 = vpop.permute.xlu0 %931 }
 0x1af   : > { %v8700_v41 = vmin.u32 %v1552_v18, %v10881_v2  ;;  %v1636_v52 = vsel %vm1624_vm14, %v1618_v13, %v1635_v35  ;;  %v1633_v45 = vsel %vm1623_vm0, %v1630_v21, %v1632_v7  ;;  %v1628_v49 = vsel %vm1624_vm14, %v1612_v63, %v1627_v20 }
 0x1b0   : > { %v1637_v10 = vsel %vm1623_vm0, %v1634_v31, %v1636_v52  ;;  %v10913_v16 = vmul.u32.u64.low %v1638_v40, %v1633_v45  ;;  %v10914_v26 = vmul.u32.u64.high %v1638_v40, %v1633_v45, %v10913_v16  ;;  %v10918_v14 = vmul.f32 %v10604_v33, %v912_v50 }
 0x1b1   : > { %v1554_v48 = vclz %v8700_v41  ;;  %v10910_v4 = vmul.u32.u64.low %v1638_v40, %v1637_v10  ;;  %v10911_v3 = vmul.u32.u64.high %v1638_v40, %v1637_v10, %v10910_v4  ;;  %vm1705_vm1 = vcmp.gt.s32.totalorder %v1704_v56, 0 }
 0x1b2   : > { %v10920_v62 = vor.u32 %v1456_v42, %v1455_v6  ;;  %v10922_v13 = vor.u32 4788187, %v1460_v61  ;;  %v1706_v18 = vsel %vm1705_vm1, %v1704_v56, 0  ;;  %v10929_v63 = vsel %vm1176_vm12, %v1258_v24, %v10837_v30  ;;  %v1000_v61 = vpop.permute.xlu1 %999 }
 0x1b3   : > { %v8701_v29 = vadd.s32 4294967294, %v1554_v48  ;;  %v1629_v50 = vsel %vm1623_vm0, %v1626_v8, %v1628_v49  ;;  %v1708_v20 = vand.u32 31, %v1706_v18  ;;  %vm1647_vm3 = vc.u32 %v10911_v3, %v10913_v16 }
 0x1b4   : > { %v1702_v6 = vor.u32 8388608, %v1701_v37  ;;  %v964_v42 = vmul.f32 %v10604_v33, %v907_v9  ;;  %v1542_v30 = vadd.s32 %v10822_v53, %v10820_v12  ;;  %v1648_v31 = vadd.s32 1, %v10914_v26 }
 0x1b5   : > { %vm8702_vm2 = vcmp.lt.s32.totalorder %v8701_v29, 0  ;;  %v1709_v46 = vsub.s32 32, %v1708_v20  ;;  %v1462_v35 = vand.u32 2147483647, %v10922_v13  ;;  %v1464_v41 = vcvt.s32.f32 %v10920_v62 }
 0x1b6   : > { %v10941_v24 = vsel %vm8702_vm2, 0, %v8701_v29  ;;  %v1645_v52 = vmul.u32 %v1638_v40, %v1629_v50  ;;  %v1649_v37 = vsel %vm1647_vm3, %v1648_v31, %v10914_v26  ;;  %v1048_v12 = vmul.f32 %v10601_v32, %v1000_v61  ;;  %v1100_v26 = vpop.permute.xlu0 %1099 }
 0x1b7   : > { %v1562_v7 = vsub.s32 4294967266, %v10941_v24  ;;  %v1712_v9 = vshrl.u32 %v13287_v19, %v1709_v46  ;;  %v1715_v8 = vshrl.u32 %v13289_v22, %v1709_v46  ;;  %v1707_v45 = vshrl.u32 %v1706_v18, 5 }
 0x1b8   : > { %v1650_v53 = vadd.s32 %v1649_v37, %v1645_v52  ;;  %v1711_v10 = vshll.u32 %v13292_v17, %v1708_v20  ;;  %v10952_v56 = vshll.u32 %v1702_v6, 8  ;;  %v1714_v49 = vshll.u32 %v13287_v19, %v1708_v20  ;;  %v1004_v52 = vpop.permute.xlu1 %1003 }
 0x1b9   : > { %v1563_v48 = vadd.s32 127, %v1562_v7  ;;  %v1717_v4 = vshll.u32 %v13289_v22, %v1708_v20  ;;  %v1718_v40 = vshrl.u32 %v13300_v25, %v1709_v46  ;;  %v1720_v31 = vshll.u32 %v13300_v25, %v1708_v20 }
 0x1ba   : > { %v1651_v29 = vadd.s32 536870912, %v1650_v53  ;;  %v1713_v50 = vor.u32 %v1712_v9, %v1711_v10  ;;  %v1721_v61 = vshrl.u32 %v13305_v28, %v1709_v46  ;;  %v1716_v18 = vor.u32 %v1715_v8, %v1714_v49 }
 0x1bb   : > { %v1719_v37 = vor.u32 %v1718_v40, %v1717_v4  ;;  %v1723_v6 = vshll.u32 %v13305_v28, %v1708_v20  ;;  %v1724_v7 = vshrl.u32 %v13294_v39, %v1709_v46  ;;  %v1064_v22 = vadd.f32 %v1048_v12, %v964_v42 }
 0x1bc   : > { %v10961_v57 = vshrl.u32 %v1651_v29, 30  ;;  %v1722_v19 = vor.u32 %v1721_v61, %v1720_v31  ;;  %v1148_v21 = vmul.f32 %v10606_v34, %v1100_v26  ;;  %vm10966_vm4 = vcmp.le.f32.partialorder %v1174_v47, 0.7853982 }
 0x1bd   : > { %v13437_v9 = vmov 0  ;;  %v1558_v10 = vsub.s32 32, %v10941_v24  ;;  %v1710_v8 = vshrl.u32 %v13292_v17, %v1709_v46  ;;  %v1725_v49 = vor.u32 %v1724_v7, %v1723_v6 }
 0x1be   : > { %13436 = vst [vmem:[#allocation25_spill] sm:$0xff] %v10961_v57  ;;  %v13438_v9 = vsel %vm10966_vm4, 4294967295, %v13437_v9  ;;  %v1049_v20 = vmul.f32 %v10601_v32, %v1004_v52  ;;  %vm1280_vm5 = vcmp.lt.s32.totalorder %v10622_v54, 0  ;;  %v1564_v4 = vshll.u32 %v1563_v48, 23 }
 0x1bf   : > { %13439 = vst [vmem:[#allocation26_spill] sm:$0xff] %v13438_v9  ;;  %v1653_v42 = vshll.u32 %v10961_v57, 30  ;;  %vm1726_vm6 = vcmp.lt.s32.totalorder %v1707_v45, 1  ;;  %vm1729_vm7 = vcmp.lt.s32.totalorder %v1707_v45, 4  ;;  %vm1728_vm8 = vcmp.lt.s32.totalorder %v1707_v45, 3 }
 0x1c0   : > { %v1731_v12 = vsel %vm1729_vm7, %v1719_v37, 2102212464  ;;  %v1734_v47 = vsel %vm1726_vm6, %v1713_v50, %v1716_v18  ;;  %v1735_v40 = vsel %vm1729_vm7, %v1722_v19, 920167782  ;;  %vm1727_vm9 = vcmp.lt.s32.totalorder %v1707_v45, 2 }
 0x1c1   : > { %v10976_v26 = vsub.s32 %v1650_v53, %v1653_v42  ;;  %v1736_v46 = vsel %vm1728_vm8, %v1719_v37, %v1735_v40  ;;  %v1738_v29 = vsel %vm1726_vm6, %v1716_v18, %v1719_v37  ;;  %v1560_v31 = vshrl.u32 %v1542_v30, %v1558_v10 }
 0x1c2   : > { %v1737_v61 = vsel %vm1727_vm9, %v1734_v47, %v1736_v46  ;;  %v1739_v48 = vsel %vm1729_vm7, %v1725_v49, 1326507024  ;;  %v10981_v52 = vadd.f32 %v1148_v21, %v1064_v22  ;;  %vm10985_vm10 = vcmp.le.f32.partialorder %v1278_v58, 0.7853982  ;;  %v1104_v58 = vpop.permute.xlu1 %1103 }
 0x1c3   : > { %v13441_v6 = vmov 0  ;;  %v1656_v53 = vsub.s32 0, %v10976_v26  ;;  %v1730_v7 = vsel %vm1726_vm6, %v1710_v8, %v1713_v50  ;;  %v1732_v42 = vsel %vm1728_vm8, %v1716_v18, %v1731_v12 }
 0x1c4   : > { %13440 = vst [vmem:[#allocation27_spill] sm:$0xff] %v10981_v52  ;;  %v13442_v6 = vsel %vm10985_vm10, 4294967295, %v13441_v6  ;;  %v1740_v37 = vsel %vm1728_vm8, %v1722_v19, %v1739_v48  ;;  %v1565_v30 = vor.u32 4788187, %v1564_v4  ;;  %v1559_v49 = vshll.u32 %v10881_v2, %v10941_v24 }
 0x1c5   : > { %13443 = vst [vmem:[#allocation28_spill] sm:$0xff] %v13442_v6  ;;  %v1741_v10 = vsel %vm1727_vm9, %v1738_v29, %v1740_v37  ;;  %v10995_v22 = vmul.u32.u64.low %v10952_v56, %v1737_v61  ;;  %v10996_v21 = vmul.u32.u64.high %v10952_v56, %v1737_v61, %v10995_v22  ;;  %v8704_v47 = vmin.u32 %v1656_v53, %v10976_v26 }
 0x1c6   : > { %v11003_v50 = vmul.u32.u64.low %v10952_v56, %v1741_v10  ;;  %v11004_v8 = vmul.u32.u64.high %v10952_v56, %v1741_v10, %v11003_v50  ;;  %vm13340_vm11 = vcmp.lt.s32.totalorder %v10628_v60, 0  ;;  %v1465_v19 = vmul.f32 %v1464_v41, %v1462_v35 }
 0x1c7   : > { %v1733_v18 = vsel %vm1727_vm9, %v1730_v7, %v1732_v42  ;;  %v1801_v4 = vand.u32 2139095040, %v10981_v52  ;;  %v1262_v2 = vsel %vm10966_vm4, %v10613_v43, %v10929_v63  ;;  %v1561_v24 = vor.u32 %v1560_v31, %v1559_v49 }
 0x1c8   : > { %v1658_v12 = vclz %v8704_v47  ;;  %v1149_v40 = vmul.f32 %v10606_v34, %v1104_v58  ;;  %v13444_v46 = vxor.u32 2147483648, %v10859_v51  ;;  %v1566_v13 = vand.u32 2147483647, %v1565_v30 }
 0x1c9   : > { %v1752_v35 = vadd.s32 1, %v10996_v21  ;;  %v1802_v41 = vshrl.u32 %v1801_v4, 23  ;;  %v1749_v29 = vmul.u32 %v10952_v56, %v1733_v18  ;;  %vm1751_vm13 = vc.u32 %v11004_v8, %v10995_v22 }
 0x1ca   : > { %v1363_v62 = vsel %vm1280_vm5, %v13444_v46, %v10859_v51  ;;  %v8705_v45 = vadd.s32 4294967294, %v1658_v12  ;;  %v1065_v63 = vadd.f32 %v1049_v20, %v10918_v14  ;;  %v1466_v31 = vxor.u32 2147483648, %v1465_v19 }
 0x1cb   : > { %v1753_v61 = vsel %vm1751_vm13, %v1752_v35, %v10996_v21  ;;  %v13291_v48 = vand.u32 2147483647, %v10981_v52  ;;  %v8711_v53 = vadd.s32 4294967169, %v1802_v41  ;;  %v1568_v7 = vcvt.s32.f32 %v1561_v24 }
 0x1cc   : > { %vm8706_vm14 = vcmp.lt.s32.totalorder %v8705_v45, 0  ;;  %v1754_v51 = vadd.s32 %v1753_v61, %v1749_v29  ;;  %v11030_v42 = vadd.f32 %v1149_v40, %v1065_v63  ;;  %9913 = vcosq.f32 %v1262_v2 }
 0x1cd   : > { %v1366_v56 = vsel %vm10985_vm10, %v10622_v54, %v1363_v62  ;;  %v11035_v37 = vsel %vm8706_vm14, 0, %v8705_v45  ;;  %v1808_v30 = vadd.s32 1, %v8711_v53  ;;  %9915 = vsinq.f32 %v1262_v2  ;;  %v11053_v2 = vpop.permute.xlu1 %916 }
 0x1ce   : > { %13445 = vst [vmem:[#allocation29_spill] sm:$0xff] %v11030_v42  ;;  %v13446_v14 = vand.u32 2147483647, %v10628_v60  ;;  %v13447_v20 = vmov 0  ;;  %v11043_v10 = vmul.f32 %v1568_v7, %v1566_v13  ;;  %v1755_v21 = vadd.s32 536870912, %v1754_v51 }
 0x1cf   : > { %v1467_v58 = vsel %vm13340_vm11, %v1466_v31, %v1465_v19  ;;  %v1666_v49 = vsub.s32 4294967266, %v11035_v37  ;;  %v1805_v47 = vand.u32 8388607, %v13291_v48  ;;  %vm1809_vm0 = vcmp.gt.s32.totalorder %v1808_v30, 0 }
 0x1d0   : > { %vm11039_vm15 = vcmp.le.f32.partialorder %v13446_v14, 0.7853982  ;;  %9917 = vcosq.f32 %v1366_v56  ;;  %v11050_v50 = vshrl.u32 %v1755_v21, 30  ;;  %v1810_v18 = vsel %vm1809_vm0, %v1808_v30, 0 }
 0x1d1   : > { %v13448_v20 = vsel %vm11039_vm15, 4294967295, %v13447_v20  ;;  %v1905_v4 = vand.u32 2139095040, %v11030_v42  ;;  %9919 = vsinq.f32 %v1366_v56  ;;  %v11057_v24 = vmul.f32 %v10604_v33, %v10894_v15 }
 0x1d2   : > { %13449 = vst [vmem:[#allocation30_spill] sm:$0xff] %v13448_v20  ;;  %v11061_v19 = vmul.f32 %v10604_v33, %v10934_v55  ;;  %v1812_v12 = vand.u32 31, %v1810_v18  ;;  %v11066_v40 = vsel %vm11039_vm15, %v10628_v60, %v1467_v58  ;;  %v1646_v62 = vadd.s32 %v10913_v16, %v10911_v3  ;;  %v1008_v58 = vpop.permute.xlu1 %1007 }
 0x1d3   : > { %v1757_v13 = vshll.u32 %v11050_v50, 30  ;;  %v1662_v15 = vsub.s32 32, %v11035_v37  ;;  %v1667_v35 = vadd.s32 127, %v1666_v49  ;;  %v1806_v41 = vor.u32 8388608, %v1805_v47 }
 0x1d4   : > { %v1813_v45 = vsub.s32 32, %v1812_v12  ;;  %v1815_v29 = vshll.u32 %v13292_v17, %v1812_v12  ;;  %v13450_v63 = vmov 2475754826   ;;  %v1906_v61 = vshrl.u32 %v1905_v4, 23 }
 0x1d5   : > { %v11073_v55 = vsub.s32 %v1754_v51, %v1757_v13  ;;  %v1818_v31 = vshll.u32 %v13450_v63, %v1812_v12  ;;  %v13451_v7 = vmov 2131351028   ;;  %v1811_v14 = vshrl.u32 %v1810_v18, 5 }
 0x1d6   : > { %v1816_v53 = vshrl.u32 %v13450_v63, %v1813_v45  ;;  %v1819_v56 = vshrl.u32 %v13451_v7, %v1813_v45  ;;  %v1821_v3 = vshll.u32 %v13451_v7, %v1812_v12  ;;  %v1822_v16 = vshrl.u32 %v13300_v25, %v1813_v45  ;;  %v11084_v49 = vpop.eup %9913 }
 0x1d7   : > { %v1760_v30 = vsub.s32 0, %v11073_v55  ;;  %v1824_v21 = vshll.u32 %v13300_v25, %v1812_v12  ;;  %v1825_v51 = vshrl.u32 %v13305_v28, %v1813_v45  ;;  %v1668_v47 = vshll.u32 %v1667_v35, 23  ;;  %v11086_v46 = vpop.eup %9915 }
 0x1d8   : > { %v1817_v4 = vor.u32 %v1816_v53, %v1815_v29  ;;  %v1820_v13 = vor.u32 %v1819_v56, %v1818_v31  ;;  %v1823_v48 = vor.u32 %v1822_v16, %v1821_v3  ;;  %v1827_v27 = vshll.u32 %v13305_v28, %v1812_v12 }
 0x1d9   : > { %v8708_v17 = vmin.u32 %v1760_v30, %v11073_v55  ;;  %v1826_v39 = vor.u32 %v1825_v51, %v1824_v21  ;;  %v1828_v18 = vshrl.u32 %v13452_v23, %v1813_v45  ;;  %v1664_v5 = vshrl.u32 %v1646_v62, %v1662_v15 }
 0x1da   : > { %v11091_v25 = vshll.u32 %v1806_v41, 8  ;;  %v13307_v57 = vand.u32 2147483647, %v11030_v42  ;;  %v1050_v20 = vmul.f32 %v10601_v32, %v1008_v58  ;;  %v11095_v35 = vpop.eup %9917  ;;  %vm1488_vm1 = vcmp.lt.s32.totalorder %v10742_v38, 0 }
 0x1db   : > { %13453 = vst [vmem:[#allocation31_spill] sm:$0xff] %v11095_v35  ;;  %v1762_v29 = vclz %v8708_v17  ;;  %v1829_v31 = vor.u32 %v1828_v18, %v1827_v27  ;;  %vm1830_vm2 = vcmp.lt.s32.totalorder %v1811_v14, 1  ;;  %vm1833_vm3 = vcmp.lt.s32.totalorder %v1811_v14, 4  ;;  %v11098_v53 = vpop.eup %9919 }
 0x1dc   : > { %13454 = vst [vmem:[#allocation32_spill] sm:$0xff] %v11098_v53  ;;  %vm1832_vm6 = vcmp.lt.s32.totalorder %v1811_v14, 3  ;;  %v1838_v12 = vsel %vm1830_vm2, %v1817_v4, %v1820_v13  ;;  %v1839_v62 = vsel %vm1833_vm3, %v1826_v39, 920167782  ;;  %v8715_v15 = vadd.s32 4294967169, %v1906_v61 }
 0x1dd   : > { %v1669_v41 = vor.u32 4788187, %v1668_v47  ;;  %v8709_v56 = vadd.s32 4294967294, %v1762_v29  ;;  %v1840_v3 = vsel %vm1832_vm6, %v1823_v48, %v1839_v62  ;;  %v1842_v16 = vsel %vm1830_vm2, %v1820_v13, %v1823_v48 }
 0x1de   : > { %v1663_v30 = vshll.u32 %v10976_v26, %v11035_v37  ;;  %vm1831_vm7 = vcmp.lt.s32.totalorder %v1811_v14, 2  ;;  %v1835_v27 = vsel %vm1833_vm3, %v1823_v48, 2102212464  ;;  %v1843_v17 = vsel %vm1833_vm3, %v1829_v31, 1326507024 }
 0x1df   : > { %vm8710_vm8 = vcmp.lt.s32.totalorder %v8709_v56, 0  ;;  %v13455_v21 = vmov 683565275   ;;  %v1841_v58 = vsel %vm1831_vm7, %v1838_v12, %v1840_v3  ;;  %v1844_v18 = vsel %vm1832_vm6, %v1826_v39, %v1843_v17 }
 0x1e0   : > { %v1814_v51 = vshrl.u32 %v13455_v21, %v1813_v45  ;;  %v11108_v61 = vsel %vm8710_vm8, 0, %v8709_v56  ;;  %v1845_v47 = vsel %vm1831_vm7, %v1842_v16, %v1844_v18  ;;  %v1909_v29 = vand.u32 8388607, %v13307_v57 }
 0x1e1   : > { %v1912_v62 = vadd.s32 1, %v8715_v15  ;;  %v1665_v28 = vor.u32 %v1664_v5, %v1663_v30  ;;  %v1770_v26 = vsub.s32 4294967266, %v11108_v61  ;;  %v1836_v37 = vsel %vm1832_vm6, %v1820_v13, %v1835_v27  ;;  %v1108_v15 = vpop.permute.xlu0 %1107 }
 0x1e2   : > { %v1834_v48 = vsel %vm1830_vm2, %v1814_v51, %v1817_v4  ;;  %v11117_v45 = vmul.u32.u64.low %v11091_v25, %v1845_v47  ;;  %v11118_v31 = vmul.u32.u64.high %v11091_v25, %v1845_v47, %v11117_v45  ;;  %9921 = vcosq.f32 %v11066_v40 }
 0x1e3   : > { %v11121_v39 = vmul.u32.u64.low %v11091_v25, %v1841_v58  ;;  %v11122_v12 = vmul.u32.u64.high %v11091_v25, %v1841_v58, %v11121_v39  ;;  %v1670_v56 = vand.u32 2147483647, %v1669_v41  ;;  %vm1913_vm9 = vcmp.gt.s32.totalorder %v1912_v62, 0 }
 0x1e4   : > { %v966_v5 = vmul.f32 %v10604_v33, %v11053_v2  ;;  %v13456_v4 = vxor.u32 2147483648, %v11043_v10  ;;  %v1771_v3 = vadd.s32 127, %v1770_v26  ;;  %v1837_v16 = vsel %vm1831_vm7, %v1834_v48, %v1836_v37  ;;  %v1012_v26 = vpop.permute.xlu1 %1011 }
 0x1e5   : > { %v1914_v30 = vsel %vm1913_vm9, %v1912_v62, 0  ;;  %v1672_v27 = vcvt.s32.f32 %v1665_v28  ;;  %v1750_v41 = vadd.s32 %v10995_v22, %v11004_v8  ;;  %vm1855_vm13 = vc.u32 %v11118_v31, %v11121_v39 }
 0x1e6   : > { %v11133_v13 = vsel %vm1488_vm1, %v13456_v4, %v11043_v10  ;;  %v1916_v17 = vand.u32 31, %v1914_v30  ;;  %v1066_v51 = vadd.f32 %v1050_v20, %v966_v5  ;;  %v1856_v2 = vadd.s32 1, %v11122_v12 }
 0x1e7   : > { %v1910_v58 = vor.u32 8388608, %v1909_v29  ;;  %v1150_v18 = vmul.f32 %v10606_v34, %v1108_v15  ;;  %v11142_v10 = vmul.f32 %v1672_v27, %v1670_v56  ;;  %v1766_v14 = vsub.s32 32, %v11108_v61 }
 0x1e8   : > { %v1853_v47 = vmul.u32 %v11091_v25, %v1837_v16  ;;  %v1917_v28 = vsub.s32 32, %v1916_v17  ;;  %v1772_v62 = vshll.u32 %v1771_v3, 23  ;;  %v1857_v22 = vsel %vm1855_vm13, %v1856_v2, %v11122_v12 }
 0x1e9   : > { %v1915_v8 = vshrl.u32 %v1914_v30, 5  ;;  %v1919_v20 = vshll.u32 %v13455_v21, %v1916_v17  ;;  %v1922_v29 = vshll.u32 %v13450_v63, %v1916_v17  ;;  %v1925_v45 = vshll.u32 %v13451_v7, %v1916_v17 }
 0x1ea   : > { %v1858_v48 = vadd.s32 %v1857_v22, %v1853_v47  ;;  %v1920_v37 = vshrl.u32 %v13450_v63, %v1917_v28  ;;  %v1923_v56 = vshrl.u32 %v13451_v7, %v1917_v28  ;;  %v13457_v5 = vmov 2102212464  }
 0x1eb   : > { %v1926_v15 = vshrl.u32 %v13457_v5, %v1917_v28  ;;  %v1928_v25 = vshll.u32 %v13457_v5, %v1916_v17  ;;  %v13458_v4 = vmov 920167782   ;;  %v1674_v12 = vxor.u32 2147483648, %v11142_v10 }
 0x1ec   : > { %v1929_v3 = vshrl.u32 %v13458_v4, %v1917_v28  ;;  %v1859_v16 = vadd.s32 536870912, %v1858_v48  ;;  %v1931_v30 = vshll.u32 %v13458_v4, %v1916_v17  ;;  %v1932_v27 = vshrl.u32 %v13452_v23, %v1917_v28  ;;  %v11158_v60 = vpop.eup %9921 }
 0x1ed   : > { %v1921_v2 = vor.u32 %v1920_v37, %v1919_v20  ;;  %v1924_v47 = vor.u32 %v1923_v56, %v1922_v29  ;;  %v1927_v22 = vor.u32 %v1926_v15, %v1925_v45  ;;  %13459 = vst [vmem:[#allocation33_spill] sm:$0xff] %v11158_v60  ;;  %v13460_v44 = vand.u32 2147483647, %v10742_v38  ;;  %v1112_v45 = vpop.permute.xlu1 %1111 }
 0x1ee   : > { %v1930_v57 = vor.u32 %v1929_v3, %v1928_v25  ;;  %v1767_v6 = vshll.u32 %v11073_v55, %v11108_v61  ;;  %v1768_v53 = vshrl.u32 %v1750_v41, %v1766_v14  ;;  %v11168_v54 = vshrl.u32 %v1859_v16, 30 }
 0x1ef   : > { %vm11162_vm14 = vcmp.le.f32.partialorder %v13460_v44, 0.7853982  ;;  %v1950_v17 = vshll.u32 %v1910_v58, 8  ;;  %vm13326_vm0 = vcmp.lt.s32.totalorder %v10791_v59, 0  ;;  %v1773_v20 = vor.u32 4788187, %v1772_v62 }
 0x1f0   : > { %v1933_v37 = vor.u32 %v1932_v27, %v1931_v30  ;;  %vm1937_vm2 = vcmp.lt.s32.totalorder %v1915_v8, 4  ;;  %v11171_v29 = vadd.f32 %v1150_v18, %v1066_v51  ;;  %v1861_v44 = vshll.u32 %v11168_v54, 30 }
 0x1f1   : > { %v1918_v56 = vshrl.u32 %v13455_v21, %v1917_v28  ;;  %vm1934_vm3 = vcmp.lt.s32.totalorder %v1915_v8, 1  ;;  %v1939_v15 = vsel %vm1937_vm2, %v1927_v22, 2102212464  ;;  %vm1936_vm6 = vcmp.lt.s32.totalorder %v1915_v8, 3 }
 0x1f2   : > { %v1942_v55 = vsel %vm1934_vm3, %v1921_v2, %v1924_v47  ;;  %v1943_v61 = vsel %vm1937_vm2, %v1930_v57, 920167782  ;;  %v1051_v41 = vmul.f32 %v10601_v32, %v1012_v26  ;;  %v13463_v58 = vand.u32 2147483647, %v10791_v59 }
 0x1f3   : > { %v13464_v14 = vmov 0  ;;  %v11184_v51 = vsub.s32 %v1858_v48, %v1861_v44  ;;  %v1938_v18 = vsel %vm1934_vm3, %v1918_v56, %v1921_v2  ;;  %v1940_v28 = vsel %vm1936_vm6, %v1924_v47, %v1939_v15  ;;  %v927_v2 = vpop.permute.xlu1 %926 }
 0x1f4   : > { %vm11180_vm7 = vcmp.le.f32.partialorder %v13463_v58, 0.7853982  ;;  %v1946_v62 = vsel %vm1934_vm3, %v1924_v47, %v1927_v22  ;;  %v1769_v25 = vor.u32 %v1768_v53, %v1767_v6  ;;  %vm1935_vm8 = vcmp.lt.s32.totalorder %v1915_v8, 2 }
 0x1f5   : > { %v13465_v14 = vsel %vm11180_vm7, 4294967295, %v13464_v14  ;;  %v1944_v3 = vsel %vm1936_vm6, %v1927_v22, %v1943_v61  ;;  %v1947_v16 = vsel %vm1937_vm2, %v1933_v37, 1326507024  ;;  %v1774_v30 = vand.u32 2147483647, %v1773_v20 }
 0x1f6   : > { %13466 = vst [vmem:[#allocation34_spill] sm:$0xff] %v13465_v14  ;;  %v1864_v26 = vsub.s32 0, %v11184_v51  ;;  %v1945_v27 = vsel %vm1935_vm8, %v1942_v55, %v1944_v3  ;;  %v1948_v58 = vsel %vm1936_vm6, %v1930_v57, %v1947_v16  ;;  %v1941_v60 = vsel %vm1935_vm8, %v1938_v18, %v1940_v28 }
 0x1f7   : > { %v1949_v9 = vsel %vm1935_vm8, %v1946_v62, %v1948_v58  ;;  %v11191_v48 = vmul.u32.u64.low %v1950_v17, %v1945_v27  ;;  %v11192_v44 = vmul.u32.u64.high %v1950_v17, %v1945_v27, %v11191_v48  ;;  %vm1696_vm9 = vcmp.lt.s32.totalorder %v10832_v36, 0  ;;  %v1116_v58 = vpop.permute.xlu0 %1115 }
 0x1f8   : > { %v8712_v6 = vmin.u32 %v1864_v26, %v11184_v51  ;;  %v11196_v53 = vmul.u32.u64.low %v1950_v17, %v1949_v9  ;;  %v11197_v47 = vmul.u32.u64.high %v1950_v17, %v1949_v9, %v11196_v53  ;;  %v2009_v22 = vand.u32 2139095040, %v11171_v29 }
 0x1f9   : > { %9923 = vsinq.f32 %v11066_v40  ;;  %v1572_v8 = vsub.s32 4, %v10867_v11  ;;  %v1574_v57 = vsel %vm11162_vm14, %v10742_v38, %v11133_v13  ;;  %v1776_v20 = vcvt.s32.f32 %v1769_v25 }
 0x1fa   : > { %v1675_v37 = vsel %vm13326_vm0, %v1674_v12, %v11142_v10  ;;  %v1866_v56 = vclz %v8712_v6  ;;  %v2010_v15 = vshrl.u32 %v2009_v22, 23  ;;  %v1151_v9 = vmul.f32 %v10606_v34, %v1112_v45 }
 0x1fb   : > { %v1777_v55 = vmul.f32 %v1776_v20, %v1774_v30  ;;  %v1957_v61 = vmul.u32 %v1950_v17, %v1941_v60  ;;  %v1960_v40 = vadd.s32 1, %v11192_v44  ;;  %v13319_v18 = vand.u32 2147483647, %v11171_v29  ;;  %v1016_v60 = vpop.permute.xlu1 %1015 }
 0x1fc   : > { %v8713_v28 = vadd.s32 4294967294, %v1866_v56  ;;  %vm1959_vm13 = vc.u32 %v11197_v47, %v11191_v48  ;;  %v8719_v62 = vadd.s32 4294967169, %v2010_v15  ;;  %v1067_v13 = vadd.f32 %v1051_v41, %v11057_v24 }
 0x1fd   : > { %9925 = vcosq.f32 %v1574_v57  ;;  %v1678_v10 = vsel %vm11180_vm7, %v10791_v59, %v1675_v37  ;;  %v1780_v12 = vsub.s32 4, %v11050_v50  ;;  %v1961_v45 = vsel %vm1959_vm13, %v1960_v40, %v11192_v44 }
 0x1fe   : > { %vm8714_vm2 = vcmp.lt.s32.totalorder %v8713_v28, 0  ;;  %v1962_v17 = vadd.s32 %v1961_v45, %v1957_v61  ;;  %v2016_v25 = vadd.s32 1, %v8719_v62  ;;  %v11219_v3 = vadd.f32 %v1151_v9, %v1067_v13 }
 0x1ff   : > { %v11224_v16 = vsel %vm1488_vm1, %v1572_v8, %v10867_v11  ;;  %9927 = vsinq.f32 %v1574_v57  ;;  %v1778_v24 = vxor.u32 2147483648, %v1777_v55  ;;  %v11226_v41 = vsel %vm8714_vm2, 0, %v8713_v28 }
 0x200   : > { %9929 = vcosq.f32 %v1678_v10  ;;  %v1963_v30 = vadd.s32 536870912, %v1962_v17  ;;  %v2013_v26 = vand.u32 8388607, %v13319_v18  ;;  %v1052_v27 = vmul.f32 %v10601_v32, %v1016_v60 }
 0x201   : > { %9931 = vsinq.f32 %v1678_v10  ;;  %v11234_v44 = vsel %vm1696_vm9, %v1780_v12, %v11050_v50  ;;  %v1874_v11 = vsub.s32 4294967266, %v11226_v41  ;;  %vm2017_vm1 = vcmp.gt.s32.totalorder %v2016_v25, 0 }
 0x202   : > { %13467 = vst [vmem:[#allocation35_spill] sm:$0xff] %v11234_v44  ;;  %v11237_v6 = vshrl.u32 %v1963_v30, 30  ;;  %v2018_v53 = vsel %vm2017_vm1, %v2016_v25, 0  ;;  %v2113_v22 = vand.u32 2139095040, %v11219_v3  ;;  %v968_v8 = vmul.f32 %v10604_v33, %v927_v2 }
 0x203   : > { %v11241_v57 = vpop.eup %9923  ;;  %v11245_v20 = vsel %vm1696_vm9, %v1778_v24, %v1777_v55  ;;  %v1854_v50 = vadd.s32 %v11121_v39, %v11118_v31  ;;  %v2020_v37 = vand.u32 31, %v2018_v53  ;;  %v11250_v56 = vmul.f32 %v10606_v34, %v1116_v58 }
 0x204   : > { %13468 = vst [vmem:[#allocation36_spill] sm:$0xff] %v11241_v57  ;;  %v11253_v15 = vadd.s32 %v11191_v48, %v11197_v47  ;;  %v1965_v9 = vshll.u32 %v11237_v6, 30  ;;  %v2014_v61 = vor.u32 8388608, %v2013_v26  ;;  %v11256_v2 = vadd.f32 %v1052_v27, %v968_v8 }
 0x205   : > { %v1870_v40 = vsub.s32 32, %v11226_v41  ;;  %v1875_v28 = vadd.s32 127, %v1874_v11  ;;  %v2021_v55 = vsub.s32 32, %v2020_v37  ;;  %v2023_v31 = vshll.u32 %v13455_v21, %v2020_v37 }
 0x206   : > { %v11260_v13 = vsub.s32 %v1962_v17, %v1965_v9  ;;  %v2026_v39 = vshll.u32 %v13450_v63, %v2020_v37  ;;  %v2114_v10 = vshrl.u32 %v2113_v22, 23  ;;  %v2029_v45 = vshll.u32 %v13451_v7, %v2020_v37 }
 0x207   : > { %v11264_v48 = vpop.eup %9925  ;;  %v2024_v47 = vshrl.u32 %v13450_v63, %v2021_v55  ;;  %v2027_v12 = vshrl.u32 %v13451_v7, %v2021_v55  ;;  %v2030_v60 = vshrl.u32 %v13457_v5, %v2021_v55  ;;  %v2019_v24 = vshrl.u32 %v2018_v53, 5 }
 0x208   : > { %13469 = vst [vmem:[#allocation37_spill] sm:$0xff] %v11264_v48  ;;  %v1968_v25 = vsub.s32 0, %v11260_v13  ;;  %v2032_v17 = vshll.u32 %v13457_v5, %v2020_v37  ;;  %v2033_v30 = vshrl.u32 %v13458_v4, %v2021_v55  ;;  %v1876_v27 = vshll.u32 %v1875_v28, 23 }
 0x209   : > { %v11273_v26 = vpop.eup %9927  ;;  %v2025_v58 = vor.u32 %v2024_v47, %v2023_v31  ;;  %v2028_v11 = vor.u32 %v2027_v12, %v2026_v39  ;;  %v2031_v22 = vor.u32 %v2030_v60, %v2029_v45  ;;  %v2035_v62 = vshll.u32 %v13458_v4, %v2020_v37 }
 0x20a   : > { %13470 = vst [vmem:[#allocation38_spill] sm:$0xff] %v11273_v26  ;;  %v11275_v8 = vpop.eup %9929  ;;  %v8716_v9 = vmin.u32 %v1968_v25, %v11260_v13  ;;  %v2034_v18 = vor.u32 %v2033_v30, %v2032_v17  ;;  %v2036_v14 = vshrl.u32 %v13452_v23, %v2021_v55  ;;  %v1871_v44 = vshll.u32 %v11184_v51, %v11226_v41 }
 0x20b   : > { %13471 = vst [vmem:[#allocation39_spill] sm:$0xff] %v11275_v8  ;;  %v11280_v53 = vpop.eup %9931  ;;  %v1872_v59 = vshrl.u32 %v1854_v50, %v1870_v40  ;;  %v2054_v38 = vshll.u32 %v2014_v61, 8  ;;  %v8723_v28 = vadd.s32 4294967169, %v2114_v10  ;;  %vm2038_vm3 = vcmp.lt.s32.totalorder %v2019_v24, 1 }
 0x20c   : > { %13472 = vst [vmem:[#allocation40_spill] sm:$0xff] %v11280_v53  ;;  %v1970_v31 = vclz %v8716_v9  ;;  %v2037_v39 = vor.u32 %v2036_v14, %v2035_v62  ;;  %vm2041_vm6 = vcmp.lt.s32.totalorder %v2019_v24, 4  ;;  %v13473_v47 = vand.u32 2147483647, %v10832_v36 }
 0x20d   : > { %v1877_v37 = vor.u32 4788187, %v1876_v27  ;;  %vm2040_vm9 = vcmp.lt.s32.totalorder %v2019_v24, 3  ;;  %v2046_v45 = vsel %vm2038_vm3, %v2025_v58, %v2028_v11  ;;  %v2047_v60 = vsel %vm2041_vm6, %v2034_v18, 920167782 }
 0x20e   : > { %vm11286_vm8 = vcmp.le.f32.partialorder %v13473_v47, 0.7853982  ;;  %v8717_v25 = vadd.s32 4294967294, %v1970_v31  ;;  %v2048_v51 = vsel %vm2040_vm9, %v2031_v22, %v2047_v60  ;;  %v2050_v41 = vsel %vm2038_vm3, %v2028_v11, %v2031_v22 }
 0x20f   : > { %v13476_v14 = vand.u32 2147483647, %v11219_v3  ;;  %v1873_v61 = vor.u32 %v1872_v59, %v1871_v44  ;;  %vm2039_vm13 = vcmp.lt.s32.totalorder %v2019_v24, 2  ;;  %v2043_v40 = vsel %vm2041_vm6, %v2031_v22, 2102212464 }
 0x210   : > { %v2051_v62 = vsel %vm2041_vm6, %v2037_v39, 1326507024  ;;  %vm8718_vm2 = vcmp.lt.s32.totalorder %v8717_v25, 0  ;;  %v2022_v10 = vshrl.u32 %v13455_v21, %v2021_v55  ;;  %v2049_v17 = vsel %vm2039_vm13, %v2046_v45, %v2048_v51 }
 0x211   : > { %v11295_v50 = vand.u32 8388607, %v13476_v14  ;;  %v2052_v30 = vsel %vm2040_vm9, %v2034_v18, %v2051_v62  ;;  %v1878_v27 = vand.u32 2147483647, %v1877_v37  ;;  %v1973_v9 = vsel %vm8718_vm2, 0, %v8717_v25 }
 0x212   : > { %v2053_v31 = vsel %vm2039_vm13, %v2050_v41, %v2052_v30  ;;  %v2120_v47 = vadd.s32 1, %v8723_v28  ;;  %v1974_v60 = vsub.s32 32, %v1973_v9  ;;  %v1978_v8 = vsub.s32 4294967266, %v1973_v9 }
 0x213   : > { %v2042_v14 = vsel %vm2038_vm3, %v2022_v10, %v2025_v58  ;;  %v2044_v59 = vsel %vm2040_vm9, %v2028_v11, %v2043_v40  ;;  %v11303_v44 = vmul.u32.u64.low %v2054_v38, %v2053_v31  ;;  %v11304_v22 = vmul.u32.u64.high %v2054_v38, %v2053_v31, %v11303_v44 }
 0x214   : > { %v11306_v39 = vmul.u32.u64.low %v2054_v38, %v2049_v17  ;;  %v11307_v55 = vmul.u32.u64.high %v2054_v38, %v2049_v17, %v11306_v39  ;;  %v1979_v37 = vadd.s32 127, %v1978_v8  ;;  %vm2121_vm1 = vcmp.gt.s32.totalorder %v2120_v47, 0 }
 0x215   : > { %v11313_v28 = vadd.f32 %v11250_v56, %v11256_v2  ;;  %v1880_v45 = vcvt.s32.f32 %v1873_v61  ;;  %v1976_v58 = vshrl.u32 %v11253_v15, %v1974_v60  ;;  %v2045_v11 = vsel %vm2039_vm13, %v2042_v14, %v2044_v59 }
 0x216   : > { %v2122_v25 = vsel %vm2121_vm1, %v2120_v47, 0  ;;  %v11321_v51 = vsel %vm11286_vm8, %v10832_v36, %v11245_v20  ;;  %v1980_v41 = vshll.u32 %v1979_v37, 23  ;;  %v2118_v8 = vor.u32 8388608, %v11295_v50 }
 0x217   : > { %v2124_v40 = vand.u32 31, %v2122_v25  ;;  %v11324_v62 = vmul.f32 %v1880_v45, %v1878_v27  ;;  %v1975_v56 = vshll.u32 %v11260_v13, %v1973_v9  ;;  %vm2063_vm3 = vc.u32 %v11304_v22, %v11306_v39 }
 0x218   : > { %v2064_v15 = vadd.s32 1, %v11307_v55  ;;  %v1981_v2 = vor.u32 4788187, %v1980_v41  ;;  %v2061_v24 = vmul.u32 %v2054_v38, %v2045_v11  ;;  %v2217_v10 = vand.u32 2139095040, %v11313_v28 }
 0x219   : > { %v2125_v61 = vsub.s32 32, %v2124_v40  ;;  %v1977_v20 = vor.u32 %v1976_v58, %v1975_v56  ;;  %v2123_v30 = vshrl.u32 %v2122_v25, 5  ;;  %v2127_v50 = vshll.u32 %v13455_v21, %v2124_v40 }
 0x21a   : > { %v2065_v17 = vsel %vm2063_vm3, %v2064_v15, %v11307_v55  ;;  %v2130_v13 = vshll.u32 %v13450_v63, %v2124_v40  ;;  %v2133_v9 = vshll.u32 %v13451_v7, %v2124_v40  ;;  %v2136_v60 = vshll.u32 %v13457_v5, %v2124_v40 }
 0x21b   : > { %v2066_v27 = vadd.s32 %v2065_v17, %v2061_v24  ;;  %v2128_v31 = vshrl.u32 %v13450_v63, %v2125_v61  ;;  %v2131_v47 = vshrl.u32 %v13451_v7, %v2125_v61  ;;  %v2134_v38 = vshrl.u32 %v13457_v5, %v2125_v61 }
 0x21c   : > { %v2137_v14 = vshrl.u32 %v13458_v4, %v2125_v61  ;;  %v1982_v59 = vand.u32 2147483647, %v1981_v2  ;;  %v2139_v55 = vshll.u32 %v13458_v4, %v2124_v40  ;;  %v2140_v37 = vshrl.u32 %v13452_v23, %v2125_v61 }
 0x21d   : > { %v2067_v44 = vadd.s32 536870912, %v2066_v27  ;;  %v2129_v45 = vor.u32 %v2128_v31, %v2127_v50  ;;  %v2132_v58 = vor.u32 %v2131_v47, %v2130_v13  ;;  %v2135_v11 = vor.u32 %v2134_v38, %v2133_v9  ;;  %v1020_v13 = vpop.permute.xlu1 %1019 }
 0x21e   : > { %v2138_v25 = vor.u32 %v2137_v14, %v2136_v60  ;;  %9933 = vcosq.f32 %v11321_v51  ;;  %vm1800_vm6 = vcmp.lt.s32.totalorder %v10981_v52, 0  ;;  %v11346_v56 = vshll.u32 %v2118_v8, 8 }
 0x21f   : > { %v11344_v41 = vshrl.u32 %v2067_v44, 30  ;;  %v1882_v2 = vxor.u32 2147483648, %v11324_v62  ;;  %v1984_v24 = vcvt.s32.f32 %v1977_v20  ;;  %v2141_v40 = vor.u32 %v2140_v37, %v2139_v55 }
 0x220   : > { %vm2145_vm9 = vcmp.lt.s32.totalorder %v2123_v30, 4  ;;  %vm2142_vm13 = vcmp.lt.s32.totalorder %v2123_v30, 1  ;;  %v2218_v31 = vshrl.u32 %v2217_v10, 23  ;;  %v2126_v47 = vshrl.u32 %v13455_v21, %v2125_v61 }
 0x221   : > { %v2069_v17 = vshll.u32 %v11344_v41, 30  ;;  %v2147_v50 = vsel %vm2145_vm9, %v2135_v11, 2102212464  ;;  %v1985_v9 = vmul.f32 %v1984_v24, %v1982_v59  ;;  %v2150_v38 = vsel %vm2142_vm13, %v2129_v45, %v2132_v58 }
 0x222   : > { %v2151_v8 = vsel %vm2145_vm9, %v2138_v25, 920167782  ;;  %v13477_v60 = vand.u32 2147483647, %v10981_v52  ;;  %v13478_v14 = vmov 0  ;;  %vm2143_vm1 = vcmp.lt.s32.totalorder %v2123_v30, 2 }
 0x223   : > { %v11360_v20 = vsub.s32 %v2066_v27, %v2069_v17  ;;  %vm2144_vm3 = vcmp.lt.s32.totalorder %v2123_v30, 3  ;;  %v2154_v44 = vsel %vm2142_vm13, %v2132_v58, %v2135_v11  ;;  %vm1904_vm0 = vcmp.lt.s32.totalorder %v11030_v42, 0 }
 0x224   : > { %vm11356_vm2 = vcmp.le.f32.partialorder %v13477_v60, 0.7853982  ;;  %v2146_v10 = vsel %vm2142_vm13, %v2126_v47, %v2129_v45  ;;  %v2148_v59 = vsel %vm2144_vm3, %v2132_v58, %v2147_v50  ;;  %v2152_v55 = vsel %vm2144_vm3, %v2135_v11, %v2151_v8  ;;  %v1120_v47 = vpop.permute.xlu1 %1119 }
 0x225   : > { %v13479_v14 = vsel %vm11356_vm2, 4294967295, %v13478_v14  ;;  %v2155_v61 = vsel %vm2145_vm9, %v2141_v40, 1326507024  ;;  %v2072_v37 = vsub.s32 0, %v11360_v20  ;;  %v2153_v24 = vsel %vm2143_vm1, %v2150_v38, %v2152_v55 }
 0x226   : > { %13480 = vst [vmem:[#allocation41_spill] sm:$0xff] %v13479_v14  ;;  %v2156_v60 = vsel %vm2144_vm3, %v2138_v25, %v2155_v61  ;;  %v8727_v18 = vadd.s32 4294967169, %v2218_v31  ;;  %v11368_v27 = vmul.u32.u64.low %v11346_v56, %v2153_v24  ;;  %v11369_v17 = vmul.u32.u64.high %v11346_v56, %v2153_v24, %v11368_v27 }
 0x227   : > { %v2157_v15 = vsel %vm2143_vm1, %v2154_v44, %v2156_v60  ;;  %v13481_v36 = vand.u32 2147483647, %v11313_v28  ;;  %v8720_v58 = vmin.u32 %v2072_v37, %v11360_v20  ;;  %9935 = vsinq.f32 %v11321_v51 }
 0x228   : > { %v11376_v11 = vmul.u32.u64.low %v11346_v56, %v2157_v15  ;;  %v11377_v40 = vmul.u32.u64.high %v11346_v56, %v2157_v15, %v11376_v11  ;;  %v2224_v50 = vadd.s32 1, %v8727_v18  ;;  %v13482_v25 = vsub.s32 4, %v11168_v54  ;;  %v11389_v8 = vpop.eup %9933 }
 0x229   : > { %v2221_v45 = vand.u32 8388607, %v13481_v36  ;;  %v2149_v38 = vsel %vm2143_vm1, %v2146_v10, %v2148_v59  ;;  %v1053_v36 = vmul.f32 %v10601_v32, %v1020_v13  ;;  %13484 = vst [vmem:[#allocation43_spill] sm:$0xff] %v11389_v8  ;;  %v1883_v18 = vsel %vm1800_vm6, %v1882_v2, %v11324_v62 }
 0x22a   : > { %v11385_v31 = vsel %vm1800_vm6, %v13482_v25, %v11168_v54  ;;  %v1986_v15 = vxor.u32 2147483648, %v1985_v9  ;;  %v2074_v44 = vclz %v8720_v58  ;;  %vm2225_vm9 = vcmp.gt.s32.totalorder %v2224_v50, 0 }
 0x22b   : > { %13483 = vst [vmem:[#allocation42_spill] sm:$0xff] %v11385_v31  ;;  %v2168_v51 = vadd.s32 1, %v11369_v17  ;;  %v2222_v55 = vor.u32 8388608, %v2221_v45  ;;  %v2226_v61 = vsel %vm2225_vm9, %v2224_v50, 0  ;;  %v1153_v54 = vmul.f32 %v10606_v34, %v1120_v47 }
 0x22c   : > { %v8721_v10 = vadd.s32 4294967294, %v2074_v44  ;;  %v2165_v13 = vmul.u32 %v11346_v56, %v2149_v38  ;;  %vm2167_vm13 = vc.u32 %v11377_v40, %v11368_v27  ;;  %v11403_v62 = vsel %vm11356_vm2, %v10981_v52, %v1883_v18 }
 0x22d   : > { %v2169_v2 = vsel %vm2167_vm13, %v2168_v51, %v11369_v17  ;;  %v2228_v59 = vand.u32 31, %v2226_v61  ;;  %v1069_v37 = vadd.f32 %v1053_v36, %v11061_v19  ;;  %v11409_v24 = vsel %vm1904_vm0, %v1986_v15, %v1985_v9 }
 0x22e   : > { %v2062_v56 = vadd.s32 %v11306_v39, %v11304_v22  ;;  %vm8722_vm6 = vcmp.lt.s32.totalorder %v8721_v10, 0  ;;  %v2170_v60 = vadd.s32 %v2169_v2, %v2165_v13  ;;  %v11413_v11 = vshll.u32 %v2222_v55, 8 }
 0x22f   : > { %v2077_v45 = vsel %vm8722_vm6, 0, %v8721_v10  ;;  %v2229_v58 = vsub.s32 32, %v2228_v59  ;;  %v11415_v50 = vadd.f32 %v1153_v54, %v1069_v37  ;;  %v11417_v38 = vshrl.u32 %v2226_v61, 5 }
 0x230   : > { %v2078_v47 = vsub.s32 32, %v2077_v45  ;;  %v2082_v17 = vsub.s32 4294967266, %v2077_v45  ;;  %v2171_v25 = vadd.s32 536870912, %v2170_v60  ;;  %v2231_v19 = vshll.u32 %v13455_v21, %v2228_v59 }
 0x231   : > { %v2232_v9 = vshrl.u32 %v13450_v63, %v2229_v58  ;;  %v2234_v36 = vshll.u32 %v13450_v63, %v2228_v59  ;;  %v2235_v22 = vshrl.u32 %v13451_v7, %v2229_v58  ;;  %v2079_v39 = vshll.u32 %v11360_v20, %v2077_v45  ;;  %v11427_v51 = vpop.eup %9935 }
 0x232   : > { %v2083_v18 = vadd.s32 127, %v2082_v17  ;;  %v11424_v15 = vshrl.u32 %v2171_v25, 30  ;;  %v2238_v44 = vshrl.u32 %v13457_v5, %v2229_v58  ;;  %13485 = vst [vmem:[#allocation44_spill] sm:$0xff] %v11427_v51  ;;  %v2080_v55 = vshrl.u32 %v2062_v56, %v2078_v47 }
 0x233   : > { %v2237_v61 = vshll.u32 %v13451_v7, %v2228_v59  ;;  %v2240_v54 = vshll.u32 %v13457_v5, %v2228_v59  ;;  %v2241_v10 = vshrl.u32 %v13458_v4, %v2229_v58  ;;  %v2233_v37 = vor.u32 %v2232_v9, %v2231_v19 }
 0x234   : > { %v2084_v13 = vshll.u32 %v2083_v18, 23  ;;  %v2173_v2 = vshll.u32 %v11424_v15, 30  ;;  %v2236_v30 = vor.u32 %v2235_v22, %v2234_v36  ;;  %v2243_v17 = vshll.u32 %v13458_v4, %v2228_v59 }
 0x235   : > { %v2239_v20 = vor.u32 %v2238_v44, %v2237_v61  ;;  %v2242_v45 = vor.u32 %v2241_v10, %v2240_v54  ;;  %v2244_v25 = vshrl.u32 %v13452_v23, %v2229_v58  ;;  %v13333_v56 = vand.u32 2147483647, %v11415_v50 }
 0x236   : > { %v2085_v52 = vor.u32 4788187, %v2084_v13  ;;  %v11435_v14 = vsub.s32 %v2170_v60, %v2173_v2  ;;  %v2321_v47 = vand.u32 2139095040, %v11415_v50  ;;  %v2081_v31 = vor.u32 %v2080_v55, %v2079_v39 }
 0x237   : > { %v2245_v8 = vor.u32 %v2244_v25, %v2243_v17  ;;  %vm2246_vm1 = vcmp.lt.s32.totalorder %v11417_v38, 1  ;;  %vm2247_vm3 = vcmp.lt.s32.totalorder %v11417_v38, 2  ;;  %v13486_v19 = vand.u32 2147483647, %v11030_v42 }
 0x238   : > { %v13487_v9 = vmov 0  ;;  %v2176_v59 = vsub.s32 0, %v11435_v14  ;;  %vm2248_vm13 = vcmp.lt.s32.totalorder %v11417_v38, 3  ;;  %vm2249_vm6 = vcmp.lt.s32.totalorder %v11417_v38, 4 }
 0x239   : > { %vm11443_vm9 = vcmp.le.f32.partialorder %v13486_v19, 0.7853982  ;;  %v2254_v60 = vsel %vm2246_vm1, %v2233_v37, %v2236_v30  ;;  %v2251_v36 = vsel %vm2249_vm6, %v2239_v20, 2102212464  ;;  %v2255_v22 = vsel %vm2249_vm6, %v2242_v45, 920167782 }
 0x23a   : > { %v13488_v9 = vsel %vm11443_vm9, 4294967295, %v13487_v9  ;;  %v2258_v39 = vsel %vm2246_vm1, %v2236_v30, %v2239_v20  ;;  %v2259_v18 = vsel %vm2249_vm6, %v2245_v8, 1326507024  ;;  %v2086_v44 = vand.u32 2147483647, %v2085_v52 }
 0x23b   : > { %13489 = vst [vmem:[#allocation45_spill] sm:$0xff] %v13488_v9  ;;  %v8724_v55 = vmin.u32 %v2176_v59, %v11435_v14  ;;  %v2230_v61 = vshrl.u32 %v13455_v21, %v2229_v58  ;;  %v2256_v54 = vsel %vm2248_vm13, %v2239_v20, %v2255_v22  ;;  %v2088_v10 = vcvt.s32.f32 %v2081_v31 }
 0x23c   : > { %v2257_v13 = vsel %vm2247_vm3, %v2254_v60, %v2256_v54  ;;  %v2260_v2 = vsel %vm2248_vm13, %v2242_v45, %v2259_v18  ;;  %v2322_v17 = vshrl.u32 %v2321_v47, 23  ;;  %v2252_v52 = vsel %vm2248_vm13, %v2236_v30, %v2251_v36 }
 0x23d   : > { %v2178_v25 = vclz %v8724_v55  ;;  %v2250_v8 = vsel %vm2246_vm1, %v2230_v61, %v2233_v37  ;;  %v2261_v58 = vsel %vm2247_vm3, %v2258_v39, %v2260_v2  ;;  %v2089_v45 = vmul.f32 %v2088_v10, %v2086_v44 }
 0x23e   : > { %v11469_v20 = vmul.u32.u64.low %v11413_v11, %v2261_v58  ;;  %v11470_v31 = vmul.u32.u64.high %v11413_v11, %v2261_v58, %v11469_v20  ;;  %v11473_v19 = vmul.u32.u64.low %v11413_v11, %v2257_v13  ;;  %v11474_v59 = vmul.u32.u64.high %v11413_v11, %v2257_v13, %v11473_v19 }
 0x23f   : > { %v8725_v47 = vadd.s32 4294967294, %v2178_v25  ;;  %v8731_v60 = vadd.s32 4294967169, %v2322_v17  ;;  %v2325_v37 = vand.u32 8388607, %v13333_v56  ;;  %9937 = vcosq.f32 %v11403_v62 }
 0x240   : > { %v13490_v30 = vsub.s32 4, %v11237_v6  ;;  %vm13339_vm1 = vcmp.lt.s32.totalorder %v11171_v29, 0  ;;  %v1260_v22 = vsub.s32 4, %v10695_v1  ;;  %9939 = vsinq.f32 %v11403_v62 }
 0x241   : > { %vm8726_vm13 = vcmp.lt.s32.totalorder %v8725_v47, 0  ;;  %v2253_v39 = vsel %vm2247_vm3, %v2250_v8, %v2252_v52  ;;  %v2328_v18 = vadd.s32 1, %v8731_v60  ;;  %v11496_v44 = vsel %vm11443_vm9, %v11030_v42, %v11409_v24 }
 0x242   : > { %v11485_v36 = vsel %vm1904_vm0, %v13490_v30, %v11237_v6  ;;  %v2181_v55 = vsel %vm8726_vm13, 0, %v8725_v47  ;;  %vm2271_vm0 = vc.u32 %v11470_v31, %v11473_v19  ;;  %v2090_v61 = vxor.u32 2147483648, %v2089_v45 }
 0x243   : > { %13491 = vst [vmem:[#allocation46_spill] sm:$0xff] %v11485_v36  ;;  %v2186_v54 = vsub.s32 4294967266, %v2181_v55  ;;  %v2272_v62 = vadd.s32 1, %v11474_v59  ;;  %v2326_v10 = vor.u32 8388608, %v2325_v37  ;;  %v2182_v38 = vsub.s32 32, %v2181_v55  ;;  %v13496_v36 = vld [vmem:[#allocation32_spill] sm:$0xff] }
 0x244   : > { %v2269_v13 = vmul.u32 %v11413_v11, %v2253_v39  ;;  %vm2329_vm3 = vcmp.gt.s32.totalorder %v2328_v18, 0  ;;  %v1261_v24 = vsel %vm1176_vm12, %v1260_v22, %v10695_v1  ;;  %v1364_v8 = vsub.s32 4, %v10731_v0 }
 0x245   : > { %v2187_v2 = vadd.s32 127, %v2186_v54  ;;  %v2273_v17 = vsel %vm2271_vm0, %v2272_v62, %v11474_v59  ;;  %v2330_v25 = vsel %vm2329_vm3, %v2328_v18, 0  ;;  %v2166_v52 = vadd.s32 %v11368_v27, %v11377_v40 }
 0x246   : > { %v2274_v58 = vadd.s32 %v2273_v17, %v2269_v13  ;;  %v2332_v20 = vand.u32 31, %v2330_v25  ;;  %v11513_v11 = vsel %vm13339_vm1, %v2090_v61, %v2089_v45  ;;  %v2183_v60 = vshll.u32 %v11435_v14, %v2181_v55  ;;  %v13493_v45 = vld [vmem:[#allocation19_spill] sm:$0xff] }
 0x247   : > { %v2188_v1 = vshll.u32 %v2187_v2, 23  ;;  %v11516_v37 = vshll.u32 %v2326_v10, 8  ;;  %v2184_v59 = vshrl.u32 %v2166_v52, %v2182_v38  ;;  %v11520_v18 = vsel %vm10966_vm4, 0, %v1261_v24 }
 0x248   : > { %v2275_v30 = vadd.s32 536870912, %v2274_v58  ;;  %v2333_v22 = vsub.s32 32, %v2332_v20  ;;  %v2331_v27 = vshrl.u32 %v2330_v25, 5  ;;  %v2335_v40 = vshll.u32 %v13455_v21, %v2332_v20 }
 0x249   : > { %v2338_v54 = vshll.u32 %v13450_v63, %v2332_v20  ;;  %v1365_v61 = vsel %vm1280_vm5, %v1364_v8, %v10731_v0  ;;  %v11527_v14 = vpop.eup %9937  ;;  %v2189_v55 = vor.u32 4788187, %v2188_v1  ;;  %v2341_v24 = vshll.u32 %v13451_v7, %v2332_v20 }
 0x24a   : > { %13494 = vst [vmem:[#allocation26_spill] sm:$0xff] %v11527_v14  ;;  %v11529_v62 = vshrl.u32 %v2275_v30, 30  ;;  %v2336_v10 = vshrl.u32 %v13450_v63, %v2333_v22  ;;  %v2339_v38 = vshrl.u32 %v13451_v7, %v2333_v22  ;;  %v11533_v13 = vpop.eup %9939  ;;  %v2342_v2 = vshrl.u32 %v13457_v5, %v2333_v22 }
 0x24b   : > { %13495 = vst [vmem:[#allocation19_spill] sm:$0xff] %v11533_v13  ;;  %v2344_v17 = vshll.u32 %v13457_v5, %v2332_v20  ;;  %v2345_v25 = vshrl.u32 %v13458_v4, %v2333_v22  ;;  %v2185_v0 = vor.u32 %v2184_v59, %v2183_v60  ;;  %v2347_v56 = vshll.u32 %v13458_v4, %v2332_v20 }
 0x24c   : > { %v2277_v8 = vshll.u32 %v11529_v62, 30  ;;  %v2337_v52 = vor.u32 %v2336_v10, %v2335_v40  ;;  %v2340_v1 = vor.u32 %v2339_v38, %v2338_v54  ;;  %v2343_v30 = vor.u32 %v2342_v2, %v2341_v24 }
 0x24d   : > { %v2346_v39 = vor.u32 %v2345_v25, %v2344_v17  ;;  %v2348_v47 = vshrl.u32 %v13452_v23, %v2333_v22  ;;  %v11544_v6 = vadd.s32 %v11473_v19, %v11470_v31  ;;  %v1267_v9 = vadd.s32 3, %v11520_v18 }
 0x24e   : > { %v11546_v42 = vsub.s32 %v2274_v58, %v2277_v8  ;;  %v2190_v59 = vand.u32 2147483647, %v2189_v55  ;;  %vm2350_vm12 = vcmp.lt.s32.totalorder %v2331_v27, 1  ;;  %v1367_v54 = vsel %vm10985_vm10, 0, %v1365_v61 }
 0x24f   : > { %v2349_v14 = vor.u32 %v2348_v47, %v2347_v56  ;;  %v2192_v10 = vcvt.s32.f32 %v2185_v0  ;;  %vm2353_vm4 = vcmp.lt.s32.totalorder %v2331_v27, 4  ;;  %v2358_v38 = vsel %vm2350_vm12, %v2337_v52, %v2340_v1 }
 0x250   : > { %v2280_v20 = vsub.s32 0, %v11546_v42  ;;  %v2334_v31 = vshrl.u32 %v13455_v21, %v2333_v22  ;;  %vm2352_vm5 = vcmp.lt.s32.totalorder %v2331_v27, 3  ;;  %v2355_v19 = vsel %vm2353_vm4, %v2343_v30, 2102212464 }
 0x251   : > { %v2359_v58 = vsel %vm2353_vm4, %v2346_v39, 920167782  ;;  %vm2351_vm6 = vcmp.lt.s32.totalorder %v2331_v27, 2  ;;  %v2362_v55 = vsel %vm2350_vm12, %v2340_v1, %v2343_v30  ;;  %v11555_v56 = vmul.f32 %v2192_v10, %v2190_v59 }
 0x252   : > { %v8728_v24 = vmin.u32 %v2280_v20, %v11546_v42  ;;  %v2360_v2 = vsel %vm2352_vm5, %v2343_v30, %v2359_v58  ;;  %v2354_v47 = vsel %vm2350_vm12, %v2334_v31, %v2337_v52  ;;  %v2363_v17 = vsel %vm2353_vm4, %v2349_v14, 1326507024  ;;  %v13498_v14 = vld [vmem:[#allocation31_spill] sm:$0xff] }
 0x253   : > { %v2361_v61 = vsel %vm2351_vm6, %v2358_v38, %v2360_v2  ;;  %v2356_v0 = vsel %vm2352_vm5, %v2340_v1, %v2355_v19  ;;  %v2364_v8 = vsel %vm2352_vm5, %v2346_v39, %v2363_v17  ;;  %v1268_v40 = vand.u32 3, %v1267_v9 }
 0x254   : > { %v2282_v25 = vclz %v8728_v24  ;;  %v2365_v22 = vsel %vm2351_vm6, %v2362_v55, %v2364_v8  ;;  %v11560_v60 = vmul.u32.u64.low %v11516_v37, %v2361_v61  ;;  %v11561_v13 = vmul.u32.u64.high %v11516_v37, %v2361_v61, %v11560_v60 }
 0x255   : > { %vm1266_vm10 = vweird.f32 %v10613_v43  ;;  %v1371_v30 = vadd.s32 3, %v1367_v54  ;;  %v11566_v52 = vmul.u32.u64.low %v11516_v37, %v2365_v22  ;;  %v11567_v10 = vmul.u32.u64.high %v11516_v37, %v2365_v22, %v11566_v52  ;;  %v937_v22 = vpop.permute.xlu1 %936 }
 0x256   : > { %v8729_v59 = vadd.s32 4294967294, %v2282_v25  ;;  %vm1370_vm13 = vweird.f32 %v13493_v45  ;;  %v1378_v1 = vxor.u32 2147483648, %v13498_v14  ;;  %v2357_v9 = vsel %vm2351_vm6, %v2354_v47, %v2356_v0 }
 0x257   : > { %vm1270_vm0 = vcmp.eq.s32.totalorder %v1268_v40, 0  ;;  %vm1273_vm3 = vcmp.eq.s32.totalorder %v1268_v40, 2  ;;  %v1372_v39 = vand.u32 3, %v1371_v30  ;;  %v2194_v20 = vxor.u32 2147483648, %v11555_v56 }
 0x258   : > { %vm8730_vm12 = vcmp.lt.s32.totalorder %v8729_v59, 0  ;;  %v13499_v38 = vxor.u32 2147483648, %v11086_v46  ;;  %v13500_v19 = vxor.u32 2147483648, %v11084_v49  ;;  %v2376_v2 = vadd.s32 1, %v11561_v13 }
 0x259   : > { %v2285_v24 = vsel %vm8730_vm12, 0, %v8729_v59  ;;  %vm1269_vm4 = vcmp.lt.s32.totalorder %v1268_v40, 2  ;;  %v2939_v27 = vand.u32 3, %v11520_v18  ;;  %v2373_v47 = vmul.u32 %v11516_v37, %v2357_v9 }
 0x25a   : > { %v1272_v31 = vsel %vm1270_vm0, %v11084_v49, %v13499_v38  ;;  %v1275_v58 = vsel %vm1273_vm3, %v13500_v19, %v11086_v46  ;;  %v2290_v55 = vsub.s32 4294967266, %v2285_v24  ;;  %v3042_v17 = vand.u32 3, %v1367_v54 }
 0x25b   : > { %v1276_v61 = vsel %vm1269_vm4, %v1272_v31, %v1275_v58  ;;  %v13501_v25 = vand.u32 2147483647, %v11171_v29  ;;  %vm2112_vm6 = vcmp.lt.s32.totalorder %v11219_v3, 0  ;;  %v2286_v8 = vsub.s32 32, %v2285_v24 }
 0x25c   : > { %vm2375_vm0 = vc.u32 %v11567_v10, %v11560_v60  ;;  %vm1373_vm3 = vcmp.lt.s32.totalorder %v1372_v39, 2  ;;  %vm1374_vm12 = vcmp.eq.s32.totalorder %v1372_v39, 0  ;;  %v2291_v18 = vadd.s32 127, %v2290_v55 }
 0x25d   : > { %vm11584_vm5 = vcmp.le.f32.partialorder %v13501_v25, 0.7853982  ;;  %v2377_v40 = vsel %vm2375_vm0, %v2376_v2, %v11561_v13  ;;  %v13504_v37 = vxor.u32 2147483648, %v13496_v36  ;;  %vm1377_vm4 = vcmp.eq.s32.totalorder %v1372_v39, 2 }
 0x25e   : > { %v2287_v30 = vshll.u32 %v11546_v42, %v2285_v24  ;;  %v2378_v59 = vadd.s32 %v2377_v40, %v2373_v47  ;;  %v1379_v52 = vsel %vm1377_vm4, %v1378_v1, %v13496_v36  ;;  %vm2941_vm1 = vcmp.eq.s32.totalorder %v2939_v27, 0 }
 0x25f   : > { %v1376_v54 = vsel %vm1374_vm12, %v13498_v14, %v13504_v37  ;;  %v2292_v9 = vshll.u32 %v2291_v18, 23  ;;  %v1277_v38 = vsel %vm1266_vm10, nan, %v1276_v61  ;;  %v13505_v19 = vxor.u32 2147483648, %v11086_v46 }
 0x260   : > { %v1380_v31 = vsel %vm1373_vm3, %v1376_v54, %v1379_v52  ;;  %v13506_v58 = vand.u32 2147483647, %v11219_v3  ;;  %v2288_v42 = vshrl.u32 %v11544_v6, %v2286_v8  ;;  %v2379_v24 = vadd.s32 536870912, %v2378_v59  ;;  %v1024_v54 = vpop.permute.xlu1 %1023 }
 0x261   : > { %v2943_v13 = vsel %vm2941_vm1, %v11084_v49, %v13505_v19  ;;  %v1381_v2 = vsel %vm1370_vm13, nan, %v1380_v31  ;;  %vm2944_vm12 = vcmp.eq.s32.totalorder %v2939_v27, 2  ;;  %vm2940_vm3 = vcmp.lt.s32.totalorder %v2939_v27, 2 }
 0x262   : > { %vm11604_vm0 = vcmp.le.f32.partialorder %v13506_v58, 0.7853982  ;;  %v11611_v55 = vpack.c.bf16 %v1381_v2, %v1277_v38  ;;  %v13510_v47 = vxor.u32 2147483648, %v11084_v49  ;;  %vm3043_vm1 = vcmp.lt.s32.totalorder %v3042_v17, 2 }
 0x263   : > { %v11616_v25 = vshrl.u32 %v2379_v24, 30  ;;  %vm3044_vm4 = vcmp.eq.s32.totalorder %v3042_v17, 0  ;;  %vm3047_vm11 = vcmp.eq.s32.totalorder %v3042_v17, 2  ;;  %v2293_v40 = vor.u32 4788187, %v2292_v9 }
 0x264   : > { %13509 = vst [vmem:[#allocation32_spill] sm:$0xff] %v11611_v55  ;;  %v2946_v61 = vsel %vm2944_vm12, %v13510_v47, %v11086_v46  ;;  %v13511_v8 = vmov %v13504_v37  ;;  %v3049_v27 = vsel %vm3047_vm11, %v1378_v1, %v13496_v36  ;;  %9941 = vcosq.f32 %v11496_v44 }
 0x265   : > { %v2947_v18 = vsel %vm2940_vm3, %v2943_v13, %v2946_v61  ;;  %v3046_v37 = vsel %vm3044_vm4, %v13498_v14, %v13511_v8  ;;  %v2381_v46 = vshll.u32 %v11616_v25, 30  ;;  %vm4535_vm12 = vcmask 261120   ;;  %v1124_v14 = vpop.permute.xlu0 %1123 }
 0x266   : > { %v2948_v6 = vsel %vm1266_vm10, nan, %v2947_v18  ;;  %v3050_v49 = vsel %vm3043_vm1, %v3046_v37, %v3049_v27  ;;  %v2094_v17 = vsel %vm11584_vm5, %v11171_v29, %v11513_v11  ;;  %v2195_v43 = vsel %vm2112_vm6, %v2194_v20, %v11555_v56  ;;  %8819 = vmatmul.mubr.msk.bf16.vlgmr.msra.gmra.mrb[0].mxu0 %vm4535_vm12, %v11611_v55  ;;  %v13514_v20 = vld [vmem:[#allocation22_spill] sm:$0xff] }
 0x267   : > { %v2289_v52 = vor.u32 %v2288_v42, %v2287_v30  ;;  %v3051_v36 = vsel %vm1370_vm13, nan, %v3050_v49  ;;  %v11637_v1 = vsub.s32 %v2378_v59, %v2381_v46  ;;  %v970_v38 = vmul.f32 %v10604_v33, %v937_v22  ;;  %v13516_v42 = vld [vmem:[#allocation20_spill] sm:$0xff] }
 0x268   : > { %v11639_v9 = vpack.c.bf16 %v3051_v36, %v2948_v6  ;;  %v13513_v31 = vmov 0   ;;  %v1054_v11 = vmul.f32 %v10601_v32, %v1024_v54  ;;  %9943 = vsinq.f32 %v11496_v44 }
 0x269   : > { %4602 = vmatprep.mubr.bf16.mxu0 %v13513_v31  ;;  %v2092_v56 = vsub.s32 4, %v11344_v41  ;;  %v2294_v45 = vand.u32 2147483647, %v2293_v40  ;;  %v1468_v30 = vsub.s32 4, %v13514_v20  ;;  %v2384_v19 = vsub.s32 0, %v11637_v1 }
 0x26a   : > { %13512 = vst [vmem:[#allocation28_spill] sm:$0xff] %v11639_v9  ;;  %v1154_v59 = vmul.f32 %v10606_v34, %v1124_v14  ;;  %v1070_v13 = vadd.f32 %v1054_v11, %v970_v38  ;;  %v11652_v22 = vsel %vm11162_vm14, 0, %v11224_v16  ;;  %9945 = vcosq.f32 %v2094_v17 }
 0x26b   : > { %13515 = vst [vmem:[#allocation31_spill] sm:$0xff] %v11652_v22  ;;  %v2198_v44 = vsel %vm11604_vm0, %v11219_v3, %v2195_v43  ;;  %v2296_v58 = vcvt.s32.f32 %v2289_v52  ;;  %vm13517_vm11 = vcmp.lt.s32.totalorder %v13516_v42, 0  ;;  %v8732_v2 = vmin.u32 %v2384_v19, %v11637_v1  ;;  %v13521_v43 = vld [vmem:[#allocation33_spill] sm:$0xff] }
 0x26c   : > { %v1469_v24 = vsel %vm13517_vm11, %v1468_v30, %v13514_v20  ;;  %v11661_v47 = vadd.f32 %v1154_v59, %v1070_v13  ;;  %v1579_v35 = vadd.s32 3, %v11652_v22  ;;  %vm13520_vm14 = vcmp.lt.s32.totalorder %v11171_v29, 0  ;;  %v1028_v30 = vpop.permute.xlu1 %1027 }
 0x26d   : > { %v11665_v18 = vsel %vm11039_vm15, 0, %v1469_v24  ;;  %v11671_v16 = vsel %vm13520_vm14, %v2092_v56, %v11344_v41  ;;  %9947 = vsinq.f32 %v2094_v17  ;;  %v11673_v40 = vmul.f32 %v2296_v58, %v2294_v45 }
 0x26e   : > { %13519 = vst [vmem:[#allocation22_spill] sm:$0xff] %v11665_v18  ;;  %v1475_v6 = vadd.s32 3, %v11665_v18  ;;  %9949 = vcosq.f32 %v2198_v44  ;;  %v2386_v37 = vclz %v8732_v2  ;;  %v13344_v27 = vand.u32 2147483647, %v11661_v47  ;;  %v11681_v41 = vpop.eup %9941 }
 0x26f   : > { %v2425_v54 = vand.u32 2139095040, %v11661_v47  ;;  %v13342_v49 = vxor.u32 2147483648, %v11241_v57  ;;  %v13341_v52 = vxor.u32 2147483648, %v13521_v43  ;;  %9951 = vsinq.f32 %v2198_v44 }
 0x270   : > { %v1476_v46 = vand.u32 3, %v1475_v6  ;;  %v8733_v36 = vadd.s32 4294967294, %v2386_v37  ;;  %v1580_v14 = vand.u32 3, %v1579_v35  ;;  %v2374_v11 = vadd.s32 %v11560_v60, %v11567_v10 }
 0x271   : > { %v2426_v56 = vshrl.u32 %v2425_v54, 23  ;;  %v13343_v45 = vxor.u32 2147483648, %v11273_v26  ;;  %v2429_v20 = vand.u32 8388607, %v13344_v27  ;;  %vm13360_vm3 = vweird.f32 %v13516_v42  ;;  %v13523_v27 = vld [vmem:[#allocation21_spill] sm:$0xff] }
 0x272   : > { %vm8734_vm15 = vcmp.lt.s32.totalorder %v8733_v36, 0  ;;  %vm1478_vm10 = vcmp.eq.s32.totalorder %v1476_v46, 0  ;;  %vm1481_vm13 = vcmp.eq.s32.totalorder %v1476_v46, 2  ;;  %v11690_v19 = vpop.eup %9943  ;;  %vm1582_vm1 = vcmp.eq.s32.totalorder %v1580_v14, 0 }
 0x273   : > { %v2389_v59 = vsel %vm8734_vm15, 0, %v8733_v36  ;;  %v8735_v13 = vadd.s32 4294967169, %v2426_v56  ;;  %v1480_v44 = vsel %vm1478_vm10, %v13521_v43, %v13342_v49  ;;  %v1483_v60 = vsel %vm1481_vm13, %v13341_v52, %v11241_v57 }
 0x274   : > { %v2390_v10 = vsub.s32 32, %v2389_v59  ;;  %v2394_v58 = vsub.s32 4294967266, %v2389_v59  ;;  %v11699_v24 = vpop.eup %9945  ;;  %vm1477_vm4 = vcmp.lt.s32.totalorder %v1476_v46, 2  ;;  %v1584_v61 = vsel %vm1582_vm1, %v11264_v48, %v13343_v45  ;;  %v942_v46 = vpop.permute.xlu0 %941 }
 0x275   : > { %v2432_v2 = vadd.s32 1, %v8735_v13  ;;  %v13345_v35 = vxor.u32 2147483648, %v11264_v48  ;;  %v2430_v37 = vor.u32 8388608, %v2429_v20  ;;  %v1484_v54 = vsel %vm1477_vm4, %v1480_v44, %v1483_v60  ;;  %v1128_v20 = vpop.permute.xlu1 %1127 }
 0x276   : > { %v2395_v6 = vadd.s32 127, %v2394_v58  ;;  %vm1585_vm11 = vcmp.eq.s32.totalorder %v1580_v14, 2  ;;  %v2392_v56 = vshrl.u32 %v2374_v11, %v2390_v10  ;;  %vm1581_vm15 = vcmp.lt.s32.totalorder %v1580_v14, 2 }
 0x277   : > { %v11705_v36 = vpop.eup %9947  ;;  %vm2433_vm14 = vcmp.gt.s32.totalorder %v2432_v2, 0  ;;  %v1587_v13 = vsel %vm1585_vm11, %v13345_v35, %v11273_v26  ;;  %vm13365_vm10 = vweird.f32 %v13523_v27  ;;  %v2391_v44 = vshll.u32 %v11637_v1, %v2389_v59 }
 0x278   : > { %v11710_v52 = vpop.eup %9949  ;;  %v2396_v49 = vshll.u32 %v2395_v6, 23  ;;  %v2434_v45 = vsel %vm2433_vm14, %v2432_v2, 0  ;;  %v1588_v58 = vsel %vm1581_vm15, %v1584_v61, %v1587_v13  ;;  %v1485_v11 = vsel %vm13360_vm3, nan, %v1484_v54 }
 0x279   : > { %13522 = vst [vmem:[#allocation30_spill] sm:$0xff] %v11710_v52  ;;  %v2436_v60 = vand.u32 31, %v2434_v45  ;;  %v1589_v14 = vsel %vm13365_vm10, nan, %v1588_v58  ;;  %v11718_v10 = vpop.eup %9951  ;;  %v11720_v17 = vshll.u32 %v2430_v37, 8  ;;  %v971_v2 = vmul.f32 %v10604_v33, %v942_v46  ;;  %v947_v27 = vpop.permute.xlu1 %946 }
 0x27a   : > { %v2397_v35 = vor.u32 4788187, %v2396_v49  ;;  %v11722_v6 = vpack.c.bf16 %v1589_v14, %v1485_v11  ;;  %vm13375_vm13 = vcmp.lt.s32.totalorder %v11313_v28, 0  ;;  %v2393_v61 = vor.u32 %v2392_v56, %v2391_v44 }
 0x27b   : > { %v2437_v1 = vsub.s32 32, %v2436_v60  ;;  %v1055_v59 = vmul.f32 %v10601_v32, %v1028_v30  ;;  %v1155_v54 = vmul.f32 %v10606_v34, %v1128_v20  ;;  %v2435_v13 = vshrl.u32 %v2434_v45, 5 }
 0x27c   : > { %13524 = vst [vmem:[#allocation47_spill] sm:$0xff] %v11722_v6  ;;  %v2439_v58 = vshll.u32 %v13455_v21, %v2436_v60  ;;  %v2442_v8 = vshll.u32 %v13450_v63, %v2436_v60  ;;  %v2445_v49 = vshll.u32 %v13451_v7, %v2436_v60  ;;  %8820 = vmatmul.mubr.msk.bf16.gmra.mrb[4].mxu0 %vm4535_vm12, %v11722_v6  ;;  %v2398_v37 = vand.u32 2147483647, %v2397_v35 }
 0x27d   : > { %v2440_v46 = vshrl.u32 %v13450_v63, %v2437_v1  ;;  %v2443_v56 = vshrl.u32 %v13451_v7, %v2437_v1  ;;  %v2446_v44 = vshrl.u32 %v13457_v5, %v2437_v1  ;;  %4612 = vmatprep.mubr.bf16.mxu0 %v13513_v31  ;;  %v13525_v45 = vand.u32 2147483647, %v11313_v28 }
 0x27e   : > { %v13526_v30 = vmov 0  ;;  %v2448_v20 = vshll.u32 %v13457_v5, %v2436_v60  ;;  %v2449_v11 = vshrl.u32 %v13458_v4, %v2437_v1  ;;  %v2451_v35 = vshll.u32 %v13458_v4, %v2436_v60 }
 0x27f   : > { %vm11739_vm1 = vcmp.le.f32.partialorder %v13525_v45, 0.7853982  ;;  %v2452_v14 = vshrl.u32 %v13452_v23, %v2437_v1  ;;  %v2400_v38 = vcvt.s32.f32 %v2393_v61  ;;  %v2441_v6 = vor.u32 %v2440_v46, %v2439_v58 }
 0x280   : > { %v13527_v30 = vsel %vm11739_vm1, 4294967295, %v13526_v30  ;;  %v2444_v55 = vor.u32 %v2443_v56, %v2442_v8  ;;  %v2447_v42 = vor.u32 %v2446_v44, %v2445_v49  ;;  %v2438_v9 = vshrl.u32 %v13455_v21, %v2437_v1 }
 0x281   : > { %13528 = vst [vmem:[#allocation48_spill] sm:$0xff] %v13527_v30  ;;  %v2450_v43 = vor.u32 %v2449_v11, %v2448_v20  ;;  %v2453_v45 = vor.u32 %v2452_v14, %v2451_v35  ;;  %vm2454_vm4 = vcmp.lt.s32.totalorder %v2435_v13, 1  ;;  %vm13368_vm11 = vcmp.lt.s32.totalorder %v11415_v50, 0  ;;  %v13531_v35 = vld [vmem:[#allocation23_spill] sm:$0xff] }
 0x282   : > { %vm2456_vm14 = vcmp.lt.s32.totalorder %v2435_v13, 3  ;;  %vm2457_vm15 = vcmp.lt.s32.totalorder %v2435_v13, 4  ;;  %v2462_v57 = vsel %vm2454_vm4, %v2441_v6, %v2444_v55  ;;  %v2466_v48 = vsel %vm2454_vm4, %v2444_v55, %v2447_v42 }
 0x283   : > { %v2401_v26 = vmul.f32 %v2400_v38, %v2398_v37  ;;  %v2459_v60 = vsel %vm2457_vm15, %v2447_v42, 2102212464  ;;  %v2463_v18 = vsel %vm2457_vm15, %v2450_v43, 920167782  ;;  %v2467_v22 = vsel %vm2457_vm15, %v2453_v45, 1326507024 }
 0x284   : > { %vm2455_vm3 = vcmp.lt.s32.totalorder %v2435_v13, 2  ;;  %v2464_v8 = vsel %vm2456_vm14, %v2447_v42, %v2463_v18  ;;  %v2468_v61 = vsel %vm2456_vm14, %v2450_v43, %v2467_v22  ;;  %v1071_v58 = vadd.f32 %v1055_v59, %v971_v2  ;;  %v952_v22 = vpop.permute.xlu0 %951  ;;  %v1032_v18 = vpop.permute.xlu1 %1031  ;;  %v13533_v45 = vld [vmem:[#allocation35_spill] sm:$0xff] }
 0x285   : > { %v13529_v1 = vxor.u32 2147483648, %v11673_v40  ;;  %v2458_v46 = vsel %vm2454_vm4, %v2438_v9, %v2441_v6  ;;  %v2465_v56 = vsel %vm2455_vm3, %v2462_v57, %v2464_v8  ;;  %v2469_v38 = vsel %vm2455_vm3, %v2466_v48, %v2468_v61  ;;  %v13530_v9 = vld [vmem:[#allocation25_spill] sm:$0xff] }
 0x286   : > { %v2460_v37 = vsel %vm2456_vm14, %v2444_v55, %v2459_v60  ;;  %v11760_v44 = vmul.u32.u64.low %v11720_v17, %v2469_v38  ;;  %v11761_v20 = vmul.u32.u64.high %v11720_v17, %v2469_v38, %v11760_v44  ;;  %v11763_v42 = vadd.f32 %v1155_v54, %v1071_v58 }
 0x287   : > { %v2299_v49 = vsel %vm13375_vm13, %v13529_v1, %v11673_v40  ;;  %v2402_v43 = vxor.u32 2147483648, %v2401_v26  ;;  %v11766_v2 = vmul.u32.u64.low %v11720_v17, %v2465_v56  ;;  %v11767_v59 = vmul.u32.u64.high %v11720_v17, %v2465_v56, %v11766_v2 }
 0x288   : > { %v1676_v40 = vsub.s32 4, %v13530_v9  ;;  %v11773_v57 = vsel %vm11739_vm1, %v11313_v28, %v2299_v49  ;;  %v13361_v55 = vand.u32 2147483647, %v11763_v42  ;;  %v2529_v6 = vand.u32 2139095040, %v11763_v42 }
 0x289   : > { %v2461_v54 = vsel %vm2455_vm3, %v2458_v46, %v2460_v37  ;;  %v1056_v11 = vmul.f32 %v10601_v32, %v1032_v18  ;;  %vm13532_vm4 = vcmp.lt.s32.totalorder %v13531_v35, 0  ;;  %v11786_v60 = vsel %vm11286_vm8, 0, %v13533_v45  ;;  %v1132_v37 = vpop.permute.xlu0 %1131  ;;  %v13537_v18 = vld [vmem:[#allocation39_spill] sm:$0xff] }
 0x28a   : > { %v1677_v14 = vsel %vm13532_vm4, %v1676_v40, %v13530_v9  ;;  %13534 = vst [vmem:[#allocation25_spill] sm:$0xff] %v11786_v60  ;;  %vm2479_vm14 = vc.u32 %v11761_v20, %v11766_v2  ;;  %v2530_v8 = vshrl.u32 %v2529_v6, 23  ;;  %v972_v61 = vmul.f32 %v10604_v33, %v947_v27  ;;  %v13538_v45 = vld [vmem:[#allocation43_spill] sm:$0xff] }
 0x28b   : > { %v11791_v58 = vmul.f32 %v10604_v33, %v952_v22  ;;  %v11795_v13 = vsel %vm13368_vm11, %v2402_v43, %v2401_v26  ;;  %v2480_v1 = vadd.s32 1, %v11767_v59  ;;  %v2533_v49 = vand.u32 8388607, %v13361_v55 }
 0x28c   : > { %v11802_v46 = vsel %vm11180_vm7, 0, %v1677_v14  ;;  %v2477_v56 = vmul.u32 %v11720_v17, %v2461_v54  ;;  %v8739_v38 = vadd.s32 4294967169, %v2530_v8  ;;  %v1787_v33 = vadd.s32 3, %v11786_v60 }
 0x28d   : > { %13536 = vst [vmem:[#allocation35_spill] sm:$0xff] %v11802_v46  ;;  %v1683_v27 = vadd.s32 3, %v11802_v46  ;;  %v2481_v26 = vsel %vm2479_vm14, %v2480_v1, %v11767_v59  ;;  %v1072_v44 = vadd.f32 %v1056_v11, %v972_v61  ;;  %v13363_v22 = vxor.u32 2147483648, %v11280_v53  ;;  %v1036_v11 = vpop.permute.xlu1 %1035 }
 0x28e   : > { %v13362_v43 = vxor.u32 2147483648, %v13537_v18  ;;  %v11811_v9 = vadd.s32 %v11766_v2, %v11761_v20  ;;  %v2482_v40 = vadd.s32 %v2481_v26, %v2477_v56  ;;  %v2536_v6 = vadd.s32 1, %v8739_v38 }
 0x28f   : > { %v1684_v14 = vand.u32 3, %v1683_v27  ;;  %v2534_v17 = vor.u32 8388608, %v2533_v49  ;;  %v1156_v12 = vmul.f32 %v10606_v34, %v1132_v37  ;;  %v11816_v59 = vand.u32 3, %v1787_v33 }
 0x290   : > { %v2483_v55 = vadd.s32 536870912, %v2482_v40  ;;  %vm2537_vm7 = vcmp.gt.s32.totalorder %v2536_v6, 0  ;;  %v11831_v37 = vmul.f32 %v10601_v32, %v1036_v11  ;;  %9953 = vcosq.f32 %v11773_v57 }
 0x291   : > { %vm1686_vm8 = vcmp.eq.s32.totalorder %v1684_v14, 0  ;;  %v2538_v61 = vsel %vm2537_vm7, %v2536_v6, 0  ;;  %vm1685_vm3 = vcmp.lt.s32.totalorder %v1684_v14, 2  ;;  %vm1689_vm15 = vcmp.eq.s32.totalorder %v1684_v14, 2 }
 0x292   : > { %v1688_v20 = vsel %vm1686_vm8, %v13537_v18, %v13363_v22  ;;  %v11821_v2 = vshrl.u32 %v2483_v55, 30  ;;  %v2539_v1 = vshrl.u32 %v2538_v61, 5  ;;  %v2540_v49 = vand.u32 31, %v2538_v61 }
 0x293   : > { %v1691_v56 = vsel %vm1689_vm15, %v13362_v43, %v11280_v53  ;;  %v11826_v38 = vshll.u32 %v2534_v17, 8  ;;  %v11828_v33 = vadd.f32 %v1156_v12, %v1072_v44  ;;  %vm1790_vm4 = vcmp.eq.s32.totalorder %v11816_v59, 0 }
 0x294   : > { %13539 = vst [vmem:[#allocation34_spill] sm:$0xff] %v11821_v2  ;;  %v1692_v27 = vsel %vm1685_vm3, %v1688_v20, %v1691_v56  ;;  %v2485_v26 = vshll.u32 %v11821_v2, 30  ;;  %v2541_v6 = vsub.s32 32, %v2540_v49  ;;  %v2543_v55 = vshll.u32 %v13455_v21, %v2540_v49 }
 0x295   : > { %v2546_v14 = vshll.u32 %v13450_v63, %v2540_v49  ;;  %v2549_v61 = vshll.u32 %v13451_v7, %v2540_v49  ;;  %v2552_v17 = vshll.u32 %v13457_v5, %v2540_v49  ;;  %v2555_v20 = vshll.u32 %v13458_v4, %v2540_v49 }
 0x296   : > { %v11840_v44 = vsub.s32 %v2482_v40, %v2485_v26  ;;  %v2544_v32 = vshrl.u32 %v13450_v63, %v2541_v6  ;;  %v2547_v12 = vshrl.u32 %v13451_v7, %v2541_v6  ;;  %vm2558_vm14 = vcmp.lt.s32.totalorder %v2539_v1, 1  ;;  %v13540_v26 = vld [vmem:[#allocation24_spill] sm:$0xff] }
 0x297   : > { %vm1793_vm7 = vcmp.eq.s32.totalorder %v11816_v59, 2  ;;  %v2542_v11 = vshrl.u32 %v13455_v21, %v2541_v6  ;;  %v2550_v56 = vshrl.u32 %v13457_v5, %v2541_v6  ;;  %v2553_v43 = vshrl.u32 %v13458_v4, %v2541_v6 }
 0x298   : > { %v2556_v22 = vshrl.u32 %v13452_v23, %v2541_v6  ;;  %v2488_v48 = vsub.s32 0, %v11840_v44  ;;  %v2545_v49 = vor.u32 %v2544_v32, %v2543_v55  ;;  %v2548_v40 = vor.u32 %v2547_v12, %v2546_v14 }
 0x299   : > { %vm2559_vm8 = vcmp.lt.s32.totalorder %v2539_v1, 2  ;;  %vm13385_vm3 = vweird.f32 %v13531_v35  ;;  %vm13386_vm15 = vweird.f32 %v13540_v26  ;;  %v2551_v8 = vor.u32 %v2550_v56, %v2549_v61 }
 0x29a   : > { %v2554_v54 = vor.u32 %v2553_v43, %v2552_v17  ;;  %v2557_v18 = vor.u32 %v2556_v22, %v2555_v20  ;;  %vm2560_vm10 = vcmp.lt.s32.totalorder %v2539_v1, 3  ;;  %v8736_v53 = vmin.u32 %v2488_v48, %v11840_v44 }
 0x29b   : > { %vm2561_vm11 = vcmp.lt.s32.totalorder %v2539_v1, 4  ;;  %v2562_v46 = vsel %vm2558_vm14, %v2542_v11, %v2545_v49  ;;  %v2566_v6 = vsel %vm2558_vm14, %v2545_v49, %v2548_v40  ;;  %v2570_v55 = vsel %vm2558_vm14, %v2548_v40, %v2551_v8 }
 0x29c   : > { %v2563_v60 = vsel %vm2561_vm11, %v2551_v8, 2102212464  ;;  %v2567_v2 = vsel %vm2561_vm11, %v2554_v54, 920167782  ;;  %v2571_v14 = vsel %vm2561_vm11, %v2557_v18, 1326507024  ;;  %v2490_v32 = vclz %v8736_v53 }
 0x29d   : > { %v2564_v12 = vsel %vm2560_vm10, %v2548_v40, %v2563_v60  ;;  %v2568_v30 = vsel %vm2560_vm10, %v2551_v8, %v2567_v2  ;;  %v2572_v52 = vsel %vm2560_vm10, %v2554_v54, %v2571_v14  ;;  %v13541_v43 = vand.u32 2147483647, %v11415_v50  ;;  %v1136_v60 = vpop.permute.xlu1 %1135 }
 0x29e   : > { %v2569_v48 = vsel %vm2559_vm8, %v2566_v6, %v2568_v30  ;;  %v2573_v61 = vsel %vm2559_vm8, %v2570_v55, %v2572_v52  ;;  %v13544_v17 = vxor.u32 2147483648, %v11427_v51  ;;  %v13377_v53 = vand.u32 2147483647, %v11828_v33 }
 0x29f   : > { %vm11858_vm13 = vcmp.le.f32.partialorder %v13541_v43, 0.7853982  ;;  %v8737_v54 = vadd.s32 4294967294, %v2490_v32  ;;  %v2565_v8 = vsel %vm2559_vm8, %v2562_v46, %v2564_v12  ;;  %vm1789_vm10 = vcmp.lt.s32.totalorder %v11816_v59, 2 }
 0x2a0   : > { %v1792_v18 = vsel %vm1790_vm4, %v13538_v45, %v13544_v17  ;;  %v11872_v2 = vmul.u32.u64.low %v11826_v38, %v2573_v61  ;;  %v11873_v20 = vmul.u32.u64.high %v11826_v38, %v2573_v61, %v11872_v2  ;;  %v13545_v52 = vxor.u32 2147483648, %v13538_v45 }
 0x2a1   : > { %v11876_v30 = vmul.u32.u64.low %v11826_v38, %v2569_v48  ;;  %v11877_v11 = vmul.u32.u64.high %v11826_v38, %v2569_v48, %v11876_v30  ;;  %vm8738_vm11 = vcmp.lt.s32.totalorder %v8737_v54, 0  ;;  %v2633_v46 = vand.u32 2139095040, %v11828_v33 }
 0x2a2   : > { %v1795_v56 = vsel %vm1793_vm7, %v13545_v52, %v11427_v51  ;;  %v1157_v1 = vmul.f32 %v10606_v34, %v1136_v60  ;;  %v2493_v40 = vsel %vm8738_vm11, 0, %v8737_v54  ;;  %v2581_v6 = vmul.u32 %v11826_v38, %v2565_v8 }
 0x2a3   : > { %v1796_v49 = vsel %vm1789_vm10, %v1792_v18, %v1795_v56  ;;  %v1693_v55 = vsel %vm13385_vm3, nan, %v1692_v27  ;;  %v2494_v32 = vsub.s32 32, %v2493_v40  ;;  %v2498_v12 = vsub.s32 4294967266, %v2493_v40 }
 0x2a4   : > { %v1797_v14 = vsel %vm13386_vm15, nan, %v1796_v49  ;;  %v2637_v59 = vand.u32 8388607, %v13377_v53  ;;  %v1073_v43 = vadd.f32 %v11831_v37, %v11791_v58  ;;  %vm2583_vm4 = vc.u32 %v11873_v20, %v11876_v30 }
 0x2a5   : > { %v2584_v34 = vadd.s32 1, %v11877_v11  ;;  %v11898_v48 = vpack.c.bf16 %v1797_v14, %v1693_v55  ;;  %v2634_v38 = vshrl.u32 %v2633_v46, 23  ;;  %v2495_v27 = vshll.u32 %v11840_v44, %v2493_v40 }
 0x2a6   : > { %v2496_v61 = vshrl.u32 %v11811_v9, %v2494_v32  ;;  %v2499_v17 = vadd.s32 127, %v2498_v12  ;;  %v11902_v18 = vadd.f32 %v1157_v1, %v1073_v43  ;;  %v13547_v60 = vsub.s32 4, %v11424_v15 }
 0x2a7   : > { %13546 = vst [vmem:[#allocation49_spill] sm:$0xff] %v11898_v48  ;;  %v2585_v37 = vsel %vm2583_vm4, %v2584_v34, %v11877_v11  ;;  %8821 = vmatmul.mubr.msk.bf16.gmra.mrb[8].mxu0 %vm4535_vm12, %v11898_v48  ;;  %v8743_v44 = vadd.s32 4294967169, %v2634_v38  ;;  %v2406_v9 = vsel %vm11858_vm13, %v11415_v50, %v11795_v13  ;;  %9955 = vsinq.f32 %v11773_v57 }
 0x2a8   : > { %v11909_v58 = vsel %vm2112_vm6, %v13547_v60, %v11424_v15  ;;  %v2497_v54 = vor.u32 %v2496_v61, %v2495_v27  ;;  %v2500_v8 = vshll.u32 %v2499_v17, 23  ;;  %v2586_v2 = vadd.s32 %v2585_v37, %v2581_v6  ;;  %4622 = vmatprep.mubr.bf16.mxu0 %v13513_v31  ;;  %v13552_v6 = vld [vmem:[#allocation42_spill] sm:$0xff] }
 0x2a9   : > { %v13548_v15 = vsub.s32 4, %v11529_v62  ;;  %vm13549_vm6 = vcmp.lt.s32.totalorder %v11313_v28, 0  ;;  %v13550_v52 = vsub.s32 4, %v11616_v25  ;;  %vm13551_vm14 = vcmp.lt.s32.totalorder %v11415_v50, 0 }
 0x2aa   : > { %v2640_v56 = vadd.s32 1, %v8743_v44  ;;  %v2501_v49 = vor.u32 4788187, %v2500_v8  ;;  %v2587_v46 = vadd.s32 536870912, %v2586_v2  ;;  %v2638_v1 = vor.u32 8388608, %v2637_v59  ;;  %v11961_v8 = vpop.eup %9953 }
 0x2ab   : > { %v11925_v11 = vsel %vm13549_vm6, %v13548_v15, %v11529_v62  ;;  %v11933_v13 = vsel %vm13551_vm14, %v13550_v52, %v11616_v25  ;;  %v2737_v40 = vand.u32 2139095040, %v11902_v18  ;;  %9957 = vcosq.f32 %v2406_v9 }
 0x2ac   : > { %vm2641_vm7 = vcmp.gt.s32.totalorder %v2640_v56, 0  ;;  %v13376_v62 = vand.u32 2147483647, %v11902_v18  ;;  %v11940_v57 = vsel %vm11356_vm2, 0, %v13552_v6  ;;  %v2502_v14 = vand.u32 2147483647, %v2501_v49 }
 0x2ad   : > { %13554 = vst [vmem:[#allocation42_spill] sm:$0xff] %v11940_v57  ;;  %v2504_v32 = vcvt.s32.f32 %v2497_v54  ;;  %v11942_v12 = vshrl.u32 %v2587_v46, 30  ;;  %v2642_v25 = vsel %vm2641_vm7, %v2640_v56, 0  ;;  %9959 = vsinq.f32 %v2406_v9 }
 0x2ae   : > { %vm2424_vm8 = vcmp.lt.s32.totalorder %v11661_v47, 0  ;;  %v11946_v59 = vadd.s32 %v11876_v30, %v11873_v20  ;;  %v2644_v43 = vand.u32 31, %v2642_v25  ;;  %v11949_v27 = vshll.u32 %v2638_v1, 8 }
 0x2af   : > { %v2505_v34 = vmul.f32 %v2504_v32, %v2502_v14  ;;  %v2589_v38 = vshll.u32 %v11942_v12, 30  ;;  %v2738_v61 = vshrl.u32 %v2737_v40, 23  ;;  %v2643_v17 = vshrl.u32 %v2642_v25, 5 }
 0x2b0   : > { %v2645_v60 = vsub.s32 32, %v2644_v43  ;;  %v11953_v37 = vand.u32 8388607, %v13376_v62  ;;  %v1891_v44 = vadd.s32 3, %v11940_v57  ;;  %v2647_v20 = vshll.u32 %v13455_v21, %v2644_v43 }
 0x2b1   : > { %v11956_v9 = vsub.s32 %v2586_v2, %v2589_v38  ;;  %v2650_v30 = vshll.u32 %v13450_v63, %v2644_v43  ;;  %v2653_v54 = vshll.u32 %v13451_v7, %v2644_v43  ;;  %v2506_v15 = vxor.u32 2147483648, %v2505_v34  ;;  %v11975_v14 = vpop.eup %9955 }
 0x2b2   : > { %v2648_v52 = vshrl.u32 %v13450_v63, %v2645_v60  ;;  %v2651_v56 = vshrl.u32 %v13451_v7, %v2645_v60  ;;  %v2654_v49 = vshrl.u32 %v13457_v5, %v2645_v60  ;;  %v13555_v46 = vand.u32 2147483647, %v11661_v47 }
 0x2b3   : > { %v2592_v1 = vsub.s32 0, %v11956_v9  ;;  %v2656_v40 = vshll.u32 %v13457_v5, %v2644_v43  ;;  %v2657_v6 = vshrl.u32 %v13458_v4, %v2645_v60  ;;  %v8747_v55 = vadd.s32 4294967169, %v2738_v61 }
 0x2b4   : > { %vm11968_vm2 = vcmp.le.f32.partialorder %v13555_v46, 0.7853982  ;;  %v2612_v32 = vsub.s32 4, %v11942_v12  ;;  %v2649_v25 = vor.u32 %v2648_v52, %v2647_v20  ;;  %v2652_v38 = vor.u32 %v2651_v56, %v2650_v30 }
 0x2b5   : > { %v2655_v62 = vor.u32 %v2654_v49, %v2653_v54  ;;  %vm2528_vm10 = vcmp.lt.s32.totalorder %v11763_v42, 0  ;;  %v8740_v46 = vmin.u32 %v2592_v1, %v11956_v9  ;;  %v2658_v53 = vor.u32 %v2657_v6, %v2656_v40  ;;  %v11982_v26 = vpop.eup %9957 }
 0x2b6   : > { %v2659_v48 = vshll.u32 %v13458_v4, %v2644_v43  ;;  %v2660_v35 = vshrl.u32 %v13452_v23, %v2645_v60  ;;  %v2507_v61 = vsel %vm2424_vm8, %v2506_v15, %v2505_v34  ;;  %v2646_v45 = vshrl.u32 %v13455_v21, %v2645_v60 }
 0x2b7   : > { %vm2662_vm11 = vcmp.lt.s32.totalorder %v2643_v17, 1  ;;  %vm2663_vm4 = vcmp.lt.s32.totalorder %v2643_v17, 2  ;;  %v2594_v20 = vclz %v8740_v46  ;;  %vm2664_vm6 = vcmp.lt.s32.totalorder %v2643_v17, 3  ;;  %v11987_v54 = vpop.eup %9959 }
 0x2b8   : > { %v2661_v30 = vor.u32 %v2660_v35, %v2659_v48  ;;  %vm2665_vm14 = vcmp.lt.s32.totalorder %v2643_v17, 4  ;;  %v2670_v56 = vsel %vm2662_vm11, %v2649_v25, %v2652_v38  ;;  %v2674_v49 = vsel %vm2662_vm11, %v2652_v38, %v2655_v62 }
 0x2b9   : > { %v2667_v52 = vsel %vm2665_vm14, %v2655_v62, 2102212464  ;;  %v2671_v43 = vsel %vm2665_vm14, %v2658_v53, 920167782  ;;  %v8741_v1 = vadd.s32 4294967294, %v2594_v20  ;;  %v2666_v40 = vsel %vm2662_vm11, %v2646_v45, %v2649_v25 }
 0x2ba   : > { %v2672_v6 = vsel %vm2664_vm6, %v2655_v62, %v2671_v43  ;;  %v2675_v51 = vsel %vm2665_vm14, %v2661_v30, 1326507024  ;;  %v2668_v57 = vsel %vm2664_vm6, %v2652_v38, %v2667_v52  ;;  %v2744_v15 = vadd.s32 1, %v8747_v55 }
 0x2bb   : > { %v2673_v34 = vsel %vm2663_vm4, %v2670_v56, %v2672_v6  ;;  %v2676_v60 = vsel %vm2664_vm6, %v2658_v53, %v2675_v51  ;;  %vm8742_vm7 = vcmp.lt.s32.totalorder %v8741_v1, 0  ;;  %v2510_v20 = vsel %vm11968_vm2, %v11661_v47, %v2507_v61 }
 0x2bc   : > { %v2677_v35 = vsel %vm2663_vm4, %v2674_v49, %v2676_v60  ;;  %v11992_v48 = vmul.u32.u64.low %v11949_v27, %v2673_v34  ;;  %v11993_v46 = vmul.u32.u64.high %v11949_v27, %v2673_v34, %v11992_v48  ;;  %v2597_v45 = vsel %vm8742_vm7, 0, %v8741_v1 }
 0x2bd   : > { %v12000_v62 = vmul.u32.u64.low %v11949_v27, %v2677_v35  ;;  %v12001_v25 = vmul.u32.u64.high %v11949_v27, %v2677_v35, %v12000_v62  ;;  %v2598_v38 = vsub.s32 32, %v2597_v45  ;;  %v2602_v51 = vsub.s32 4294967266, %v2597_v45 }
 0x2be   : > { %v2669_v53 = vsel %vm2663_vm4, %v2666_v40, %v2668_v57  ;;  %vm2745_vm11 = vcmp.gt.s32.totalorder %v2744_v15, 0  ;;  %v12007_v55 = vsel %vm2528_vm10, %v2612_v32, %v11942_v12  ;;  %v2742_v30 = vor.u32 8388608, %v11953_v37 }
 0x2bf   : > { %v2746_v52 = vsel %vm2745_vm11, %v2744_v15, 0  ;;  %v12010_v56 = vand.u32 3, %v1891_v44  ;;  %v2599_v61 = vshll.u32 %v11956_v9, %v2597_v45  ;;  %v2600_v43 = vshrl.u32 %v11946_v59, %v2598_v38 }
 0x2c0   : > { %v2603_v49 = vadd.s32 127, %v2602_v51  ;;  %v2688_v1 = vadd.s32 1, %v11993_v46  ;;  %9961 = vcosq.f32 %v2510_v20  ;;  %v2685_v57 = vmul.u32 %v11949_v27, %v2669_v53 }
 0x2c1   : > { %vm2687_vm4 = vc.u32 %v12001_v25, %v11992_v48  ;;  %v2748_v12 = vand.u32 31, %v2746_v52  ;;  %9963 = vsinq.f32 %v2510_v20  ;;  %v2601_v17 = vor.u32 %v2600_v43, %v2599_v61 }
 0x2c2   : > { %v2604_v37 = vshll.u32 %v2603_v49, 23  ;;  %v2689_v44 = vsel %vm2687_vm4, %v2688_v1, %v11993_v46  ;;  %v2747_v40 = vshrl.u32 %v2746_v52, 5  ;;  %v12019_v6 = vshll.u32 %v2742_v30, 8 }
 0x2c3   : > { %v2690_v32 = vadd.s32 %v2689_v44, %v2685_v57  ;;  %v2749_v9 = vsub.s32 32, %v2748_v12  ;;  %v2608_v34 = vcvt.s32.f32 %v2601_v17  ;;  %v2751_v60 = vshll.u32 %v13455_v21, %v2748_v12 }
 0x2c4   : > { %v2605_v59 = vor.u32 4788187, %v2604_v37  ;;  %v2754_v27 = vshll.u32 %v13450_v63, %v2748_v12  ;;  %v2757_v45 = vshll.u32 %v13451_v7, %v2748_v12  ;;  %v2760_v38 = vshll.u32 %v13457_v5, %v2748_v12  ;;  %v13561_v37 = vld [vmem:[#allocation19_spill] sm:$0xff] }
 0x2c5   : > { %v2691_v15 = vadd.s32 536870912, %v2690_v32  ;;  %v2752_v35 = vshrl.u32 %v13450_v63, %v2749_v9  ;;  %v2755_v20 = vshrl.u32 %v13451_v7, %v2749_v9  ;;  %v2758_v46 = vshrl.u32 %v13457_v5, %v2749_v9 }
 0x2c6   : > { %v2606_v62 = vand.u32 2147483647, %v2605_v59  ;;  %v2761_v51 = vshrl.u32 %v13458_v4, %v2749_v9  ;;  %v2764_v61 = vshrl.u32 %v13452_v23, %v2749_v9  ;;  %v2763_v1 = vshll.u32 %v13458_v4, %v2748_v12 }
 0x2c7   : > { %v12029_v53 = vshrl.u32 %v2691_v15, 30  ;;  %v2753_v30 = vor.u32 %v2752_v35, %v2751_v60  ;;  %v2756_v52 = vor.u32 %v2755_v20, %v2754_v27  ;;  %v2759_v49 = vor.u32 %v2758_v46, %v2757_v45 }
 0x2c8   : > { %v2609_v43 = vmul.f32 %v2608_v34, %v2606_v62  ;;  %v2762_v63 = vor.u32 %v2761_v51, %v2760_v38  ;;  %v13558_v7 = vand.u32 2147483647, %v11763_v42  ;;  %v2750_v17 = vshrl.u32 %v13455_v21, %v2749_v9 }
 0x2c9   : > { %v2693_v5 = vshll.u32 %v12029_v53, 30  ;;  %vm2766_vm14 = vcmp.lt.s32.totalorder %v2747_v40, 1  ;;  %v1895_v44 = vxor.u32 2147483648, %v13561_v37  ;;  %v2765_v59 = vor.u32 %v2764_v61, %v2763_v1 }
 0x2ca   : > { %vm12035_vm6 = vcmp.le.f32.partialorder %v13558_v7, 0.7853982  ;;  %vm2768_vm7 = vcmp.lt.s32.totalorder %v2747_v40, 3  ;;  %vm2769_vm11 = vcmp.lt.s32.totalorder %v2747_v40, 4  ;;  %v2774_v23 = vsel %vm2766_vm14, %v2753_v30, %v2756_v52  ;;  %v12043_v34 = vpop.eup %9961 }
 0x2cb   : > { %v2610_v4 = vxor.u32 2147483648, %v2609_v43  ;;  %v12045_v12 = vsub.s32 %v2690_v32, %v2693_v5  ;;  %v2771_v60 = vsel %vm2769_vm11, %v2759_v49, 2102212464  ;;  %v2775_v27 = vsel %vm2769_vm11, %v2762_v63, 920167782  ;;  %v12050_v21 = vpop.eup %9963  ;;  %v13563_v5 = vld [vmem:[#allocation46_spill] sm:$0xff] }
 0x2cc   : > { %vm1893_vm4 = vcmp.lt.s32.totalorder %v12010_v56, 2  ;;  %vm2767_vm3 = vcmp.lt.s32.totalorder %v2747_v40, 2  ;;  %v2770_v9 = vsel %vm2766_vm14, %v2750_v17, %v2753_v30  ;;  %v2776_v15 = vsel %vm2768_vm7, %v2759_v49, %v2775_v27 }
 0x2cd   : > { %vm1894_vm15 = vcmp.eq.s32.totalorder %v12010_v56, 0  ;;  %v2696_v35 = vsub.s32 0, %v12045_v12  ;;  %v2772_v32 = vsel %vm2768_vm7, %v2756_v52, %v2771_v60  ;;  %v2777_v20 = vsel %vm2767_vm3, %v2774_v23, %v2776_v15 }
 0x2ce   : > { %v2778_v45 = vsel %vm2766_vm14, %v2756_v52, %v2759_v49  ;;  %v2686_v62 = vadd.s32 %v11992_v48, %v12001_v25  ;;  %v2779_v46 = vsel %vm2769_vm11, %v2765_v59, 1326507024  ;;  %v2611_v30 = vsel %vm2528_vm10, %v2610_v4, %v2609_v43  ;;  %v13562_v52 = vld [vmem:[#allocation26_spill] sm:$0xff] }
 0x2cf   : > { %v12063_v38 = vmul.u32.u64.low %v12019_v6, %v2777_v20  ;;  %v12064_v51 = vmul.u32.u64.high %v12019_v6, %v2777_v20, %v12063_v38  ;;  %v8744_v61 = vmin.u32 %v2696_v35, %v12045_v12  ;;  %v2780_v1 = vsel %vm2768_vm7, %v2762_v63, %v2779_v46  ;;  %v13565_v63 = vld [vmem:[#allocation27_spill] sm:$0xff] }
 0x2d0   : > { %v1896_v49 = vsel %vm1894_vm15, %v13562_v52, %v1895_v44  ;;  %v2773_v48 = vsel %vm2767_vm3, %v2770_v9, %v2772_v32  ;;  %v2781_v25 = vsel %vm2767_vm3, %v2778_v45, %v2780_v1  ;;  %v1898_v7 = vxor.u32 2147483648, %v13562_v52  ;;  %v13566_v32 = vld [vmem:[#allocation29_spill] sm:$0xff] }
 0x2d1   : > { %v12080_v59 = vsel %vm11443_vm9, 0, %v13563_v5  ;;  %v2698_v43 = vclz %v8744_v61  ;;  %v12083_v23 = vmul.u32.u64.low %v12019_v6, %v2781_v25  ;;  %v12084_v4 = vmul.u32.u64.high %v12019_v6, %v2781_v25, %v12083_v23 }
 0x2d2   : > { %vm1890_vm10 = vweird.f32 %v13565_v63  ;;  %vm1897_vm15 = vcmp.eq.s32.totalorder %v12010_v56, 2  ;;  %v12091_v40 = vsel %vm12035_vm6, %v11763_v42, %v2611_v30  ;;  %v2792_v60 = vadd.s32 1, %v12064_v51 }
 0x2d3   : > { %v1899_v27 = vsel %vm1897_vm15, %v1898_v7, %v13561_v37  ;;  %v1995_v9 = vadd.s32 3, %v12080_v59  ;;  %v8745_v15 = vadd.s32 4294967294, %v2698_v43  ;;  %v2789_v35 = vmul.u32 %v12019_v6, %v2773_v48 }
 0x2d4   : > { %vm1994_vm9 = vweird.f32 %v13566_v32  ;;  %v12103_v20 = vsel %vm11584_vm5, 0, %v11671_v16  ;;  %v1900_v45 = vsel %vm1893_vm4, %v1896_v49, %v1899_v27  ;;  %v1999_v30 = vxor.u32 2147483648, %v11690_v19  ;;  %v9550_v32 = vld [vmem:[%s13580_s27 + $0x14] ss:$8 sps:$4 sm:$0xff]  }
 0x2d5   : > { %v1996_v46 = vand.u32 3, %v1995_v9  ;;  %v2099_v61 = vadd.s32 3, %v12103_v20  ;;  %vm8746_vm3 = vcmp.lt.s32.totalorder %v8745_v15, 0  ;;  %vm2791_vm14 = vc.u32 %v12084_v4, %v12063_v38 }
 0x2d6   : > { %v13395_v6 = vxor.u32 2147483648, %v11681_v41  ;;  %v13394_v1 = vxor.u32 2147483648, %v11705_v36  ;;  %v2701_v48 = vsel %vm8746_vm3, 0, %v8745_v15  ;;  %v2793_v0 = vsel %vm2791_vm14, %v2792_v60, %v12064_v51 }
 0x2d7   : > { %vm1997_vm5 = vcmp.lt.s32.totalorder %v1996_v46, 2  ;;  %vm1998_vm7 = vcmp.eq.s32.totalorder %v1996_v46, 0  ;;  %v2702_v16 = vsub.s32 32, %v2701_v48  ;;  %v2703_v56 = vshll.u32 %v12045_v12, %v2701_v48 }
 0x2d8   : > { %v2706_v49 = vsub.s32 4294967266, %v2701_v48  ;;  %v2794_v25 = vadd.s32 %v2793_v0, %v2789_v35  ;;  %v2000_v5 = vsel %vm1998_vm7, %v11681_v41, %v1999_v30  ;;  %vm2001_vm11 = vcmp.eq.s32.totalorder %v1996_v46, 2 }
 0x2d9   : > { %v2100_v17 = vand.u32 3, %v2099_v61  ;;  %v13387_v43 = vxor.u32 2147483648, %v11699_v24  ;;  %v2704_v23 = vshrl.u32 %v2686_v62, %v2702_v16  ;;  %v2003_v51 = vsel %vm2001_vm11, %v13395_v6, %v11690_v19 }
 0x2da   : > { %v2707_v27 = vadd.s32 127, %v2706_v49  ;;  %v2795_v9 = vadd.s32 536870912, %v2794_v25  ;;  %v1901_v12 = vsel %vm1890_vm10, nan, %v1900_v45  ;;  %v2004_v60 = vsel %vm1997_vm5, %v2000_v5, %v2003_v51  ;;  %v4510_v49 = vld [vmem:[%s13567_s5] sm:$0xff]  ;;  %s13633_s5 = sld [smem:[#allocation62_spill]] }
 0x2db   : > { %vm2102_vm4 = vcmp.eq.s32.totalorder %v2100_v17, 0  ;;  %vm2105_vm15 = vcmp.eq.s32.totalorder %v2100_v17, 2  ;;  %v2705_v15 = vor.u32 %v2704_v23, %v2703_v56  ;;  %v2005_v46 = vsel %vm1994_vm9, nan, %v2004_v60  ;;  %v13571_v60 = vld [vmem:[#allocation30_spill] sm:$0xff] }
 0x2dc   : > { %v2708_v35 = vshll.u32 %v2707_v27, 23  ;;  %v12124_v48 = vshrl.u32 %v2795_v9, 30  ;;  %vm2632_vm3 = vcmp.lt.s32.totalorder %v11828_v33, 0  ;;  %v12129_v62 = vpack.c.bf16 %v2005_v46, %v1901_v12 }
 0x2dd   : > { %v2104_v61 = vsel %vm2102_vm4, %v11699_v24, %v13394_v1  ;;  %v2107_v45 = vsel %vm2105_vm15, %v13387_v43, %v11705_v36  ;;  %v12140_v0 = vsel %vm11604_vm0, 0, %v11909_v58  ;;  %9965 = vcosq.f32 %v12091_v40 }
 0x2de   : > { %v2709_v16 = vor.u32 4788187, %v2708_v35  ;;  %v2797_v56 = vshll.u32 %v12124_v48, 30  ;;  %vm2101_vm14 = vcmp.lt.s32.totalorder %v2100_v17, 2  ;;  %v2712_v5 = vcvt.s32.f32 %v2705_v15  ;;  %8822 = vmatmul.mubr.msk.bf16.gmra.mrb[12].mxu0 %vm4535_vm12, %v12129_v62 }
 0x2df   : > { %vm13392_vm5 = vweird.f32 %v11171_v29  ;;  %v2108_v23 = vsel %vm2101_vm14, %v2104_v61, %v2107_v45  ;;  %v2203_v39 = vadd.s32 3, %v12140_v0  ;;  %v13568_v58 = vand.u32 2147483647, %v11828_v33  ;;  %4632 = vmatprep.mubr.bf16.mxu0 %v13513_v31 }
 0x2e0   : > { %v2710_v17 = vand.u32 2147483647, %v2709_v16  ;;  %v12157_v9 = vsub.s32 %v2794_v25, %v2797_v56  ;;  %vm13391_vm7 = vweird.f32 %v11219_v3  ;;  %v13388_v51 = vxor.u32 2147483648, %v11718_v10  ;;  %v9543_v56 = vld [vmem:[%s13573_s20 + $0x4] ss:$8 sps:$4 sm:$0xff]  }
 0x2e1   : > { %vm12153_vm0 = vcmp.le.f32.partialorder %v13568_v58, 0.7853982  ;;  %v2204_v12 = vand.u32 3, %v2203_v39  ;;  %v13389_v15 = vxor.u32 2147483648, %v13571_v60  ;;  %v8828_v35 = vcombine.high %v4510_v49, %v4510_v49 }
 0x2e2   : > { %vm13390_vm11 = vcmask 1043456   ;;  %v2713_v46 = vmul.f32 %v2712_v5, %v2710_v17  ;;  %v2800_v61 = vsub.s32 0, %v12157_v9  ;;  %v8827_v45 = vcombine.low %v4510_v49, %v4510_v49 }
 0x2e3   : > { %v12167_v25 = vsel %vm11739_vm1, 0, %v11925_v11  ;;  %v2109_v16 = vsel %vm13392_vm5, nan, %v2108_v23  ;;  %vm2205_vm4 = vcmp.lt.s32.totalorder %v2204_v12, 2  ;;  %vm2206_vm15 = vcmp.eq.s32.totalorder %v2204_v12, 0  ;;  %8829 = vmatprep.subr.msk.bf16.mxu0 %vm13390_vm11, %v8828_v35 }
 0x2e4   : > { %vm2209_vm14 = vcmp.eq.s32.totalorder %v2204_v12, 2  ;;  %v2714_v5 = vxor.u32 2147483648, %v2713_v46  ;;  %v8748_v49 = vmin.u32 %v2800_v61, %v12157_v9  ;;  %v2208_v11 = vsel %vm2206_vm15, %v13571_v60, %v13388_v51 }
 0x2e5   : > { %v2211_v23 = vsel %vm2209_vm14, %v13389_v15, %v11718_v10  ;;  %v4705_v17 = vsel %vm13390_vm11, %v8827_v45, 0  ;;  %v2307_v12 = vadd.s32 3, %v12167_v25  ;;  %v13393_v35 = vxor.u32 2147483648, %v11975_v14 }
 0x2e6   : > { %v2212_v39 = vsel %vm2205_vm4, %v2208_v11, %v2211_v23  ;;  %v2715_v58 = vsel %vm2632_vm3, %v2714_v5, %v2713_v46  ;;  %v2802_v43 = vclz %v8748_v49  ;;  %4711 = vmatpush1.bf16.msra.mxu0 %v4705_v17  ;;  %v2314_v51 = vxor.u32 2147483648, %v11961_v8 }
 0x2e7   : > { %v2213_v61 = vsel %vm13391_vm7, nan, %v2212_v39  ;;  %9967 = vsinq.f32 %v12091_v40  ;;  %v2308_v11 = vand.u32 3, %v2307_v12  ;;  %v12196_v45 = vsel %vm11858_vm13, 0, %v11933_v13  ;;  %4871 = vmatprep.subr.bf16.mxu0 %v9543_v56  ;;  %v12198_v23 = vpop.eup %9965 }
 0x2e8   : > { %v12191_v15 = vpack.c.bf16 %v2213_v61, %v2109_v16  ;;  %v2716_v46 = vsub.s32 4, %v12029_v53  ;;  %v2790_v5 = vadd.s32 %v12063_v38, %v12084_v4  ;;  %v8749_v49 = vadd.s32 4294967294, %v2802_v43  ;;  %v13574_v61 = vld [vmem:[#allocation34_spill] sm:$0xff] }
 0x2e9   : > { %v2411_v39 = vadd.s32 3, %v12196_v45  ;;  %v2718_v40 = vsel %vm12153_vm0, %v11828_v33, %v2715_v58  ;;  %vm2306_vm13 = vweird.f32 %v11313_v28  ;;  %vm2310_vm1 = vcmp.eq.s32.totalorder %v2308_v11, 0 }
 0x2ea   : > { %8823 = vmatmul.mubr.msk.bf16.gmra.mrb[16].mxu0 %vm4535_vm12, %v12191_v15  ;;  %vm2313_vm4 = vcmp.eq.s32.totalorder %v2308_v11, 2  ;;  %vm8750_vm15 = vcmp.lt.s32.totalorder %v8749_v49, 0  ;;  %v2312_v22 = vsel %vm2310_vm1, %v11961_v8, %v13393_v35  ;;  %vm2309_vm14 = vcmp.lt.s32.totalorder %v2308_v11, 2 }
 0x2eb   : > { %4642 = vmatprep.mubr.bf16.mxu0 %v13513_v31  ;;  %v2315_v13 = vsel %vm2313_vm4, %v2314_v51, %v11975_v14  ;;  %v2412_v38 = vand.u32 3, %v2411_v39  ;;  %v2805_v4 = vsel %vm8750_vm15, 0, %v8749_v49  ;;  %v2415_v43 = vxor.u32 2147483648, %v11987_v54 }
 0x2ec   : > { %v2418_v16 = vxor.u32 2147483648, %v11982_v26  ;;  %v2806_v56 = vsub.s32 32, %v2805_v4  ;;  %v2807_v17 = vshll.u32 %v12157_v9, %v2805_v4  ;;  %v2810_v12 = vsub.s32 4294967266, %v2805_v4 }
 0x2ed   : > { %v2316_v58 = vsel %vm2309_vm14, %v2312_v22, %v2315_v13  ;;  %vm2413_vm11 = vcmp.lt.s32.totalorder %v2412_v38, 2  ;;  %vm2414_vm7 = vcmp.eq.s32.totalorder %v2412_v38, 0  ;;  %vm2417_vm5 = vcmp.eq.s32.totalorder %v2412_v38, 2 }
 0x2ee   : > { %v2508_v35 = vsub.s32 4, %v13574_v61  ;;  %v2808_v1 = vshrl.u32 %v2790_v5, %v2806_v56  ;;  %v2811_v6 = vadd.s32 127, %v2810_v12  ;;  %v2416_v11 = vsel %vm2414_vm7, %v11982_v26, %v2415_v43 }
 0x2ef   : > { %v2419_v49 = vsel %vm2417_vm5, %v2418_v16, %v11987_v54  ;;  %v2317_v9 = vsel %vm2306_vm13, nan, %v2316_v58  ;;  %vm2410_vm1 = vweird.f32 %v11415_v50  ;;  %9969 = vcosq.f32 %v2718_v40 }
 0x2f0   : > { %v2420_v39 = vsel %vm2413_vm11, %v2416_v11, %v2419_v49  ;;  %v2509_v22 = vsel %vm2424_vm8, %v2508_v35, %v13574_v61  ;;  %v2809_v5 = vor.u32 %v2808_v1, %v2807_v17  ;;  %v2812_v13 = vshll.u32 %v2811_v6, 23 }
 0x2f1   : > { %v2421_v38 = vsel %vm2410_vm1, nan, %v2420_v39  ;;  %v12237_v4 = vsel %vm11968_vm2, 0, %v2509_v22  ;;  %v12239_v56 = vpop.eup %9967  ;;  %v12247_v35 = vsel %vm12035_vm6, 0, %v12007_v55  ;;  %v2519_v1 = vxor.u32 2147483648, %v12050_v21 }
 0x2f2   : > { %v12241_v12 = vpack.c.bf16 %v2421_v38, %v2317_v9  ;;  %v2515_v58 = vadd.s32 3, %v12237_v4  ;;  %v2813_v6 = vor.u32 4788187, %v2812_v13  ;;  %v2522_v17 = vxor.u32 2147483648, %v12043_v34 }
 0x2f3   : > { %v2619_v2 = vadd.s32 3, %v12247_v35  ;;  %9971 = vsinq.f32 %v2718_v40  ;;  %vm2736_vm8 = vcmp.lt.s32.totalorder %v11902_v18, 0  ;;  %v2816_v61 = vcvt.s32.f32 %v2809_v5 }
 0x2f4   : > { %8824 = vmatmul.mubr.msk.bf16.gmra.mrb[20].mxu0 %vm4535_vm12, %v12241_v12  ;;  %v2516_v11 = vand.u32 3, %v2515_v58  ;;  %v2814_v49 = vand.u32 2147483647, %v2813_v6  ;;  %v2623_v57 = vxor.u32 2147483648, %v12239_v56  ;;  %v13396_v9 = vxor.u32 2147483648, %v12198_v23 }
 0x2f5   : > { %4652 = vmatprep.mubr.bf16.mxu0 %v13513_v31  ;;  %v2620_v55 = vand.u32 3, %v2619_v2  ;;  %v2717_v39 = vsel %vm2632_vm3, %v2716_v46, %v12029_v53  ;;  %v2820_v40 = vsub.s32 4, %v12124_v48  ;;  %v13575_v38 = vand.u32 2147483647, %v11902_v18 }
 0x2f6   : > { %vm2518_vm2 = vcmp.eq.s32.totalorder %v2516_v11, 0  ;;  %vm2521_vm6 = vcmp.eq.s32.totalorder %v2516_v11, 2  ;;  %v2817_v22 = vmul.f32 %v2816_v61, %v2814_v49  ;;  %vm2517_vm5 = vcmp.lt.s32.totalorder %v2516_v11, 2 }
 0x2f7   : > { %v2520_v5 = vsel %vm2518_vm2, %v12043_v34, %v2519_v1  ;;  %v2523_v13 = vsel %vm2521_vm6, %v2522_v17, %v12050_v21  ;;  %vm12270_vm7 = vcmp.le.f32.partialorder %v13575_v38, 0.7853982  ;;  %vm2622_vm3 = vcmp.eq.s32.totalorder %v2620_v55, 0 }
 0x2f8   : > { %v2524_v53 = vsel %vm2517_vm5, %v2520_v5, %v2523_v13  ;;  %vm2625_vm11 = vcmp.eq.s32.totalorder %v2620_v55, 2  ;;  %v2818_v46 = vxor.u32 2147483648, %v2817_v22  ;;  %vm2621_vm4 = vcmp.lt.s32.totalorder %v2620_v55, 2 }
 0x2f9   : > { %v2624_v6 = vsel %vm2622_vm3, %v12198_v23, %v2623_v57  ;;  %v2627_v2 = vsel %vm2625_vm11, %v13396_v9, %v12239_v56  ;;  %vm2514_vm15 = vweird.f32 %v11661_v47  ;;  %vm2618_vm14 = vweird.f32 %v11763_v42  ;;  %v12295_v38 = vpop.eup %9969  ;;  %v9561_v42 = vld [vmem:[%s13580_s27 + $0x40] ss:$8 sps:$4 sm:$0xff]  }
 0x2fa   : > { %v2628_v61 = vsel %vm2621_vm4, %v2624_v6, %v2627_v2  ;;  %v12284_v11 = vsel %vm12153_vm0, 0, %v2717_v39  ;;  %v2819_v49 = vsel %vm2736_vm8, %v2818_v46, %v2817_v22  ;;  %v2821_v55 = vsel %vm2736_vm8, %v2820_v40, %v12124_v48 }
 0x2fb   : > { %v2525_v5 = vsel %vm2514_vm15, nan, %v2524_v53  ;;  %v2629_v13 = vsel %vm2618_vm14, nan, %v2628_v61  ;;  %v2822_v27 = vsel %vm12270_vm7, %v11902_v18, %v2819_v49  ;;  %v2723_v22 = vadd.s32 3, %v12284_v11 }
 0x2fc   : > { %v12300_v39 = vpack.c.bf16 %v2629_v13, %v2525_v5  ;;  %9973 = vcosq.f32 %v2822_v27  ;;  %v12309_v48 = vsel %vm12270_vm7, 0, %v2821_v55  ;;  %v13399_v2 = vxor.u32 2147483648, %v12295_v38  ;;  %v13578_v5 = vld [vmem:[#allocation42_spill] sm:$0xff] }
 0x2fd   : > { %v12303_v46 = vpop.eup %9971  ;;  %9975 = vsinq.f32 %v2822_v27  ;;  %v2724_v40 = vand.u32 3, %v2723_v22  ;;  %v2827_v53 = vadd.s32 3, %v12309_v48  ;;  %v3557_v13 = vand.u32 3, %v13578_v5 }
 0x2fe   : > { %8825 = vmatmul.mubr.msk.bf16.gmra.mrb[24].mxu0 %vm4535_vm12, %v12300_v39  ;;  %v13397_v6 = vxor.u32 2147483648, %v12303_v46  ;;  %vm2722_vm2 = vweird.f32 %v11828_v33  ;;  %vm2826_vm7 = vweird.f32 %v11902_v18  ;;  %v13590_v47 = vxor.u32 2147483648, %v12303_v46  ;;  %v9567_v18 = vld [vmem:[%s13580_s27 + $0x60] ss:$8 sps:$4 sm:$0xff]  }
 0x2ff   : > { %4662 = vmatprep.mubr.bf16.mxu0 %v13513_v31  ;;  %vm2726_vm0 = vcmp.eq.s32.totalorder %v2724_v40, 0  ;;  %vm2729_vm8 = vcmp.eq.s32.totalorder %v2724_v40, 2  ;;  %v2828_v61 = vand.u32 3, %v2827_v53  ;;  %vm2725_vm6 = vcmp.lt.s32.totalorder %v2724_v40, 2 }
 0x300   : > { %v2728_v49 = vsel %vm2726_vm0, %v12295_v38, %v13397_v6  ;;  %v2731_v58 = vsel %vm2729_vm8, %v13399_v2, %v12303_v46  ;;  %v3660_v6 = vand.u32 3, %v12080_v59  ;;  %vm3559_vm11 = vcmp.eq.s32.totalorder %v3557_v13, 0 }
 0x301   : > { %v2732_v53 = vsel %vm2725_vm6, %v2728_v49, %v2731_v58  ;;  %vm2833_vm5 = vcmp.eq.s32.totalorder %v2828_v61, 2  ;;  %vm2830_vm3 = vcmp.eq.s32.totalorder %v2828_v61, 0  ;;  %vm2829_vm4 = vcmp.lt.s32.totalorder %v2828_v61, 2 }
 0x302   : > { %v3561_v49 = vsel %vm3559_vm11, %v13562_v52, %v1895_v44  ;;  %vm3562_vm0 = vcmp.eq.s32.totalorder %v3557_v13, 2  ;;  %v2733_v59 = vsel %vm2722_vm2, nan, %v2732_v53  ;;  %vm3558_vm8 = vcmp.lt.s32.totalorder %v3557_v13, 2 }
 0x303   : > { %vm4678_vm6 = vcmask 64512   ;;  %vm3665_vm11 = vcmp.eq.s32.totalorder %v3660_v6, 2  ;;  %v3969_v53 = vand.u32 3, %v12167_v25  ;;  %v13581_v25 = vxor.u32 2147483648, %v11705_v36 }
 0x306   : > { %v12321_v55 = vpop.eup %9973 }
 0x307   : > { %v12324_v27 = vpop.eup %9975  ;;  %v13398_v22 = vxor.u32 2147483648, %v12321_v55 }
 0x308   : > { %v13400_v9 = vxor.u32 2147483648, %v12324_v27 }
 0x309   : > { %v2835_v5 = vsel %vm2833_vm5, %v13398_v22, %v12324_v27  ;;  %v3564_v22 = vsel %vm3562_vm0, %v1898_v7, %v13561_v37  ;;  %vm3661_vm5 = vcmp.lt.s32.totalorder %v3660_v6, 2  ;;  %v13579_v37 = vxor.u32 2147483648, %v11681_v41 }
 0x30a   : > { %v2832_v40 = vsel %vm2830_vm3, %v12321_v55, %v13400_v9  ;;  %v3565_v2 = vsel %vm3558_vm8, %v3561_v49, %v3564_v22  ;;  %vm3662_vm3 = vcmp.eq.s32.totalorder %v3660_v6, 0  ;;  %v3763_v7 = vand.u32 3, %v12103_v20  ;;  %v9549_v20 = vld [vmem:[%s13580_s27] ss:$8 sps:$4 sm:$0xff]  }
 0x30b   : > { %v2836_v58 = vsel %vm2829_vm4, %v2832_v40, %v2835_v5  ;;  %v3566_v44 = vsel %vm1890_vm10, nan, %v3565_v2  ;;  %v3664_v13 = vsel %vm3662_vm3, %v11681_v41, %v1999_v30  ;;  %v3667_v52 = vsel %vm3665_vm11, %v13579_v37, %v11690_v19  ;;  %v9547_v41 = vld [vmem:[%s13580_s27 + $0x4] ss:$8 sps:$4 sm:$0xff]   ;;  %v9552_v40 = vld [vmem:[%s13580_s27 + $0x10] ss:$8 sps:$4 sm:$0xff]  }
 0x30c   : > { %v2837_v61 = vsel %vm2826_vm7, nan, %v2836_v58  ;;  %v3866_v22 = vand.u32 3, %v12140_v0  ;;  %v3668_v63 = vsel %vm3661_vm5, %v3664_v13, %v3667_v52  ;;  %v4072_v2 = vand.u32 3, %v12196_v45  ;;  %5294 = vmatprep.subr.bf16.mxu1 %v9547_v41 }
 0x30d   : > { %v12347_v9 = vpack.c.bf16 %v2837_v61, %v2733_v59  ;;  %v12364_v5 = vand.u32 3, %v12237_v4  ;;  %v12367_v30 = vand.u32 3, %v12247_v35  ;;  %v3669_v19 = vsel %vm1994_vm9, nan, %v3668_v63  ;;  %5295 = vmatpush1.bf16.msra.mxu1 %v9549_v20  ;;  %v9553_v61 = vld [vmem:[%s13580_s27 + $0x24] ss:$8 sps:$4 sm:$0xff]  }
 0x30e   : > { %vm3764_vm10 = vcmp.lt.s32.totalorder %v3763_v7, 2  ;;  %vm3765_vm4 = vcmp.eq.s32.totalorder %v3763_v7, 0  ;;  %vm3768_vm0 = vcmp.eq.s32.totalorder %v3763_v7, 2  ;;  %v12378_v0 = vpack.c.bf16 %v3669_v19, %v3566_v44  ;;  %5296 = vmatprep.subr.bf16.mxu1 %v9550_v32  ;;  %v9541_v44 = vld [vmem:[%s13573_s20] ss:$8 sps:$4 sm:$0xff]  }
 0x30f   : > { %8826 = vmatmul.mubr.msk.bf16.gmra.mrb[28].mxu0 %vm4535_vm12, %v12347_v9  ;;  %v3767_v45 = vsel %vm3765_vm4, %v11699_v24, %v13581_v25  ;;  %v13582_v4 = vxor.u32 2147483648, %v11699_v24  ;;  %vm3867_vm8 = vcmp.lt.s32.totalorder %v3866_v22, 2  ;;  %vm3868_vm9 = vcmp.eq.s32.totalorder %v3866_v22, 0 }
 0x310   : > { %4742 = vmatprep.mubr.bf16.mxu0 %v13513_v31  ;;  %vm3871_vm5 = vcmp.eq.s32.totalorder %v3866_v22, 2  ;;  %vm3970_vm3 = vcmp.lt.s32.totalorder %v3969_v53, 2  ;;  %vm13583_vm11 = vweird.f32 %v11171_v29  ;;  %v13584_v24 = vxor.u32 2147483648, %v11718_v10 }
 0x311   : > { %v3770_v35 = vsel %vm3768_vm0, %v13582_v4, %v11705_v36  ;;  %v13585_v59 = vxor.u32 2147483648, %v13571_v60  ;;  %v13586_v13 = vxor.u32 2147483648, %v11975_v14  ;;  %vm3974_vm4 = vcmp.eq.s32.totalorder %v3969_v53, 2  ;;  %5297 = vmatpush1.bf16.msra.mxu1 %v9552_v40 }
 0x312   : > { %v3771_v6 = vsel %vm3764_vm10, %v3767_v45, %v3770_v35  ;;  %v3870_v36 = vsel %vm3868_vm9, %v13571_v60, %v13584_v24  ;;  %vm3971_vm10 = vcmp.eq.s32.totalorder %v3969_v53, 0  ;;  %vm4073_vm0 = vcmp.lt.s32.totalorder %v4072_v2, 2  ;;  %5298 = vmatprep.subr.bf16.mxu1 %v9553_v61  ;;  %v9565_v61 = vld [vmem:[%s13580_s27 + $0x64] ss:$8 sps:$4 sm:$0xff]  }
 0x313   : > { %v3772_v49 = vsel %vm13583_vm11, nan, %v3771_v6  ;;  %v3873_v58 = vsel %vm3871_vm5, %v13585_v59, %v11718_v10  ;;  %v3973_v37 = vsel %vm3971_vm10, %v11961_v8, %v13586_v13  ;;  %v9546_v10 = vld [vmem:[%s13573_s20 + $0x14] ss:$8 sps:$4 sm:$0xff]   ;;  %vm13587_vm9 = vweird.f32 %v11219_v3  ;;  %v9555_v3 = vld [vmem:[%s13580_s27 + $0x20] ss:$8 sps:$4 sm:$0xff]  }
 0x314   : > { %v3874_v29 = vsel %vm3867_vm8, %v3870_v36, %v3873_v58  ;;  %v3976_v52 = vsel %vm3974_vm4, %v2314_v51, %v11975_v14  ;;  %vm4074_vm5 = vcmp.eq.s32.totalorder %v4072_v2, 0  ;;  %vm4077_vm11 = vcmp.eq.s32.totalorder %v4072_v2, 2  ;;  %v13588_v8 = vld [vmem:[#allocation16_spill] sm:$0xff]  ;;  %v9980_v59 = vld [vmem:[%s10544_s26 + $0x28] sm:$0xff]  ;;  %v9981_v13 = vld [vmem:[%s10544_s26 + $0x38] sm:$0xff] }
 0x315   : > { %v3875_v60 = vsel %vm13587_vm9, nan, %v3874_v29  ;;  %v3977_v22 = vsel %vm3970_vm3, %v3973_v37, %v3976_v52  ;;  %v4076_v63 = vsel %vm4074_vm5, %v11982_v26, %v2415_v43  ;;  %v4079_v41 = vsel %vm4077_vm11, %v2418_v16, %v11987_v54  ;;  %v9556_v26 = vld [vmem:[%s13580_s27 + $0x34] ss:$8 sps:$4 sm:$0xff]   ;;  %v9544_v54 = vld [vmem:[%s13573_s20 + $0x10] ss:$8 sps:$4 sm:$0xff]   ;;  %5299 = vmatpush1.bf16.msra.mxu1 %v9555_v3  ;;  %v9984_v3 = vld [vmem:[%s10544_s26 + $0x40] sm:$0xff] }
 0x316   : > { %v12418_v7 = vpack.c.bf16 %v3875_v60, %v3772_v49  ;;  %v3978_v14 = vsel %vm2306_vm13, nan, %v3977_v22  ;;  %v4080_v51 = vsel %vm4073_vm0, %v4076_v63, %v4079_v41  ;;  %vm4176_vm8 = vcmp.lt.s32.totalorder %v12364_v5, 2  ;;  %5300 = vmatprep.subr.bf16.mxu1 %v9556_v26  ;;  %v9562_v49 = vld [vmem:[%s13580_s27 + $0x54] ss:$8 sps:$4 sm:$0xff]   ;;  %v9570_v29 = vld [vmem:[%s13580_s27 + $0x70] ss:$8 sps:$4 sm:$0xff]  }
 0x317   : > { %8830 = vmatmul.mubr.msk.bf16.vlgmr.msra.gmra.mrb[0].mxu0 %vm4678_vm6, %v13588_v8  ;;  %vm4177_vm3 = vcmp.eq.s32.totalorder %v12364_v5, 0  ;;  %v4081_v28 = vsel %vm2410_vm1, nan, %v4080_v51  ;;  %vm4180_vm13 = vcmp.eq.s32.totalorder %v12364_v5, 2  ;;  %vm4279_vm10 = vcmp.lt.s32.totalorder %v12367_v30, 2  ;;  %v9982_v37 = vld [vmem:[%s10544_s26 + $0x30] sm:$0xff]  ;;  %v9983_v41 = vld [vmem:[%s10544_s26 + $0x48] sm:$0xff] }
 0x318   : > { %4872 = vmatpush1.bf16.msra.mxu0 %v9541_v44  ;;  %4752 = vmatprep.mubr.bf16.mxu0 %v13513_v31  ;;  %v4179_v43 = vsel %vm4177_vm3, %v12043_v34, %v2519_v1  ;;  %v12450_v16 = vpack.c.bf16 %v4081_v28, %v3978_v14  ;;  %v4182_v53 = vsel %vm4180_vm13, %v2522_v17, %v12050_v21  ;;  %vm4280_vm4 = vcmp.eq.s32.totalorder %v12367_v30, 0  ;;  %v9558_v34 = vld [vmem:[%s13580_s27 + $0x30] ss:$8 sps:$4 sm:$0xff]   ;;  %v9568_v44 = vld [vmem:[%s13580_s27 + $0x74] ss:$8 sps:$4 sm:$0xff]  }
 0x319   : > { %4873 = vmatprep.subr.bf16.mxu0 %v9546_v10  ;;  %vm4283_vm1 = vcmp.eq.s32.totalorder %v12367_v30, 2  ;;  %v4183_v50 = vsel %vm4176_vm8, %v4179_v43, %v4182_v53  ;;  %v4282_v1 = vsel %vm4280_vm4, %v12198_v23, %v2623_v57  ;;  %v13589_v2 = vxor.u32 2147483648, %v12198_v23  ;;  %v9977_v21 = vld [vmem:[%s10544_s26 + $0x10] sm:$0xff]  ;;  %v9978_v17 = vld [vmem:[%s10544_s26 + $0x18] sm:$0xff]  ;;  %5301 = vmatpush1.bf16.msra.mxu1 %v9558_v34  ;;  %v9571_v60 = vld [vmem:[%s13580_s27 + $0x84] ss:$8 sps:$4 sm:$0xff]  }
 0x31a   : > { %v4381_v20 = vand.u32 3, %v12284_v11  ;;  %v12471_v25 = vpack.c.bf16 %v9978_v17, %v9977_v21  ;;  %v4184_v5 = vsel %vm2514_vm15, nan, %v4183_v50  ;;  %v4484_v23 = vand.u32 3, %v12309_v48  ;;  %v9573_v52 = vld [vmem:[%s13580_s27 + $0x80] ss:$8 sps:$4 sm:$0xff]   ;;  %v9985_v43 = vld [vmem:[%s10544_s26 + $0x58] sm:$0xff] }
 0x31b   : > { %v4285_v19 = vsel %vm4283_vm1, %v13589_v2, %v12239_v56  ;;  %v9559_v56 = vld [vmem:[%s13580_s27 + $0x44] ss:$8 sps:$4 sm:$0xff]   ;;  %v13591_v48 = vxor.u32 2147483648, %v12295_v38  ;;  %v13593_v6 = vxor.u32 2147483648, %v12321_v55  ;;  %v12536_v10 = vpack.c.bf16 %v9981_v13, %v9982_v37  ;;  %v9574_v22 = vld [vmem:[%s13580_s27 + $0x94] ss:$8 sps:$4 sm:$0xff]  }
 0x31c   : > { %v4286_v57 = vsel %vm4279_vm10, %v4282_v1, %v4285_v19  ;;  %4874 = vmatpush1.bf16.msra.mxu0 %v9544_v54  ;;  %vm4383_vm0 = vcmp.eq.s32.totalorder %v4381_v20, 0  ;;  %vm4386_vm9 = vcmp.eq.s32.totalorder %v4381_v20, 2  ;;  %vm4382_vm5 = vcmp.lt.s32.totalorder %v4381_v20, 2  ;;  %5302 = vmatprep.subr.bf16.mxu1 %v9559_v56  ;;  %v9576_v63 = vld [vmem:[%s13580_s27 + $0x90] ss:$8 sps:$4 sm:$0xff]   ;;  %v9987_v20 = vld [vmem:[%s10544_s26 + $0x60] sm:$0xff] }
 0x31d   : > { %v4287_v11 = vsel %vm2618_vm14, nan, %v4286_v57  ;;  %v4385_v30 = vsel %vm4383_vm0, %v12295_v38, %v13590_v47  ;;  %v4388_v4 = vsel %vm4386_vm9, %v13591_v48, %v12303_v46  ;;  %vm4486_vm15 = vcmp.eq.s32.totalorder %v4484_v23, 0  ;;  %5303 = vmatpush1.bf16.msra.mxu1 %v9561_v42  ;;  %v9577_v51 = vld [vmem:[%s13580_s27 + $0xa4] ss:$8 sps:$4 sm:$0xff]   ;;  %v9579_v26 = vld [vmem:[%s13580_s27 + $0xa0] ss:$8 sps:$4 sm:$0xff]  }
 0x31e   : > { %v12483_v45 = vpack.c.bf16 %v4287_v11, %v4184_v5  ;;  %v4389_v35 = vsel %vm4382_vm5, %v4385_v30, %v4388_v4  ;;  %vm4489_vm11 = vcmp.eq.s32.totalorder %v4484_v23, 2  ;;  %vm4485_vm14 = vcmp.lt.s32.totalorder %v4484_v23, 2  ;;  %5304 = vmatprep.subr.bf16.mxu1 %v9562_v49  ;;  %v9580_v54 = vld [vmem:[%s13580_s27 + $0xb4] ss:$8 sps:$4 sm:$0xff]   ;;  %v9582_v28 = vld [vmem:[%s13580_s27 + $0xb0] ss:$8 sps:$4 sm:$0xff]  }
 0x31f   : > { %8831 = vmatmul.mubr.msk.bf16.gmra.mrb[4].mxu0 %vm4678_vm6, %v12471_v25  ;;  %v4390_v32 = vsel %vm2722_vm2, nan, %v4389_v35  ;;  %v13592_v38 = vxor.u32 2147483648, %v12324_v27  ;;  %v4491_v40 = vsel %vm4489_vm11, %v13593_v6, %v12324_v27  ;;  %v9979_v27 = vld [vmem:[%s10544_s26 + $0x20] sm:$0xff]  ;;  %v12555_v14 = vpack.c.bf16 %v9983_v41, %v9984_v3  ;;  %v9986_v53 = vld [vmem:[%s10544_s26 + $0x50] sm:$0xff]  ;;  %v9988_v34 = vld [vmem:[%s10544_s26 + $0x68] sm:$0xff] }
 0x320   : > { %4762 = vmatprep.mubr.bf16.mxu0 %v13513_v31  ;;  %v12517_v58 = vpack.c.bf16 %v9980_v59, %v9979_v27  ;;  %v12574_v50 = vpack.c.bf16 %v9985_v43, %v9986_v53  ;;  %v9583_v1 = vld [vmem:[%s13580_s27 + $0xc4] ss:$8 sps:$4 sm:$0xff]   ;;  %v9585_v2 = vld [vmem:[%s13580_s27 + $0xc0] ss:$8 sps:$4 sm:$0xff]   ;;  %v9586_v19 = vld [vmem:[%s13580_s27 + $0xd4] ss:$8 sps:$4 sm:$0xff]   ;;  %v12590_v21 = vpack.c.bf16 %v9988_v34, %v9987_v20 }
 0x321   : > { %v4488_v46 = vsel %vm4486_vm15, %v12321_v55, %v13592_v38  ;;  %v9564_v55 = vld [vmem:[%s13580_s27 + $0x50] ss:$8 sps:$4 sm:$0xff]   ;;  %v13598_v4 = vld [vmem:[#allocation37_spill] sm:$0xff]  ;;  %v13600_v38 = vld [vmem:[#allocation36_spill] sm:$0xff] }
 0x322   : > { %v4492_v24 = vsel %vm4485_vm14, %v4488_v46, %v4491_v40  ;;  %5305 = vmatpush1.bf16.msra.mxu1 %v9564_v55  ;;  %v9989_v17 = vld [vmem:[%s10544_s26 + $0x78] sm:$0xff]  ;;  %v9990_v5 = vld [vmem:[%s10544_s26 + $0x70] sm:$0xff]  ;;  %v13599_v42 = vxor.u32 2147483648, %v13598_v4  ;;  %v13601_v46 = vxor.u32 2147483648, %v13600_v38  ;;  %v13602_v6 = vld [vmem:[#allocation33_spill] sm:$0xff] }
 0x323   : > { %v4493_v33 = vsel %vm2826_vm7, nan, %v4492_v24  ;;  %5306 = vmatprep.subr.bf16.mxu1 %v9565_v61  ;;  %v12597_v57 = vpack.c.bf16 %v9989_v17, %v9990_v5  ;;  %v13594_v23 = vld [vmem:[#allocation31_spill] sm:$0xff]  ;;  %v13595_v11 = vld [vmem:[#allocation22_spill] sm:$0xff]  ;;  %v13603_v49 = vxor.u32 2147483648, %v13602_v6  ;;  %v13605_v27 = vld [vmem:[#allocation25_spill] sm:$0xff] }
 0x324   : > { %v12510_v36 = vpack.c.bf16 %v4493_v33, %v4390_v32  ;;  %v3248_v56 = vand.u32 3, %v13594_v23  ;;  %v3145_v47 = vand.u32 3, %v13595_v11  ;;  %v13596_v30 = vld [vmem:[#allocation38_spill] sm:$0xff]  ;;  %v13604_v33 = vld [vmem:[#allocation28_spill] sm:$0xff]  ;;  %v3454_v59 = vand.u32 3, %v13605_v27  ;;  %v13617_v43 = vld [vmem:[#allocation39_spill] sm:$0xff] }
 0x325   : > { %v13597_v48 = vxor.u32 2147483648, %v13596_v30  ;;  %v13609_v37 = vld [vmem:[#allocation20_spill] sm:$0xff]  ;;  %v13621_v5 = vld [vmem:[#allocation23_spill] sm:$0xff] }
 0x326   : > { %5307 = vmatpush1.bf16.msra.mxu1 %v9567_v18  ;;  %vm3250_vm2 = vcmp.eq.s32.totalorder %v3248_v56, 0  ;;  %vm3253_vm7 = vcmp.eq.s32.totalorder %v3248_v56, 2  ;;  %vm3147_vm8 = vcmp.eq.s32.totalorder %v3145_v47, 0  ;;  %vm3150_vm3 = vcmp.eq.s32.totalorder %v3145_v47, 2  ;;  %v13606_v18 = vld [vmem:[#allocation35_spill] sm:$0xff]  ;;  %v13619_v34 = vld [vmem:[#allocation24_spill] sm:$0xff] }
 0x327   : > { %8832 = vmatmul.mubr.msk.bf16.gmra.mrb[8].mxu0 %vm4678_vm6, %v12517_v58  ;;  %5308 = vmatprep.subr.bf16.mxu1 %v9568_v44  ;;  %v3252_v35 = vsel %vm3250_vm2, %v13598_v4, %v13597_v48  ;;  %v3255_v32 = vsel %vm3253_vm7, %v13599_v42, %v13596_v30  ;;  %v3149_v40 = vsel %vm3147_vm8, %v13602_v6, %v13601_v46  ;;  %vm3249_vm13 = vcmp.lt.s32.totalorder %v3248_v56, 2  ;;  %v9588_v11 = vld [vmem:[%s13580_s27 + $0xd0] ss:$8 sps:$4 sm:$0xff]   ;;  %v9591_v30 = vld [vmem:[%s13580_s27 + $0xe0] ss:$8 sps:$4 sm:$0xff]  }
 0x328   : > { %4772 = vmatprep.mubr.bf16.mxu0 %v13513_v31  ;;  %v3152_v24 = vsel %vm3150_vm3, %v13603_v49, %v13600_v38  ;;  %v3256_v55 = vsel %vm3249_vm13, %v3252_v35, %v3255_v32  ;;  %vm3146_vm10 = vcmp.lt.s32.totalorder %v3145_v47, 2  ;;  %v3351_v44 = vand.u32 3, %v13606_v18  ;;  %v9589_v47 = vld [vmem:[%s13580_s27 + $0xe4] ss:$8 sps:$4 sm:$0xff]   ;;  %v9592_v48 = vld [vmem:[%s13580_s27 + $0xf4] ss:$8 sps:$4 sm:$0xff]  }
 0x329   : > { %v3153_v61 = vsel %vm3146_vm10, %v3149_v40, %v3152_v24  ;;  %vm3456_vm1 = vcmp.eq.s32.totalorder %v3454_v59, 0  ;;  %vm3459_vm0 = vcmp.eq.s32.totalorder %v3454_v59, 2  ;;  %vm13610_vm9 = vweird.f32 %v13609_v37  ;;  %v9594_v4 = vld [vmem:[%s13580_s27 + $0xf0] ss:$8 sps:$4 sm:$0xff]   ;;  %v9597_v35 = vld [vmem:[#allocation2 + $0x4] ss:$8 sps:$4 sm:$0xff]  }
 0x32a   : > { %5309 = vmatpush1.bf16.msra.mxu1 %v9570_v29  ;;  %v13607_v29 = vld [vmem:[#allocation21_spill] sm:$0xff]  ;;  %vm3353_vm5 = vcmp.eq.s32.totalorder %v3351_v44, 0  ;;  %vm3356_vm15 = vcmp.eq.s32.totalorder %v3351_v44, 2  ;;  %vm3455_vm11 = vcmp.lt.s32.totalorder %v3454_v59, 2  ;;  %vm3352_vm14 = vcmp.lt.s32.totalorder %v3351_v44, 2  ;;  %v13625_v44 = vld [vmem:[#allocation18_spill] sm:$0xff] }
 0x32b   : > { %5310 = vmatprep.subr.bf16.mxu1 %v9571_v60  ;;  %vm13608_vm4 = vweird.f32 %v13607_v29  ;;  %v3154_v60 = vsel %vm13610_vm9, nan, %v3153_v61  ;;  %vm13620_vm2 = vweird.f32 %v13619_v34  ;;  %vm13622_vm7 = vweird.f32 %v13621_v5  ;;  %v8850_v46 = vld.sshfl [vmem:[%s13623_s23] sm:$0x11 pattern:$0x75316420]  ;;  %v13624_v6 = vld [vmem:[#allocation17_spill] sm:$0xff] }
 0x32c   : > { %v3257_v13 = vsel %vm13608_vm4, nan, %v3256_v55  ;;  %v10200_v42 = vmov 1966171168   ;;  %v5041_v49 = vcombine.high %v8850_v46, %v8850_v46  ;;  %v9598_v34 = vld [vmem:[#allocation2 + $0x10] ss:$8 sps:$4 sm:$0xff]   ;;  %vm13628_vm8 = vcmask 1043456  }
 0x32d   : > { %v5043_v32 = vunpack.c.l.s4 %v10200_v42  ;;  %v9603_v5 = vld [vmem:[#allocation2 + $0x24] ss:$8 sps:$4 sm:$0xff]   ;;  %vm13629_vm3 = vmmov %vm13628_vm8 }
 0x32e   : > { %5311 = vmatpush1.bf16.msra.mxu1 %v9573_v52  ;;  %v13611_v52 = vld [vmem:[#allocation44_spill] sm:$0xff] }
 0x32f   : > { %8833 = vmatmul.mubr.msk.bf16.gmra.mrb[12].mxu0 %vm4678_vm6, %v12536_v10  ;;  %5312 = vmatprep.subr.bf16.mxu1 %v9574_v22  ;;  %v13612_v22 = vxor.u32 2147483648, %v13611_v52  ;;  %v5044_v38 = vunpack.c.0.s8 %v5043_v32 }
 0x330   : > { %4782 = vmatprep.mubr.bf16.mxu0 %v13513_v31 }
 0x331   : > { %v12684_v40 = vsub.s32 %v5044_v38, %v13624_v6  ;;  %v9604_v6 = vld [vmem:[#allocation2 + $0x30] ss:$8 sps:$4 sm:$0xff]  }
 0x332   : > { %5313 = vmatpush1.bf16.msra.mxu1 %v9576_v63  ;;  %v13613_v63 = vld [vmem:[#allocation43_spill] sm:$0xff] }
 0x333   : > { %5314 = vmatprep.subr.bf16.mxu1 %v9577_v51  ;;  %v3458_v41 = vsel %vm3456_vm1, %v13613_v63, %v13612_v22  ;;  %v13614_v3 = vxor.u32 2147483648, %v13613_v63  ;;  %v5048_v24 = vrot.slane %v8850_v46, %v12684_v40  ;;  %v5055_v55 = vrot.slane %v5041_v49, %v12684_v40 }
 0x335   : > { %v3461_v51 = vsel %vm3459_vm0, %v13614_v3, %v13611_v52  ;;  %v5057_v27 = vpack.i.b16 %v5048_v24, %v5048_v24  ;;  %v5064_v59 = vpack.i.b16 %v5055_v55, %v5055_v55  ;;  %v9609_v24 = vld [vmem:[#allocation2 + $0x44] ss:$8 sps:$4 sm:$0xff]  }
 0x336   : > { %5315 = vmatpush1.bf16.msra.mxu1 %v9579_v26  ;;  %v12631_v26 = vpack.c.bf16 %v3257_v13, %v3154_v60 }
 0x337   : > { %8834 = vmatmul.mubr.msk.bf16.gmra.mrb[16].mxu0 %vm4678_vm6, %v12555_v14  ;;  %5316 = vmatprep.subr.bf16.mxu1 %v9580_v54  ;;  %v13615_v54 = vld [vmem:[#allocation40_spill] sm:$0xff]  ;;  %v12689_v29 = vrot.slane %v5057_v27, %v13625_v44  ;;  %v12692_v37 = vrot.slane %v5064_v59, %v13625_v44 }
 0x338   : > { %4792 = vmatprep.mubr.bf16.mxu0 %v13513_v31 }
 0x33a   : > { %5317 = vmatpush1.bf16.msra.mxu1 %v9582_v28  ;;  %v13616_v28 = vxor.u32 2147483648, %v13615_v54 }
 0x33b   : > { %5318 = vmatprep.subr.bf16.mxu1 %v9583_v1  ;;  %v13618_v1 = vxor.u32 2147483648, %v13617_v43 }
 0x33c   : > { %v3355_v53 = vsel %vm3353_vm5, %v13617_v43, %v13616_v28 }
 0x33e   : > { %5319 = vmatpush1.bf16.msra.mxu1 %v9585_v2  ;;  %v3358_v2 = vsel %vm3356_vm15, %v13618_v1, %v13615_v54  ;;  %v9595_v54 = vld [vmem:[#allocation2] ss:$8 sps:$4 sm:$0xff]  }
 0x33f   : > { %8835 = vmatmul.mubr.msk.bf16.gmra.mrb[20].mxu0 %vm4678_vm6, %v12574_v50  ;;  %5320 = vmatprep.subr.bf16.mxu1 %v9586_v19  ;;  %v3462_v19 = vsel %vm3455_vm11, %v3458_v41, %v3461_v51  ;;  %v3359_v20 = vsel %vm3352_vm14, %v3355_v53, %v3358_v2  ;;  %v9600_v53 = vld [vmem:[#allocation2 + $0x14] ss:$8 sps:$4 sm:$0xff]  }
 0x340   : > { %4802 = vmatprep.mubr.bf16.mxu0 %v13513_v31  ;;  %v3463_v17 = vsel %vm13620_vm2, nan, %v3462_v19  ;;  %v3360_v23 = vsel %vm13622_vm7, nan, %v3359_v20 }
 0x341   : > { %v12646_v56 = vpack.c.bf16 %v3463_v17, %v3360_v23 }
 0x342   : > { %5321 = vmatpush1.bf16.msra.mxu1 %v9588_v11 }
 0x343   : > { %5322 = vmatprep.subr.bf16.mxu1 %v9589_v47 }
 0x346   : > { %5323 = vmatpush1.bf16.msra.mxu1 %v9591_v30  ;;  %v9601_v30 = vld [vmem:[#allocation2 + $0x20] ss:$8 sps:$4 sm:$0xff]  }
 0x347   : > { %8836 = vmatmul.mubr.msk.bf16.gmra.mrb[24].mxu0 %vm4678_vm6, %v12590_v21  ;;  %5324 = vmatprep.subr.bf16.mxu1 %v9592_v48 }
 0x348   : > { %4812 = vmatprep.mubr.bf16.mxu0 %v13513_v31 }
 0x34a   : > { %5325 = vmatpush1.bf16.msra.mxu1 %v9594_v4 }
 0x34b   : > { %5685 = vmatprep.subr.bf16.mxu1 %v9597_v35  ;;  %v9606_v35 = vld [vmem:[#allocation2 + $0x34] ss:$8 sps:$4 sm:$0xff]  }
 0x34f   : > { %8837 = vmatmul.mubr.msk.bf16.gmra.mrb[28].mxu0 %vm4678_vm6, %v12597_v57 }
 0x350   : > { %4903 = vmatprep.mubr.bf16.mxu0 %v13513_v31 }
 0x357   : > { %8842 = vmatmul.mubr.msk.bf16.vlgmr.msra.gmra.mrb[0].mxu0 %vm4535_vm12, %v13604_v33 }
 0x358   : > { %4913 = vmatprep.mubr.bf16.mxu0 %v13513_v31 }
 0x35f   : > { %8843 = vmatmul.mubr.msk.bf16.gmra.mrb[4].mxu0 %vm4535_vm12, %v12631_v26 }
 0x360   : > { %4923 = vmatprep.mubr.bf16.mxu0 %v13513_v31 }
 0x367   : > { %8844 = vmatmul.mubr.msk.bf16.gmra.mrb[8].mxu0 %vm4535_vm12, %v12646_v56 }
 0x368   : > { %4933 = vmatprep.mubr.bf16.mxu0 %v13513_v31 }
 0x36f   : > { %8845 = vmatmul.mubr.msk.bf16.gmra.mrb[12].mxu0 %vm4535_vm12, %v12378_v0 }
 0x370   : > { %4943 = vmatprep.mubr.bf16.mxu0 %v13513_v31 }
 0x377   : > { %8846 = vmatmul.mubr.msk.bf16.gmra.mrb[16].mxu0 %vm4535_vm12, %v12418_v7 }
 0x378   : > { %4953 = vmatprep.mubr.bf16.mxu0 %v13513_v31 }
 0x37f   : > { %8847 = vmatmul.mubr.msk.bf16.gmra.mrb[20].mxu0 %vm4535_vm12, %v12450_v16 }
 0x380   : > { %4963 = vmatprep.mubr.bf16.mxu0 %v13513_v31 }
 0x387   : > { %8848 = vmatmul.mubr.msk.bf16.gmra.mrb[24].mxu0 %vm4535_vm12, %v12483_v45 }
 0x388   : > { %4973 = vmatprep.mubr.bf16.mxu0 %v13513_v31 }
 0x38f   : > { %8849 = vmatmul.mubr.msk.bf16.gmra.mrb[28].mxu0 %vm4535_vm12, %v12510_v36 }
 0x42a   : > { %v4905_v61 = vpop.f32.mrb[0].mxu0 }
 0x42b   : > { %v4907_v18 = vpop.f32.mrb[1].mxu0 }
 0x42c   : > { %v4909_v13 = vpop.f32.mrb[2].mxu0 }
 0x42d   : > { %v5016_v60 = vpack.c.bf16 %v4909_v13, %v4905_v61  ;;  %v4911_v52 = vpop.f32.mrb[3].mxu0  ;;  %v9607_v61 = vld [vmem:[#allocation2 + $0x40] ss:$8 sps:$4 sm:$0xff]  }
 0x42e   : > { %v5017_v22 = vpack.c.bf16 %v4911_v52, %v4907_v18 }
 0x42f   : > { %v5070_v63 = vadd.bf16 %v12689_v29, %v5016_v60  ;;  %v9612_v60 = vld [vmem:[#allocation2 + $0x54] ss:$8 sps:$4 sm:$0xff]  }
 0x430   : > { %v5071_v41 = vadd.bf16 %v12692_v37, %v5017_v22 }
 0x431   : > { %v5086_v43 = vmax.bf16 %v13513_v31, %v5070_v63 }
 0x432   : > { %v4915_v3 = vpop.f32.mrb[4].mxu0  ;;  %v5087_v51 = vmax.bf16 %v13513_v31, %v5071_v41 }
 0x433   : > { %v4917_v28 = vpop.f32.mrb[5].mxu0 }
 0x434   : > { %v4919_v1 = vpop.f32.mrb[6].mxu0  ;;  %5326 = vmatprep.mubr.bf16.mxu1 %v5087_v51 }
 0x435   : > { %v5018_v2 = vpack.c.bf16 %v4919_v1, %v4915_v3  ;;  %v4921_v19 = vpop.f32.mrb[7].mxu0  ;;  %5327 = vmatmul.mubr.bf16.vlgmr.msra.gmra.mrb[0].mxu1 %v5086_v43  ;;  %v9610_v3 = vld [vmem:[#allocation2 + $0x50] ss:$8 sps:$4 sm:$0xff]   ;;  %v9613_v1 = vld [vmem:[#allocation2 + $0x60] ss:$8 sps:$4 sm:$0xff]  }
 0x436   : > { %v5019_v20 = vpack.c.bf16 %v4921_v19, %v4917_v28  ;;  %5686 = vmatpush1.bf16.msra.mxu1 %v9595_v54  ;;  %v9615_v54 = vld [vmem:[#allocation2 + $0x64] ss:$8 sps:$4 sm:$0xff]  }
 0x437   : > { %v5072_v17 = vadd.bf16 %v12689_v29, %v5018_v2  ;;  %5687 = vmatprep.subr.bf16.mxu1 %v9600_v53 }
 0x438   : > { %v5073_v23 = vadd.bf16 %v12692_v37, %v5019_v20  ;;  %v9618_v20 = vld [vmem:[#allocation2 + $0x74] ss:$8 sps:$4 sm:$0xff]  }
 0x439   : > { %v5088_v4 = vmax.bf16 %v13513_v31, %v5072_v17 }
 0x43a   : > { %v4925_v11 = vpop.f32.mrb[8].mxu0  ;;  %v5089_v47 = vmax.bf16 %v13513_v31, %v5073_v23  ;;  %5688 = vmatpush1.bf16.msra.mxu1 %v9598_v34 }
 0x43b   : > { %v4927_v48 = vpop.f32.mrb[9].mxu0  ;;  %5689 = vmatprep.subr.bf16.mxu1 %v9603_v5 }
 0x43c   : > { %v4929_v42 = vpop.f32.mrb[10].mxu0  ;;  %5336 = vmatprep.mubr.bf16.mxu1 %v5089_v47 }
 0x43d   : > { %v5020_v32 = vpack.c.bf16 %v4929_v42, %v4925_v11  ;;  %v4931_v38 = vpop.f32.mrb[11].mxu0  ;;  %5337 = vmatmul.mubr.bf16.gmra.mrb[4].mxu1 %v5088_v4  ;;  %v9616_v11 = vld [vmem:[#allocation2 + $0x70] ss:$8 sps:$4 sm:$0xff]   ;;  %v9619_v42 = vld [vmem:[#allocation2 + $0x80] ss:$8 sps:$4 sm:$0xff]  }
 0x43e   : > { %v5021_v46 = vpack.c.bf16 %v4931_v38, %v4927_v48  ;;  %5690 = vmatpush1.bf16.msra.mxu1 %v9601_v30  ;;  %v9621_v30 = vld [vmem:[#allocation2 + $0x84] ss:$8 sps:$4 sm:$0xff]  }
 0x43f   : > { %v5074_v49 = vadd.bf16 %v12689_v29, %v5020_v32  ;;  %5691 = vmatprep.subr.bf16.mxu1 %v9606_v35 }
 0x440   : > { %v5075_v55 = vadd.bf16 %v12692_v37, %v5021_v46  ;;  %v9624_v46 = vld [vmem:[#allocation2 + $0x94] ss:$8 sps:$4 sm:$0xff]  }
 0x441   : > { %v5090_v13 = vmax.bf16 %v13513_v31, %v5074_v49 }
 0x442   : > { %v4935_v27 = vpop.f32.mrb[12].mxu0  ;;  %v5091_v59 = vmax.bf16 %v13513_v31, %v5075_v55  ;;  %5692 = vmatpush1.bf16.msra.mxu1 %v9604_v6 }
 0x443   : > { %v4937_v18 = vpop.f32.mrb[13].mxu0  ;;  %5693 = vmatprep.subr.bf16.mxu1 %v9609_v24 }
 0x444   : > { %v4939_v52 = vpop.f32.mrb[14].mxu0  ;;  %5346 = vmatprep.mubr.bf16.mxu1 %v5091_v59 }
 0x445   : > { %v5022_v22 = vpack.c.bf16 %v4939_v52, %v4935_v27  ;;  %v4941_v63 = vpop.f32.mrb[15].mxu0  ;;  %5347 = vmatmul.mubr.bf16.gmra.mrb[8].mxu1 %v5090_v13  ;;  %v9622_v27 = vld [vmem:[#allocation2 + $0x90] ss:$8 sps:$4 sm:$0xff]   ;;  %v9625_v52 = vld [vmem:[#allocation2 + $0xa0] ss:$8 sps:$4 sm:$0xff]  }
 0x446   : > { %v5023_v41 = vpack.c.bf16 %v4941_v63, %v4937_v18  ;;  %5694 = vmatpush1.bf16.msra.mxu1 %v9607_v61  ;;  %v9627_v61 = vld [vmem:[#allocation2 + $0xa4] ss:$8 sps:$4 sm:$0xff]  }
 0x447   : > { %v5076_v51 = vadd.bf16 %v12689_v29, %v5022_v22  ;;  %5695 = vmatprep.subr.bf16.mxu1 %v9612_v60 }
 0x448   : > { %v5077_v28 = vadd.bf16 %v12692_v37, %v5023_v41  ;;  %v9630_v41 = vld [vmem:[#allocation2 + $0xb4] ss:$8 sps:$4 sm:$0xff]  }
 0x449   : > { %v5092_v19 = vmax.bf16 %v13513_v31, %v5076_v51 }
 0x44a   : > { %v4945_v43 = vpop.f32.mrb[16].mxu0  ;;  %v5093_v53 = vmax.bf16 %v13513_v31, %v5077_v28  ;;  %5696 = vmatpush1.bf16.msra.mxu1 %v9610_v3 }
 0x44b   : > { %v4947_v2 = vpop.f32.mrb[17].mxu0  ;;  %5697 = vmatprep.subr.bf16.mxu1 %v9615_v54 }
 0x44c   : > { %v4949_v34 = vpop.f32.mrb[18].mxu0  ;;  %5356 = vmatprep.mubr.bf16.mxu1 %v5093_v53 }
 0x44d   : > { %v5024_v17 = vpack.c.bf16 %v4949_v34, %v4945_v43  ;;  %v4951_v5 = vpop.f32.mrb[19].mxu0  ;;  %5357 = vmatmul.mubr.bf16.gmra.mrb[12].mxu1 %v5092_v19  ;;  %v9628_v43 = vld [vmem:[#allocation2 + $0xb0] ss:$8 sps:$4 sm:$0xff]   ;;  %v9631_v34 = vld [vmem:[#allocation2 + $0xc0] ss:$8 sps:$4 sm:$0xff]  }
 0x44e   : > { %v5025_v23 = vpack.c.bf16 %v4951_v5, %v4947_v2  ;;  %5698 = vmatpush1.bf16.msra.mxu1 %v9613_v1  ;;  %v9633_v1 = vld [vmem:[#allocation2 + $0xc4] ss:$8 sps:$4 sm:$0xff]  }
 0x44f   : > { %v5078_v47 = vadd.bf16 %v12689_v29, %v5024_v17  ;;  %5699 = vmatprep.subr.bf16.mxu1 %v9618_v20 }
 0x450   : > { %v5079_v48 = vadd.bf16 %v12692_v37, %v5025_v23  ;;  %v9636_v23 = vld [vmem:[#allocation2 + $0xd4] ss:$8 sps:$4 sm:$0xff]  }
 0x451   : > { %v5094_v38 = vmax.bf16 %v13513_v31, %v5078_v47 }
 0x452   : > { %v4955_v4 = vpop.f32.mrb[20].mxu0  ;;  %v5095_v35 = vmax.bf16 %v13513_v31, %v5079_v48  ;;  %5700 = vmatpush1.bf16.msra.mxu1 %v9616_v11 }
 0x453   : > { %v4957_v32 = vpop.f32.mrb[21].mxu0  ;;  %5701 = vmatprep.subr.bf16.mxu1 %v9621_v30 }
 0x454   : > { %v4959_v6 = vpop.f32.mrb[22].mxu0  ;;  %5366 = vmatprep.mubr.bf16.mxu1 %v5095_v35 }
 0x455   : > { %v5026_v49 = vpack.c.bf16 %v4959_v6, %v4955_v4  ;;  %v4961_v24 = vpop.f32.mrb[23].mxu0  ;;  %5367 = vmatmul.mubr.bf16.gmra.mrb[16].mxu1 %v5094_v38  ;;  %v9634_v4 = vld [vmem:[#allocation2 + $0xd0] ss:$8 sps:$4 sm:$0xff]   ;;  %v9639_v6 = vld [vmem:[#allocation2 + $0xe4] ss:$8 sps:$4 sm:$0xff]  }
 0x456   : > { %v5027_v55 = vpack.c.bf16 %v4961_v24, %v4957_v32  ;;  %5702 = vmatpush1.bf16.msra.mxu1 %v9619_v42  ;;  %v9640_v24 = vld [vmem:[#allocation2 + $0xf0] ss:$8 sps:$4 sm:$0xff]  }
 0x457   : > { %v5080_v59 = vadd.bf16 %v12689_v29, %v5026_v49  ;;  %5703 = vmatprep.subr.bf16.mxu1 %v9624_v46  ;;  %v9637_v46 = vld [vmem:[#allocation2 + $0xe0] ss:$8 sps:$4 sm:$0xff]   ;;  %v9642_v49 = vld [vmem:[#allocation2 + $0xf4] ss:$8 sps:$4 sm:$0xff]  }
 0x458   : > { %v5081_v18 = vadd.bf16 %v12692_v37, %v5027_v55  ;;  %v9645_v55 = vld [vmem:[#allocation4 + $0x4] ss:$8 sps:$4 sm:$0xff]  }
 0x459   : > { %v5096_v63 = vmax.bf16 %v13513_v31, %v5080_v59 }
 0x45a   : > { %v4965_v13 = vpop.f32.mrb[24].mxu0  ;;  %v5097_v60 = vmax.bf16 %v13513_v31, %v5081_v18  ;;  %5704 = vmatpush1.bf16.msra.mxu1 %v9622_v27 }
 0x45b   : > { %v4967_v22 = vpop.f32.mrb[25].mxu0  ;;  %5705 = vmatprep.subr.bf16.mxu1 %v9627_v61 }
 0x45c   : > { %v4969_v3 = vpop.f32.mrb[26].mxu0  ;;  %5376 = vmatprep.mubr.bf16.mxu1 %v5097_v60 }
 0x45d   : > { %v5028_v51 = vpack.c.bf16 %v4969_v3, %v4965_v13  ;;  %v4971_v54 = vpop.f32.mrb[27].mxu0  ;;  %5377 = vmatmul.mubr.bf16.gmra.mrb[20].mxu1 %v5096_v63 }
 0x45e   : > { %v5029_v28 = vpack.c.bf16 %v4971_v54, %v4967_v22  ;;  %5706 = vmatpush1.bf16.msra.mxu1 %v9625_v52 }
 0x45f   : > { %v5082_v53 = vadd.bf16 %v12689_v29, %v5028_v51  ;;  %5707 = vmatprep.subr.bf16.mxu1 %v9630_v41 }
 0x460   : > { %v5083_v2 = vadd.bf16 %v12692_v37, %v5029_v28 }
 0x461   : > { %v5098_v5 = vmax.bf16 %v13513_v31, %v5082_v53 }
 0x462   : > { %v4975_v19 = vpop.f32.mrb[28].mxu0  ;;  %v5099_v20 = vmax.bf16 %v13513_v31, %v5083_v2  ;;  %5708 = vmatpush1.bf16.msra.mxu1 %v9628_v43 }
 0x463   : > { %v4977_v17 = vpop.f32.mrb[29].mxu0  ;;  %5709 = vmatprep.subr.bf16.mxu1 %v9633_v1  ;;  %v9643_v1 = vld [vmem:[#allocation4] ss:$8 sps:$4 sm:$0xff]  }
 0x464   : > { %v4979_v11 = vpop.f32.mrb[30].mxu0  ;;  %5386 = vmatprep.mubr.bf16.mxu1 %v5099_v20  ;;  %v9648_v20 = vld [vmem:[#allocation4 + $0x14] ss:$8 sps:$4 sm:$0xff]  }
 0x465   : > { %v5030_v47 = vpack.c.bf16 %v4979_v11, %v4975_v19  ;;  %v4981_v30 = vpop.f32.mrb[31].mxu0  ;;  %5387 = vmatmul.mubr.bf16.gmra.mrb[24].mxu1 %v5098_v5  ;;  %v9646_v11 = vld [vmem:[#allocation4 + $0x10] ss:$8 sps:$4 sm:$0xff]  }
 0x466   : > { %v5031_v48 = vpack.c.bf16 %v4981_v30, %v4977_v17  ;;  %5710 = vmatpush1.bf16.msra.mxu1 %v9631_v34  ;;  %v9651_v30 = vld [vmem:[#allocation4 + $0x24] ss:$8 sps:$4 sm:$0xff]  }
 0x467   : > { %v5084_v35 = vadd.bf16 %v12689_v29, %v5030_v47  ;;  %5711 = vmatprep.subr.bf16.mxu1 %v9636_v23  ;;  %v8883_v29 = vld.sshfl [vmem:[%s13626_s25] sm:$0x11 pattern:$0x75316420] }
 0x468   : > { %v5085_v42 = vadd.bf16 %v12692_v37, %v5031_v48  ;;  %v5432_v37 = vcombine.high %v8883_v29, %v8883_v29  ;;  %v5439_v27 = vrot.slane %v8883_v29, %v12684_v40  ;;  %v9652_v29 = vld [vmem:[#allocation4 + $0x30] ss:$8 sps:$4 sm:$0xff]  }
 0x469   : > { %v5100_v38 = vmax.bf16 %v13513_v31, %v5084_v35 }
 0x46a   : > { %v5101_v32 = vmax.bf16 %v13513_v31, %v5085_v42  ;;  %5712 = vmatpush1.bf16.msra.mxu1 %v9634_v4  ;;  %v5446_v59 = vrot.slane %v5432_v37, %v12684_v40  ;;  %v5448_v61 = vpack.i.b16 %v5439_v27, %v5439_v27  ;;  %v9649_v42 = vld [vmem:[#allocation4 + $0x20] ss:$8 sps:$4 sm:$0xff]   ;;  %v9657_v27 = vld [vmem:[#allocation4 + $0x44] ss:$8 sps:$4 sm:$0xff]  }
 0x46b   : > { %5713 = vmatprep.subr.bf16.mxu1 %v9639_v6 }
 0x46c   : > { %5396 = vmatprep.mubr.bf16.mxu1 %v5101_v32  ;;  %v5455_v18 = vpack.i.b16 %v5446_v59, %v5446_v59  ;;  %v12732_v52 = vrot.slane %v5448_v61, %v13625_v44 }
 0x46d   : > { %5397 = vmatmul.mubr.bf16.gmra.mrb[28].mxu1 %v5100_v38 }
 0x46e   : > { %5714 = vmatpush1.bf16.msra.mxu1 %v9637_v46  ;;  %v12735_v63 = vrot.slane %v5455_v18, %v13625_v44  ;;  %v9654_v46 = vld [vmem:[#allocation4 + $0x34] ss:$8 sps:$4 sm:$0xff]  }
 0x46f   : > { %5715 = vmatprep.subr.bf16.mxu1 %v9642_v49 }
 0x472   : > { %5716 = vmatpush1.bf16.msra.mxu1 %v9640_v24 }
 0x473   : > { %6076 = vmatprep.subr.bf16.mxu1 %v9645_v55 }
 0x508   : > { %v5328_v13 = vpop.f32.mrb[0].mxu1 }
 0x509   : > { %v5330_v60 = vpop.f32.mrb[1].mxu1 }
 0x50a   : > { %v5332_v22 = vpop.f32.mrb[2].mxu1 }
 0x50b   : > { %v5407_v41 = vpack.c.bf16 %v5332_v22, %v5328_v13  ;;  %v5334_v3 = vpop.f32.mrb[3].mxu1  ;;  %v9655_v13 = vld [vmem:[#allocation4 + $0x40] ss:$8 sps:$4 sm:$0xff]  }
 0x50c   : > { %v5408_v51 = vpack.c.bf16 %v5334_v3, %v5330_v60 }
 0x50d   : > { %v5461_v54 = vadd.bf16 %v12732_v52, %v5407_v41  ;;  %v9660_v41 = vld [vmem:[#allocation4 + $0x54] ss:$8 sps:$4 sm:$0xff]  }
 0x50e   : > { %v5462_v28 = vadd.bf16 %v12735_v63, %v5408_v51 }
 0x50f   : > { %v5477_v2 = vmax.bf16 %v13513_v31, %v5461_v54 }
 0x510   : > { %v5338_v43 = vpop.f32.mrb[4].mxu1  ;;  %v5478_v53 = vmax.bf16 %v13513_v31, %v5462_v28 }
 0x511   : > { %v5340_v19 = vpop.f32.mrb[5].mxu1 }
 0x512   : > { %v5342_v34 = vpop.f32.mrb[6].mxu1  ;;  %5717 = vmatprep.mubr.bf16.mxu1 %v5478_v53 }
 0x513   : > { %v5409_v17 = vpack.c.bf16 %v5342_v34, %v5338_v43  ;;  %v5344_v5 = vpop.f32.mrb[7].mxu1  ;;  %5718 = vmatmul.mubr.bf16.vlgmr.msra.gmra.mrb[32].mxu1 %v5477_v2  ;;  %v9658_v43 = vld [vmem:[#allocation4 + $0x50] ss:$8 sps:$4 sm:$0xff]   ;;  %v9661_v34 = vld [vmem:[#allocation4 + $0x60] ss:$8 sps:$4 sm:$0xff]  }
 0x514   : > { %v5410_v23 = vpack.c.bf16 %v5344_v5, %v5340_v19  ;;  %6077 = vmatpush1.bf16.msra.mxu1 %v9643_v1  ;;  %v9663_v1 = vld [vmem:[#allocation4 + $0x64] ss:$8 sps:$4 sm:$0xff]  }
 0x515   : > { %v5463_v47 = vadd.bf16 %v12732_v52, %v5409_v17  ;;  %6078 = vmatprep.subr.bf16.mxu1 %v9648_v20 }
 0x516   : > { %v5464_v48 = vadd.bf16 %v12735_v63, %v5410_v23  ;;  %v9666_v23 = vld [vmem:[#allocation4 + $0x74] ss:$8 sps:$4 sm:$0xff]  }
 0x517   : > { %v5479_v38 = vmax.bf16 %v13513_v31, %v5463_v47 }
 0x518   : > { %v5348_v4 = vpop.f32.mrb[8].mxu1  ;;  %v5480_v35 = vmax.bf16 %v13513_v31, %v5464_v48  ;;  %6079 = vmatpush1.bf16.msra.mxu1 %v9646_v11 }
 0x519   : > { %v5350_v32 = vpop.f32.mrb[9].mxu1  ;;  %6080 = vmatprep.subr.bf16.mxu1 %v9651_v30 }
 0x51a   : > { %v5352_v6 = vpop.f32.mrb[10].mxu1  ;;  %5727 = vmatprep.mubr.bf16.mxu1 %v5480_v35 }
 0x51b   : > { %v5411_v49 = vpack.c.bf16 %v5352_v6, %v5348_v4  ;;  %v5354_v24 = vpop.f32.mrb[11].mxu1  ;;  %5728 = vmatmul.mubr.bf16.gmra.mrb[36].mxu1 %v5479_v38  ;;  %v9664_v4 = vld [vmem:[#allocation4 + $0x70] ss:$8 sps:$4 sm:$0xff]   ;;  %v9667_v6 = vld [vmem:[#allocation4 + $0x80] ss:$8 sps:$4 sm:$0xff]  }
 0x51c   : > { %v5412_v55 = vpack.c.bf16 %v5354_v24, %v5350_v32  ;;  %6081 = vmatpush1.bf16.msra.mxu1 %v9649_v42  ;;  %v9669_v42 = vld [vmem:[#allocation4 + $0x84] ss:$8 sps:$4 sm:$0xff]  }
 0x51d   : > { %v5465_v37 = vadd.bf16 %v12732_v52, %v5411_v49  ;;  %6082 = vmatprep.subr.bf16.mxu1 %v9654_v46 }
 0x51e   : > { %v5466_v59 = vadd.bf16 %v12735_v63, %v5412_v55  ;;  %v9672_v55 = vld [vmem:[#allocation4 + $0x94] ss:$8 sps:$4 sm:$0xff]  }
 0x51f   : > { %v5481_v22 = vmax.bf16 %v13513_v31, %v5465_v37 }
 0x520   : > { %v5358_v61 = vpop.f32.mrb[12].mxu1  ;;  %v5482_v18 = vmax.bf16 %v13513_v31, %v5466_v59  ;;  %6083 = vmatpush1.bf16.msra.mxu1 %v9652_v29 }
 0x521   : > { %v5360_v60 = vpop.f32.mrb[13].mxu1  ;;  %6084 = vmatprep.subr.bf16.mxu1 %v9657_v27 }
 0x522   : > { %v5362_v3 = vpop.f32.mrb[14].mxu1  ;;  %5737 = vmatprep.mubr.bf16.mxu1 %v5482_v18 }
 0x523   : > { %v5413_v51 = vpack.c.bf16 %v5362_v3, %v5358_v61  ;;  %v5364_v54 = vpop.f32.mrb[15].mxu1  ;;  %5738 = vmatmul.mubr.bf16.gmra.mrb[40].mxu1 %v5481_v22  ;;  %v9670_v61 = vld [vmem:[#allocation4 + $0x90] ss:$8 sps:$4 sm:$0xff]   ;;  %v9673_v3 = vld [vmem:[#allocation4 + $0xa0] ss:$8 sps:$4 sm:$0xff]  }
 0x524   : > { %v5414_v28 = vpack.c.bf16 %v5364_v54, %v5360_v60  ;;  %6085 = vmatpush1.bf16.msra.mxu1 %v9655_v13  ;;  %v9675_v13 = vld [vmem:[#allocation4 + $0xa4] ss:$8 sps:$4 sm:$0xff]  }
 0x525   : > { %v5467_v53 = vadd.bf16 %v12732_v52, %v5413_v51  ;;  %6086 = vmatprep.subr.bf16.mxu1 %v9660_v41 }
 0x526   : > { %v5468_v2 = vadd.bf16 %v12735_v63, %v5414_v28  ;;  %v9678_v28 = vld [vmem:[#allocation4 + $0xb4] ss:$8 sps:$4 sm:$0xff]  }
 0x527   : > { %v5483_v5 = vmax.bf16 %v13513_v31, %v5467_v53 }
 0x528   : > { %v5368_v19 = vpop.f32.mrb[16].mxu1  ;;  %v5484_v20 = vmax.bf16 %v13513_v31, %v5468_v2  ;;  %6087 = vmatpush1.bf16.msra.mxu1 %v9658_v43 }
 0x529   : > { %v5370_v17 = vpop.f32.mrb[17].mxu1  ;;  %6088 = vmatprep.subr.bf16.mxu1 %v9663_v1 }
 0x52a   : > { %v5372_v11 = vpop.f32.mrb[18].mxu1  ;;  %5747 = vmatprep.mubr.bf16.mxu1 %v5484_v20 }
 0x52b   : > { %v5415_v47 = vpack.c.bf16 %v5372_v11, %v5368_v19  ;;  %v5374_v30 = vpop.f32.mrb[19].mxu1  ;;  %5748 = vmatmul.mubr.bf16.gmra.mrb[44].mxu1 %v5483_v5  ;;  %v9676_v19 = vld [vmem:[#allocation4 + $0xb0] ss:$8 sps:$4 sm:$0xff]   ;;  %v9679_v11 = vld [vmem:[#allocation4 + $0xc0] ss:$8 sps:$4 sm:$0xff]  }
 0x52c   : > { %v5416_v48 = vpack.c.bf16 %v5374_v30, %v5370_v17  ;;  %6089 = vmatpush1.bf16.msra.mxu1 %v9661_v34  ;;  %v9681_v34 = vld [vmem:[#allocation4 + $0xc4] ss:$8 sps:$4 sm:$0xff]  }
 0x52d   : > { %v5469_v35 = vadd.bf16 %v12732_v52, %v5415_v47  ;;  %6090 = vmatprep.subr.bf16.mxu1 %v9666_v23 }
 0x52e   : > { %v5470_v32 = vadd.bf16 %v12735_v63, %v5416_v48  ;;  %v9684_v48 = vld [vmem:[#allocation4 + $0xd4] ss:$8 sps:$4 sm:$0xff]  }
 0x52f   : > { %v5485_v24 = vmax.bf16 %v13513_v31, %v5469_v35 }
 0x530   : > { %v5378_v38 = vpop.f32.mrb[20].mxu1  ;;  %v5486_v46 = vmax.bf16 %v13513_v31, %v5470_v32  ;;  %6091 = vmatpush1.bf16.msra.mxu1 %v9664_v4 }
 0x531   : > { %v5380_v49 = vpop.f32.mrb[21].mxu1  ;;  %6092 = vmatprep.subr.bf16.mxu1 %v9669_v42 }
 0x532   : > { %v5382_v29 = vpop.f32.mrb[22].mxu1  ;;  %5757 = vmatprep.mubr.bf16.mxu1 %v5486_v46 }
 0x533   : > { %v5417_v37 = vpack.c.bf16 %v5382_v29, %v5378_v38  ;;  %v5384_v27 = vpop.f32.mrb[23].mxu1  ;;  %5758 = vmatmul.mubr.bf16.gmra.mrb[48].mxu1 %v5485_v24  ;;  %v9682_v38 = vld [vmem:[#allocation4 + $0xd0] ss:$8 sps:$4 sm:$0xff]   ;;  %v9687_v29 = vld [vmem:[#allocation4 + $0xe4] ss:$8 sps:$4 sm:$0xff]  }
 0x534   : > { %v5418_v59 = vpack.c.bf16 %v5384_v27, %v5380_v49  ;;  %6093 = vmatpush1.bf16.msra.mxu1 %v9667_v6  ;;  %v9688_v27 = vld [vmem:[#allocation4 + $0xf0] ss:$8 sps:$4 sm:$0xff]  }
 0x535   : > { %v5471_v18 = vadd.bf16 %v12732_v52, %v5417_v37  ;;  %6094 = vmatprep.subr.bf16.mxu1 %v9672_v55  ;;  %v9685_v55 = vld [vmem:[#allocation4 + $0xe0] ss:$8 sps:$4 sm:$0xff]   ;;  %v9690_v37 = vld [vmem:[#allocation4 + $0xf4] ss:$8 sps:$4 sm:$0xff]  }
 0x536   : > { %v5472_v60 = vadd.bf16 %v12735_v63, %v5418_v59 }
 0x537   : > { %v5487_v54 = vmax.bf16 %v13513_v31, %v5471_v18 }
 0x538   : > { %v5388_v22 = vpop.f32.mrb[24].mxu1  ;;  %v5488_v41 = vmax.bf16 %v13513_v31, %v5472_v60  ;;  %6095 = vmatpush1.bf16.msra.mxu1 %v9670_v61 }
 0x539   : > { %v5390_v51 = vpop.f32.mrb[25].mxu1  ;;  %6096 = vmatprep.subr.bf16.mxu1 %v9675_v13 }
 0x53a   : > { %v5392_v43 = vpop.f32.mrb[26].mxu1  ;;  %5767 = vmatprep.mubr.bf16.mxu1 %v5488_v41 }
 0x53b   : > { %v5419_v53 = vpack.c.bf16 %v5392_v43, %v5388_v22  ;;  %v5394_v1 = vpop.f32.mrb[27].mxu1  ;;  %5768 = vmatmul.mubr.bf16.gmra.mrb[52].mxu1 %v5487_v54 }
 0x53c   : > { %v5420_v2 = vpack.c.bf16 %v5394_v1, %v5390_v51  ;;  %6097 = vmatpush1.bf16.msra.mxu1 %v9673_v3 }
 0x53d   : > { %v5473_v20 = vadd.bf16 %v12732_v52, %v5419_v53  ;;  %6098 = vmatprep.subr.bf16.mxu1 %v9678_v28 }
 0x53e   : > { %v5474_v17 = vadd.bf16 %v12735_v63, %v5420_v2 }
 0x53f   : > { %v5489_v30 = vmax.bf16 %v13513_v31, %v5473_v20 }
 0x540   : > { %v5398_v5 = vpop.f32.mrb[28].mxu1  ;;  %v5490_v23 = vmax.bf16 %v13513_v31, %v5474_v17  ;;  %6099 = vmatpush1.bf16.msra.mxu1 %v9676_v19 }
 0x541   : > { %v5400_v47 = vpop.f32.mrb[29].mxu1  ;;  %6100 = vmatprep.subr.bf16.mxu1 %v9681_v34  ;;  %v9691_v34 = vld [vmem:[%s13260_s15] ss:$8 sps:$4 sm:$0xff]  }
 0x542   : > { %v5402_v4 = vpop.f32.mrb[30].mxu1  ;;  %5777 = vmatprep.mubr.bf16.mxu1 %v5490_v23  ;;  %v9696_v23 = vld [vmem:[%s13260_s15 + $0x14] ss:$8 sps:$4 sm:$0xff]  }
 0x543   : > { %v5421_v35 = vpack.c.bf16 %v5402_v4, %v5398_v5  ;;  %v5404_v42 = vpop.f32.mrb[31].mxu1  ;;  %5778 = vmatmul.mubr.bf16.gmra.mrb[56].mxu1 %v5489_v30 }
 0x544   : > { %v5422_v32 = vpack.c.bf16 %v5404_v42, %v5400_v47  ;;  %6101 = vmatpush1.bf16.msra.mxu1 %v9679_v11  ;;  %v12796_v47 = vld [vmem:[%s13259_s14] sm:$0xff] }
 0x545   : > { %v5475_v46 = vadd.bf16 %v12732_v52, %v5421_v35  ;;  %6102 = vmatprep.subr.bf16.mxu1 %v9684_v48  ;;  %v9693_v52 = vld [vmem:[%s13260_s15 + $0x4] ss:$8 sps:$4 sm:$0xff]   ;;  %v9694_v35 = vld [vmem:[%s13260_s15 + $0x10] ss:$8 sps:$4 sm:$0xff]  }
 0x546   : > { %v5476_v6 = vadd.bf16 %v12735_v63, %v5422_v32  ;;  %v8916_v63 = vld.sshfl [vmem:[%s13627_s22] sm:$0x11 pattern:$0x75316420]  ;;  %v8996_v32 = vcombine.high %v12796_v47, %v12796_v47  ;;  %s13634_s22 = sld [smem:[#allocation60_spill]] }
 0x547   : > { %v5491_v24 = vmax.bf16 %v13513_v31, %v5475_v46  ;;  %v5823_v59 = vcombine.high %v8916_v63, %v8916_v63  ;;  %v5830_v61 = vrot.slane %v8916_v63, %v12684_v40 }
 0x548   : > { %v5492_v49 = vmax.bf16 %v13513_v31, %v5476_v6  ;;  %6103 = vmatpush1.bf16.msra.mxu1 %v9682_v38 }
 0x549   : > { %6104 = vmatprep.subr.bf16.mxu1 %v9687_v29  ;;  %v5837_v18 = vrot.slane %v5823_v59, %v12684_v40  ;;  %v5839_v13 = vpack.i.b16 %v5830_v61, %v5830_v61 }
 0x54a   : > { %5787 = vmatprep.mubr.bf16.mxu1 %v5492_v49 }
 0x54b   : > { %5788 = vmatmul.mubr.bf16.gmra.mrb[60].mxu1 %v5491_v24  ;;  %v5846_v60 = vpack.i.b16 %v5837_v18, %v5837_v18  ;;  %v12778_v3 = vrot.slane %v5839_v13, %v13625_v44 }
 0x54c   : > { %6105 = vmatpush1.bf16.msra.mxu1 %v9685_v55 }
 0x54d   : > { %6106 = vmatprep.subr.bf16.mxu1 %v9690_v37  ;;  %v12781_v54 = vrot.slane %v5846_v60, %v13625_v44 }
 0x550   : > { %6107 = vmatpush1.bf16.msra.mxu1 %v9688_v27 }
 0x551   : > { %6691 = vmatprep.subr.bf16.mxu1 %v9693_v52 }
 0x5e6   : > { %v5719_v22 = vpop.f32.mrb[32].mxu1 }
 0x5e7   : > { %v5721_v41 = vpop.f32.mrb[33].mxu1 }
 0x5e8   : > { %v5723_v51 = vpop.f32.mrb[34].mxu1 }
 0x5e9   : > { %v5798_v28 = vpack.c.bf16 %v5723_v51, %v5719_v22  ;;  %v5725_v43 = vpop.f32.mrb[35].mxu1 }
 0x5ea   : > { %v5799_v53 = vpack.c.bf16 %v5725_v43, %v5721_v41 }
 0x5eb   : > { %v5852_v1 = vadd.bf16 %v12778_v3, %v5798_v28 }
 0x5ec   : > { %v5853_v2 = vadd.bf16 %v12781_v54, %v5799_v53 }
 0x5ed   : > { %v5868_v17 = vmax.bf16 %v13513_v31, %v5852_v1 }
 0x5ee   : > { %v5729_v19 = vpop.f32.mrb[36].mxu1  ;;  %v5869_v20 = vmax.bf16 %v13513_v31, %v5853_v2 }
 0x5ef   : > { %v5731_v5 = vpop.f32.mrb[37].mxu1 }
 0x5f0   : > { %v5733_v11 = vpop.f32.mrb[38].mxu1  ;;  %6108 = vmatprep.mubr.bf16.mxu1 %v5869_v20 }
 0x5f1   : > { %v5800_v30 = vpack.c.bf16 %v5733_v11, %v5729_v19  ;;  %v5735_v48 = vpop.f32.mrb[39].mxu1  ;;  %6109 = vmatmul.mubr.bf16.vlgmr.msra.gmra.mrb[64].mxu1 %v5868_v17 }
 0x5f2   : > { %v5801_v4 = vpack.c.bf16 %v5735_v48, %v5731_v5  ;;  %6692 = vmatpush1.bf16.msra.mxu1 %v9691_v34  ;;  %v9699_v5 = vld [vmem:[#allocation6] ss:$8 sps:$4 sm:$0xff]  }
 0x5f3   : > { %v5854_v42 = vadd.bf16 %v12778_v3, %v5800_v30  ;;  %6693 = vmatprep.subr.bf16.mxu1 %v9696_v23  ;;  %v9701_v23 = vld [vmem:[#allocation6 + $0x4] ss:$8 sps:$4 sm:$0xff]  }
 0x5f4   : > { %v5855_v38 = vadd.bf16 %v12781_v54, %v5801_v4  ;;  %6467 = vmatprep.subr.bf16.mxu0 %v9701_v23 }
 0x5f5   : > { %v5870_v24 = vmax.bf16 %v13513_v31, %v5854_v42  ;;  %6468 = vmatpush1.bf16.msra.mxu0 %v9699_v5 }
 0x5f6   : > { %v5739_v46 = vpop.f32.mrb[40].mxu1  ;;  %v5871_v6 = vmax.bf16 %v13513_v31, %v5855_v38  ;;  %6694 = vmatpush1.bf16.msra.mxu1 %v9694_v35 }
 0x5f7   : > { %v5741_v49 = vpop.f32.mrb[41].mxu1  ;;  %8997 = vmatprep.subr.msk.bf16.mxu1 %vm13628_vm8, %v8996_v32 }
 0x5f8   : > { %v5743_v55 = vpop.f32.mrb[42].mxu1  ;;  %6118 = vmatprep.mubr.bf16.mxu1 %v5871_v6 }
 0x5f9   : > { %v5802_v29 = vpack.c.bf16 %v5743_v55, %v5739_v46  ;;  %v5745_v37 = vpop.f32.mrb[43].mxu1  ;;  %6119 = vmatmul.mubr.bf16.gmra.mrb[68].mxu1 %v5870_v24  ;;  %v9704_v24 = vld [vmem:[#allocation6 + $0x14] ss:$8 sps:$4 sm:$0xff]  }
 0x5fa   : > { %v5803_v27 = vpack.c.bf16 %v5745_v37, %v5741_v49  ;;  %v9702_v49 = vld [vmem:[#allocation6 + $0x10] ss:$8 sps:$4 sm:$0xff]   ;;  %6469 = vmatprep.subr.bf16.mxu0 %v9704_v24  ;;  %v9725_v24 = vld [vmem:[#allocation6 + $0x74] ss:$8 sps:$4 sm:$0xff]  }
 0x5fb   : > { %v5856_v52 = vadd.bf16 %v12778_v3, %v5802_v29  ;;  %v9707_v29 = vld [vmem:[#allocation6 + $0x24] ss:$8 sps:$4 sm:$0xff]   ;;  %6470 = vmatpush1.bf16.msra.mxu0 %v9702_v49  ;;  %v9723_v49 = vld [vmem:[#allocation6 + $0x70] ss:$8 sps:$4 sm:$0xff]  }
 0x5fc   : > { %v5857_v63 = vadd.bf16 %v12781_v54, %v5803_v27  ;;  %6471 = vmatprep.subr.bf16.mxu0 %v9707_v29 }
 0x5fd   : > { %v5872_v13 = vmax.bf16 %v13513_v31, %v5856_v52  ;;  %v9705_v52 = vld [vmem:[#allocation6 + $0x20] ss:$8 sps:$4 sm:$0xff]  }
 0x5fe   : > { %v5749_v59 = vpop.f32.mrb[44].mxu1  ;;  %v5873_v61 = vmax.bf16 %v13513_v31, %v5857_v63 }
 0x5ff   : > { %v5751_v18 = vpop.f32.mrb[45].mxu1  ;;  %6472 = vmatpush1.bf16.msra.mxu0 %v9705_v52  ;;  %v9732_v52 = vld [vmem:[#allocation6 + $0x90] ss:$8 sps:$4 sm:$0xff]  }
 0x600   : > { %v5753_v60 = vpop.f32.mrb[46].mxu1  ;;  %6128 = vmatprep.mubr.bf16.mxu1 %v5873_v61 }
 0x601   : > { %v5804_v22 = vpack.c.bf16 %v5753_v60, %v5749_v59  ;;  %v5755_v41 = vpop.f32.mrb[47].mxu1  ;;  %6129 = vmatmul.mubr.bf16.gmra.mrb[72].mxu1 %v5872_v13 }
 0x602   : > { %v5805_v51 = vpack.c.bf16 %v5755_v41, %v5751_v18  ;;  %v9708_v41 = vld [vmem:[#allocation6 + $0x30] ss:$8 sps:$4 sm:$0xff]  }
 0x603   : > { %v5858_v28 = vadd.bf16 %v12778_v3, %v5804_v22 }
 0x604   : > { %v5859_v43 = vadd.bf16 %v12781_v54, %v5805_v51  ;;  %v9710_v51 = vld [vmem:[#allocation6 + $0x34] ss:$8 sps:$4 sm:$0xff]  }
 0x605   : > { %v5874_v19 = vmax.bf16 %v13513_v31, %v5858_v28  ;;  %6473 = vmatprep.subr.bf16.mxu0 %v9710_v51  ;;  %v9744_v51 = vld [vmem:[#allocation6 + $0xd0] ss:$8 sps:$4 sm:$0xff]  }
 0x606   : > { %v5759_v53 = vpop.f32.mrb[48].mxu1  ;;  %v5875_v1 = vmax.bf16 %v13513_v31, %v5859_v43  ;;  %v9713_v43 = vld [vmem:[#allocation6 + $0x44] ss:$8 sps:$4 sm:$0xff]   ;;  %6474 = vmatpush1.bf16.msra.mxu0 %v9708_v41 }
 0x607   : > { %v5761_v2 = vpop.f32.mrb[49].mxu1  ;;  %6475 = vmatprep.subr.bf16.mxu0 %v9713_v43  ;;  %v13632_v41 = vld [vmem:[#allocation49_spill] sm:$0xff] }
 0x608   : > { %v5763_v20 = vpop.f32.mrb[50].mxu1  ;;  %6138 = vmatprep.mubr.bf16.mxu1 %v5875_v1  ;;  %v9747_v43 = vld [vmem:[#allocation6 + $0xe0] ss:$8 sps:$4 sm:$0xff]  }
 0x609   : > { %v5806_v34 = vpack.c.bf16 %v5763_v20, %v5759_v53  ;;  %v5765_v17 = vpop.f32.mrb[51].mxu1  ;;  %6139 = vmatmul.mubr.bf16.gmra.mrb[76].mxu1 %v5874_v19 }
 0x60a   : > { %v5807_v11 = vpack.c.bf16 %v5765_v17, %v5761_v2  ;;  %v9711_v2 = vld [vmem:[#allocation6 + $0x40] ss:$8 sps:$4 sm:$0xff]  }
 0x60b   : > { %v5860_v30 = vadd.bf16 %v12778_v3, %v5806_v34  ;;  %6476 = vmatpush1.bf16.msra.mxu0 %v9711_v2  ;;  %v9750_v2 = vld [vmem:[#allocation6 + $0xf0] ss:$8 sps:$4 sm:$0xff]  }
 0x60c   : > { %v5861_v48 = vadd.bf16 %v12781_v54, %v5807_v11 }
 0x60d   : > { %v5876_v32 = vmax.bf16 %v13513_v31, %v5860_v30  ;;  %v9714_v30 = vld [vmem:[#allocation6 + $0x50] ss:$8 sps:$4 sm:$0xff]  }
 0x60e   : > { %v5769_v4 = vpop.f32.mrb[52].mxu1  ;;  %v5877_v35 = vmax.bf16 %v13513_v31, %v5861_v48  ;;  %v9716_v48 = vld [vmem:[#allocation6 + $0x54] ss:$8 sps:$4 sm:$0xff]  }
 0x60f   : > { %v5771_v42 = vpop.f32.mrb[53].mxu1  ;;  %6477 = vmatprep.subr.bf16.mxu0 %v9716_v48 }
 0x610   : > { %v5773_v38 = vpop.f32.mrb[54].mxu1  ;;  %6148 = vmatprep.mubr.bf16.mxu1 %v5877_v35  ;;  %v9719_v35 = vld [vmem:[#allocation6 + $0x64] ss:$8 sps:$4 sm:$0xff]   ;;  %6478 = vmatpush1.bf16.msra.mxu0 %v9714_v30 }
 0x611   : > { %v5808_v46 = vpack.c.bf16 %v5773_v38, %v5769_v4  ;;  %v5775_v6 = vpop.f32.mrb[55].mxu1  ;;  %6149 = vmatmul.mubr.bf16.gmra.mrb[80].mxu1 %v5876_v32  ;;  %v9717_v38 = vld [vmem:[#allocation6 + $0x60] ss:$8 sps:$4 sm:$0xff]   ;;  %6479 = vmatprep.subr.bf16.mxu0 %v9719_v35 }
 0x612   : > { %v5809_v55 = vpack.c.bf16 %v5775_v6, %v5771_v42 }
 0x613   : > { %v5862_v37 = vadd.bf16 %v12778_v3, %v5808_v46 }
 0x614   : > { %v5863_v27 = vadd.bf16 %v12781_v54, %v5809_v55  ;;  %6480 = vmatpush1.bf16.msra.mxu0 %v9717_v38  ;;  %v9731_v55 = vld [vmem:[#allocation6 + $0x84] ss:$8 sps:$4 sm:$0xff]  }
 0x615   : > { %v5878_v18 = vmax.bf16 %v13513_v31, %v5862_v37  ;;  %6481 = vmatprep.subr.bf16.mxu0 %v9725_v24  ;;  %v9722_v37 = vld [vmem:[%s13261_s16 + $0x4] ss:$8 sps:$4 sm:$0xff]  }
 0x616   : > { %v5779_v63 = vpop.f32.mrb[56].mxu1  ;;  %v5879_v59 = vmax.bf16 %v13513_v31, %v5863_v27  ;;  %v13630_v27 = vld [vmem:[#allocation32_spill] sm:$0xff] }
 0x617   : > { %v5781_v61 = vpop.f32.mrb[57].mxu1 }
 0x618   : > { %v5783_v13 = vpop.f32.mrb[58].mxu1  ;;  %6158 = vmatprep.mubr.bf16.mxu1 %v5879_v59  ;;  %6482 = vmatpush1.bf16.msra.mxu0 %v9723_v49  ;;  %v9735_v59 = vld [vmem:[#allocation6 + $0xa0] ss:$8 sps:$4 sm:$0xff]  }
 0x619   : > { %v5810_v60 = vpack.c.bf16 %v5783_v13, %v5779_v63  ;;  %v5785_v22 = vpop.f32.mrb[59].mxu1  ;;  %6159 = vmatmul.mubr.bf16.gmra.mrb[84].mxu1 %v5878_v18  ;;  %6483 = vmatprep.subr.bf16.mxu0 %v9731_v55  ;;  %v9734_v63 = vld [vmem:[#allocation6 + $0x94] ss:$8 sps:$4 sm:$0xff]   ;;  %v9738_v18 = vld [vmem:[#allocation6 + $0xb0] ss:$8 sps:$4 sm:$0xff]  }
 0x61a   : > { %v5811_v28 = vpack.c.bf16 %v5785_v22, %v5781_v61  ;;  %v13631_v61 = vld [vmem:[#allocation47_spill] sm:$0xff]  ;;  %v9741_v22 = vld [vmem:[#allocation6 + $0xc0] ss:$8 sps:$4 sm:$0xff]   ;;  %v9779_v55 = vld [vmem:[#allocation7 + $0x84] ss:$8 sps:$4 sm:$0xff]  }
 0x61b   : > { %v5864_v53 = vadd.bf16 %v12778_v3, %v5810_v60  ;;  %v9740_v13 = vld [vmem:[#allocation6 + $0xb4] ss:$8 sps:$4 sm:$0xff]   ;;  %v9743_v60 = vld [vmem:[#allocation6 + $0xc4] ss:$8 sps:$4 sm:$0xff]  }
 0x61c   : > { %v5865_v1 = vadd.bf16 %v12781_v54, %v5811_v28  ;;  %v9746_v28 = vld [vmem:[#allocation6 + $0xd4] ss:$8 sps:$4 sm:$0xff]  }
 0x61d   : > { %v5880_v17 = vmax.bf16 %v13513_v31, %v5864_v53  ;;  %v9749_v53 = vld [vmem:[#allocation6 + $0xe4] ss:$8 sps:$4 sm:$0xff]  }
 0x61e   : > { %v5789_v19 = vpop.f32.mrb[60].mxu1  ;;  %v5881_v20 = vmax.bf16 %v13513_v31, %v5865_v1  ;;  %v9752_v1 = vld [vmem:[#allocation6 + $0xf4] ss:$8 sps:$4 sm:$0xff]  }
 0x61f   : > { %v5791_v34 = vpop.f32.mrb[61].mxu1 }
 0x620   : > { %v5793_v5 = vpop.f32.mrb[62].mxu1  ;;  %6168 = vmatprep.mubr.bf16.mxu1 %v5881_v20 }
 0x621   : > { %v5812_v23 = vpack.c.bf16 %v5793_v5, %v5789_v19  ;;  %v5795_v11 = vpop.f32.mrb[63].mxu1  ;;  %6169 = vmatmul.mubr.bf16.gmra.mrb[88].mxu1 %v5880_v17  ;;  %v9770_v17 = vld [vmem:[#allocation7 + $0x54] ss:$8 sps:$4 sm:$0xff]  }
 0x622   : > { %v5813_v4 = vpack.c.bf16 %v5795_v11, %v5791_v34  ;;  %v9765_v34 = vld [vmem:[#allocation7 + $0x40] ss:$8 sps:$4 sm:$0xff]   ;;  %v9773_v11 = vld [vmem:[#allocation7 + $0x64] ss:$8 sps:$4 sm:$0xff]  }
 0x623   : > { %v5866_v42 = vadd.bf16 %v12778_v3, %v5812_v23  ;;  %v8995_v3 = vcombine.low %v12796_v47, %v12796_v47  ;;  %v9737_v47 = vld [vmem:[#allocation6 + $0xa4] ss:$8 sps:$4 sm:$0xff]   ;;  %v9768_v23 = vld [vmem:[#allocation7 + $0x50] ss:$8 sps:$4 sm:$0xff]  }
 0x624   : > { %v5867_v32 = vadd.bf16 %v12781_v54, %v5813_v4  ;;  %v9729_v54 = vld [vmem:[#allocation6 + $0x80] ss:$8 sps:$4 sm:$0xff]  }
 0x625   : > { %v5882_v6 = vmax.bf16 %v13513_v31, %v5866_v42  ;;  %v6810_v29 = vsel %vm13629_vm3, %v8995_v3, 0  ;;  %6484 = vmatpush1.bf16.msra.mxu0 %v9729_v54  ;;  %v9774_v3 = vld [vmem:[#allocation7 + $0x70] ss:$8 sps:$4 sm:$0xff]  }
 0x626   : > { %v5883_v46 = vmax.bf16 %v13513_v31, %v5867_v32  ;;  %6485 = vmatprep.subr.bf16.mxu0 %v9734_v63  ;;  %v9771_v32 = vld [vmem:[#allocation7 + $0x60] ss:$8 sps:$4 sm:$0xff]  }
 0x627   : > { %v9777_v63 = vld [vmem:[#allocation7 + $0x80] ss:$8 sps:$4 sm:$0xff]  }
 0x628   : > { %6178 = vmatprep.mubr.bf16.mxu1 %v5883_v46  ;;  %v9776_v46 = vld [vmem:[#allocation7 + $0x74] ss:$8 sps:$4 sm:$0xff]  }
 0x629   : > { %6179 = vmatmul.mubr.bf16.gmra.mrb[92].mxu1 %v5882_v6  ;;  %6486 = vmatpush1.bf16.msra.mxu0 %v9732_v52 }
 0x62a   : > { %6723 = vmatprep.mubr.bf16.mxu1 %v13513_v31  ;;  %6487 = vmatprep.subr.bf16.mxu0 %v9737_v47 }
 0x62d   : > { %6488 = vmatpush1.bf16.msra.mxu0 %v9735_v59  ;;  %v9782_v59 = vld [vmem:[#allocation7 + $0x94] ss:$8 sps:$4 sm:$0xff]  }
 0x62e   : > { %6489 = vmatprep.subr.bf16.mxu0 %v9740_v13 }
 0x631   : > { %8987 = vmatmul.mubr.msk.bf16.vlgmr.msra.gmra.mrb[96].mxu1 %vm4535_vm12, %v13630_v27  ;;  %6490 = vmatpush1.bf16.msra.mxu0 %v9738_v18 }
 0x632   : > { %6733 = vmatprep.mubr.bf16.mxu1 %v13513_v31  ;;  %6816 = vmatpush1.bf16.msra.mxu1 %v6810_v29 }
 0x633   : > { %6952 = vmatprep.subr.bf16.mxu1 %v9722_v37  ;;  %6491 = vmatprep.subr.bf16.mxu0 %v9743_v60  ;;  %v9780_v60 = vld [vmem:[#allocation7 + $0x90] ss:$8 sps:$4 sm:$0xff]  }
 0x635   : > { %6492 = vmatpush1.bf16.msra.mxu0 %v9741_v22  ;;  %v9785_v22 = vld [vmem:[#allocation7 + $0xa4] ss:$8 sps:$4 sm:$0xff]  }
 0x636   : > { %6493 = vmatprep.subr.bf16.mxu0 %v9746_v28 }
 0x639   : > { %8988 = vmatmul.mubr.msk.bf16.gmra.mrb[100].mxu1 %vm4535_vm12, %v13631_v61  ;;  %6494 = vmatpush1.bf16.msra.mxu0 %v9744_v51 }
 0x63a   : > { %6743 = vmatprep.mubr.bf16.mxu1 %v13513_v31  ;;  %6495 = vmatprep.subr.bf16.mxu0 %v9749_v53 }
 0x63d   : > { %6496 = vmatpush1.bf16.msra.mxu0 %v9747_v43 }
 0x63e   : > { %6497 = vmatprep.subr.bf16.mxu0 %v9752_v1  ;;  %v9783_v1 = vld [vmem:[#allocation7 + $0xa0] ss:$8 sps:$4 sm:$0xff]  }
 0x641   : > { %8989 = vmatmul.mubr.msk.bf16.gmra.mrb[104].mxu1 %vm4535_vm12, %v13632_v41  ;;  %6498 = vmatpush1.bf16.msra.mxu0 %v9750_v2 }
 0x642   : > { %6753 = vmatprep.mubr.bf16.mxu1 %v13513_v31 }
 0x649   : > { %8990 = vmatmul.mubr.msk.bf16.gmra.mrb[108].mxu1 %vm4535_vm12, %v12129_v62  ;;  %v9720_v62 = vld [vmem:[%s13261_s16] ss:$8 sps:$4 sm:$0xff]  }
 0x64a   : > { %6763 = vmatprep.mubr.bf16.mxu1 %v13513_v31 }
 0x651   : > { %8991 = vmatmul.mubr.msk.bf16.gmra.mrb[112].mxu1 %vm4535_vm12, %v12191_v15  ;;  %v9728_v15 = vld [vmem:[%s13261_s16 + $0x14] ss:$8 sps:$4 sm:$0xff]  }
 0x652   : > { %6773 = vmatprep.mubr.bf16.mxu1 %v13513_v31 }
 0x659   : > { %8992 = vmatmul.mubr.msk.bf16.gmra.mrb[116].mxu1 %vm4535_vm12, %v12241_v12  ;;  %v9726_v12 = vld [vmem:[%s13261_s16 + $0x10] ss:$8 sps:$4 sm:$0xff]  }
 0x65a   : > { %6783 = vmatprep.mubr.bf16.mxu1 %v13513_v31 }
 0x661   : > { %8993 = vmatmul.mubr.msk.bf16.gmra.mrb[120].mxu1 %vm4535_vm12, %v12300_v39  ;;  %v9753_v39 = vld [vmem:[#allocation7] ss:$8 sps:$4 sm:$0xff]  }
 0x662   : > { %6793 = vmatprep.mubr.bf16.mxu1 %v13513_v31 }
 0x669   : > { %8994 = vmatmul.mubr.msk.bf16.gmra.mrb[124].mxu1 %vm4535_vm12, %v12347_v9  ;;  %v9755_v9 = vld [vmem:[#allocation7 + $0x4] ss:$8 sps:$4 sm:$0xff]  }
 0x66a   : > { %6847 = vmatprep.mubr.bf16.mxu1 %v13513_v31 }
 0x671   : > { %8998 = vmatmul.mubr.msk.bf16.vlgmr.msra.gmra.mrb[96].mxu1 %vm4678_vm6, %v13588_v8  ;;  %v9758_v8 = vld [vmem:[#allocation7 + $0x14] ss:$8 sps:$4 sm:$0xff]  }
 0x672   : > { %6857 = vmatprep.mubr.bf16.mxu1 %v13513_v31  ;;  %6953 = vmatpush1.bf16.msra.mxu1 %v9720_v62  ;;  %v9788_v62 = vld [vmem:[#allocation7 + $0xb4] ss:$8 sps:$4 sm:$0xff]  }
 0x673   : > { %6954 = vmatprep.subr.bf16.mxu1 %v9728_v15 }
 0x676   : > { %6955 = vmatpush1.bf16.msra.mxu1 %v9726_v12 }
 0x677   : > { %7289 = vmatprep.subr.bf16.mxu1 %v9755_v9 }
 0x679   : > { %8999 = vmatmul.mubr.msk.bf16.gmra.mrb[100].mxu1 %vm4678_vm6, %v12471_v25  ;;  %v9756_v25 = vld [vmem:[#allocation7 + $0x10] ss:$8 sps:$4 sm:$0xff]  }
 0x67a   : > { %6867 = vmatprep.mubr.bf16.mxu1 %v13513_v31 }
 0x681   : > { %9000 = vmatmul.mubr.msk.bf16.gmra.mrb[104].mxu1 %vm4678_vm6, %v12517_v58  ;;  %v9761_v58 = vld [vmem:[#allocation7 + $0x24] ss:$8 sps:$4 sm:$0xff]  }
 0x682   : > { %6877 = vmatprep.mubr.bf16.mxu1 %v13513_v31 }
 0x689   : > { %9001 = vmatmul.mubr.msk.bf16.gmra.mrb[108].mxu1 %vm4678_vm6, %v12536_v10  ;;  %v9759_v10 = vld [vmem:[#allocation7 + $0x20] ss:$8 sps:$4 sm:$0xff]  }
 0x68a   : > { %6887 = vmatprep.mubr.bf16.mxu1 %v13513_v31 }
 0x691   : > { %9002 = vmatmul.mubr.msk.bf16.gmra.mrb[112].mxu1 %vm4678_vm6, %v12555_v14  ;;  %v8949_v14 = vld.sshfl [vmem:[%s13256_s11] sm:$0x11 pattern:$0x75316420] }
 0x692   : > { %6897 = vmatprep.mubr.bf16.mxu1 %v13513_v31  ;;  %v6221_v19 = vrot.slane %v8949_v14, %v12684_v40 }
 0x694   : > { %v6230_v5 = vpack.i.b16 %v6221_v19, %v6221_v19 }
 0x696   : > { %v12911_v4 = vrot.slane %v6230_v5, %v13625_v44 }
 0x699   : > { %9003 = vmatmul.mubr.msk.bf16.gmra.mrb[116].mxu1 %vm4678_vm6, %v12574_v50  ;;  %v9764_v50 = vld [vmem:[#allocation7 + $0x34] ss:$8 sps:$4 sm:$0xff]  }
 0x69a   : > { %6907 = vmatprep.mubr.bf16.mxu1 %v13513_v31 }
 0x6a1   : > { %9004 = vmatmul.mubr.msk.bf16.gmra.mrb[120].mxu1 %vm4678_vm6, %v12590_v21  ;;  %v6214_v21 = vcombine.high %v8949_v14, %v8949_v14 }
 0x6a2   : > { %6917 = vmatprep.mubr.bf16.mxu1 %v13513_v31 }
 0x6a3   : > { %v6228_v20 = vrot.slane %v6214_v21, %v12684_v40  ;;  %v9789_v21 = vld [vmem:[#allocation7 + $0xc0] ss:$8 sps:$4 sm:$0xff]  }
 0x6a9   : > { %9005 = vmatmul.mubr.msk.bf16.gmra.mrb[124].mxu1 %vm4678_vm6, %v12597_v57  ;;  %v9762_v57 = vld [vmem:[#allocation7 + $0x30] ss:$8 sps:$4 sm:$0xff]  }
 0x6aa   : > { %6984 = vmatprep.mubr.bf16.mxu1 %v13513_v31 }
 0x6b1   : > { %9010 = vmatmul.mubr.msk.bf16.vlgmr.msra.gmra.mrb[96].mxu1 %vm4535_vm12, %v13604_v33  ;;  %v9767_v33 = vld [vmem:[#allocation7 + $0x44] ss:$8 sps:$4 sm:$0xff]  }
 0x6b2   : > { %6994 = vmatprep.mubr.bf16.mxu1 %v13513_v31  ;;  %7290 = vmatpush1.bf16.msra.mxu1 %v9753_v39  ;;  %v9786_v39 = vld [vmem:[#allocation7 + $0xb0] ss:$8 sps:$4 sm:$0xff]  }
 0x6b3   : > { %7291 = vmatprep.subr.bf16.mxu1 %v9758_v8  ;;  %v9791_v8 = vld [vmem:[#allocation7 + $0xc4] ss:$8 sps:$4 sm:$0xff]  }
 0x6b6   : > { %7292 = vmatpush1.bf16.msra.mxu1 %v9756_v25 }
 0x6b7   : > { %7293 = vmatprep.subr.bf16.mxu1 %v9761_v58 }
 0x6b9   : > { %9011 = vmatmul.mubr.msk.bf16.gmra.mrb[100].mxu1 %vm4535_vm12, %v12631_v26  ;;  %v6237_v26 = vpack.i.b16 %v6228_v20, %v6228_v20 }
 0x6ba   : > { %7004 = vmatprep.mubr.bf16.mxu1 %v13513_v31  ;;  %7294 = vmatpush1.bf16.msra.mxu1 %v9759_v10 }
 0x6bb   : > { %7295 = vmatprep.subr.bf16.mxu1 %v9764_v50  ;;  %v12914_v42 = vrot.slane %v6237_v26, %v13625_v44 }
 0x6be   : > { %7296 = vmatpush1.bf16.msra.mxu1 %v9762_v57 }
 0x6bf   : > { %7297 = vmatprep.subr.bf16.mxu1 %v9767_v33  ;;  %v9794_v33 = vld [vmem:[#allocation7 + $0xd4] ss:$8 sps:$4 sm:$0xff]  }
 0x6c1   : > { %9012 = vmatmul.mubr.msk.bf16.gmra.mrb[104].mxu1 %vm4535_vm12, %v12646_v56 }
 0x6c2   : > { %7014 = vmatprep.mubr.bf16.mxu1 %v13513_v31  ;;  %7298 = vmatpush1.bf16.msra.mxu1 %v9765_v34 }
 0x6c3   : > { %7299 = vmatprep.subr.bf16.mxu1 %v9770_v17  ;;  %v9792_v17 = vld [vmem:[#allocation7 + $0xd0] ss:$8 sps:$4 sm:$0xff]  }
 0x6c4   : > { %v6110_v30 = vpop.f32.mrb[64].mxu1 }
 0x6c5   : > { %v6112_v48 = vpop.f32.mrb[65].mxu1 }
 0x6c6   : > { %v6114_v35 = vpop.f32.mrb[66].mxu1  ;;  %7300 = vmatpush1.bf16.msra.mxu1 %v9768_v23 }
 0x6c7   : > { %v6189_v56 = vpack.c.bf16 %v6114_v35, %v6110_v30  ;;  %v6116_v38 = vpop.f32.mrb[67].mxu1  ;;  %7301 = vmatprep.subr.bf16.mxu1 %v9773_v11 }
 0x6c8   : > { %v6190_v6 = vpack.c.bf16 %v6116_v38, %v6112_v48 }
 0x6c9   : > { %v6243_v49 = vadd.bf16 %v12911_v4, %v6189_v56  ;;  %9013 = vmatmul.mubr.msk.bf16.gmra.mrb[108].mxu1 %vm4535_vm12, %v12378_v0 }
 0x6ca   : > { %v6244_v24 = vadd.bf16 %v12914_v42, %v6190_v6  ;;  %7024 = vmatprep.mubr.bf16.mxu1 %v13513_v31  ;;  %7302 = vmatpush1.bf16.msra.mxu1 %v9771_v32 }
 0x6cb   : > { %7303 = vmatprep.subr.bf16.mxu1 %v9776_v46  ;;  %v6259_v37 = vmax.bf16 %v13513_v31, %v6243_v49 }
 0x6cc   : > { %v6120_v54 = vpop.f32.mrb[68].mxu1  ;;  %v6260_v29 = vmax.bf16 %v13513_v31, %v6244_v24 }
 0x6cd   : > { %v6122_v27 = vpop.f32.mrb[69].mxu1 }
 0x6ce   : > { %v6124_v52 = vpop.f32.mrb[70].mxu1  ;;  %6499 = vmatprep.mubr.bf16.mxu0 %v6260_v29  ;;  %7304 = vmatpush1.bf16.msra.mxu1 %v9774_v3 }
 0x6cf   : > { %v6191_v47 = vpack.c.bf16 %v6124_v52, %v6120_v54  ;;  %v6126_v0 = vpop.f32.mrb[71].mxu1  ;;  %6500 = vmatmul.mubr.bf16.vlgmr.msra.gmra.mrb[32].mxu0 %v6259_v37  ;;  %7305 = vmatprep.subr.bf16.mxu1 %v9779_v55 }
 0x6d0   : > { %v6192_v61 = vpack.c.bf16 %v6126_v0, %v6122_v27 }
 0x6d1   : > { %v6245_v18 = vadd.bf16 %v12911_v4, %v6191_v47  ;;  %9014 = vmatmul.mubr.msk.bf16.gmra.mrb[112].mxu1 %vm4535_vm12, %v12418_v7 }
 0x6d2   : > { %v6246_v13 = vadd.bf16 %v12914_v42, %v6192_v61  ;;  %7034 = vmatprep.mubr.bf16.mxu1 %v13513_v31  ;;  %7306 = vmatpush1.bf16.msra.mxu1 %v9777_v63 }
 0x6d3   : > { %7307 = vmatprep.subr.bf16.mxu1 %v9782_v59  ;;  %v6261_v43 = vmax.bf16 %v13513_v31, %v6245_v18 }
 0x6d4   : > { %v6130_v41 = vpop.f32.mrb[72].mxu1  ;;  %v6262_v51 = vmax.bf16 %v13513_v31, %v6246_v13 }
 0x6d5   : > { %v6132_v28 = vpop.f32.mrb[73].mxu1 }
 0x6d6   : > { %v6134_v53 = vpop.f32.mrb[74].mxu1  ;;  %6509 = vmatprep.mubr.bf16.mxu0 %v6262_v51  ;;  %7308 = vmatpush1.bf16.msra.mxu1 %v9780_v60 }
 0x6d7   : > { %v6193_v2 = vpack.c.bf16 %v6134_v53, %v6130_v41  ;;  %v6136_v7 = vpop.f32.mrb[75].mxu1  ;;  %6510 = vmatmul.mubr.bf16.gmra.mrb[36].mxu0 %v6261_v43  ;;  %7309 = vmatprep.subr.bf16.mxu1 %v9785_v22 }
 0x6d8   : > { %v6194_v15 = vpack.c.bf16 %v6136_v7, %v6132_v28 }
 0x6d9   : > { %v6247_v12 = vadd.bf16 %v12911_v4, %v6193_v2  ;;  %9015 = vmatmul.mubr.msk.bf16.gmra.mrb[116].mxu1 %vm4535_vm12, %v12450_v16 }
 0x6da   : > { %v6248_v9 = vadd.bf16 %v12914_v42, %v6194_v15  ;;  %7044 = vmatprep.mubr.bf16.mxu1 %v13513_v31  ;;  %7310 = vmatpush1.bf16.msra.mxu1 %v9783_v1 }
 0x6db   : > { %7311 = vmatprep.subr.bf16.mxu1 %v9788_v62  ;;  %v6263_v14 = vmax.bf16 %v13513_v31, %v6247_v12  ;;  %v9795_v12 = vld [vmem:[#allocation7 + $0xe0] ss:$8 sps:$4 sm:$0xff]  }
 0x6dc   : > { %v6140_v25 = vpop.f32.mrb[76].mxu1  ;;  %v6264_v58 = vmax.bf16 %v13513_v31, %v6248_v9  ;;  %v9797_v9 = vld [vmem:[#allocation7 + $0xe4] ss:$8 sps:$4 sm:$0xff]  }
 0x6dd   : > { %v6142_v10 = vpop.f32.mrb[77].mxu1 }
 0x6de   : > { %v6144_v50 = vpop.f32.mrb[78].mxu1  ;;  %6519 = vmatprep.mubr.bf16.mxu0 %v6264_v58  ;;  %7312 = vmatpush1.bf16.msra.mxu1 %v9786_v39  ;;  %v9800_v39 = vld [vmem:[#allocation7 + $0xf4] ss:$8 sps:$4 sm:$0xff]   ;;  %v9803_v58 = vld [vmem:[#allocation9 + $0x4] ss:$8 sps:$4 sm:$0xff]  }
 0x6df   : > { %v6195_v57 = vpack.c.bf16 %v6144_v50, %v6140_v25  ;;  %v6146_v16 = vpop.f32.mrb[79].mxu1  ;;  %6520 = vmatmul.mubr.bf16.gmra.mrb[40].mxu0 %v6263_v14  ;;  %7313 = vmatprep.subr.bf16.mxu1 %v9791_v8  ;;  %v9798_v8 = vld [vmem:[#allocation7 + $0xf0] ss:$8 sps:$4 sm:$0xff]   ;;  %v9801_v25 = vld [vmem:[#allocation9] ss:$8 sps:$4 sm:$0xff]  }
 0x6e0   : > { %v6196_v19 = vpack.c.bf16 %v6146_v16, %v6142_v10  ;;  %v9806_v10 = vld [vmem:[#allocation9 + $0x14] ss:$8 sps:$4 sm:$0xff]   ;;  %7712 = vmatprep.subr.bf16.mxu0 %v9803_v58  ;;  %v9807_v14 = vld [vmem:[#allocation9 + $0x20] ss:$8 sps:$4 sm:$0xff]  }
 0x6e1   : > { %v6249_v20 = vadd.bf16 %v12911_v4, %v6195_v57  ;;  %9016 = vmatmul.mubr.msk.bf16.gmra.mrb[120].mxu1 %vm4535_vm12, %v12483_v45  ;;  %7713 = vmatpush1.bf16.msra.mxu0 %v9801_v25  ;;  %v9812_v50 = vld [vmem:[#allocation9 + $0x34] ss:$8 sps:$4 sm:$0xff]   ;;  %v9815_v57 = vld [vmem:[#allocation9 + $0x44] ss:$8 sps:$4 sm:$0xff]   ;;  %v9813_v16 = vld [vmem:[#allocation9 + $0x40] ss:$8 sps:$4 sm:$0xff]  }
 0x6e2   : > { %v6250_v34 = vadd.bf16 %v12914_v42, %v6196_v19  ;;  %7054 = vmatprep.mubr.bf16.mxu1 %v13513_v31  ;;  %7314 = vmatpush1.bf16.msra.mxu1 %v9789_v21  ;;  %v9810_v21 = vld [vmem:[#allocation9 + $0x30] ss:$8 sps:$4 sm:$0xff]  }
 0x6e3   : > { %7315 = vmatprep.subr.bf16.mxu1 %v9794_v33  ;;  %v6265_v11 = vmax.bf16 %v13513_v31, %v6249_v20  ;;  %7714 = vmatprep.subr.bf16.mxu0 %v9806_v10  ;;  %v9818_v33 = vld [vmem:[#allocation9 + $0x54] ss:$8 sps:$4 sm:$0xff]   ;;  %v9816_v19 = vld [vmem:[#allocation9 + $0x50] ss:$8 sps:$4 sm:$0xff]   ;;  %v9821_v20 = vld [vmem:[#allocation9 + $0x64] ss:$8 sps:$4 sm:$0xff]  }
 0x6e4   : > { %v6150_v5 = vpop.f32.mrb[80].mxu1  ;;  %v6266_v26 = vmax.bf16 %v13513_v31, %v6250_v34  ;;  %v9819_v34 = vld [vmem:[#allocation9 + $0x60] ss:$8 sps:$4 sm:$0xff]  }
 0x6e5   : > { %v6152_v23 = vpop.f32.mrb[81].mxu1 }
 0x6e6   : > { %v6154_v30 = vpop.f32.mrb[82].mxu1  ;;  %6529 = vmatprep.mubr.bf16.mxu0 %v6266_v26  ;;  %7316 = vmatpush1.bf16.msra.mxu1 %v9792_v17  ;;  %v9824_v17 = vld [vmem:[#allocation9 + $0x74] ss:$8 sps:$4 sm:$0xff]   ;;  %v9827_v26 = vld [vmem:[#allocation9 + $0x84] ss:$8 sps:$4 sm:$0xff]  }
 0x6e7   : > { %v6197_v48 = vpack.c.bf16 %v6154_v30, %v6150_v5  ;;  %v6156_v35 = vpop.f32.mrb[83].mxu1  ;;  %6530 = vmatmul.mubr.bf16.gmra.mrb[44].mxu0 %v6265_v11  ;;  %7317 = vmatprep.subr.bf16.mxu1 %v9797_v9  ;;  %v9822_v5 = vld [vmem:[#allocation9 + $0x70] ss:$8 sps:$4 sm:$0xff]   ;;  %v9830_v11 = vld [vmem:[#allocation9 + $0x94] ss:$8 sps:$4 sm:$0xff]  }
 0x6e8   : > { %v6198_v45 = vpack.c.bf16 %v6156_v35, %v6152_v23  ;;  %v9825_v23 = vld [vmem:[#allocation9 + $0x80] ss:$8 sps:$4 sm:$0xff]   ;;  %v9828_v30 = vld [vmem:[#allocation9 + $0x90] ss:$8 sps:$4 sm:$0xff]  }
 0x6e9   : > { %v6251_v32 = vadd.bf16 %v12911_v4, %v6197_v48  ;;  %9017 = vmatmul.mubr.msk.bf16.gmra.mrb[124].mxu1 %vm4535_vm12, %v12510_v36  ;;  %v9833_v48 = vld [vmem:[#allocation9 + $0xa4] ss:$8 sps:$4 sm:$0xff]   ;;  %v9831_v35 = vld [vmem:[#allocation9 + $0xa0] ss:$8 sps:$4 sm:$0xff]  }
 0x6ea   : > { %v6252_v56 = vadd.bf16 %v12914_v42, %v6198_v45  ;;  %7318 = vmatpush1.bf16.msra.mxu1 %v9795_v12  ;;  %v9836_v45 = vld [vmem:[#allocation9 + $0xb4] ss:$8 sps:$4 sm:$0xff]  }
 0x6eb   : > { %v6267_v49 = vmax.bf16 %v13513_v31, %v6251_v32  ;;  %7319 = vmatprep.subr.bf16.mxu1 %v9800_v39  ;;  %v9834_v32 = vld [vmem:[#allocation9 + $0xb0] ss:$8 sps:$4 sm:$0xff]  }
 0x6ec   : > { %v6160_v38 = vpop.f32.mrb[84].mxu1  ;;  %v6268_v46 = vmax.bf16 %v13513_v31, %v6252_v56  ;;  %v9839_v56 = vld [vmem:[#allocation9 + $0xc4] ss:$8 sps:$4 sm:$0xff]  }
 0x6ed   : > { %v6162_v6 = vpop.f32.mrb[85].mxu1 }
 0x6ee   : > { %v6164_v24 = vpop.f32.mrb[86].mxu1  ;;  %6539 = vmatprep.mubr.bf16.mxu0 %v6268_v46  ;;  %7320 = vmatpush1.bf16.msra.mxu1 %v9798_v8  ;;  %v8982_v46 = vld.sshfl [vmem:[%s13258_s13] sm:$0x11 pattern:$0x75316420] }
 0x6ef   : > { %v6199_v3 = vpack.c.bf16 %v6164_v24, %v6160_v38  ;;  %v6166_v55 = vpop.f32.mrb[87].mxu1  ;;  %6540 = vmatmul.mubr.bf16.gmra.mrb[48].mxu0 %v6267_v49  ;;  %v9837_v38 = vld [vmem:[#allocation9 + $0xc0] ss:$8 sps:$4 sm:$0xff]   ;;  %v6605_v49 = vcombine.high %v8982_v46, %v8982_v46  ;;  %v9840_v24 = vld [vmem:[#allocation9 + $0xd0] ss:$8 sps:$4 sm:$0xff]  }
 0x6f0   : > { %v6200_v54 = vpack.c.bf16 %v6166_v55, %v6162_v6  ;;  %v9842_v6 = vld [vmem:[#allocation9 + $0xd4] ss:$8 sps:$4 sm:$0xff]  }
 0x6f1   : > { %v6253_v29 = vadd.bf16 %v12911_v4, %v6199_v3  ;;  %v6612_v3 = vrot.slane %v8982_v46, %v12684_v40  ;;  %v6619_v55 = vrot.slane %v6605_v49, %v12684_v40 }
 0x6f2   : > { %v6254_v37 = vadd.bf16 %v12914_v42, %v6200_v54 }
 0x6f3   : > { %v6269_v63 = vmax.bf16 %v13513_v31, %v6253_v29  ;;  %v6621_v54 = vpack.i.b16 %v6612_v3, %v6612_v3  ;;  %v6628_v29 = vpack.i.b16 %v6619_v55, %v6619_v55 }
 0x6f4   : > { %v6170_v27 = vpop.f32.mrb[88].mxu1  ;;  %v6270_v36 = vmax.bf16 %v13513_v31, %v6254_v37 }
 0x6f5   : > { %v6172_v52 = vpop.f32.mrb[89].mxu1 }
 0x6f6   : > { %v6174_v47 = vpop.f32.mrb[90].mxu1  ;;  %6549 = vmatprep.mubr.bf16.mxu0 %v6270_v36  ;;  %v12968_v36 = vrot.slane %v6621_v54, %v13625_v44 }
 0x6f7   : > { %v6201_v0 = vpack.c.bf16 %v6174_v47, %v6170_v27  ;;  %v6176_v59 = vpop.f32.mrb[91].mxu1  ;;  %6550 = vmatmul.mubr.bf16.gmra.mrb[52].mxu0 %v6269_v63  ;;  %v12971_v63 = vrot.slane %v6628_v29, %v13625_v44 }
 0x6f8   : > { %v6202_v61 = vpack.c.bf16 %v6176_v59, %v6172_v52 }
 0x6f9   : > { %v6255_v18 = vadd.bf16 %v12911_v4, %v6201_v0 }
 0x6fa   : > { %v6256_v13 = vadd.bf16 %v12914_v42, %v6202_v61 }
 0x6fb   : > { %v6271_v51 = vmax.bf16 %v13513_v31, %v6255_v18 }
 0x6fc   : > { %v6180_v60 = vpop.f32.mrb[92].mxu1  ;;  %v6272_v22 = vmax.bf16 %v13513_v31, %v6256_v13 }
 0x6fd   : > { %v6182_v41 = vpop.f32.mrb[93].mxu1 }
 0x6fe   : > { %v6184_v28 = vpop.f32.mrb[94].mxu1  ;;  %6559 = vmatprep.mubr.bf16.mxu0 %v6272_v22 }
 0x6ff   : > { %v6203_v43 = vpack.c.bf16 %v6184_v28, %v6180_v60  ;;  %v6186_v53 = vpop.f32.mrb[95].mxu1  ;;  %6560 = vmatmul.mubr.bf16.gmra.mrb[56].mxu0 %v6271_v51 }
 0x700   : > { %v6204_v1 = vpack.c.bf16 %v6186_v53, %v6182_v41 }
 0x701   : > { %v6257_v2 = vadd.bf16 %v12911_v4, %v6203_v43  ;;  %v9804_v4 = vld [vmem:[#allocation9 + $0x10] ss:$8 sps:$4 sm:$0xff]  }
 0x702   : > { %v6258_v7 = vadd.bf16 %v12914_v42, %v6204_v1  ;;  %v9809_v42 = vld [vmem:[#allocation9 + $0x24] ss:$8 sps:$4 sm:$0xff]   ;;  %7715 = vmatpush1.bf16.msra.mxu0 %v9804_v4 }
 0x703   : > { %v6273_v15 = vmax.bf16 %v13513_v31, %v6257_v2  ;;  %7716 = vmatprep.subr.bf16.mxu0 %v9809_v42 }
 0x704   : > { %v6274_v62 = vmax.bf16 %v13513_v31, %v6258_v7 }
 0x706   : > { %6569 = vmatprep.mubr.bf16.mxu0 %v6274_v62  ;;  %7717 = vmatpush1.bf16.msra.mxu0 %v9807_v14 }
 0x707   : > { %6570 = vmatmul.mubr.bf16.gmra.mrb[60].mxu0 %v6273_v15  ;;  %7718 = vmatprep.subr.bf16.mxu0 %v9812_v50 }
 0x70a   : > { %7719 = vmatpush1.bf16.msra.mxu0 %v9810_v21 }
 0x70b   : > { %7720 = vmatprep.subr.bf16.mxu0 %v9815_v57 }
 0x70e   : > { %7721 = vmatpush1.bf16.msra.mxu0 %v9813_v16 }
 0x70f   : > { %7722 = vmatprep.subr.bf16.mxu0 %v9818_v33 }
 0x712   : > { %7723 = vmatpush1.bf16.msra.mxu0 %v9816_v19 }
 0x713   : > { %7724 = vmatprep.subr.bf16.mxu0 %v9821_v20 }
 0x716   : > { %7725 = vmatpush1.bf16.msra.mxu0 %v9819_v34 }
 0x717   : > { %7726 = vmatprep.subr.bf16.mxu0 %v9824_v17 }
 0x71a   : > { %7727 = vmatpush1.bf16.msra.mxu0 %v9822_v5 }
 0x71b   : > { %7728 = vmatprep.subr.bf16.mxu0 %v9827_v26 }
 0x71e   : > { %7729 = vmatpush1.bf16.msra.mxu0 %v9825_v23 }
 0x71f   : > { %7730 = vmatprep.subr.bf16.mxu0 %v9830_v11 }
 0x722   : > { %7731 = vmatpush1.bf16.msra.mxu0 %v9828_v30 }
 0x723   : > { %7732 = vmatprep.subr.bf16.mxu0 %v9833_v48 }
 0x726   : > { %7733 = vmatpush1.bf16.msra.mxu0 %v9831_v35 }
 0x727   : > { %7734 = vmatprep.subr.bf16.mxu0 %v9836_v45 }
 0x72a   : > { %7735 = vmatpush1.bf16.msra.mxu0 %v9834_v32 }
 0x72b   : > { %7736 = vmatprep.subr.bf16.mxu0 %v9839_v56 }
 0x72e   : > { %7737 = vmatpush1.bf16.msra.mxu0 %v9837_v38 }
 0x72f   : > { %7738 = vmatprep.subr.bf16.mxu0 %v9842_v6 }
 0x732   : > { %7739 = vmatpush1.bf16.msra.mxu0 %v9840_v24 }
 0x7a2   : > { %v6501_v37 = vpop.f32.mrb[32].mxu0 }
 0x7a3   : > { %v6503_v27 = vpop.f32.mrb[33].mxu0 }
 0x7a4   : > { %v6505_v52 = vpop.f32.mrb[34].mxu0 }
 0x7a5   : > { %v6580_v47 = vpack.c.bf16 %v6505_v52, %v6501_v37  ;;  %v6507_v0 = vpop.f32.mrb[35].mxu0 }
 0x7a6   : > { %v6581_v59 = vpack.c.bf16 %v6507_v0, %v6503_v27 }
 0x7a7   : > { %v6634_v61 = vadd.bf16 %v12968_v36, %v6580_v47 }
 0x7a8   : > { %v6635_v18 = vadd.bf16 %v12971_v63, %v6581_v59 }
 0x7a9   : > { %v6650_v22 = vmax.bf16 %v13513_v31, %v6634_v61 }
 0x7aa   : > { %v6511_v13 = vpop.f32.mrb[36].mxu0  ;;  %v6651_v60 = vmax.bf16 %v13513_v31, %v6635_v18 }
 0x7ab   : > { %v6513_v41 = vpop.f32.mrb[37].mxu0 }
 0x7ac   : > { %v6515_v51 = vpop.f32.mrb[38].mxu0  ;;  %7321 = vmatprep.mubr.bf16.mxu1 %v6651_v60 }
 0x7ad   : > { %v6582_v28 = vpack.c.bf16 %v6515_v51, %v6511_v13  ;;  %v6517_v43 = vpop.f32.mrb[39].mxu0  ;;  %7322 = vmatmul.mubr.bf16.vlgmr.msra.gmra.mrb[96].mxu1 %v6650_v22 }
 0x7ae   : > { %v6583_v53 = vpack.c.bf16 %v6517_v43, %v6513_v41 }
 0x7af   : > { %v6636_v1 = vadd.bf16 %v12968_v36, %v6582_v28 }
 0x7b0   : > { %v6637_v2 = vadd.bf16 %v12971_v63, %v6583_v53 }
 0x7b1   : > { %v6652_v12 = vmax.bf16 %v13513_v31, %v6636_v1 }
 0x7b2   : > { %v6521_v7 = vpop.f32.mrb[40].mxu0  ;;  %v6653_v62 = vmax.bf16 %v13513_v31, %v6637_v2 }
 0x7b3   : > { %v6523_v15 = vpop.f32.mrb[41].mxu0 }
 0x7b4   : > { %v6525_v9 = vpop.f32.mrb[42].mxu0  ;;  %7331 = vmatprep.mubr.bf16.mxu1 %v6653_v62 }
 0x7b5   : > { %v6584_v39 = vpack.c.bf16 %v6525_v9, %v6521_v7  ;;  %v6527_v8 = vpop.f32.mrb[43].mxu0  ;;  %7332 = vmatmul.mubr.bf16.gmra.mrb[100].mxu1 %v6652_v12  ;;  %v9843_v12 = vld [vmem:[#allocation9 + $0xe0] ss:$8 sps:$4 sm:$0xff]   ;;  %v9845_v9 = vld [vmem:[#allocation9 + $0xe4] ss:$8 sps:$4 sm:$0xff]  }
 0x7b6   : > { %v6585_v25 = vpack.c.bf16 %v6527_v8, %v6523_v15  ;;  %7740 = vmatprep.subr.bf16.mxu0 %v9845_v9  ;;  %v9846_v8 = vld [vmem:[#allocation9 + $0xf0] ss:$8 sps:$4 sm:$0xff]  }
 0x7b7   : > { %v6638_v58 = vadd.bf16 %v12968_v36, %v6584_v39  ;;  %v9848_v39 = vld [vmem:[#allocation9 + $0xf4] ss:$8 sps:$4 sm:$0xff]   ;;  %7741 = vmatpush1.bf16.msra.mxu0 %v9843_v12  ;;  %v9869_v12 = vld [vmem:[#allocation10 + $0x64] ss:$8 sps:$4 sm:$0xff]  }
 0x7b8   : > { %v6639_v10 = vadd.bf16 %v12971_v63, %v6585_v25  ;;  %7742 = vmatprep.subr.bf16.mxu0 %v9848_v39  ;;  %v9851_v25 = vld [vmem:[#allocation10 + $0x4] ss:$8 sps:$4 sm:$0xff]  }
 0x7b9   : > { %v6654_v50 = vmax.bf16 %v13513_v31, %v6638_v58 }
 0x7ba   : > { %v6531_v4 = vpop.f32.mrb[44].mxu0  ;;  %v6655_v42 = vmax.bf16 %v13513_v31, %v6639_v10 }
 0x7bb   : > { %v6533_v14 = vpop.f32.mrb[45].mxu0  ;;  %7743 = vmatpush1.bf16.msra.mxu0 %v9846_v8 }
 0x7bc   : > { %v6535_v21 = vpop.f32.mrb[46].mxu0  ;;  %7341 = vmatprep.mubr.bf16.mxu1 %v6655_v42  ;;  %8103 = vmatprep.subr.bf16.mxu0 %v9851_v25  ;;  %v9867_v25 = vld [vmem:[#allocation10 + $0x60] ss:$8 sps:$4 sm:$0xff]  }
 0x7bd   : > { %v6586_v57 = vpack.c.bf16 %v6535_v21, %v6531_v4  ;;  %v6537_v16 = vpop.f32.mrb[47].mxu0  ;;  %7342 = vmatmul.mubr.bf16.gmra.mrb[104].mxu1 %v6654_v50 }
 0x7be   : > { %v6587_v33 = vpack.c.bf16 %v6537_v16, %v6533_v14 }
 0x7bf   : > { %v6640_v19 = vadd.bf16 %v12968_v36, %v6586_v57 }
 0x7c0   : > { %v6641_v20 = vadd.bf16 %v12971_v63, %v6587_v33 }
 0x7c1   : > { %v6656_v26 = vmax.bf16 %v13513_v31, %v6640_v19 }
 0x7c2   : > { %v6541_v34 = vpop.f32.mrb[48].mxu0  ;;  %v6657_v17 = vmax.bf16 %v13513_v31, %v6641_v20 }
 0x7c3   : > { %v6543_v5 = vpop.f32.mrb[49].mxu0 }
 0x7c4   : > { %v6545_v23 = vpop.f32.mrb[50].mxu0  ;;  %7351 = vmatprep.mubr.bf16.mxu1 %v6657_v17 }
 0x7c5   : > { %v6588_v11 = vpack.c.bf16 %v6545_v23, %v6541_v34  ;;  %v6547_v30 = vpop.f32.mrb[51].mxu0  ;;  %7352 = vmatmul.mubr.bf16.gmra.mrb[108].mxu1 %v6656_v26  ;;  %v9849_v23 = vld [vmem:[#allocation10] ss:$8 sps:$4 sm:$0xff]  }
 0x7c6   : > { %v6589_v48 = vpack.c.bf16 %v6547_v30, %v6543_v5 }
 0x7c7   : > { %v6642_v35 = vadd.bf16 %v12968_v36, %v6588_v11 }
 0x7c8   : > { %v6643_v45 = vadd.bf16 %v12971_v63, %v6589_v48  ;;  %v9854_v48 = vld [vmem:[#allocation10 + $0x14] ss:$8 sps:$4 sm:$0xff]  }
 0x7c9   : > { %v6658_v46 = vmax.bf16 %v13513_v31, %v6642_v35 }
 0x7ca   : > { %v6551_v32 = vpop.f32.mrb[52].mxu0  ;;  %v6659_v56 = vmax.bf16 %v13513_v31, %v6643_v45 }
 0x7cb   : > { %v6553_v38 = vpop.f32.mrb[53].mxu0 }
 0x7cc   : > { %v6555_v6 = vpop.f32.mrb[54].mxu0  ;;  %7361 = vmatprep.mubr.bf16.mxu1 %v6659_v56 }
 0x7cd   : > { %v6590_v49 = vpack.c.bf16 %v6555_v6, %v6551_v32  ;;  %v6557_v24 = vpop.f32.mrb[55].mxu0  ;;  %7362 = vmatmul.mubr.bf16.gmra.mrb[112].mxu1 %v6658_v46  ;;  %v9857_v6 = vld [vmem:[#allocation10 + $0x24] ss:$8 sps:$4 sm:$0xff]  }
 0x7ce   : > { %v6591_v3 = vpack.c.bf16 %v6557_v24, %v6553_v38  ;;  %v9852_v38 = vld [vmem:[#allocation10 + $0x10] ss:$8 sps:$4 sm:$0xff]  }
 0x7cf   : > { %v6644_v55 = vadd.bf16 %v12968_v36, %v6590_v49 }
 0x7d0   : > { %v6645_v54 = vadd.bf16 %v12971_v63, %v6591_v3 }
 0x7d1   : > { %v6660_v52 = vmax.bf16 %v13513_v31, %v6644_v55  ;;  %v9855_v55 = vld [vmem:[#allocation10 + $0x20] ss:$8 sps:$4 sm:$0xff]  }
 0x7d2   : > { %v6561_v29 = vpop.f32.mrb[56].mxu0  ;;  %v6661_v37 = vmax.bf16 %v13513_v31, %v6645_v54 }
 0x7d3   : > { %v6563_v27 = vpop.f32.mrb[57].mxu0 }
 0x7d4   : > { %v6565_v47 = vpop.f32.mrb[58].mxu0  ;;  %7371 = vmatprep.mubr.bf16.mxu1 %v6661_v37  ;;  %v9860_v37 = vld [vmem:[#allocation10 + $0x34] ss:$8 sps:$4 sm:$0xff]  }
 0x7d5   : > { %v6592_v0 = vpack.c.bf16 %v6565_v47, %v6561_v29  ;;  %v6567_v59 = vpop.f32.mrb[59].mxu0  ;;  %7372 = vmatmul.mubr.bf16.gmra.mrb[116].mxu1 %v6660_v52 }
 0x7d6   : > { %v6593_v61 = vpack.c.bf16 %v6567_v59, %v6563_v27  ;;  %v9858_v59 = vld [vmem:[#allocation10 + $0x30] ss:$8 sps:$4 sm:$0xff]  }
 0x7d7   : > { %v6646_v18 = vadd.bf16 %v12968_v36, %v6592_v0 }
 0x7d8   : > { %v6647_v13 = vadd.bf16 %v12971_v63, %v6593_v61 }
 0x7d9   : > { %v6662_v51 = vmax.bf16 %v13513_v31, %v6646_v18  ;;  %v9863_v18 = vld [vmem:[#allocation10 + $0x44] ss:$8 sps:$4 sm:$0xff]  }
 0x7da   : > { %v6571_v60 = vpop.f32.mrb[60].mxu0  ;;  %v6663_v22 = vmax.bf16 %v13513_v31, %v6647_v13 }
 0x7db   : > { %v6573_v41 = vpop.f32.mrb[61].mxu0 }
 0x7dc   : > { %v6575_v28 = vpop.f32.mrb[62].mxu0  ;;  %7381 = vmatprep.mubr.bf16.mxu1 %v6663_v22 }
 0x7dd   : > { %v6594_v43 = vpack.c.bf16 %v6575_v28, %v6571_v60  ;;  %v6577_v53 = vpop.f32.mrb[63].mxu0  ;;  %7382 = vmatmul.mubr.bf16.gmra.mrb[120].mxu1 %v6662_v51 }
 0x7de   : > { %v6595_v1 = vpack.c.bf16 %v6577_v53, %v6573_v41  ;;  %v9861_v41 = vld [vmem:[#allocation10 + $0x40] ss:$8 sps:$4 sm:$0xff]  }
 0x7df   : > { %v6648_v2 = vadd.bf16 %v12968_v36, %v6594_v43  ;;  %v9050_v36 = vld.sshfl [vmem:[%s13263_s18] sm:$0x11 pattern:$0x75316420]  ;;  %v9866_v43 = vld [vmem:[#allocation10 + $0x54] ss:$8 sps:$4 sm:$0xff]  }
 0x7e0   : > { %v6649_v7 = vadd.bf16 %v12971_v63, %v6595_v1  ;;  %v7459_v63 = vcombine.high %v9050_v36, %v9050_v36  ;;  %v7466_v58 = vrot.slane %v9050_v36, %v12684_v40 }
 0x7e1   : > { %v6664_v15 = vmax.bf16 %v13513_v31, %v6648_v2 }
 0x7e2   : > { %v6665_v62 = vmax.bf16 %v13513_v31, %v6649_v7  ;;  %v7473_v10 = vrot.slane %v7459_v63, %v12684_v40  ;;  %v7475_v4 = vpack.i.b16 %v7466_v58, %v7466_v58  ;;  %v9872_v58 = vld [vmem:[#allocation10 + $0x74] ss:$8 sps:$4 sm:$0xff]  }
 0x7e4   : > { %7391 = vmatprep.mubr.bf16.mxu1 %v6665_v62  ;;  %v7482_v42 = vpack.i.b16 %v7473_v10, %v7473_v10  ;;  %v13011_v21 = vrot.slane %v7475_v4, %v13625_v44  ;;  %v9864_v62 = vld [vmem:[#allocation10 + $0x50] ss:$8 sps:$4 sm:$0xff]  }
 0x7e5   : > { %7392 = vmatmul.mubr.bf16.gmra.mrb[124].mxu1 %v6664_v15 }
 0x7e6   : > { %v13014_v16 = vrot.slane %v7482_v42, %v13625_v44 }
 0x880   : > { %v7323_v14 = vpop.f32.mrb[96].mxu1 }
 0x881   : > { %v7325_v50 = vpop.f32.mrb[97].mxu1 }
 0x882   : > { %v7327_v57 = vpop.f32.mrb[98].mxu1 }
 0x883   : > { %v7434_v33 = vpack.c.bf16 %v7327_v57, %v7323_v14  ;;  %v7329_v19 = vpop.f32.mrb[99].mxu1 }
 0x884   : > { %v7435_v20 = vpack.c.bf16 %v7329_v19, %v7325_v50  ;;  %v9870_v50 = vld [vmem:[#allocation10 + $0x70] ss:$8 sps:$4 sm:$0xff]  }
 0x885   : > { %v7488_v34 = vadd.bf16 %v13011_v21, %v7434_v33  ;;  %v9875_v33 = vld [vmem:[#allocation10 + $0x84] ss:$8 sps:$4 sm:$0xff]  }
 0x886   : > { %v7489_v17 = vadd.bf16 %v13014_v16, %v7435_v20 }
 0x887   : > { %v7504_v11 = vmax.bf16 %v13513_v31, %v7488_v34 }
 0x888   : > { %v7333_v5 = vpop.f32.mrb[100].mxu1  ;;  %v7505_v26 = vmax.bf16 %v13513_v31, %v7489_v17  ;;  %v9873_v17 = vld [vmem:[#allocation10 + $0x80] ss:$8 sps:$4 sm:$0xff]  }
 0x889   : > { %v7335_v30 = vpop.f32.mrb[101].mxu1 }
 0x88a   : > { %v7337_v35 = vpop.f32.mrb[102].mxu1  ;;  %7744 = vmatprep.mubr.bf16.mxu0 %v7505_v26 }
 0x88b   : > { %v7436_v45 = vpack.c.bf16 %v7337_v35, %v7333_v5  ;;  %v7339_v32 = vpop.f32.mrb[103].mxu1  ;;  %7745 = vmatmul.mubr.bf16.vlgmr.msra.gmra.mrb[64].mxu0 %v7504_v11 }
 0x88c   : > { %v7437_v56 = vpack.c.bf16 %v7339_v32, %v7335_v30  ;;  %8104 = vmatpush1.bf16.msra.mxu0 %v9849_v23  ;;  %v9878_v23 = vld [vmem:[#allocation10 + $0x94] ss:$8 sps:$4 sm:$0xff]  }
 0x88d   : > { %v7490_v46 = vadd.bf16 %v13011_v21, %v7436_v45  ;;  %8105 = vmatprep.subr.bf16.mxu0 %v9854_v48  ;;  %v9876_v45 = vld [vmem:[#allocation10 + $0x90] ss:$8 sps:$4 sm:$0xff]  }
 0x88e   : > { %v7491_v49 = vadd.bf16 %v13014_v16, %v7437_v56  ;;  %v9881_v56 = vld [vmem:[#allocation10 + $0xa4] ss:$8 sps:$4 sm:$0xff]  }
 0x88f   : > { %v7506_v29 = vmax.bf16 %v13513_v31, %v7490_v46 }
 0x890   : > { %v7343_v24 = vpop.f32.mrb[104].mxu1  ;;  %v7507_v3 = vmax.bf16 %v13513_v31, %v7491_v49  ;;  %8106 = vmatpush1.bf16.msra.mxu0 %v9852_v38  ;;  %v9879_v49 = vld [vmem:[#allocation10 + $0xa0] ss:$8 sps:$4 sm:$0xff]  }
 0x891   : > { %v7345_v54 = vpop.f32.mrb[105].mxu1  ;;  %8107 = vmatprep.subr.bf16.mxu0 %v9857_v6 }
 0x892   : > { %v7347_v27 = vpop.f32.mrb[106].mxu1  ;;  %7754 = vmatprep.mubr.bf16.mxu0 %v7507_v3 }
 0x893   : > { %v7438_v52 = vpack.c.bf16 %v7347_v27, %v7343_v24  ;;  %v7349_v47 = vpop.f32.mrb[107].mxu1  ;;  %7755 = vmatmul.mubr.bf16.gmra.mrb[68].mxu0 %v7506_v29 }
 0x894   : > { %v7439_v0 = vpack.c.bf16 %v7349_v47, %v7345_v54  ;;  %8108 = vmatpush1.bf16.msra.mxu0 %v9855_v55  ;;  %v9884_v55 = vld [vmem:[#allocation10 + $0xb4] ss:$8 sps:$4 sm:$0xff]  }
 0x895   : > { %v7492_v61 = vadd.bf16 %v13011_v21, %v7438_v52  ;;  %8109 = vmatprep.subr.bf16.mxu0 %v9860_v37  ;;  %v9882_v52 = vld [vmem:[#allocation10 + $0xb0] ss:$8 sps:$4 sm:$0xff]  }
 0x896   : > { %v7493_v13 = vadd.bf16 %v13014_v16, %v7439_v0  ;;  %v9887_v0 = vld [vmem:[#allocation10 + $0xc4] ss:$8 sps:$4 sm:$0xff]  }
 0x897   : > { %v7508_v28 = vmax.bf16 %v13513_v31, %v7492_v61 }
 0x898   : > { %v7353_v60 = vpop.f32.mrb[108].mxu1  ;;  %v7509_v22 = vmax.bf16 %v13513_v31, %v7493_v13  ;;  %8110 = vmatpush1.bf16.msra.mxu0 %v9858_v59  ;;  %v9885_v13 = vld [vmem:[#allocation10 + $0xc0] ss:$8 sps:$4 sm:$0xff]  }
 0x899   : > { %v7355_v51 = vpop.f32.mrb[109].mxu1  ;;  %8111 = vmatprep.subr.bf16.mxu0 %v9863_v18 }
 0x89a   : > { %v7357_v53 = vpop.f32.mrb[110].mxu1  ;;  %7764 = vmatprep.mubr.bf16.mxu0 %v7509_v22 }
 0x89b   : > { %v7440_v1 = vpack.c.bf16 %v7357_v53, %v7353_v60  ;;  %v7359_v2 = vpop.f32.mrb[111].mxu1  ;;  %7765 = vmatmul.mubr.bf16.gmra.mrb[72].mxu0 %v7508_v28 }
 0x89c   : > { %v7441_v7 = vpack.c.bf16 %v7359_v2, %v7355_v51  ;;  %8112 = vmatpush1.bf16.msra.mxu0 %v9861_v41  ;;  %v9890_v41 = vld [vmem:[#allocation10 + $0xd4] ss:$8 sps:$4 sm:$0xff]  }
 0x89d   : > { %v7494_v15 = vadd.bf16 %v13011_v21, %v7440_v1  ;;  %8113 = vmatprep.subr.bf16.mxu0 %v9866_v43  ;;  %v9888_v1 = vld [vmem:[#allocation10 + $0xd0] ss:$8 sps:$4 sm:$0xff]  }
 0x89e   : > { %v7495_v9 = vadd.bf16 %v13014_v16, %v7441_v7 }
 0x89f   : > { %v7510_v63 = vmax.bf16 %v13513_v31, %v7494_v15 }
 0x8a0   : > { %v7363_v39 = vpop.f32.mrb[112].mxu1  ;;  %v7511_v8 = vmax.bf16 %v13513_v31, %v7495_v9  ;;  %8114 = vmatpush1.bf16.msra.mxu0 %v9864_v62  ;;  %v9893_v9 = vld [vmem:[#allocation10 + $0xe4] ss:$8 sps:$4 sm:$0xff]  }
 0x8a1   : > { %v7365_v36 = vpop.f32.mrb[113].mxu1  ;;  %8115 = vmatprep.subr.bf16.mxu0 %v9869_v12  ;;  %v9891_v12 = vld [vmem:[#allocation10 + $0xe0] ss:$8 sps:$4 sm:$0xff]  }
 0x8a2   : > { %v7367_v10 = vpop.f32.mrb[114].mxu1  ;;  %7774 = vmatprep.mubr.bf16.mxu0 %v7511_v8  ;;  %v9894_v8 = vld [vmem:[#allocation10 + $0xf0] ss:$8 sps:$4 sm:$0xff]  }
 0x8a3   : > { %v7442_v4 = vpack.c.bf16 %v7367_v10, %v7363_v39  ;;  %v7369_v42 = vpop.f32.mrb[115].mxu1  ;;  %7775 = vmatmul.mubr.bf16.gmra.mrb[76].mxu0 %v7510_v63  ;;  %v9896_v39 = vld [vmem:[#allocation10 + $0xf4] ss:$8 sps:$4 sm:$0xff]  }
 0x8a4   : > { %v7443_v14 = vpack.c.bf16 %v7369_v42, %v7365_v36  ;;  %8116 = vmatpush1.bf16.msra.mxu0 %v9867_v25 }
 0x8a5   : > { %v7496_v57 = vadd.bf16 %v13011_v21, %v7442_v4  ;;  %8117 = vmatprep.subr.bf16.mxu0 %v9872_v58 }
 0x8a6   : > { %v7497_v19 = vadd.bf16 %v13014_v16, %v7443_v14 }
 0x8a7   : > { %v7512_v26 = vmax.bf16 %v13513_v31, %v7496_v57 }
 0x8a8   : > { %v7373_v20 = vpop.f32.mrb[116].mxu1  ;;  %v7513_v34 = vmax.bf16 %v13513_v31, %v7497_v19  ;;  %8118 = vmatpush1.bf16.msra.mxu0 %v9870_v50 }
 0x8a9   : > { %v7375_v5 = vpop.f32.mrb[117].mxu1  ;;  %8119 = vmatprep.subr.bf16.mxu0 %v9875_v33 }
 0x8aa   : > { %v7377_v11 = vpop.f32.mrb[118].mxu1  ;;  %7784 = vmatprep.mubr.bf16.mxu0 %v7513_v34 }
 0x8ab   : > { %v7444_v30 = vpack.c.bf16 %v7377_v11, %v7373_v20  ;;  %v7379_v48 = vpop.f32.mrb[119].mxu1  ;;  %7785 = vmatmul.mubr.bf16.gmra.mrb[80].mxu0 %v7512_v26 }
 0x8ac   : > { %v7445_v35 = vpack.c.bf16 %v7379_v48, %v7375_v5  ;;  %8120 = vmatpush1.bf16.msra.mxu0 %v9873_v17  ;;  %v9899_v48 = vld [vmem:[%s13633_s5 + $0x48] sm:$0xff]  }
 0x8ad   : > { %v7498_v32 = vadd.bf16 %v13011_v21, %v7444_v30  ;;  %8121 = vmatprep.subr.bf16.mxu0 %v9878_v23  ;;  %v9898_v23 = vld [vmem:[%s13633_s5] sm:$0xff]  }
 0x8ae   : > { %v7499_v38 = vadd.bf16 %v13014_v16, %v7445_v35 }
 0x8af   : > { %v7514_v3 = vmax.bf16 %v13513_v31, %v7498_v32 }
 0x8b0   : > { %v7383_v46 = vpop.f32.mrb[120].mxu1  ;;  %v7515_v6 = vmax.bf16 %v13513_v31, %v7499_v38  ;;  %8122 = vmatpush1.bf16.msra.mxu0 %v9876_v45  ;;  %v9900_v38 = vld [vmem:[%s13633_s5 + $0x8] sm:$0xff]  }
 0x8b1   : > { %v7385_v24 = vpop.f32.mrb[121].mxu1  ;;  %8123 = vmatprep.subr.bf16.mxu0 %v9881_v56 }
 0x8b2   : > { %v7387_v54 = vpop.f32.mrb[122].mxu1  ;;  %7794 = vmatprep.mubr.bf16.mxu0 %v7515_v6  ;;  %v9901_v6 = vld [vmem:[%s13633_s5 + $0x50] sm:$0xff]  }
 0x8b3   : > { %v7446_v29 = vpack.c.bf16 %v7387_v54, %v7383_v46  ;;  %v7389_v37 = vpop.f32.mrb[123].mxu1  ;;  %7795 = vmatmul.mubr.bf16.gmra.mrb[84].mxu0 %v7514_v3 }
 0x8b4   : > { %v7447_v27 = vpack.c.bf16 %v7389_v37, %v7385_v24  ;;  %8124 = vmatpush1.bf16.msra.mxu0 %v9879_v49  ;;  %v9903_v37 = vld [vmem:[%s13633_s5 + $0x58] sm:$0xff]  }
 0x8b5   : > { %v7500_v47 = vadd.bf16 %v13011_v21, %v7446_v29  ;;  %8125 = vmatprep.subr.bf16.mxu0 %v9884_v55  ;;  %v9902_v55 = vld [vmem:[%s13633_s5 + $0x10] sm:$0xff]  }
 0x8b6   : > { %v7501_v59 = vadd.bf16 %v13014_v16, %v7447_v27 }
 0x8b7   : > { %v7516_v22 = vmax.bf16 %v13513_v31, %v7500_v47 }
 0x8b8   : > { %v7393_v61 = vpop.f32.mrb[124].mxu1  ;;  %v7517_v18 = vmax.bf16 %v13513_v31, %v7501_v59  ;;  %8126 = vmatpush1.bf16.msra.mxu0 %v9882_v52  ;;  %v9904_v59 = vld [vmem:[%s13633_s5 + $0x18] sm:$0xff]  }
 0x8b9   : > { %v7395_v60 = vpop.f32.mrb[125].mxu1  ;;  %8127 = vmatprep.subr.bf16.mxu0 %v9887_v0 }
 0x8ba   : > { %v7397_v51 = vpop.f32.mrb[126].mxu1  ;;  %7804 = vmatprep.mubr.bf16.mxu0 %v7517_v18  ;;  %v9905_v18 = vld [vmem:[%s13633_s5 + $0x60] sm:$0xff]  }
 0x8bb   : > { %v7448_v28 = vpack.c.bf16 %v7397_v51, %v7393_v61  ;;  %v7399_v43 = vpop.f32.mrb[127].mxu1  ;;  %7805 = vmatmul.mubr.bf16.gmra.mrb[88].mxu0 %v7516_v22 }
 0x8bc   : > { %v7449_v53 = vpack.c.bf16 %v7399_v43, %v7395_v60  ;;  %8128 = vmatpush1.bf16.msra.mxu0 %v9885_v13  ;;  %v9907_v43 = vld [vmem:[%s13633_s5 + $0x68] sm:$0xff]  }
 0x8bd   : > { %v7502_v2 = vadd.bf16 %v13011_v21, %v7448_v28  ;;  %8129 = vmatprep.subr.bf16.mxu0 %v9890_v41  ;;  %v9897_v21 = vld [vmem:[%s13633_s5 + $0x40] sm:$0xff]  }
 0x8be   : > { %v7503_v7 = vadd.bf16 %v13014_v16, %v7449_v53  ;;  %v9083_v16 = vld.sshfl [vmem:[%s13634_s22] sm:$0x11 pattern:$0x75316420]  ;;  %s13637_s22 = sld [smem:[#allocation64_spill]] }
 0x8bf   : > { %v7518_v15 = vmax.bf16 %v13513_v31, %v7502_v2  ;;  %v7850_v25 = vcombine.high %v9083_v16, %v9083_v16  ;;  %v7857_v36 = vrot.slane %v9083_v16, %v12684_v40  ;;  %v9906_v41 = vld [vmem:[%s13633_s5 + $0x20] sm:$0xff]  }
 0x8c0   : > { %v7519_v62 = vmax.bf16 %v13513_v31, %v7503_v7  ;;  %8130 = vmatpush1.bf16.msra.mxu0 %v9888_v1 }
 0x8c1   : > { %8131 = vmatprep.subr.bf16.mxu0 %v9893_v9  ;;  %v7864_v63 = vrot.slane %v7850_v25, %v12684_v40  ;;  %v7866_v58 = vpack.i.b16 %v7857_v36, %v7857_v36 }
 0x8c2   : > { %7814 = vmatprep.mubr.bf16.mxu0 %v7519_v62  ;;  %v9908_v62 = vld [vmem:[%s13633_s5 + $0x28] sm:$0xff]  }
 0x8c3   : > { %7815 = vmatmul.mubr.bf16.gmra.mrb[92].mxu0 %v7518_v15  ;;  %v7873_v10 = vpack.i.b16 %v7864_v63, %v7864_v63  ;;  %v13057_v14 = vrot.slane %v7866_v58, %v13625_v44 }
 0x8c4   : > { %8132 = vmatpush1.bf16.msra.mxu0 %v9891_v12  ;;  %v9909_v12 = vld [vmem:[%s13633_s5 + $0x70] sm:$0xff]   ;;  %s13192_s24 = scalar_lea.vmem %s13637_s22, %s8684_s8 }
 0x8c5   : > { %8133 = vmatprep.subr.bf16.mxu0 %v9896_v39  ;;  %v13060_v57 = vrot.slane %v7873_v10, %v13625_v44 }
 0x8c8   : > { %8134 = vmatpush1.bf16.msra.mxu0 %v9894_v8 }
 0x8c9   : > { %9136 = vmatprep.subr.bf16.mxu0 %v9897_v21  ;;  %v9910_v21 = vld [vmem:[%s13633_s5 + $0x30] sm:$0xff]  }
 0x95e   : > { %v7746_v4 = vpop.f32.mrb[64].mxu0 }
 0x95f   : > { %v7748_v42 = vpop.f32.mrb[65].mxu0 }
 0x960   : > { %v7750_v50 = vpop.f32.mrb[66].mxu0 }
 0x961   : > { %v7825_v33 = vpack.c.bf16 %v7750_v50, %v7746_v4  ;;  %v7752_v19 = vpop.f32.mrb[67].mxu0 }
 0x962   : > { %v7826_v20 = vpack.c.bf16 %v7752_v19, %v7748_v42 }
 0x963   : > { %v7879_v34 = vadd.bf16 %v13057_v14, %v7825_v33 }
 0x964   : > { %v7880_v17 = vadd.bf16 %v13060_v57, %v7826_v20 }
 0x965   : > { %v7895_v11 = vmax.bf16 %v13513_v31, %v7879_v34 }
 0x966   : > { %v7756_v5 = vpop.f32.mrb[68].mxu0  ;;  %v7896_v26 = vmax.bf16 %v13513_v31, %v7880_v17 }
 0x967   : > { %v7758_v30 = vpop.f32.mrb[69].mxu0 }
 0x968   : > { %v7760_v35 = vpop.f32.mrb[70].mxu0  ;;  %8135 = vmatprep.mubr.bf16.mxu0 %v7896_v26 }
 0x969   : > { %v7827_v45 = vpack.c.bf16 %v7760_v35, %v7756_v5  ;;  %v7762_v32 = vpop.f32.mrb[71].mxu0  ;;  %8136 = vmatmul.mubr.bf16.vlgmr.msra.gmra.mrb[96].mxu0 %v7895_v11 }
 0x96a   : > { %v7828_v56 = vpack.c.bf16 %v7762_v32, %v7758_v30  ;;  %9137 = vmatpush3.bf16.msra.mxu0 %v9898_v23 }
 0x96b   : > { %v7881_v46 = vadd.bf16 %v13057_v14, %v7827_v45  ;;  %9138 = vmatprep.subr.bf16.mxu0 %v9899_v48 }
 0x96c   : > { %v7882_v49 = vadd.bf16 %v13060_v57, %v7828_v56 }
 0x96d   : > { %v7897_v29 = vmax.bf16 %v13513_v31, %v7881_v46 }
 0x96e   : > { %v7766_v24 = vpop.f32.mrb[72].mxu0  ;;  %v7898_v3 = vmax.bf16 %v13513_v31, %v7882_v49  ;;  %9139 = vmatpush3.bf16.msra.mxu0 %v9900_v38 }
 0x96f   : > { %v7768_v54 = vpop.f32.mrb[73].mxu0  ;;  %9140 = vmatprep.subr.bf16.mxu0 %v9901_v6 }
 0x970   : > { %v7770_v27 = vpop.f32.mrb[74].mxu0  ;;  %8145 = vmatprep.mubr.bf16.mxu0 %v7898_v3 }
 0x971   : > { %v7829_v52 = vpack.c.bf16 %v7770_v27, %v7766_v24  ;;  %v7772_v47 = vpop.f32.mrb[75].mxu0  ;;  %8146 = vmatmul.mubr.bf16.gmra.mrb[100].mxu0 %v7897_v29 }
 0x972   : > { %v7830_v0 = vpack.c.bf16 %v7772_v47, %v7768_v54  ;;  %9141 = vmatpush3.bf16.msra.mxu0 %v9902_v55 }
 0x973   : > { %v7883_v61 = vadd.bf16 %v13057_v14, %v7829_v52  ;;  %9142 = vmatprep.subr.bf16.mxu0 %v9903_v37 }
 0x974   : > { %v7884_v13 = vadd.bf16 %v13060_v57, %v7830_v0 }
 0x975   : > { %v7899_v28 = vmax.bf16 %v13513_v31, %v7883_v61 }
 0x976   : > { %v7776_v60 = vpop.f32.mrb[76].mxu0  ;;  %v7900_v22 = vmax.bf16 %v13513_v31, %v7884_v13  ;;  %9143 = vmatpush3.bf16.msra.mxu0 %v9904_v59  ;;  %v9912_v13 = vld [vmem:[%s13633_s5 + $0x38] sm:$0xff]  }
 0x977   : > { %v7778_v51 = vpop.f32.mrb[77].mxu0  ;;  %9144 = vmatprep.subr.bf16.mxu0 %v9905_v18  ;;  %v9911_v18 = vld [vmem:[%s13633_s5 + $0x78] sm:$0xff]  }
 0x978   : > { %v7780_v53 = vpop.f32.mrb[78].mxu0  ;;  %8155 = vmatprep.mubr.bf16.mxu0 %v7900_v22 }
 0x979   : > { %v7831_v1 = vpack.c.bf16 %v7780_v53, %v7776_v60  ;;  %v7782_v2 = vpop.f32.mrb[79].mxu0  ;;  %8156 = vmatmul.mubr.bf16.gmra.mrb[104].mxu0 %v7899_v28 }
 0x97a   : > { %v7832_v7 = vpack.c.bf16 %v7782_v2, %v7778_v51  ;;  %9145 = vmatpush3.bf16.msra.mxu0 %v9906_v41 }
 0x97b   : > { %v7885_v15 = vadd.bf16 %v13057_v14, %v7831_v1  ;;  %9146 = vmatprep.subr.bf16.mxu0 %v9907_v43 }
 0x97c   : > { %v7886_v9 = vadd.bf16 %v13060_v57, %v7832_v7 }
 0x97d   : > { %v7901_v25 = vmax.bf16 %v13513_v31, %v7885_v15 }
 0x97e   : > { %v7786_v39 = vpop.f32.mrb[80].mxu0  ;;  %v7902_v8 = vmax.bf16 %v13513_v31, %v7886_v9  ;;  %9147 = vmatpush3.bf16.msra.mxu0 %v9908_v62 }
 0x97f   : > { %v7788_v16 = vpop.f32.mrb[81].mxu0  ;;  %9148 = vmatprep.subr.bf16.mxu0 %v9909_v12 }
 0x980   : > { %v7790_v36 = vpop.f32.mrb[82].mxu0  ;;  %8165 = vmatprep.mubr.bf16.mxu0 %v7902_v8 }
 0x981   : > { %v7833_v63 = vpack.c.bf16 %v7790_v36, %v7786_v39  ;;  %v7792_v58 = vpop.f32.mrb[83].mxu0  ;;  %8166 = vmatmul.mubr.bf16.gmra.mrb[108].mxu0 %v7901_v25 }
 0x982   : > { %v7834_v10 = vpack.c.bf16 %v7792_v58, %v7788_v16  ;;  %9149 = vmatpush3.bf16.msra.mxu0 %v9910_v21 }
 0x983   : > { %v7887_v4 = vadd.bf16 %v13057_v14, %v7833_v63  ;;  %9150 = vmatprep.subr.bf16.mxu0 %v9911_v18 }
 0x984   : > { %v7888_v42 = vadd.bf16 %v13060_v57, %v7834_v10 }
 0x985   : > { %v7903_v20 = vmax.bf16 %v13513_v31, %v7887_v4 }
 0x986   : > { %v7796_v50 = vpop.f32.mrb[84].mxu0  ;;  %v7904_v33 = vmax.bf16 %v13513_v31, %v7888_v42  ;;  %9151 = vmatpush3.bf16.msra.mxu0 %v9912_v13 }
 0x987   : > { %v7798_v19 = vpop.f32.mrb[85].mxu0 }
 0x988   : > { %v7800_v34 = vpop.f32.mrb[86].mxu0  ;;  %8175 = vmatprep.mubr.bf16.mxu0 %v7904_v33 }
 0x989   : > { %v7835_v17 = vpack.c.bf16 %v7800_v34, %v7796_v50  ;;  %v7802_v5 = vpop.f32.mrb[87].mxu0  ;;  %8176 = vmatmul.mubr.bf16.gmra.mrb[112].mxu0 %v7903_v20 }
 0x98a   : > { %v7836_v26 = vpack.c.bf16 %v7802_v5, %v7798_v19 }
 0x98b   : > { %v7889_v23 = vadd.bf16 %v13057_v14, %v7835_v17 }
 0x98c   : > { %v7890_v11 = vadd.bf16 %v13060_v57, %v7836_v26 }
 0x98d   : > { %v7905_v45 = vmax.bf16 %v13513_v31, %v7889_v23 }
 0x98e   : > { %v7806_v30 = vpop.f32.mrb[88].mxu0  ;;  %v7906_v48 = vmax.bf16 %v13513_v31, %v7890_v11 }
 0x98f   : > { %v7808_v35 = vpop.f32.mrb[89].mxu0 }
 0x990   : > { %v7810_v32 = vpop.f32.mrb[90].mxu0  ;;  %8185 = vmatprep.mubr.bf16.mxu0 %v7906_v48 }
 0x991   : > { %v7837_v56 = vpack.c.bf16 %v7810_v32, %v7806_v30  ;;  %v7812_v38 = vpop.f32.mrb[91].mxu0  ;;  %8186 = vmatmul.mubr.bf16.gmra.mrb[116].mxu0 %v7905_v45 }
 0x992   : > { %v7838_v46 = vpack.c.bf16 %v7812_v38, %v7808_v35 }
 0x993   : > { %v7891_v6 = vadd.bf16 %v13057_v14, %v7837_v56 }
 0x994   : > { %v7892_v49 = vadd.bf16 %v13060_v57, %v7838_v46 }
 0x995   : > { %v7907_v54 = vmax.bf16 %v13513_v31, %v7891_v6 }
 0x996   : > { %v7816_v24 = vpop.f32.mrb[92].mxu0  ;;  %v7908_v3 = vmax.bf16 %v13513_v31, %v7892_v49 }
 0x997   : > { %v7818_v55 = vpop.f32.mrb[93].mxu0 }
 0x998   : > { %v7820_v29 = vpop.f32.mrb[94].mxu0  ;;  %8195 = vmatprep.mubr.bf16.mxu0 %v7908_v3 }
 0x999   : > { %v7839_v37 = vpack.c.bf16 %v7820_v29, %v7816_v24  ;;  %v7822_v27 = vpop.f32.mrb[95].mxu0  ;;  %8196 = vmatmul.mubr.bf16.gmra.mrb[120].mxu0 %v7907_v54 }
 0x99a   : > { %v7840_v52 = vpack.c.bf16 %v7822_v27, %v7818_v55 }
 0x99b   : > { %v7893_v47 = vadd.bf16 %v13057_v14, %v7839_v37  ;;  %v9116_v14 = vld.sshfl [vmem:[%s13635_s9] sm:$0x11 pattern:$0x75316420] }
 0x99c   : > { %v7894_v0 = vadd.bf16 %v13060_v57, %v7840_v52  ;;  %v8241_v57 = vcombine.high %v9116_v14, %v9116_v14  ;;  %v8248_v60 = vrot.slane %v9116_v14, %v12684_v40 }
 0x99d   : > { %v7909_v61 = vmax.bf16 %v13513_v31, %v7893_v47 }
 0x99e   : > { %v7910_v59 = vmax.bf16 %v13513_v31, %v7894_v0  ;;  %v8255_v22 = vrot.slane %v8241_v57, %v12684_v40  ;;  %v8257_v41 = vpack.i.b16 %v8248_v60, %v8248_v60 }
 0x9a0   : > { %8205 = vmatprep.mubr.bf16.mxu0 %v7910_v59  ;;  %v8264_v51 = vpack.i.b16 %v8255_v22, %v8255_v22  ;;  %v13145_v53 = vrot.slane %v8257_v41, %v13625_v44 }
 0x9a1   : > { %8206 = vmatmul.mubr.bf16.gmra.mrb[124].mxu0 %v7909_v61 }
 0x9a2   : > { %v13148_v2 = vrot.slane %v8264_v51, %v13625_v44 }
 0xa3c   : > { %v8137_v28 = vpop.f32.mrb[96].mxu0 }
 0xa3d   : > { %v8139_v43 = vpop.f32.mrb[97].mxu0 }
 0xa3e   : > { %v8141_v1 = vpop.f32.mrb[98].mxu0 }
 0xa3f   : > { %v8216_v7 = vpack.c.bf16 %v8141_v1, %v8137_v28  ;;  %v8143_v62 = vpop.f32.mrb[99].mxu0 }
 0xa40   : > { %v8217_v15 = vpack.c.bf16 %v8143_v62, %v8139_v43 }
 0xa41   : > { %v8270_v12 = vadd.bf16 %v13145_v53, %v8216_v7 }
 0xa42   : > { %v8271_v9 = vadd.bf16 %v13148_v2, %v8217_v15 }
 0xa43   : > { %v8286_v8 = vmax.bf16 %v13513_v31, %v8270_v12 }
 0xa44   : > { %v8147_v39 = vpop.f32.mrb[100].mxu0  ;;  %v8287_v40 = vmax.bf16 %v13513_v31, %v8271_v9 }
 0xa45   : > { %v8149_v21 = vpop.f32.mrb[101].mxu0 }
 0xa46   : > { %v8151_v16 = vpop.f32.mrb[102].mxu0  ;;  %8469 = vmatprep.mubr.bf16.mxu0 %v8287_v40 }
 0xa47   : > { %v8218_v25 = vpack.c.bf16 %v8151_v16, %v8147_v39  ;;  %v8153_v36 = vpop.f32.mrb[103].mxu0  ;;  %8470 = vmatmul.mubr.bf16.vlgmr.msra.gmra.mrb[128].mxu0 %v8286_v8 }
 0xa48   : > { %v8219_v44 = vpack.c.bf16 %v8153_v36, %v8149_v21 }
 0xa49   : > { %v8272_v63 = vadd.bf16 %v13145_v53, %v8218_v25 }
 0xa4a   : > { %v8273_v58 = vadd.bf16 %v13148_v2, %v8219_v44 }
 0xa4b   : > { %v8288_v50 = vmax.bf16 %v13513_v31, %v8272_v63 }
 0xa4c   : > { %v8157_v10 = vpop.f32.mrb[104].mxu0  ;;  %v8289_v4 = vmax.bf16 %v13513_v31, %v8273_v58 }
 0xa4d   : > { %v8159_v42 = vpop.f32.mrb[105].mxu0 }
 0xa4e   : > { %v8161_v33 = vpop.f32.mrb[106].mxu0  ;;  %8477 = vmatprep.mubr.bf16.mxu0 %v8289_v4 }
 0xa4f   : > { %v8220_v19 = vpack.c.bf16 %v8161_v33, %v8157_v10  ;;  %v8163_v20 = vpop.f32.mrb[107].mxu0  ;;  %8478 = vmatmul.mubr.bf16.gmra.mrb[132].mxu0 %v8288_v50 }
 0xa50   : > { %v8221_v34 = vpack.c.bf16 %v8163_v20, %v8159_v42  ;;  %v13185_v42 = vld [vmem:[%s13636_s6] ss:$0 sm:$0xff] }
 0xa51   : > { %v8274_v17 = vadd.bf16 %v13145_v53, %v8220_v19 }
 0xa52   : > { %v8275_v5 = vadd.bf16 %v13148_v2, %v8221_v34 }
 0xa53   : > { %v8290_v30 = vmax.bf16 %v13513_v31, %v8274_v17 }
 0xa54   : > { %v8167_v26 = vpop.f32.mrb[108].mxu0  ;;  %v8291_v23 = vmax.bf16 %v13513_v31, %v8275_v5 }
 0xa55   : > { %v8169_v11 = vpop.f32.mrb[109].mxu0 }
 0xa56   : > { %v8171_v48 = vpop.f32.mrb[110].mxu0  ;;  %8485 = vmatprep.mubr.bf16.mxu0 %v8291_v23 }
 0xa57   : > { %v8222_v35 = vpack.c.bf16 %v8171_v48, %v8167_v26  ;;  %v8173_v45 = vpop.f32.mrb[111].mxu0  ;;  %8486 = vmatmul.mubr.bf16.gmra.mrb[136].mxu0 %v8290_v30 }
 0xa58   : > { %v8223_v32 = vpack.c.bf16 %v8173_v45, %v8169_v11 }
 0xa59   : > { %v8276_v56 = vadd.bf16 %v13145_v53, %v8222_v35 }
 0xa5a   : > { %v8277_v38 = vadd.bf16 %v13148_v2, %v8223_v32 }
 0xa5b   : > { %v8292_v24 = vmax.bf16 %v13513_v31, %v8276_v56 }
 0xa5c   : > { %v8177_v46 = vpop.f32.mrb[112].mxu0  ;;  %v8293_v6 = vmax.bf16 %v13513_v31, %v8277_v38 }
 0xa5d   : > { %v8179_v49 = vpop.f32.mrb[113].mxu0 }
 0xa5e   : > { %v8181_v3 = vpop.f32.mrb[114].mxu0  ;;  %8493 = vmatprep.mubr.bf16.mxu0 %v8293_v6 }
 0xa5f   : > { %v8224_v55 = vpack.c.bf16 %v8181_v3, %v8177_v46  ;;  %v8183_v54 = vpop.f32.mrb[115].mxu0  ;;  %8494 = vmatmul.mubr.bf16.gmra.mrb[140].mxu0 %v8292_v24 }
 0xa60   : > { %v8225_v29 = vpack.c.bf16 %v8183_v54, %v8179_v49 }
 0xa61   : > { %v8278_v37 = vadd.bf16 %v13145_v53, %v8224_v55 }
 0xa62   : > { %v8279_v27 = vadd.bf16 %v13148_v2, %v8225_v29 }
 0xa63   : > { %v8294_v59 = vmax.bf16 %v13513_v31, %v8278_v37 }
 0xa64   : > { %v8187_v52 = vpop.f32.mrb[116].mxu0  ;;  %v8295_v47 = vmax.bf16 %v13513_v31, %v8279_v27 }
 0xa65   : > { %v8189_v0 = vpop.f32.mrb[117].mxu0 }
 0xa66   : > { %v8191_v61 = vpop.f32.mrb[118].mxu0  ;;  %8501 = vmatprep.mubr.bf16.mxu0 %v8295_v47 }
 0xa67   : > { %v8226_v18 = vpack.c.bf16 %v8191_v61, %v8187_v52  ;;  %v8193_v13 = vpop.f32.mrb[119].mxu0  ;;  %8502 = vmatmul.mubr.bf16.gmra.mrb[144].mxu0 %v8294_v59 }
 0xa68   : > { %v8227_v14 = vpack.c.bf16 %v8193_v13, %v8189_v0 }
 0xa69   : > { %v8280_v57 = vadd.bf16 %v13145_v53, %v8226_v18 }
 0xa6a   : > { %v8281_v60 = vadd.bf16 %v13148_v2, %v8227_v14 }
 0xa6b   : > { %v8296_v28 = vmax.bf16 %v13513_v31, %v8280_v57 }
 0xa6c   : > { %v8197_v22 = vpop.f32.mrb[120].mxu0  ;;  %v8297_v41 = vmax.bf16 %v13513_v31, %v8281_v60 }
 0xa6d   : > { %v8199_v51 = vpop.f32.mrb[121].mxu0 }
 0xa6e   : > { %v8201_v43 = vpop.f32.mrb[122].mxu0  ;;  %8509 = vmatprep.mubr.bf16.mxu0 %v8297_v41 }
 0xa6f   : > { %v8228_v1 = vpack.c.bf16 %v8201_v43, %v8197_v22  ;;  %v8203_v7 = vpop.f32.mrb[123].mxu0  ;;  %8510 = vmatmul.mubr.bf16.gmra.mrb[148].mxu0 %v8296_v28 }
 0xa70   : > { %v8229_v62 = vpack.c.bf16 %v8203_v7, %v8199_v51 }
 0xa71   : > { %v8282_v15 = vadd.bf16 %v13145_v53, %v8228_v1 }
 0xa72   : > { %v8283_v12 = vadd.bf16 %v13148_v2, %v8229_v62 }
 0xa73   : > { %v8298_v8 = vmax.bf16 %v13513_v31, %v8282_v15 }
 0xa74   : > { %v8207_v9 = vpop.f32.mrb[124].mxu0  ;;  %v8299_v39 = vmax.bf16 %v13513_v31, %v8283_v12 }
 0xa75   : > { %v8209_v40 = vpop.f32.mrb[125].mxu0 }
 0xa76   : > { %v8211_v21 = vpop.f32.mrb[126].mxu0  ;;  %8517 = vmatprep.mubr.bf16.mxu0 %v8299_v39 }
 0xa77   : > { %v8230_v16 = vpack.c.bf16 %v8211_v21, %v8207_v9  ;;  %v8213_v25 = vpop.f32.mrb[127].mxu0  ;;  %8518 = vmatmul.mubr.bf16.gmra.mrb[152].mxu0 %v8298_v8 }
 0xa78   : > { %v8231_v36 = vpack.c.bf16 %v8213_v25, %v8209_v40 }
 0xa79   : > { %v8284_v44 = vadd.bf16 %v13145_v53, %v8230_v16 }
 0xa7a   : > { %v8285_v63 = vadd.bf16 %v13148_v2, %v8231_v36 }
 0xa7b   : > { %v8300_v10 = vmax.bf16 %v13513_v31, %v8284_v44 }
 0xa7c   : > { %v8301_v58 = vmax.bf16 %v13513_v31, %v8285_v63 }
 0xa7e   : > { %8525 = vmatprep.mubr.bf16.mxu0 %v8301_v58 }
 0xa7f   : > { %8526 = vmatmul.mubr.bf16.gmra.mrb[156].mxu0 %v8300_v10 }
 0xb1a   : > { %v9152_v4 = vpop.f32.mrb[128].mxu0 }
 0xb1b   : > { %v9153_v50 = vpop.f32.mrb[129].mxu0 }
 0xb1c   : > { %v9154_v33 = vadd.f32 %v9153_v50, %v9152_v4  ;;  %v9155_v19 = vpop.f32.mrb[130].mxu0 }
 0xb1d   : > { %v9156_v31 = vpop.f32.mrb[131].mxu0 }
 0xb1e   : > { %v8472_v53 = vadd.f32 %v9154_v33, %v13185_v42  ;;  %v9157_v2 = vadd.f32 %v9156_v31, %v9155_v19 }
 0xb20   : > { %8534 = vst.msk [vmem:[%s13192_s24] sm:$0xff] %vm4678_vm6, %v8472_v53  ;;  %v8475_v20 = vadd.f32 %v9157_v2, %v13185_v42 }
 0xb22   : > { %8535 = vst.msk [vmem:[%s13192_s24 + $0x8] sm:$0xff] %vm4678_vm6, %v8475_v20  ;;  %v9158_v34 = vpop.f32.mrb[132].mxu0 }
 0xb23   : > { %v9159_v17 = vpop.f32.mrb[133].mxu0 }
 0xb24   : > { %v9160_v5 = vadd.f32 %v9159_v17, %v9158_v34  ;;  %v9161_v26 = vpop.f32.mrb[134].mxu0 }
 0xb25   : > { %v9162_v23 = vpop.f32.mrb[135].mxu0 }
 0xb26   : > { %v8480_v11 = vadd.f32 %v9160_v5, %v13185_v42  ;;  %v9163_v30 = vadd.f32 %v9162_v23, %v9161_v26 }
 0xb28   : > { %8536 = vst.msk [vmem:[%s13192_s24 + $0x10] sm:$0xff] %vm4678_vm6, %v8480_v11  ;;  %v8483_v48 = vadd.f32 %v9163_v30, %v13185_v42 }
 0xb2a   : > { %8537 = vst.msk [vmem:[%s13192_s24 + $0x18] sm:$0xff] %vm4678_vm6, %v8483_v48  ;;  %v9164_v35 = vpop.f32.mrb[136].mxu0 }
 0xb2b   : > { %v9165_v45 = vpop.f32.mrb[137].mxu0 }
 0xb2c   : > { %v9166_v32 = vadd.f32 %v9165_v45, %v9164_v35  ;;  %v9167_v56 = vpop.f32.mrb[138].mxu0 }
 0xb2d   : > { %v9168_v38 = vpop.f32.mrb[139].mxu0 }
 0xb2e   : > { %v8488_v46 = vadd.f32 %v9166_v32, %v13185_v42  ;;  %v9169_v6 = vadd.f32 %v9168_v38, %v9167_v56 }
 0xb30   : > { %8538 = vst.msk [vmem:[%s13192_s24 + $0x20] sm:$0xff] %vm4678_vm6, %v8488_v46  ;;  %v8491_v49 = vadd.f32 %v9169_v6, %v13185_v42 }
 0xb32   : > { %8539 = vst.msk [vmem:[%s13192_s24 + $0x28] sm:$0xff] %vm4678_vm6, %v8491_v49  ;;  %v9170_v24 = vpop.f32.mrb[140].mxu0 }
 0xb33   : > { %v9171_v3 = vpop.f32.mrb[141].mxu0 }
 0xb34   : > { %v9172_v55 = vadd.f32 %v9171_v3, %v9170_v24  ;;  %v9173_v54 = vpop.f32.mrb[142].mxu0 }
 0xb35   : > { %v9174_v29 = vpop.f32.mrb[143].mxu0 }
 0xb36   : > { %v8496_v37 = vadd.f32 %v9172_v55, %v13185_v42  ;;  %v9175_v27 = vadd.f32 %v9174_v29, %v9173_v54 }
 0xb38   : > { %8540 = vst.msk [vmem:[%s13192_s24 + $0x30] sm:$0xff] %vm4678_vm6, %v8496_v37  ;;  %v8499_v52 = vadd.f32 %v9175_v27, %v13185_v42 }
 0xb3a   : > { %8541 = vst.msk [vmem:[%s13192_s24 + $0x38] sm:$0xff] %vm4678_vm6, %v8499_v52  ;;  %v9176_v47 = vpop.f32.mrb[144].mxu0 }
 0xb3b   : > { %v9177_v0 = vpop.f32.mrb[145].mxu0 }
 0xb3c   : > { %v9178_v59 = vadd.f32 %v9177_v0, %v9176_v47  ;;  %v9179_v61 = vpop.f32.mrb[146].mxu0 }
 0xb3d   : > { %v9180_v18 = vpop.f32.mrb[147].mxu0 }
 0xb3e   : > { %v8504_v13 = vadd.f32 %v9178_v59, %v13185_v42  ;;  %v9181_v14 = vadd.f32 %v9180_v18, %v9179_v61 }
 0xb40   : > { %8542 = vst.msk [vmem:[%s13192_s24 + $0x40] sm:$0xff] %vm4678_vm6, %v8504_v13  ;;  %v8507_v57 = vadd.f32 %v9181_v14, %v13185_v42 }
 0xb42   : > { %8543 = vst.msk [vmem:[%s13192_s24 + $0x48] sm:$0xff] %vm4678_vm6, %v8507_v57  ;;  %v9182_v60 = vpop.f32.mrb[148].mxu0 }
 0xb43   : > { %v9183_v22 = vpop.f32.mrb[149].mxu0 }
 0xb44   : > { %v9184_v41 = vadd.f32 %v9183_v22, %v9182_v60  ;;  %v9185_v51 = vpop.f32.mrb[150].mxu0 }
 0xb45   : > { %v9186_v28 = vpop.f32.mrb[151].mxu0 }
 0xb46   : > { %v8512_v43 = vadd.f32 %v9184_v41, %v13185_v42  ;;  %v9187_v1 = vadd.f32 %v9186_v28, %v9185_v51 }
 0xb48   : > { %8544 = vst.msk [vmem:[%s13192_s24 + $0x50] sm:$0xff] %vm4678_vm6, %v8512_v43  ;;  %v8515_v7 = vadd.f32 %v9187_v1, %v13185_v42 }
 0xb4a   : > { %8545 = vst.msk [vmem:[%s13192_s24 + $0x58] sm:$0xff] %vm4678_vm6, %v8515_v7  ;;  %v9188_v62 = vpop.f32.mrb[152].mxu0 }
 0xb4b   : > { %v9189_v15 = vpop.f32.mrb[153].mxu0 }
 0xb4c   : > { %v9190_v12 = vadd.f32 %v9189_v15, %v9188_v62  ;;  %v9191_v9 = vpop.f32.mrb[154].mxu0 }
 0xb4d   : > { %v9192_v39 = vpop.f32.mrb[155].mxu0 }
 0xb4e   : > { %v8520_v40 = vadd.f32 %v9190_v12, %v13185_v42  ;;  %v9193_v8 = vadd.f32 %v9192_v39, %v9191_v9 }
 0xb50   : > { %8546 = vst.msk [vmem:[%s13192_s24 + $0x60] sm:$0xff] %vm4678_vm6, %v8520_v40  ;;  %v8523_v21 = vadd.f32 %v9193_v8, %v13185_v42 }
 0xb52   : > { %8547 = vst.msk [vmem:[%s13192_s24 + $0x68] sm:$0xff] %vm4678_vm6, %v8523_v21  ;;  %v9194_v16 = vpop.f32.mrb[156].mxu0 }
 0xb53   : > { %v9195_v25 = vpop.f32.mrb[157].mxu0 }
 0xb54   : > { %v9196_v36 = vadd.f32 %v9195_v25, %v9194_v16  ;;  %v9197_v44 = vpop.f32.mrb[158].mxu0 }
 0xb55   : > { %v9198_v63 = vpop.f32.mrb[159].mxu0 }
 0xb56   : > { %v8528_v58 = vadd.f32 %v9196_v36, %v13185_v42  ;;  %v9199_v10 = vadd.f32 %v9198_v63, %v9197_v44 }
 0xb58   : > { %8548 = vst.msk [vmem:[%s13192_s24 + $0x70] sm:$0xff] %vm4678_vm6, %v8528_v58  ;;  %v8531_v4 = vadd.f32 %v9199_v10, %v13185_v42 }
 0xb5a   : > { %8549 = vst.msk [vmem:[%s13192_s24 + $0x78] sm:$0xff] %vm4678_vm6, %v8531_v4 }
 0xb5b PF: > { %s39_s29 = sadd.s32 1, %s10181_s29  }
 0xb5c   : > { %p36_p3 = scmp.ge.s32.totalorder %s39_s29, 4  }
 0xb5e   :  { %38 = sbr.rel (!%p36_p3) target bundleno = 20 (0x14), region = 175 }
 0xb65   :  { %8572 = vsyncpa [#allocation3], 1 }
 0xb66   :  { %8574 = vsyncpa [#allocation3 + $0x1], 1 }
 0xb67   :  { %8575 = vsyncpa [#allocation5], 1 }
 0xb68   :  { %8576 = vsyncpa [#allocation8], 1 }
 0xb69   :  { %8577 = vsyncpa [#allocation11], 1 }

</bundles_post_ra>
